<compile_context>
chip_gen: v6e
topology: v6e:2x2x1
jax: 0.10.0
libtpu: 0.0.40
codegen_flags: <defaults>
</compile_context>

<pallas_src>
import functools

import jax
import jax.numpy as jnp
from jax.experimental import pallas as pl
from jax.experimental.pallas import tpu as pltpu

CP = 128      # lane-padded output-channel width for all conv matmuls
KSIZE = 4     # conv kernel size used by the model
_VMEM_LIMIT = 32 * 1024 * 1024


# ----------------------------------------------------------------------------
# Pallas kernels
# ----------------------------------------------------------------------------
def _matmul_bias_kernel(x_ref, w_ref, b_ref, o_ref, *, relu):
    y = jnp.dot(x_ref[...], w_ref[...], preferred_element_type=jnp.float32)
    y = y + b_ref[...]
    if relu:
        y = jnp.maximum(y, 0.0)
    o_ref[...] = y.astype(o_ref.dtype)


def matmul_bias(x, w, b, relu=False, block_m=1024):
    """Y = X @ W + b (optional ReLU).  N is always a multiple of 128."""
    M, K = x.shape
    _, N = w.shape
    x = x.astype(jnp.float32)
    w = w.astype(jnp.float32)
    b2 = b.reshape(1, N).astype(jnp.float32)
    kern = functools.partial(_matmul_bias_kernel, relu=relu)
    if M > block_m and M % block_m == 0:
        # Scaled path: tile M, parallel grid (sharded across TCs on v7x).
        return pl.pallas_call(
            kern,
            out_shape=jax.ShapeDtypeStruct((M, N), jnp.float32),
            grid=(M // block_m,),
            in_specs=[
                pl.BlockSpec((block_m, K), lambda i: (i, 0)),
                pl.BlockSpec((K, N), lambda i: (0, 0)),
                pl.BlockSpec((1, N), lambda i: (0, 0)),
            ],
            out_specs=pl.BlockSpec((block_m, N), lambda i: (i, 0)),
            compiler_params=pltpu.CompilerParams(
                dimension_semantics=("parallel",),
                vmem_limit_bytes=_VMEM_LIMIT,
            ),
        )(x, w, b2)
    # Small path: one full-array block, no grid (lowest launch overhead).
    return pl.pallas_call(
        kern,
        out_shape=jax.ShapeDtypeStruct((M, N), jnp.float32),
        in_specs=[
            pl.BlockSpec((M, K), lambda: (0, 0)),
            pl.BlockSpec((K, N), lambda: (0, 0)),
            pl.BlockSpec((1, N), lambda: (0, 0)),
        ],
        out_specs=pl.BlockSpec((M, N), lambda: (0, 0)),
        compiler_params=pltpu.CompilerParams(vmem_limit_bytes=_VMEM_LIMIT),
    )(x, w, b2)


def _enc_latent_kernel(cols_ref, eps_ref, w4_ref, b4_ref, w1_ref, b1_ref,
                       wml_ref, bml_ref, wzd_ref, bzd_ref,
                       mu_ref, lv_ref, d1_ref, *, batch, spatial, latent_dim):
    """Fused encoder tail + latent stack:
       enc4 matmul -> ReLU -> avg pool -> fc1 -> [fc_mu | fc_log_var]
       -> reparameterize -> (fc2 o dec1) -> ReLU."""
    y4 = jnp.dot(cols_ref[...], w4_ref[...],
                 preferred_element_type=jnp.float32) + b4_ref[...]
    y4 = jnp.maximum(y4, 0.0)                               # (B*S, CP)
    if spatial > 1:
        pooled = jnp.mean(y4.reshape(batch, spatial, CP), axis=1)
    else:
        pooled = y4                                          # (B, CP)
    h = jnp.dot(pooled, w1_ref[...],
                preferred_element_type=jnp.float32) + b1_ref[...]
    ml = jnp.dot(h, wml_ref[...],
                 preferred_element_type=jnp.float32) + bml_ref[...]
    mu = ml[:, :latent_dim]
    log_var = ml[:, latent_dim:]
    std = jnp.exp(0.5 * log_var)
    z = mu + eps_ref[...] * std
    d1 = jnp.dot(z, wzd_ref[...],
                 preferred_element_type=jnp.float32) + bzd_ref[...]
    mu_ref[...] = mu
    lv_ref[...] = log_var
    d1_ref[...] = jnp.maximum(d1, 0.0)                       # ReLU after dec1


def enc_latent_block(cols4, eps, batch, spatial, w4, b4, w1, b1, wml, bml,
                     wzd, bzd, latent_dim):
    M4, K4 = cols4.shape
    Nd1 = wzd.shape[1]

    def full2(shape):
        return pl.BlockSpec(tuple(shape), lambda: (0, 0))

    return pl.pallas_call(
        functools.partial(_enc_latent_kernel, batch=batch, spatial=spatial,
                          latent_dim=latent_dim),
        out_shape=(
            jax.ShapeDtypeStruct((batch, latent_dim), jnp.float32),
            jax.ShapeDtypeStruct((batch, latent_dim), jnp.float32),
            jax.ShapeDtypeStruct((batch, Nd1), jnp.float32),
        ),
        in_specs=[
            full2((M4, K4)), full2((batch, latent_dim)),
            full2(w4.shape), full2(b4.shape),
            full2(w1.shape), full2(b1.shape),
            full2(wml.shape), full2(bml.shape),
            full2(wzd.shape), full2(bzd.shape),
        ],
        out_specs=(
            full2((batch, latent_dim)), full2((batch, latent_dim)),
            full2((batch, Nd1)),
        ),
        compiler_params=pltpu.CompilerParams(vmem_limit_bytes=_VMEM_LIMIT),
    )(cols4, eps, w4, b4, w1, b1, wml, bml, wzd, bzd)


# ----------------------------------------------------------------------------
# Conv / ConvTranspose glue around the Pallas matmuls (NHWC, lane-dense N)
# ----------------------------------------------------------------------------
def _conv_cols(x, padding):
    """im2col for Conv2d(k=4, stride=2): returns (B*OH*OW, 16*C) and (OH, OW)."""
    B, H, W, C = x.shape
    if padding:
        x = jnp.pad(x, ((0, 0), (padding, padding), (padding, padding), (0, 0)))
    Hp, Wp = x.shape[1], x.shape[2]
    OH = (Hp - KSIZE) // 2 + 1
    OW = (Wp - KSIZE) // 2 + 1
    taps = [x[:, i:i + 2 * OH:2, j:j + 2 * OW:2, :]
            for i in range(KSIZE) for j in range(KSIZE)]
    cols = jnp.concatenate(taps, axis=-1).reshape(B * OH * OW, KSIZE * KSIZE * C)
    return cols, (OH, OW)


def conv_stride2(x, w_mat, b_vec, padding, oc_real, relu):
    """PyTorch Conv2d(k=4, stride=2) on NHWC input via tap gather + one
    lane-dense Pallas matmul.  Returns NHWC output with the real channels."""
    B = x.shape[0]
    cols, (OH, OW) = _conv_cols(x, padding)
    y = matmul_bias(cols, w_mat, b_vec, relu=relu)          # (B*OH*OW, CP)
    return y.reshape(B, OH, OW, CP)[..., :oc_real]


def deconv_stride2(x, w_mat, b_vec, oc_real, relu):
    """PyTorch ConvTranspose2d(k=4, stride=2, padding=1) on NHWC input via
    sub-pixel phase decomposition: 3x3-tap im2col of the UNdilated input,
    one matmul producing all 4 output phases (N = 4*128), pixel shuffle."""
    B, H, W, C = x.shape
    xp = jnp.pad(x, ((0, 0), (1, 1), (1, 1), (0, 0)))
    taps = [xp[:, dy:dy + H, dx:dx + W, :] for dy in range(3) for dx in range(3)]
    cols = jnp.concatenate(taps, axis=-1).reshape(B * H * W, 9 * C)
    y = matmul_bias(cols, w_mat, b_vec, relu=relu)          # (B*H*W, 4*CP)
    y = y.reshape(B, H, W, 2, 2, CP)                        # (b, m, n, r, s, oc)
    y = y.transpose(0, 1, 3, 2, 4, 5).reshape(B, 2 * H, 2 * W, CP)
    return y[..., :oc_real]


# ----------------------------------------------------------------------------
# Parameter construction + one-time weight preparation
# ----------------------------------------------------------------------------
def init_params(key, kernel_size=4, init_channels=8, image_channels=3, latent_dim=128):
    ic, k = init_channels, kernel_size
    shapes = {
        "enc1_w": (ic, image_channels, k, k), "enc1_b": (ic,),
        "enc2_w": (ic * 2, ic, k, k), "enc2_b": (ic * 2,),
        "enc3_w": (ic * 4, ic * 2, k, k), "enc3_b": (ic * 4,),
        "enc4_w": (64, ic * 4, k, k), "enc4_b": (64,),
        "fc1_w": (128, 64), "fc1_b": (128,),
        "fc_mu_w": (latent_dim, 128), "fc_mu_b": (latent_dim,),
        "fc_lv_w": (latent_dim, 128), "fc_lv_b": (latent_dim,),
        "fc2_w": (64, latent_dim), "fc2_b": (64,),
        # ConvTranspose2d weights: (in_channels, out_channels, kh, kw)
        "dec1_w": (64, ic * 8, k, k), "dec1_b": (ic * 8,),
        "dec2_w": (ic * 8, ic * 4, k, k), "dec2_b": (ic * 4,),
        "dec3_w": (ic * 4, ic * 2, k, k), "dec3_b": (ic * 2,),
        "dec4_w": (ic * 2, image_channels, k, k), "dec4_b": (image_channels,),
    }
    params = {}
    keys = jax.random.split(key, len(shapes))
    for (name, shape), kk in zip(sorted(shapes.items()), keys):
        params[name] = 0.05 * jax.random.normal(kk, shape, jnp.float32)
    return params


def _prep_conv(w, b):
    """Conv2d weight (OC, Cin, kh, kw) -> (kh*kw*Cin, CP) with OC padded to 128."""
    oc, cin, kh, kw = w.shape
    wm = jnp.transpose(w, (2, 3, 1, 0)).reshape(kh * kw * cin, oc)
    wm = jnp.pad(wm, ((0, 0), (0, CP - oc))).astype(jnp.float32)
    bb = jnp.pad(b, (0, CP - oc)).reshape(1, CP).astype(jnp.float32)
    return wm, bb, int(oc)


def _prep_deconv_s2(wt, b):
    """ConvTranspose2d(k=4, s=2, p=1) weight (Cin, OC, 4, 4) -> phase-decomposed
    matmul weight (9*Cin, 4*CP).  Phase (r, s), tap (a, d):
      x_pad row offset dy = r + a uses kernel row ki = 3 - r - 2a (cols alike)."""
    cin, oc, kh, kw = wt.shape
    wm = jnp.zeros((9, cin, 4, CP), jnp.float32)
    for r in range(2):
        for s in range(2):
            for a in range(2):
                for d in range(2):
                    dy, dx = r + a, s + d
                    ki, kj = 3 - r - 2 * a, 3 - s - 2 * d
                    tap, phase = dy * 3 + dx, r * 2 + s
                    wm = wm.at[tap, :, phase, :oc].set(wt[:, :, ki, kj])
    wm = wm.reshape(9 * cin, 4 * CP).astype(jnp.float32)
    bb = jnp.tile(jnp.pad(b, (0, CP - oc)), 4).reshape(1, 4 * CP).astype(jnp.float32)
    return wm, bb, int(oc)


def prepare_params(params, latent_dim=128):
    """One-time reshape/flip/transpose/compose of all weights (outside jit)."""
    p = params
    prep, dims = {}, {"latent_dim": int(latent_dim)}
    for name in ("enc1", "enc2", "enc3", "enc4"):
        w, b, oc = _prep_conv(p[name + "_w"], p[name + "_b"])
        prep[name + "_w"], prep[name + "_b"] = w, b
        dims[name + "_oc"] = oc
    # fc1: rows padded from 64 -> CP so the fused kernel stays lane-dense
    # (the padded enc4 channels are exactly 0 after ReLU, so zero rows are exact).
    w1 = p["fc1_w"].T.astype(jnp.float32)                                  # (64, 128)
    prep["fc1_w"] = jnp.pad(w1, ((0, CP - w1.shape[0]), (0, 0)))           # (CP, 128)
    prep["fc1_b"] = p["fc1_b"].reshape(1, -1).astype(jnp.float32)
    prep["mulv_w"] = jnp.concatenate(
        [p["fc_mu_w"].T, p["fc_lv_w"].T], axis=1).astype(jnp.float32)      # (128, 2*lat)
    prep["mulv_b"] = jnp.concatenate(
        [p["fc_mu_b"], p["fc_lv_b"]]).reshape(1, -1).astype(jnp.float32)
    # fc2 composed with dec1: dec1 (k=4, s=1, p=0) on a 1x1 map is
    #   out[oy, ox, oc] = sum_c z[c] * Wt[c, oc, oy, ox] + b[oc]
    d1w, d1b = p["dec1_w"], p["dec1_b"]
    cin, oc, kh, kw = d1w.shape
    d1m = jnp.transpose(d1w, (0, 2, 3, 1))                                 # (cin, kh, kw, oc)
    d1m = jnp.pad(d1m, ((0, 0), (0, 0), (0, 0), (0, CP - oc))).reshape(cin, kh * kw * CP)
    w_fc2 = p["fc2_w"].T                                                   # (lat, 64)
    prep["zd1_w"] = (w_fc2 @ d1m).astype(jnp.float32)                      # (lat, kh*kw*CP)
    prep["zd1_b"] = (p["fc2_b"] @ d1m
                     + jnp.tile(jnp.pad(d1b, (0, CP - oc)), kh * kw)
                     ).reshape(1, -1).astype(jnp.float32)
    dims["d1_oc"], dims["d1_hw"] = int(oc), int(kh)
    for name in ("dec2", "dec3", "dec4"):
        w, b, oc = _prep_deconv_s2(p[name + "_w"], p[name + "_b"])
        prep[name + "_w"], prep[name + "_b"] = w, b
        dims[name + "_oc"] = oc
    return prep, dims


# ----------------------------------------------------------------------------
# Forward pass (mirrors ConvVAE.forward)
# ----------------------------------------------------------------------------
def make_forward(dims):
    lat = dims["latent_dim"]

    def forward(prep, x, eps):
        # NCHW -> NHWC once at the boundary.
        x = jnp.transpose(x, (0, 2, 3, 1)).astype(jnp.float32)
        B = x.shape[0]
        x = conv_stride2(x, prep["enc1_w"], prep["enc1_b"], 1, dims["enc1_oc"], True)
        x = conv_stride2(x, prep["enc2_w"], prep["enc2_b"], 1, dims["enc2_oc"], True)
        x = conv_stride2(x, prep["enc3_w"], prep["enc3_b"], 1, dims["enc3_oc"], True)
        # enc4 (padding=0) + adaptive_avg_pool + fc1 + mu/log_var + reparam
        # + (fc2 o dec1) + ReLU: one fused Pallas call.
        cols4, (oh4, ow4) = _conv_cols(x, padding=0)
        mu, log_var, d1 = enc_latent_block(
            cols4, eps, B, oh4 * ow4,
            prep["enc4_w"], prep["enc4_b"],
            prep["fc1_w"], prep["fc1_b"], prep["mulv_w"], prep["mulv_b"],
            prep["zd1_w"], prep["zd1_b"], lat)
        k = dims["d1_hw"]
        z = d1.reshape(B, k, k, CP)[..., :dims["d1_oc"]]   # relu(dec1(fc2(z)))
        y = deconv_stride2(z, prep["dec2_w"], prep["dec2_b"], dims["dec2_oc"], True)
        y = deconv_stride2(y, prep["dec3_w"], prep["dec3_b"], dims["dec3_oc"], True)
        y = deconv_stride2(y, prep["dec4_w"], prep["dec4_b"], dims["dec4_oc"], False)
        reconstruction = jnp.transpose(y, (0, 3, 1, 2))    # NHWC -> NCHW
        # NOTE: reference forward() applies no sigmoid despite the docstring.
        return reconstruction, mu, log_var

    return forward


# ----------------------------------------------------------------------------
if __name__ == "__main__":
    key = jax.random.PRNGKey(0)
    k_params, k_x, k_eps = jax.random.split(key, 3)

    B, C, H, W = 2, 3, 32, 32          # 32x32 -> enc4 output is (B, 64, 1, 1)
    latent_dim = 128

    params = init_params(k_params, latent_dim=latent_dim)
    prep, dims = prepare_params(params, latent_dim=latent_dim)
    x = jax.random.normal(k_x, (B, C, H, W), jnp.float32)
    eps = jax.random.normal(k_eps, (B, latent_dim), jnp.float32)   # randn_like(std)

    fwd = jax.jit(make_forward(dims))
    recon, mu, log_var = fwd(prep, x, eps)
    jax.block_until_ready((recon, mu, log_var))

    assert recon.shape == (B, C, H, W), recon.shape
    assert mu.shape == (B, latent_dim), mu.shape
    assert log_var.shape == (B, latent_dim), log_var.shape
    assert recon.dtype == jnp.float32

    print("KERNEL_OK")
</pallas_src>

<mosaic_0001>
module attributes {stable_mosaic.version = 11 : i64} {
  func.func @_matmul_bias_kernel(%arg0: memref<512x48xf32, #tpu.memory_space<vmem>>, %arg1: memref<48x128xf32, #tpu.memory_space<vmem>>, %arg2: memref<1x128xf32, #tpu.memory_space<vmem>>, %arg3: memref<512x128xf32, #tpu.memory_space<vmem>>) attributes {dimension_semantics = [], scalar_prefetch = 0 : i64, scratch_operands = 0 : i64, tpu.core_type = #tpu.core_type<tc>} {
    %c0 = arith.constant 0 : index
    %c0_0 = arith.constant 0 : index
    %0 = vector.load %arg0[%c0, %c0_0] : memref<512x48xf32, #tpu.memory_space<vmem>>, vector<512x48xf32>
    %c0_1 = arith.constant 0 : index
    %c0_2 = arith.constant 0 : index
    %1 = vector.load %arg1[%c0_1, %c0_2] : memref<48x128xf32, #tpu.memory_space<vmem>>, vector<48x128xf32>
    %cst = arith.constant dense<0.000000e+00> : vector<512x128xf32>
    %2 = tpu.matmul %0, %1, %cst {dimension_numbers = #tpu.dot_dimension_numbers<[1], [0], [0], [1], [0, 0, 1, 1], [], []>} : vector<512x48xf32>, vector<48x128xf32>, vector<512x128xf32> -> vector<512x128xf32>
    %c0_3 = arith.constant 0 : index
    %c0_4 = arith.constant 0 : index
    %3 = vector.load %arg2[%c0_3, %c0_4] : memref<1x128xf32, #tpu.memory_space<vmem>>, vector<1x128xf32>
    %4 = vector.broadcast %3 : vector<1x128xf32> to vector<512x128xf32>
    %5 = arith.addf %2, %4 : vector<512x128xf32>
    %cst_5 = arith.constant 0.000000e+00 : f32
    %6 = vector.broadcast %cst_5 : f32 to vector<512x128xf32>
    %7 = arith.maximumf %5, %6 : vector<512x128xf32>
    %c0_6 = arith.constant 0 : index
    %c0_7 = arith.constant 0 : index
    %8 = vector.load %arg3[%c0_6, %c0_7] : memref<512x128xf32, #tpu.memory_space<vmem>>, vector<512x128xf32>
    tpu.vector_store %arg3[%c0_6, %c0_7], %7 {strides = array<i32>} : memref<512x128xf32, #tpu.memory_space<vmem>>, vector<512x128xf32>,
    return
  }
}

module attributes {stable_mosaic.version = 11 : i64} {
  func.func @_matmul_bias_kernel(%arg0: memref<128x128xf32, #tpu.memory_space<vmem>>, %arg1: memref<128x128xf32, #tpu.memory_space<vmem>>, %arg2: memref<1x128xf32, #tpu.memory_space<vmem>>, %arg3: memref<128x128xf32, #tpu.memory_space<vmem>>) attributes {dimension_semantics = [], scalar_prefetch = 0 : i64, scratch_operands = 0 : i64, tpu.core_type = #tpu.core_type<tc>} {
    %c0 = arith.constant 0 : index
    %c0_0 = arith.constant 0 : index
    %0 = vector.load %arg0[%c0, %c0_0] : memref<128x128xf32, #tpu.memory_space<vmem>>, vector<128x128xf32>
    %c0_1 = arith.constant 0 : index
    %c0_2 = arith.constant 0 : index
    %1 = vector.load %arg1[%c0_1, %c0_2] : memref<128x128xf32, #tpu.memory_space<vmem>>, vector<128x128xf32>
    %cst = arith.constant dense<0.000000e+00> : vector<128x128xf32>
    %2 = tpu.matmul %0, %1, %cst {dimension_numbers = #tpu.dot_dimension_numbers<[1], [0], [0], [1], [0, 0, 1, 1], [], []>} : vector<128x128xf32>, vector<128x128xf32>, vector<128x128xf32> -> vector<128x128xf32>
    %c0_3 = arith.constant 0 : index
    %c0_4 = arith.constant 0 : index
    %3 = vector.load %arg2[%c0_3, %c0_4] : memref<1x128xf32, #tpu.memory_space<vmem>>, vector<1x128xf32>
    %4 = vector.broadcast %3 : vector<1x128xf32> to vector<128x128xf32>
    %5 = arith.addf %2, %4 : vector<128x128xf32>
    %cst_5 = arith.constant 0.000000e+00 : f32
    %6 = vector.broadcast %cst_5 : f32 to vector<128x128xf32>
    %7 = arith.maximumf %5, %6 : vector<128x128xf32>
    %c0_6 = arith.constant 0 : index
    %c0_7 = arith.constant 0 : index
    %8 = vector.load %arg3[%c0_6, %c0_7] : memref<128x128xf32, #tpu.memory_space<vmem>>, vector<128x128xf32>
    tpu.vector_store %arg3[%c0_6, %c0_7], %7 {strides = array<i32>} : memref<128x128xf32, #tpu.memory_space<vmem>>, vector<128x128xf32>,
    return
  }
}

module attributes {stable_mosaic.version = 11 : i64} {
  func.func @_matmul_bias_kernel(%arg0: memref<32x256xf32, #tpu.memory_space<vmem>>, %arg1: memref<256x128xf32, #tpu.memory_space<vmem>>, %arg2: memref<1x128xf32, #tpu.memory_space<vmem>>, %arg3: memref<32x128xf32, #tpu.memory_space<vmem>>) attributes {dimension_semantics = [], scalar_prefetch = 0 : i64, scratch_operands = 0 : i64, tpu.core_type = #tpu.core_type<tc>} {
    %c0 = arith.constant 0 : index
    %c0_0 = arith.constant 0 : index
    %0 = vector.load %arg0[%c0, %c0_0] : memref<32x256xf32, #tpu.memory_space<vmem>>, vector<32x256xf32>
    %c0_1 = arith.constant 0 : index
    %c0_2 = arith.constant 0 : index
    %1 = vector.load %arg1[%c0_1, %c0_2] : memref<256x128xf32, #tpu.memory_space<vmem>>, vector<256x128xf32>
    %cst = arith.constant dense<0.000000e+00> : vector<32x128xf32>
    %2 = tpu.matmul %0, %1, %cst {dimension_numbers = #tpu.dot_dimension_numbers<[1], [0], [0], [1], [0, 0, 1, 1], [], []>} : vector<32x256xf32>, vector<256x128xf32>, vector<32x128xf32> -> vector<32x128xf32>
    %c0_3 = arith.constant 0 : index
    %c0_4 = arith.constant 0 : index
    %3 = vector.load %arg2[%c0_3, %c0_4] : memref<1x128xf32, #tpu.memory_space<vmem>>, vector<1x128xf32>
    %4 = vector.broadcast %3 : vector<1x128xf32> to vector<32x128xf32>
    %5 = arith.addf %2, %4 : vector<32x128xf32>
    %cst_5 = arith.constant 0.000000e+00 : f32
    %6 = vector.broadcast %cst_5 : f32 to vector<32x128xf32>
    %7 = arith.maximumf %5, %6 : vector<32x128xf32>
    %c0_6 = arith.constant 0 : index
    %c0_7 = arith.constant 0 : index
    %8 = vector.load %arg3[%c0_6, %c0_7] : memref<32x128xf32, #tpu.memory_space<vmem>>, vector<32x128xf32>
    tpu.vector_store %arg3[%c0_6, %c0_7], %7 {strides = array<i32>} : memref<32x128xf32, #tpu.memory_space<vmem>>, vector<32x128xf32>,
    return
  }
}

module attributes {stable_mosaic.version = 11 : i64} {
  func.func @_enc_latent_kernel(%arg0: memref<2x512xf32, #tpu.memory_space<vmem>>, %arg1: memref<2x128xf32, #tpu.memory_space<vmem>>, %arg2: memref<512x128xf32, #tpu.memory_space<vmem>>, %arg3: memref<1x128xf32, #tpu.memory_space<vmem>>, %arg4: memref<128x128xf32, #tpu.memory_space<vmem>>, %arg5: memref<1x128xf32, #tpu.memory_space<vmem>>, %arg6: memref<128x256xf32, #tpu.memory_space<vmem>>, %arg7: memref<1x256xf32, #tpu.memory_space<vmem>>, %arg8: memref<128x2048xf32, #tpu.memory_space<vmem>>, %arg9: memref<1x2048xf32, #tpu.memory_space<vmem>>, %arg10: memref<2x128xf32, #tpu.memory_space<vmem>>, %arg11: memref<2x128xf32, #tpu.memory_space<vmem>>, %arg12: memref<2x2048xf32, #tpu.memory_space<vmem>>) attributes {dimension_semantics = [], scalar_prefetch = 0 : i64, scratch_operands = 0 : i64, tpu.core_type = #tpu.core_type<tc>} {
    %c0 = arith.constant 0 : index
    %c0_0 = arith.constant 0 : index
    %0 = vector.load %arg0[%c0, %c0_0] : memref<2x512xf32, #tpu.memory_space<vmem>>, vector<2x512xf32>
    %c0_1 = arith.constant 0 : index
    %c0_2 = arith.constant 0 : index
    %1 = vector.load %arg2[%c0_1, %c0_2] : memref<512x128xf32, #tpu.memory_space<vmem>>, vector<512x128xf32>
    %cst = arith.constant dense<0.000000e+00> : vector<2x128xf32>
    %2 = tpu.matmul %0, %1, %cst {dimension_numbers = #tpu.dot_dimension_numbers<[1], [0], [0], [1], [0, 0, 1, 1], [], []>} : vector<2x512xf32>, vector<512x128xf32>, vector<2x128xf32> -> vector<2x128xf32>
    %c0_3 = arith.constant 0 : index
    %c0_4 = arith.constant 0 : index
    %3 = vector.load %arg3[%c0_3, %c0_4] : memref<1x128xf32, #tpu.memory_space<vmem>>, vector<1x128xf32>
    %4 = vector.broadcast %3 : vector<1x128xf32> to vector<2x128xf32>
    %5 = arith.addf %2, %4 : vector<2x128xf32>
    %cst_5 = arith.constant 0.000000e+00 : f32
    %6 = vector.broadcast %cst_5 : f32 to vector<2x128xf32>
    %7 = arith.maximumf %5, %6 : vector<2x128xf32>
    %c0_6 = arith.constant 0 : index
    %c0_7 = arith.constant 0 : index
    %8 = vector.load %arg4[%c0_6, %c0_7] : memref<128x128xf32, #tpu.memory_space<vmem>>, vector<128x128xf32>
    %cst_8 = arith.constant dense<0.000000e+00> : vector<2x128xf32>
    %9 = tpu.matmul %7, %8, %cst_8 {dimension_numbers = #tpu.dot_dimension_numbers<[1], [0], [0], [1], [0, 0, 1, 1], [], []>} : vector<2x128xf32>, vector<128x128xf32>, vector<2x128xf32> -> vector<2x128xf32>
    %c0_9 = arith.constant 0 : index
    %c0_10 = arith.constant 0 : index
    %10 = vector.load %arg5[%c0_9, %c0_10] : memref<1x128xf32, #tpu.memory_space<vmem>>, vector<1x128xf32>
    %11 = vector.broadcast %10 : vector<1x128xf32> to vector<2x128xf32>
    %12 = arith.addf %9, %11 : vector<2x128xf32>
    %c0_11 = arith.constant 0 : index
    %c0_12 = arith.constant 0 : index
    %13 = vector.load %arg6[%c0_11, %c0_12] : memref<128x256xf32, #tpu.memory_space<vmem>>, vector<128x256xf32>
    %cst_13 = arith.constant dense<0.000000e+00> : vector<2x256xf32>
    %14 = tpu.matmul %12, %13, %cst_13 {dimension_numbers = #tpu.dot_dimension_numbers<[1], [0], [0], [1], [0, 0, 1, 1], [], []>} : vector<2x128xf32>, vector<128x256xf32>, vector<2x256xf32> -> vector<2x256xf32>
    %c0_14 = arith.constant 0 : index
    %c0_15 = arith.constant 0 : index
    %15 = vector.load %arg7[%c0_14, %c0_15] : memref<1x256xf32, #tpu.memory_space<vmem>>, vector<1x256xf32>
    %16 = vector.broadcast %15 : vector<1x256xf32> to vector<2x256xf32>
    %17 = arith.addf %14, %16 : vector<2x256xf32>
    %18 = vector.extract_strided_slice %17 {offsets = [0, 0], sizes = [2, 128], strides = [1, 1]} : vector<2x256xf32> to vector<2x128xf32>
    %19 = vector.extract_strided_slice %17 {offsets = [0, 128], sizes = [2, 128], strides = [1, 1]} : vector<2x256xf32> to vector<2x128xf32>
    %cst_16 = arith.constant 5.000000e-01 : f32
    %20 = vector.broadcast %cst_16 : f32 to vector<2x128xf32>
    %21 = arith.mulf %20, %19 : vector<2x128xf32>
    %22 = math.exp %21 : vector<2x128xf32>
    %c0_17 = arith.constant 0 : index
    %c0_18 = arith.constant 0 : index
    %23 = vector.load %arg1[%c0_17, %c0_18] : memref<2x128xf32, #tpu.memory_space<vmem>>, vector<2x128xf32>
    %24 = arith.mulf %23, %22 : vector<2x128xf32>
    %25 = arith.addf %18, %24 : vector<2x128xf32>
    %c0_19 = arith.constant 0 : index
    %c0_20 = arith.constant 0 : index
    %26 = vector.load %arg8[%c0_19, %c0_20] : memref<128x2048xf32, #tpu.memory_space<vmem>>, vector<128x2048xf32>
    %cst_21 = arith.constant dense<0.000000e+00> : vector<2x2048xf32>
    %27 = tpu.matmul %25, %26, %cst_21 {dimension_numbers = #tpu.dot_dimension_numbers<[1], [0], [0], [1], [0, 0, 1, 1], [], []>} : vector<2x128xf32>, vector<128x2048xf32>, vector<2x2048xf32> -> vector<2x2048xf32>
    %c0_22 = arith.constant 0 : index
    %c0_23 = arith.constant 0 : index
    %28 = vector.load %arg9[%c0_22, %c0_23] : memref<1x2048xf32, #tpu.memory_space<vmem>>, vector<1x2048xf32>
    %29 = vector.broadcast %28 : vector<1x2048xf32> to vector<2x2048xf32>
    %30 = arith.addf %27, %29 : vector<2x2048xf32>
    %c0_24 = arith.constant 0 : index
    %c0_25 = arith.constant 0 : index
    %31 = vector.load %arg10[%c0_24, %c0_25] : memref<2x128xf32, #tpu.memory_space<vmem>>, vector<2x128xf32>
    tpu.vector_store %arg10[%c0_24, %c0_25], %18 {strides = array<i32>} : memref<2x128xf32, #tpu.memory_space<vmem>>, vector<2x128xf32>,
    %c0_26 = arith.constant 0 : index
    %c0_27 = arith.constant 0 : index
    %32 = vector.load %arg11[%c0_26, %c0_27] : memref<2x128xf32, #tpu.memory_space<vmem>>, vector<2x128xf32>
    tpu.vector_store %arg11[%c0_26, %c0_27], %19 {strides = array<i32>} : memref<2x128xf32, #tpu.memory_space<vmem>>, vector<2x128xf32>,
    %cst_28 = arith.constant 0.000000e+00 : f32
    %33 = vector.broadcast %cst_28 : f32 to vector<2x2048xf32>
    %34 = arith.maximumf %30, %33 : vector<2x2048xf32>
    %c0_29 = arith.constant 0 : index
    %c0_30 = arith.constant 0 : index
    %35 = vector.load %arg12[%c0_29, %c0_30] : memref<2x2048xf32, #tpu.memory_space<vmem>>, vector<2x2048xf32>
    tpu.vector_store %arg12[%c0_29, %c0_30], %34 {strides = array<i32>} : memref<2x2048xf32, #tpu.memory_space<vmem>>, vector<2x2048xf32>,
    return
  }
}

module attributes {stable_mosaic.version = 11 : i64} {
  func.func @_matmul_bias_kernel(%arg0: memref<32x576xf32, #tpu.memory_space<vmem>>, %arg1: memref<576x512xf32, #tpu.memory_space<vmem>>, %arg2: memref<1x512xf32, #tpu.memory_space<vmem>>, %arg3: memref<32x512xf32, #tpu.memory_space<vmem>>) attributes {dimension_semantics = [], scalar_prefetch = 0 : i64, scratch_operands = 0 : i64, tpu.core_type = #tpu.core_type<tc>} {
    %c0 = arith.constant 0 : index
    %c0_0 = arith.constant 0 : index
    %0 = vector.load %arg0[%c0, %c0_0] : memref<32x576xf32, #tpu.memory_space<vmem>>, vector<32x576xf32>
    %c0_1 = arith.constant 0 : index
    %c0_2 = arith.constant 0 : index
    %1 = vector.load %arg1[%c0_1, %c0_2] : memref<576x512xf32, #tpu.memory_space<vmem>>, vector<576x512xf32>
    %cst = arith.constant dense<0.000000e+00> : vector<32x512xf32>
    %2 = tpu.matmul %0, %1, %cst {dimension_numbers = #tpu.dot_dimension_numbers<[1], [0], [0], [1], [0, 0, 1, 1], [], []>} : vector<32x576xf32>, vector<576x512xf32>, vector<32x512xf32> -> vector<32x512xf32>
    %c0_3 = arith.constant 0 : index
    %c0_4 = arith.constant 0 : index
    %3 = vector.load %arg2[%c0_3, %c0_4] : memref<1x512xf32, #tpu.memory_space<vmem>>, vector<1x512xf32>
    %4 = vector.broadcast %3 : vector<1x512xf32> to vector<32x512xf32>
    %5 = arith.addf %2, %4 : vector<32x512xf32>
    %cst_5 = arith.constant 0.000000e+00 : f32
    %6 = vector.broadcast %cst_5 : f32 to vector<32x512xf32>
    %7 = arith.maximumf %5, %6 : vector<32x512xf32>
    %c0_6 = arith.constant 0 : index
    %c0_7 = arith.constant 0 : index
    %8 = vector.load %arg3[%c0_6, %c0_7] : memref<32x512xf32, #tpu.memory_space<vmem>>, vector<32x512xf32>
    tpu.vector_store %arg3[%c0_6, %c0_7], %7 {strides = array<i32>} : memref<32x512xf32, #tpu.memory_space<vmem>>, vector<32x512xf32>,
    return
  }
}

module attributes {stable_mosaic.version = 11 : i64} {
  func.func @_matmul_bias_kernel(%arg0: memref<128x288xf32, #tpu.memory_space<vmem>>, %arg1: memref<288x512xf32, #tpu.memory_space<vmem>>, %arg2: memref<1x512xf32, #tpu.memory_space<vmem>>, %arg3: memref<128x512xf32, #tpu.memory_space<vmem>>) attributes {dimension_semantics = [], scalar_prefetch = 0 : i64, scratch_operands = 0 : i64, tpu.core_type = #tpu.core_type<tc>} {
    %c0 = arith.constant 0 : index
    %c0_0 = arith.constant 0 : index
    %0 = vector.load %arg0[%c0, %c0_0] : memref<128x288xf32, #tpu.memory_space<vmem>>, vector<128x288xf32>
    %c0_1 = arith.constant 0 : index
    %c0_2 = arith.constant 0 : index
    %1 = vector.load %arg1[%c0_1, %c0_2] : memref<288x512xf32, #tpu.memory_space<vmem>>, vector<288x512xf32>
    %cst = arith.constant dense<0.000000e+00> : vector<128x512xf32>
    %2 = tpu.matmul %0, %1, %cst {dimension_numbers = #tpu.dot_dimension_numbers<[1], [0], [0], [1], [0, 0, 1, 1], [], []>} : vector<128x288xf32>, vector<288x512xf32>, vector<128x512xf32> -> vector<128x512xf32>
    %c0_3 = arith.constant 0 : index
    %c0_4 = arith.constant 0 : index
    %3 = vector.load %arg2[%c0_3, %c0_4] : memref<1x512xf32, #tpu.memory_space<vmem>>, vector<1x512xf32>
    %4 = vector.broadcast %3 : vector<1x512xf32> to vector<128x512xf32>
    %5 = arith.addf %2, %4 : vector<128x512xf32>
    %cst_5 = arith.constant 0.000000e+00 : f32
    %6 = vector.broadcast %cst_5 : f32 to vector<128x512xf32>
    %7 = arith.maximumf %5, %6 : vector<128x512xf32>
    %c0_6 = arith.constant 0 : index
    %c0_7 = arith.constant 0 : index
    %8 = vector.load %arg3[%c0_6, %c0_7] : memref<128x512xf32, #tpu.memory_space<vmem>>, vector<128x512xf32>
    tpu.vector_store %arg3[%c0_6, %c0_7], %7 {strides = array<i32>} : memref<128x512xf32, #tpu.memory_space<vmem>>, vector<128x512xf32>,
    return
  }
}

module attributes {stable_mosaic.version = 11 : i64} {
  func.func @_matmul_bias_kernel(%arg0: memref<512x144xf32, #tpu.memory_space<vmem>>, %arg1: memref<144x512xf32, #tpu.memory_space<vmem>>, %arg2: memref<1x512xf32, #tpu.memory_space<vmem>>, %arg3: memref<512x512xf32, #tpu.memory_space<vmem>>) attributes {dimension_semantics = [], scalar_prefetch = 0 : i64, scratch_operands = 0 : i64, tpu.core_type = #tpu.core_type<tc>} {
    %c0 = arith.constant 0 : index
    %c0_0 = arith.constant 0 : index
    %0 = vector.load %arg0[%c0, %c0_0] : memref<512x144xf32, #tpu.memory_space<vmem>>, vector<512x144xf32>
    %c0_1 = arith.constant 0 : index
    %c0_2 = arith.constant 0 : index
    %1 = vector.load %arg1[%c0_1, %c0_2] : memref<144x512xf32, #tpu.memory_space<vmem>>, vector<144x512xf32>
    %cst = arith.constant dense<0.000000e+00> : vector<512x512xf32>
    %2 = tpu.matmul %0, %1, %cst {dimension_numbers = #tpu.dot_dimension_numbers<[1], [0], [0], [1], [0, 0, 1, 1], [], []>} : vector<512x144xf32>, vector<144x512xf32>, vector<512x512xf32> -> vector<512x512xf32>
    %c0_3 = arith.constant 0 : index
    %c0_4 = arith.constant 0 : index
    %3 = vector.load %arg2[%c0_3, %c0_4] : memref<1x512xf32, #tpu.memory_space<vmem>>, vector<1x512xf32>
    %4 = vector.broadcast %3 : vector<1x512xf32> to vector<512x512xf32>
    %5 = arith.addf %2, %4 : vector<512x512xf32>
    %c0_5 = arith.constant 0 : index
    %c0_6 = arith.constant 0 : index
    %6 = vector.load %arg3[%c0_5, %c0_6] : memref<512x512xf32, #tpu.memory_space<vmem>>, vector<512x512xf32>
    tpu.vector_store %arg3[%c0_5, %c0_6], %5 {strides = array<i32>} : memref<512x512xf32, #tpu.memory_space<vmem>>, vector<512x512xf32>,
    return
  }
}

</mosaic_0001>

<bundles_post_ra>
// kernel: forward.7
= control target key start
LH: loop header
LB: loop body
LE: loop exit
PB: predicated region body
PF: predicated region fallthrough
CT: control target
= control target key end

     0   :  { %vm91_vm0 = vcmask 392192   ;;  %s1611_s1 = inlined_call_operand.vmem [shape: f32[48,128], index: 1, kind: input, shape index: {}]   ;;  %s1612_s0 = inlined_call_operand.vmem [shape: f32[512,48], index: 0, kind: input, shape index: {}]   ;;  %s1613_s2 = inlined_call_operand.vmem [shape: f32[1,128], index: 2, kind: input, shape index: {}]   ;;  %s1614_s3 = inlined_call_operand.vmem [shape: f32[512,128], index: 3, kind: output, shape index: {}]  }
   0x1   :  { %v83_v0 = vld [vmem:[%s1611_s1 + $0x28] sm:$0xff]  ;;  %v82_v1 = vld [vmem:[%s1611_s1 + $0x20] sm:$0xff]  ;;  %v81_v2 = vld [vmem:[%s1611_s1 + $0x18] sm:$0xff] }
   0x2   :  { %936 = vmatprep.subr.mxu0 %v83_v0  ;;  %1044 = vmatprep.subr.mxu1 %v83_v0  ;;  %v80_v3 = vld [vmem:[%s1611_s1 + $0x10] sm:$0xff]  ;;  %v79_v4 = vld [vmem:[%s1611_s1 + $0x8] sm:$0xff]  ;;  %v78_v5 = vld [vmem:[%s1611_s1] sm:$0xff] }
   0x3   :  { %937 = vmatpush3.msra.mxu0 %v83_v0  ;;  %1050 = vmatpush3.msra.mxu1 %v83_v0  ;;  %v14_v6 = vld [vmem:[%s1612_s0] sm:$0xff]  ;;  %v15_v8 = vld [vmem:[%s1612_s0 + $0x8] sm:$0xff]  ;;  %v16_v10 = vld [vmem:[%s1612_s0 + $0x10] sm:$0xff] }
   0x4   :  { %938 = vmatprep.subr.mxu0 %v82_v1  ;;  %1045 = vmatprep.subr.mxu1 %v82_v1  ;;  %v46_v7 = vld [vmem:[%s1612_s0 + $0x100] sm:$0xff]  ;;  %v47_v9 = vld [vmem:[%s1612_s0 + $0x108] sm:$0xff]  ;;  %v48_v11 = vld [vmem:[%s1612_s0 + $0x110] sm:$0xff] }
   0x5   :  { %939 = vmatpush3.msra.mxu0 %v82_v1  ;;  %1051 = vmatpush3.msra.mxu1 %v82_v1  ;;  %v17_v12 = vld [vmem:[%s1612_s0 + $0x18] sm:$0xff]  ;;  %v18_v14 = vld [vmem:[%s1612_s0 + $0x20] sm:$0xff]  ;;  %v19_v16 = vld [vmem:[%s1612_s0 + $0x28] sm:$0xff] }
   0x6   :  { %940 = vmatprep.subr.mxu0 %v81_v2  ;;  %1046 = vmatprep.subr.mxu1 %v81_v2  ;;  %v49_v13 = vld [vmem:[%s1612_s0 + $0x118] sm:$0xff]  ;;  %v50_v15 = vld [vmem:[%s1612_s0 + $0x120] sm:$0xff]  ;;  %v51_v17 = vld [vmem:[%s1612_s0 + $0x128] sm:$0xff] }
   0x7   :  { %941 = vmatpush3.msra.mxu0 %v81_v2  ;;  %1052 = vmatpush3.msra.mxu1 %v81_v2  ;;  %v20_v18 = vld [vmem:[%s1612_s0 + $0x30] sm:$0xff]  ;;  %v21_v20 = vld [vmem:[%s1612_s0 + $0x38] sm:$0xff]  ;;  %v22_v22 = vld [vmem:[%s1612_s0 + $0x40] sm:$0xff] }
   0x8   :  { %942 = vmatprep.subr.mxu0 %v80_v3  ;;  %1047 = vmatprep.subr.mxu1 %v80_v3  ;;  %v52_v19 = vld [vmem:[%s1612_s0 + $0x130] sm:$0xff]  ;;  %v53_v21 = vld [vmem:[%s1612_s0 + $0x138] sm:$0xff]  ;;  %v54_v23 = vld [vmem:[%s1612_s0 + $0x140] sm:$0xff] }
   0x9   :  { %943 = vmatpush3.msra.mxu0 %v80_v3  ;;  %1053 = vmatpush3.msra.mxu1 %v80_v3  ;;  %v23_v24 = vld [vmem:[%s1612_s0 + $0x48] sm:$0xff]  ;;  %v24_v26 = vld [vmem:[%s1612_s0 + $0x50] sm:$0xff]  ;;  %v25_v28 = vld [vmem:[%s1612_s0 + $0x58] sm:$0xff] }
   0xa   :  { %944 = vmatprep.subr.mxu0 %v79_v4  ;;  %1048 = vmatprep.subr.mxu1 %v79_v4  ;;  %v55_v25 = vld [vmem:[%s1612_s0 + $0x148] sm:$0xff]  ;;  %v56_v27 = vld [vmem:[%s1612_s0 + $0x150] sm:$0xff]  ;;  %v57_v29 = vld [vmem:[%s1612_s0 + $0x158] sm:$0xff] }
   0xb   :  { %945 = vmatpush3.msra.mxu0 %v79_v4  ;;  %1054 = vmatpush3.msra.mxu1 %v79_v4  ;;  %v26_v30 = vld [vmem:[%s1612_s0 + $0x60] sm:$0xff]  ;;  %v27_v32 = vld [vmem:[%s1612_s0 + $0x68] sm:$0xff]  ;;  %v28_v34 = vld [vmem:[%s1612_s0 + $0x70] sm:$0xff] }
   0xc   :  { %946 = vmatprep.subr.mxu0 %v78_v5  ;;  %1049 = vmatprep.subr.mxu1 %v78_v5  ;;  %v58_v31 = vld [vmem:[%s1612_s0 + $0x160] sm:$0xff]  ;;  %v59_v33 = vld [vmem:[%s1612_s0 + $0x168] sm:$0xff]  ;;  %v60_v35 = vld [vmem:[%s1612_s0 + $0x170] sm:$0xff] }
   0xd   :  { %947 = vmatpush3.msra.mxu0 %v78_v5  ;;  %1055 = vmatpush3.msra.mxu1 %v78_v5  ;;  %v29_v36 = vld [vmem:[%s1612_s0 + $0x78] sm:$0xff]  ;;  %v30_v38 = vld [vmem:[%s1612_s0 + $0x80] sm:$0xff]  ;;  %v31_v40 = vld [vmem:[%s1612_s0 + $0x88] sm:$0xff] }
   0xe   :  { %948 = vmatprep.mubr.msk.f32.mxu0 %vm91_vm0, %v14_v6  ;;  %996 = vmatprep.mubr.msk.f32.mxu1 %vm91_vm0, %v46_v7  ;;  %v61_v37 = vld [vmem:[%s1612_s0 + $0x178] sm:$0xff]  ;;  %v62_v39 = vld [vmem:[%s1612_s0 + $0x180] sm:$0xff]  ;;  %v63_v41 = vld [vmem:[%s1612_s0 + $0x188] sm:$0xff] }
   0xf   :  { %949 = vmatmul.mubr.msk.f32.vlgmr.msra.gmra.mxu0 %vm91_vm0, %v15_v8  ;;  %997 = vmatmul.mubr.msk.f32.vlgmr.msra.gmra.mxu1 %vm91_vm0, %v47_v9  ;;  %v32_v42 = vld [vmem:[%s1612_s0 + $0x90] sm:$0xff]  ;;  %v33_v44 = vld [vmem:[%s1612_s0 + $0x98] sm:$0xff]  ;;  %v34_v46 = vld [vmem:[%s1612_s0 + $0xa0] sm:$0xff] }
  0x10   :  { %951 = vmatprep.mubr.msk.f32.mxu0 %vm91_vm0, %v16_v10  ;;  %999 = vmatprep.mubr.msk.f32.mxu1 %vm91_vm0, %v48_v11  ;;  %v64_v43 = vld [vmem:[%s1612_s0 + $0x190] sm:$0xff]  ;;  %v65_v45 = vld [vmem:[%s1612_s0 + $0x198] sm:$0xff]  ;;  %v66_v47 = vld [vmem:[%s1612_s0 + $0x1a0] sm:$0xff] }
  0x11   :  { %v35_v48 = vld [vmem:[%s1612_s0 + $0xa8] sm:$0xff]  ;;  %v36_v50 = vld [vmem:[%s1612_s0 + $0xb0] sm:$0xff]  ;;  %v37_v52 = vld [vmem:[%s1612_s0 + $0xb8] sm:$0xff] }
  0x12   :  { %v67_v49 = vld [vmem:[%s1612_s0 + $0x1a8] sm:$0xff]  ;;  %v68_v51 = vld [vmem:[%s1612_s0 + $0x1b0] sm:$0xff]  ;;  %v69_v53 = vld [vmem:[%s1612_s0 + $0x1b8] sm:$0xff] }
  0x13   :  { %952 = vmatmul.mubr.msk.f32.gmra.mxu0 %vm91_vm0, %v17_v12  ;;  %1000 = vmatmul.mubr.msk.f32.gmra.mxu1 %vm91_vm0, %v49_v13  ;;  %v38_v54 = vld [vmem:[%s1612_s0 + $0xc0] sm:$0xff]  ;;  %v39_v56 = vld [vmem:[%s1612_s0 + $0xc8] sm:$0xff]  ;;  %v40_v58 = vld [vmem:[%s1612_s0 + $0xd0] sm:$0xff] }
  0x14   :  { %954 = vmatprep.mubr.msk.f32.mxu0 %vm91_vm0, %v18_v14  ;;  %1002 = vmatprep.mubr.msk.f32.mxu1 %vm91_vm0, %v50_v15  ;;  %v70_v55 = vld [vmem:[%s1612_s0 + $0x1c0] sm:$0xff]  ;;  %v71_v57 = vld [vmem:[%s1612_s0 + $0x1c8] sm:$0xff]  ;;  %v72_v59 = vld [vmem:[%s1612_s0 + $0x1d0] sm:$0xff] }
  0x15   :  { %v41_v60 = vld [vmem:[%s1612_s0 + $0xd8] sm:$0xff]  ;;  %v42_v62 = vld [vmem:[%s1612_s0 + $0xe0] sm:$0xff]  ;;  %v43_v0 = vld [vmem:[%s1612_s0 + $0xe8] sm:$0xff] }
  0x16   :  { %v73_v61 = vld [vmem:[%s1612_s0 + $0x1d8] sm:$0xff]  ;;  %v74_v63 = vld [vmem:[%s1612_s0 + $0x1e0] sm:$0xff]  ;;  %v75_v1 = vld [vmem:[%s1612_s0 + $0x1e8] sm:$0xff] }
  0x17   :  { %955 = vmatmul.mubr.msk.f32.gmra.mxu0 %vm91_vm0, %v19_v16  ;;  %1003 = vmatmul.mubr.msk.f32.gmra.mxu1 %vm91_vm0, %v51_v17  ;;  %v44_v2 = vld [vmem:[%s1612_s0 + $0xf0] sm:$0xff]  ;;  %v45_v4 = vld [vmem:[%s1612_s0 + $0xf8] sm:$0xff]  ;;  %v1353_v6 = vld [vmem:[%s1613_s2] ss:$0 sm:$0xff] }
  0x18   :  { %957 = vmatprep.mubr.msk.f32.mxu0 %vm91_vm0, %v20_v18  ;;  %1005 = vmatprep.mubr.msk.f32.mxu1 %vm91_vm0, %v52_v19  ;;  %v76_v3 = vld [vmem:[%s1612_s0 + $0x1f0] sm:$0xff]  ;;  %v77_v5 = vld [vmem:[%s1612_s0 + $0x1f8] sm:$0xff] }
  0x1b   :  { %958 = vmatmul.mubr.msk.f32.gmra.mxu0 %vm91_vm0, %v21_v20  ;;  %1006 = vmatmul.mubr.msk.f32.gmra.mxu1 %vm91_vm0, %v53_v21 }
  0x1c   :  { %960 = vmatprep.mubr.msk.f32.mxu0 %vm91_vm0, %v22_v22  ;;  %1008 = vmatprep.mubr.msk.f32.mxu1 %vm91_vm0, %v54_v23 }
  0x1f   :  { %961 = vmatmul.mubr.msk.f32.gmra.mxu0 %vm91_vm0, %v23_v24  ;;  %1009 = vmatmul.mubr.msk.f32.gmra.mxu1 %vm91_vm0, %v55_v25 }
  0x20   :  { %963 = vmatprep.mubr.msk.f32.mxu0 %vm91_vm0, %v24_v26  ;;  %1011 = vmatprep.mubr.msk.f32.mxu1 %vm91_vm0, %v56_v27 }
  0x23   :  { %964 = vmatmul.mubr.msk.f32.gmra.mxu0 %vm91_vm0, %v25_v28  ;;  %1012 = vmatmul.mubr.msk.f32.gmra.mxu1 %vm91_vm0, %v57_v29 }
  0x24   :  { %966 = vmatprep.mubr.msk.f32.mxu0 %vm91_vm0, %v26_v30  ;;  %1014 = vmatprep.mubr.msk.f32.mxu1 %vm91_vm0, %v58_v31 }
  0x27   :  { %967 = vmatmul.mubr.msk.f32.gmra.mxu0 %vm91_vm0, %v27_v32  ;;  %1015 = vmatmul.mubr.msk.f32.gmra.mxu1 %vm91_vm0, %v59_v33 }
  0x28   :  { %969 = vmatprep.mubr.msk.f32.mxu0 %vm91_vm0, %v28_v34  ;;  %1017 = vmatprep.mubr.msk.f32.mxu1 %vm91_vm0, %v60_v35 }
  0x2b   :  { %970 = vmatmul.mubr.msk.f32.gmra.mxu0 %vm91_vm0, %v29_v36  ;;  %1018 = vmatmul.mubr.msk.f32.gmra.mxu1 %vm91_vm0, %v61_v37 }
  0x2c   :  { %972 = vmatprep.mubr.msk.f32.mxu0 %vm91_vm0, %v30_v38  ;;  %1020 = vmatprep.mubr.msk.f32.mxu1 %vm91_vm0, %v62_v39 }
  0x2f   :  { %973 = vmatmul.mubr.msk.f32.gmra.mxu0 %vm91_vm0, %v31_v40  ;;  %1021 = vmatmul.mubr.msk.f32.gmra.mxu1 %vm91_vm0, %v63_v41 }
  0x30   :  { %975 = vmatprep.mubr.msk.f32.mxu0 %vm91_vm0, %v32_v42  ;;  %1023 = vmatprep.mubr.msk.f32.mxu1 %vm91_vm0, %v64_v43 }
  0x33   :  { %976 = vmatmul.mubr.msk.f32.gmra.mxu0 %vm91_vm0, %v33_v44  ;;  %1024 = vmatmul.mubr.msk.f32.gmra.mxu1 %vm91_vm0, %v65_v45 }
  0x34   :  { %978 = vmatprep.mubr.msk.f32.mxu0 %vm91_vm0, %v34_v46  ;;  %1026 = vmatprep.mubr.msk.f32.mxu1 %vm91_vm0, %v66_v47 }
  0x37   :  { %979 = vmatmul.mubr.msk.f32.gmra.mxu0 %vm91_vm0, %v35_v48  ;;  %1027 = vmatmul.mubr.msk.f32.gmra.mxu1 %vm91_vm0, %v67_v49 }
  0x38   :  { %981 = vmatprep.mubr.msk.f32.mxu0 %vm91_vm0, %v36_v50  ;;  %1029 = vmatprep.mubr.msk.f32.mxu1 %vm91_vm0, %v68_v51 }
  0x3b   :  { %982 = vmatmul.mubr.msk.f32.gmra.mxu0 %vm91_vm0, %v37_v52  ;;  %1030 = vmatmul.mubr.msk.f32.gmra.mxu1 %vm91_vm0, %v69_v53 }
  0x3c   :  { %984 = vmatprep.mubr.msk.f32.mxu0 %vm91_vm0, %v38_v54  ;;  %1032 = vmatprep.mubr.msk.f32.mxu1 %vm91_vm0, %v70_v55 }
  0x3f   :  { %985 = vmatmul.mubr.msk.f32.gmra.mxu0 %vm91_vm0, %v39_v56  ;;  %1033 = vmatmul.mubr.msk.f32.gmra.mxu1 %vm91_vm0, %v71_v57 }
  0x40   :  { %987 = vmatprep.mubr.msk.f32.mxu0 %vm91_vm0, %v40_v58  ;;  %1035 = vmatprep.mubr.msk.f32.mxu1 %vm91_vm0, %v72_v59 }
  0x43   :  { %988 = vmatmul.mubr.msk.f32.gmra.mxu0 %vm91_vm0, %v41_v60  ;;  %1036 = vmatmul.mubr.msk.f32.gmra.mxu1 %vm91_vm0, %v73_v61 }
  0x44   :  { %990 = vmatprep.mubr.msk.f32.mxu0 %vm91_vm0, %v42_v62  ;;  %1038 = vmatprep.mubr.msk.f32.mxu1 %vm91_vm0, %v74_v63 }
  0x47   :  { %991 = vmatmul.mubr.msk.f32.gmra.mxu0 %vm91_vm0, %v43_v0  ;;  %1039 = vmatmul.mubr.msk.f32.gmra.mxu1 %vm91_vm0, %v75_v1 }
  0x48   :  { %993 = vmatprep.mubr.msk.f32.mxu0 %vm91_vm0, %v44_v2  ;;  %1041 = vmatprep.mubr.msk.f32.mxu1 %vm91_vm0, %v76_v3 }
  0x4b   :  { %994 = vmatmul.mubr.msk.f32.gmra.mxu0 %vm91_vm0, %v45_v4  ;;  %1042 = vmatmul.mubr.msk.f32.gmra.mxu1 %vm91_vm0, %v77_v5 }
  0xcf   :  { %v950_v7 = vpop.f32.mrf.mxu0  ;;  %v998_v8 = vpop.f32.mrf.mxu1 }
  0xd0   :  { %v356_v9 = vadd.f32 %v950_v7, %v1353_v6  ;;  %v516_v10 = vadd.f32 %v998_v8, %v1353_v6 }
  0xd1   :  { %v350_v11 = vpop.f32.mrf.mxu0  ;;  %v510_v12 = vpop.f32.mrf.mxu1 }
  0xd2   :  { %v670_v13 = vmax.f32 %v356_v9, 0.0  ;;  %v702_v14 = vmax.f32 %v516_v10, 0.0  ;;  %v351_v15 = vadd.f32 %v1353_v6, %v350_v11  ;;  %v511_v16 = vadd.f32 %v1353_v6, %v510_v12 }
  0xd3   :  { %v953_v17 = vpop.f32.mrf.mxu0  ;;  %v1001_v18 = vpop.f32.mrf.mxu1 }
  0xd4   :  { %734 = vst [vmem:[%s1614_s3 + $0x8] sm:$0xff] %v670_v13  ;;  %766 = vst [vmem:[%s1614_s3 + $0x108] sm:$0xff] %v702_v14  ;;  %v669_v19 = vmax.f32 %v351_v15, 0.0  ;;  %v701_v20 = vmax.f32 %v511_v16, 0.0  ;;  %v366_v21 = vadd.f32 %v953_v17, %v1353_v6  ;;  %v526_v22 = vadd.f32 %v1001_v18, %v1353_v6 }
  0xd5   :  { %v360_v23 = vpop.f32.mrf.mxu0  ;;  %v520_v24 = vpop.f32.mrf.mxu1 }
  0xd6   :  { %733 = vst [vmem:[%s1614_s3] sm:$0xff] %v669_v19  ;;  %765 = vst [vmem:[%s1614_s3 + $0x100] sm:$0xff] %v701_v20  ;;  %v672_v25 = vmax.f32 %v366_v21, 0.0  ;;  %v704_v26 = vmax.f32 %v526_v22, 0.0  ;;  %v361_v27 = vadd.f32 %v1353_v6, %v360_v23  ;;  %v521_v28 = vadd.f32 %v1353_v6, %v520_v24 }
  0xd7   :  { %v956_v29 = vpop.f32.mrf.mxu0  ;;  %v1004_v30 = vpop.f32.mrf.mxu1 }
  0xd8   :  { %736 = vst [vmem:[%s1614_s3 + $0x18] sm:$0xff] %v672_v25  ;;  %768 = vst [vmem:[%s1614_s3 + $0x118] sm:$0xff] %v704_v26  ;;  %v671_v31 = vmax.f32 %v361_v27, 0.0  ;;  %v703_v32 = vmax.f32 %v521_v28, 0.0  ;;  %v376_v33 = vadd.f32 %v956_v29, %v1353_v6  ;;  %v536_v34 = vadd.f32 %v1004_v30, %v1353_v6 }
  0xd9   :  { %v370_v35 = vpop.f32.mrf.mxu0  ;;  %v530_v36 = vpop.f32.mrf.mxu1 }
  0xda   :  { %735 = vst [vmem:[%s1614_s3 + $0x10] sm:$0xff] %v671_v31  ;;  %767 = vst [vmem:[%s1614_s3 + $0x110] sm:$0xff] %v703_v32  ;;  %v674_v37 = vmax.f32 %v376_v33, 0.0  ;;  %v706_v38 = vmax.f32 %v536_v34, 0.0  ;;  %v371_v39 = vadd.f32 %v1353_v6, %v370_v35  ;;  %v531_v40 = vadd.f32 %v1353_v6, %v530_v36 }
  0xdb   :  { %v959_v41 = vpop.f32.mrf.mxu0  ;;  %v1007_v42 = vpop.f32.mrf.mxu1 }
  0xdc   :  { %738 = vst [vmem:[%s1614_s3 + $0x28] sm:$0xff] %v674_v37  ;;  %770 = vst [vmem:[%s1614_s3 + $0x128] sm:$0xff] %v706_v38  ;;  %v673_v43 = vmax.f32 %v371_v39, 0.0  ;;  %v705_v44 = vmax.f32 %v531_v40, 0.0  ;;  %v386_v45 = vadd.f32 %v959_v41, %v1353_v6  ;;  %v546_v46 = vadd.f32 %v1007_v42, %v1353_v6 }
  0xdd   :  { %v380_v47 = vpop.f32.mrf.mxu0  ;;  %v540_v48 = vpop.f32.mrf.mxu1 }
  0xde   :  { %737 = vst [vmem:[%s1614_s3 + $0x20] sm:$0xff] %v673_v43  ;;  %769 = vst [vmem:[%s1614_s3 + $0x120] sm:$0xff] %v705_v44  ;;  %v676_v49 = vmax.f32 %v386_v45, 0.0  ;;  %v708_v50 = vmax.f32 %v546_v46, 0.0  ;;  %v381_v51 = vadd.f32 %v1353_v6, %v380_v47  ;;  %v541_v52 = vadd.f32 %v1353_v6, %v540_v48 }
  0xdf   :  { %v962_v53 = vpop.f32.mrf.mxu0  ;;  %v1010_v54 = vpop.f32.mrf.mxu1 }
  0xe0   :  { %740 = vst [vmem:[%s1614_s3 + $0x38] sm:$0xff] %v676_v49  ;;  %772 = vst [vmem:[%s1614_s3 + $0x138] sm:$0xff] %v708_v50  ;;  %v675_v55 = vmax.f32 %v381_v51, 0.0  ;;  %v707_v56 = vmax.f32 %v541_v52, 0.0  ;;  %v396_v57 = vadd.f32 %v962_v53, %v1353_v6  ;;  %v556_v58 = vadd.f32 %v1010_v54, %v1353_v6 }
  0xe1   :  { %v390_v59 = vpop.f32.mrf.mxu0  ;;  %v550_v60 = vpop.f32.mrf.mxu1 }
  0xe2   :  { %739 = vst [vmem:[%s1614_s3 + $0x30] sm:$0xff] %v675_v55  ;;  %771 = vst [vmem:[%s1614_s3 + $0x130] sm:$0xff] %v707_v56  ;;  %v678_v61 = vmax.f32 %v396_v57, 0.0  ;;  %v710_v62 = vmax.f32 %v556_v58, 0.0  ;;  %v391_v63 = vadd.f32 %v1353_v6, %v390_v59  ;;  %v551_v0 = vadd.f32 %v1353_v6, %v550_v60 }
  0xe3   :  { %v965_v1 = vpop.f32.mrf.mxu0  ;;  %v1013_v2 = vpop.f32.mrf.mxu1 }
  0xe4   :  { %742 = vst [vmem:[%s1614_s3 + $0x48] sm:$0xff] %v678_v61  ;;  %774 = vst [vmem:[%s1614_s3 + $0x148] sm:$0xff] %v710_v62  ;;  %v677_v3 = vmax.f32 %v391_v63, 0.0  ;;  %v709_v4 = vmax.f32 %v551_v0, 0.0  ;;  %v406_v5 = vadd.f32 %v965_v1, %v1353_v6  ;;  %v566_v7 = vadd.f32 %v1013_v2, %v1353_v6 }
  0xe5   :  { %v400_v8 = vpop.f32.mrf.mxu0  ;;  %v560_v9 = vpop.f32.mrf.mxu1 }
  0xe6   :  { %741 = vst [vmem:[%s1614_s3 + $0x40] sm:$0xff] %v677_v3  ;;  %773 = vst [vmem:[%s1614_s3 + $0x140] sm:$0xff] %v709_v4  ;;  %v680_v10 = vmax.f32 %v406_v5, 0.0  ;;  %v712_v11 = vmax.f32 %v566_v7, 0.0  ;;  %v401_v12 = vadd.f32 %v1353_v6, %v400_v8  ;;  %v561_v13 = vadd.f32 %v1353_v6, %v560_v9 }
  0xe7   :  { %v968_v14 = vpop.f32.mrf.mxu0  ;;  %v1016_v15 = vpop.f32.mrf.mxu1 }
  0xe8   :  { %744 = vst [vmem:[%s1614_s3 + $0x58] sm:$0xff] %v680_v10  ;;  %776 = vst [vmem:[%s1614_s3 + $0x158] sm:$0xff] %v712_v11  ;;  %v679_v16 = vmax.f32 %v401_v12, 0.0  ;;  %v711_v17 = vmax.f32 %v561_v13, 0.0  ;;  %v416_v18 = vadd.f32 %v968_v14, %v1353_v6  ;;  %v576_v19 = vadd.f32 %v1016_v15, %v1353_v6 }
  0xe9   :  { %v410_v20 = vpop.f32.mrf.mxu0  ;;  %v570_v21 = vpop.f32.mrf.mxu1 }
  0xea   :  { %743 = vst [vmem:[%s1614_s3 + $0x50] sm:$0xff] %v679_v16  ;;  %775 = vst [vmem:[%s1614_s3 + $0x150] sm:$0xff] %v711_v17  ;;  %v682_v22 = vmax.f32 %v416_v18, 0.0  ;;  %v714_v23 = vmax.f32 %v576_v19, 0.0  ;;  %v411_v24 = vadd.f32 %v1353_v6, %v410_v20  ;;  %v571_v25 = vadd.f32 %v1353_v6, %v570_v21 }
  0xeb   :  { %v971_v26 = vpop.f32.mrf.mxu0  ;;  %v1019_v27 = vpop.f32.mrf.mxu1 }
  0xec   :  { %746 = vst [vmem:[%s1614_s3 + $0x68] sm:$0xff] %v682_v22  ;;  %778 = vst [vmem:[%s1614_s3 + $0x168] sm:$0xff] %v714_v23  ;;  %v681_v28 = vmax.f32 %v411_v24, 0.0  ;;  %v713_v29 = vmax.f32 %v571_v25, 0.0  ;;  %v426_v30 = vadd.f32 %v971_v26, %v1353_v6  ;;  %v586_v31 = vadd.f32 %v1019_v27, %v1353_v6 }
  0xed   :  { %v420_v32 = vpop.f32.mrf.mxu0  ;;  %v580_v33 = vpop.f32.mrf.mxu1 }
  0xee   :  { %745 = vst [vmem:[%s1614_s3 + $0x60] sm:$0xff] %v681_v28  ;;  %777 = vst [vmem:[%s1614_s3 + $0x160] sm:$0xff] %v713_v29  ;;  %v684_v34 = vmax.f32 %v426_v30, 0.0  ;;  %v716_v35 = vmax.f32 %v586_v31, 0.0  ;;  %v421_v36 = vadd.f32 %v1353_v6, %v420_v32  ;;  %v581_v37 = vadd.f32 %v1353_v6, %v580_v33 }
  0xef   :  { %v974_v38 = vpop.f32.mrf.mxu0  ;;  %v1022_v39 = vpop.f32.mrf.mxu1 }
  0xf0   :  { %748 = vst [vmem:[%s1614_s3 + $0x78] sm:$0xff] %v684_v34  ;;  %780 = vst [vmem:[%s1614_s3 + $0x178] sm:$0xff] %v716_v35  ;;  %v683_v40 = vmax.f32 %v421_v36, 0.0  ;;  %v715_v41 = vmax.f32 %v581_v37, 0.0  ;;  %v436_v42 = vadd.f32 %v974_v38, %v1353_v6  ;;  %v596_v43 = vadd.f32 %v1022_v39, %v1353_v6 }
  0xf1   :  { %v430_v44 = vpop.f32.mrf.mxu0  ;;  %v590_v45 = vpop.f32.mrf.mxu1 }
  0xf2   :  { %747 = vst [vmem:[%s1614_s3 + $0x70] sm:$0xff] %v683_v40  ;;  %779 = vst [vmem:[%s1614_s3 + $0x170] sm:$0xff] %v715_v41  ;;  %v686_v46 = vmax.f32 %v436_v42, 0.0  ;;  %v718_v47 = vmax.f32 %v596_v43, 0.0  ;;  %v431_v48 = vadd.f32 %v1353_v6, %v430_v44  ;;  %v591_v49 = vadd.f32 %v1353_v6, %v590_v45 }
  0xf3   :  { %v977_v50 = vpop.f32.mrf.mxu0  ;;  %v1025_v51 = vpop.f32.mrf.mxu1 }
  0xf4   :  { %750 = vst [vmem:[%s1614_s3 + $0x88] sm:$0xff] %v686_v46  ;;  %782 = vst [vmem:[%s1614_s3 + $0x188] sm:$0xff] %v718_v47  ;;  %v685_v52 = vmax.f32 %v431_v48, 0.0  ;;  %v717_v53 = vmax.f32 %v591_v49, 0.0  ;;  %v446_v54 = vadd.f32 %v977_v50, %v1353_v6  ;;  %v606_v55 = vadd.f32 %v1025_v51, %v1353_v6 }
  0xf5   :  { %v440_v56 = vpop.f32.mrf.mxu0  ;;  %v600_v57 = vpop.f32.mrf.mxu1 }
  0xf6   :  { %749 = vst [vmem:[%s1614_s3 + $0x80] sm:$0xff] %v685_v52  ;;  %781 = vst [vmem:[%s1614_s3 + $0x180] sm:$0xff] %v717_v53  ;;  %v688_v58 = vmax.f32 %v446_v54, 0.0  ;;  %v720_v59 = vmax.f32 %v606_v55, 0.0  ;;  %v441_v60 = vadd.f32 %v1353_v6, %v440_v56  ;;  %v601_v61 = vadd.f32 %v1353_v6, %v600_v57 }
  0xf7   :  { %v980_v62 = vpop.f32.mrf.mxu0  ;;  %v1028_v63 = vpop.f32.mrf.mxu1 }
  0xf8   :  { %752 = vst [vmem:[%s1614_s3 + $0x98] sm:$0xff] %v688_v58  ;;  %784 = vst [vmem:[%s1614_s3 + $0x198] sm:$0xff] %v720_v59  ;;  %v687_v0 = vmax.f32 %v441_v60, 0.0  ;;  %v719_v1 = vmax.f32 %v601_v61, 0.0  ;;  %v456_v2 = vadd.f32 %v980_v62, %v1353_v6  ;;  %v616_v3 = vadd.f32 %v1028_v63, %v1353_v6 }
  0xf9   :  { %v450_v4 = vpop.f32.mrf.mxu0  ;;  %v610_v5 = vpop.f32.mrf.mxu1 }
  0xfa   :  { %751 = vst [vmem:[%s1614_s3 + $0x90] sm:$0xff] %v687_v0  ;;  %783 = vst [vmem:[%s1614_s3 + $0x190] sm:$0xff] %v719_v1  ;;  %v690_v7 = vmax.f32 %v456_v2, 0.0  ;;  %v722_v8 = vmax.f32 %v616_v3, 0.0  ;;  %v451_v9 = vadd.f32 %v1353_v6, %v450_v4  ;;  %v611_v10 = vadd.f32 %v1353_v6, %v610_v5 }
  0xfb   :  { %v983_v11 = vpop.f32.mrf.mxu0  ;;  %v1031_v12 = vpop.f32.mrf.mxu1 }
  0xfc   :  { %754 = vst [vmem:[%s1614_s3 + $0xa8] sm:$0xff] %v690_v7  ;;  %786 = vst [vmem:[%s1614_s3 + $0x1a8] sm:$0xff] %v722_v8  ;;  %v689_v13 = vmax.f32 %v451_v9, 0.0  ;;  %v721_v14 = vmax.f32 %v611_v10, 0.0  ;;  %v466_v15 = vadd.f32 %v983_v11, %v1353_v6  ;;  %v626_v16 = vadd.f32 %v1031_v12, %v1353_v6 }
  0xfd   :  { %v460_v17 = vpop.f32.mrf.mxu0  ;;  %v620_v18 = vpop.f32.mrf.mxu1 }
  0xfe   :  { %753 = vst [vmem:[%s1614_s3 + $0xa0] sm:$0xff] %v689_v13  ;;  %785 = vst [vmem:[%s1614_s3 + $0x1a0] sm:$0xff] %v721_v14  ;;  %v692_v19 = vmax.f32 %v466_v15, 0.0  ;;  %v724_v20 = vmax.f32 %v626_v16, 0.0  ;;  %v461_v21 = vadd.f32 %v1353_v6, %v460_v17  ;;  %v621_v22 = vadd.f32 %v1353_v6, %v620_v18 }
  0xff   :  { %v986_v23 = vpop.f32.mrf.mxu0  ;;  %v1034_v24 = vpop.f32.mrf.mxu1 }
 0x100   :  { %756 = vst [vmem:[%s1614_s3 + $0xb8] sm:$0xff] %v692_v19  ;;  %788 = vst [vmem:[%s1614_s3 + $0x1b8] sm:$0xff] %v724_v20  ;;  %v691_v25 = vmax.f32 %v461_v21, 0.0  ;;  %v723_v26 = vmax.f32 %v621_v22, 0.0  ;;  %v476_v27 = vadd.f32 %v986_v23, %v1353_v6  ;;  %v636_v28 = vadd.f32 %v1034_v24, %v1353_v6 }
 0x101   :  { %v470_v29 = vpop.f32.mrf.mxu0  ;;  %v630_v30 = vpop.f32.mrf.mxu1 }
 0x102   :  { %755 = vst [vmem:[%s1614_s3 + $0xb0] sm:$0xff] %v691_v25  ;;  %787 = vst [vmem:[%s1614_s3 + $0x1b0] sm:$0xff] %v723_v26  ;;  %v694_v31 = vmax.f32 %v476_v27, 0.0  ;;  %v726_v32 = vmax.f32 %v636_v28, 0.0  ;;  %v471_v33 = vadd.f32 %v1353_v6, %v470_v29  ;;  %v631_v34 = vadd.f32 %v1353_v6, %v630_v30 }
 0x103   :  { %v989_v35 = vpop.f32.mrf.mxu0  ;;  %v1037_v36 = vpop.f32.mrf.mxu1 }
 0x104   :  { %758 = vst [vmem:[%s1614_s3 + $0xc8] sm:$0xff] %v694_v31  ;;  %790 = vst [vmem:[%s1614_s3 + $0x1c8] sm:$0xff] %v726_v32  ;;  %v693_v37 = vmax.f32 %v471_v33, 0.0  ;;  %v725_v38 = vmax.f32 %v631_v34, 0.0  ;;  %v486_v39 = vadd.f32 %v989_v35, %v1353_v6  ;;  %v646_v40 = vadd.f32 %v1037_v36, %v1353_v6 }
 0x105   :  { %v480_v41 = vpop.f32.mrf.mxu0  ;;  %v640_v42 = vpop.f32.mrf.mxu1 }
 0x106   :  { %757 = vst [vmem:[%s1614_s3 + $0xc0] sm:$0xff] %v693_v37  ;;  %789 = vst [vmem:[%s1614_s3 + $0x1c0] sm:$0xff] %v725_v38  ;;  %v696_v43 = vmax.f32 %v486_v39, 0.0  ;;  %v728_v44 = vmax.f32 %v646_v40, 0.0  ;;  %v481_v45 = vadd.f32 %v1353_v6, %v480_v41  ;;  %v641_v46 = vadd.f32 %v1353_v6, %v640_v42 }
 0x107   :  { %v992_v47 = vpop.f32.mrf.mxu0  ;;  %v1040_v48 = vpop.f32.mrf.mxu1 }
 0x108   :  { %760 = vst [vmem:[%s1614_s3 + $0xd8] sm:$0xff] %v696_v43  ;;  %792 = vst [vmem:[%s1614_s3 + $0x1d8] sm:$0xff] %v728_v44  ;;  %v695_v49 = vmax.f32 %v481_v45, 0.0  ;;  %v727_v50 = vmax.f32 %v641_v46, 0.0  ;;  %v496_v51 = vadd.f32 %v992_v47, %v1353_v6  ;;  %v656_v52 = vadd.f32 %v1040_v48, %v1353_v6 }
 0x109   :  { %v490_v53 = vpop.f32.mrf.mxu0  ;;  %v650_v54 = vpop.f32.mrf.mxu1 }
 0x10a   :  { %759 = vst [vmem:[%s1614_s3 + $0xd0] sm:$0xff] %v695_v49  ;;  %791 = vst [vmem:[%s1614_s3 + $0x1d0] sm:$0xff] %v727_v50  ;;  %v698_v55 = vmax.f32 %v496_v51, 0.0  ;;  %v730_v56 = vmax.f32 %v656_v52, 0.0  ;;  %v491_v57 = vadd.f32 %v1353_v6, %v490_v53  ;;  %v651_v58 = vadd.f32 %v1353_v6, %v650_v54 }
 0x10b   :  { %v995_v59 = vpop.f32.mrf.mxu0  ;;  %v1043_v60 = vpop.f32.mrf.mxu1 }
 0x10c   :  { %762 = vst [vmem:[%s1614_s3 + $0xe8] sm:$0xff] %v698_v55  ;;  %794 = vst [vmem:[%s1614_s3 + $0x1e8] sm:$0xff] %v730_v56  ;;  %v697_v61 = vmax.f32 %v491_v57, 0.0  ;;  %v729_v62 = vmax.f32 %v651_v58, 0.0  ;;  %v506_v63 = vadd.f32 %v995_v59, %v1353_v6  ;;  %v666_v0 = vadd.f32 %v1043_v60, %v1353_v6 }
 0x10d   :  { %v500_v1 = vpop.f32.mrf.mxu0  ;;  %v660_v2 = vpop.f32.mrf.mxu1 }
 0x10e   :  { %761 = vst [vmem:[%s1614_s3 + $0xe0] sm:$0xff] %v697_v61  ;;  %793 = vst [vmem:[%s1614_s3 + $0x1e0] sm:$0xff] %v729_v62  ;;  %v700_v3 = vmax.f32 %v506_v63, 0.0  ;;  %v732_v4 = vmax.f32 %v666_v0, 0.0  ;;  %v501_v5 = vadd.f32 %v1353_v6, %v500_v1  ;;  %v661_v7 = vadd.f32 %v1353_v6, %v660_v2 }
 0x110   :  { %764 = vst [vmem:[%s1614_s3 + $0xf8] sm:$0xff] %v700_v3  ;;  %796 = vst [vmem:[%s1614_s3 + $0x1f8] sm:$0xff] %v732_v4  ;;  %v699_v8 = vmax.f32 %v501_v5, 0.0  ;;  %v731_v9 = vmax.f32 %v661_v7, 0.0 }
 0x112   :  { %763 = vst [vmem:[%s1614_s3 + $0xf0] sm:$0xff] %v699_v8  ;;  %795 = vst [vmem:[%s1614_s3 + $0x1f0] sm:$0xff] %v731_v9 }

// kernel: forward.8
= control target key start
LH: loop header
LB: loop body
LE: loop exit
PB: predicated region body
PF: predicated region fallthrough
CT: control target
= control target key end

     0   :  { %s522_s1 = inlined_call_operand.vmem [shape: f32[128,128], index: 1, kind: input, shape index: {}]   ;;  %s523_s0 = inlined_call_operand.vmem [shape: f32[128,128], index: 0, kind: input, shape index: {}]   ;;  %s524_s2 = inlined_call_operand.vmem [shape: f32[1,128], index: 2, kind: input, shape index: {}]   ;;  %s525_s3 = inlined_call_operand.vmem [shape: f32[128,128], index: 3, kind: output, shape index: {}]  }
   0x1   :  { %v45_v0 = vld [vmem:[%s522_s1 + $0x78] sm:$0xff]  ;;  %v44_v1 = vld [vmem:[%s522_s1 + $0x70] sm:$0xff]  ;;  %v43_v2 = vld [vmem:[%s522_s1 + $0x68] sm:$0xff] }
   0x2   :  { %267 = vmatprep.subr.mxu0 %v45_v0  ;;  %323 = vmatprep.subr.mxu1 %v45_v0  ;;  %v42_v3 = vld [vmem:[%s522_s1 + $0x60] sm:$0xff]  ;;  %v41_v4 = vld [vmem:[%s522_s1 + $0x58] sm:$0xff]  ;;  %v40_v5 = vld [vmem:[%s522_s1 + $0x50] sm:$0xff] }
   0x3   :  { %268 = vmatpush3.msra.mxu0 %v45_v0  ;;  %339 = vmatpush3.msra.mxu1 %v45_v0  ;;  %v39_v6 = vld [vmem:[%s522_s1 + $0x48] sm:$0xff]  ;;  %v38_v7 = vld [vmem:[%s522_s1 + $0x40] sm:$0xff]  ;;  %v37_v8 = vld [vmem:[%s522_s1 + $0x38] sm:$0xff] }
   0x4   :  { %269 = vmatprep.subr.mxu0 %v44_v1  ;;  %324 = vmatprep.subr.mxu1 %v44_v1  ;;  %v36_v9 = vld [vmem:[%s522_s1 + $0x30] sm:$0xff]  ;;  %v35_v10 = vld [vmem:[%s522_s1 + $0x28] sm:$0xff]  ;;  %v34_v11 = vld [vmem:[%s522_s1 + $0x20] sm:$0xff] }
   0x5   :  { %270 = vmatpush3.msra.mxu0 %v44_v1  ;;  %340 = vmatpush3.msra.mxu1 %v44_v1  ;;  %v33_v12 = vld [vmem:[%s522_s1 + $0x18] sm:$0xff]  ;;  %v32_v13 = vld [vmem:[%s522_s1 + $0x10] sm:$0xff]  ;;  %v31_v14 = vld [vmem:[%s522_s1 + $0x8] sm:$0xff] }
   0x6   :  { %271 = vmatprep.subr.mxu0 %v43_v2  ;;  %325 = vmatprep.subr.mxu1 %v43_v2  ;;  %v30_v15 = vld [vmem:[%s522_s1] sm:$0xff]  ;;  %v15_v18 = vld [vmem:[%s523_s0 + $0x8] sm:$0xff]  ;;  %v16_v20 = vld [vmem:[%s523_s0 + $0x10] sm:$0xff] }
   0x7   :  { %272 = vmatpush3.msra.mxu0 %v43_v2  ;;  %341 = vmatpush3.msra.mxu1 %v43_v2  ;;  %v14_v16 = vld [vmem:[%s523_s0] sm:$0xff]  ;;  %v23_v19 = vld [vmem:[%s523_s0 + $0x48] sm:$0xff]  ;;  %v24_v21 = vld [vmem:[%s523_s0 + $0x50] sm:$0xff] }
   0x8   :  { %273 = vmatprep.subr.mxu0 %v42_v3  ;;  %326 = vmatprep.subr.mxu1 %v42_v3  ;;  %v22_v17 = vld [vmem:[%s523_s0 + $0x40] sm:$0xff]  ;;  %v17_v22 = vld [vmem:[%s523_s0 + $0x18] sm:$0xff]  ;;  %v19_v26 = vld [vmem:[%s523_s0 + $0x28] sm:$0xff] }
   0x9   :  { %274 = vmatpush3.msra.mxu0 %v42_v3  ;;  %342 = vmatpush3.msra.mxu1 %v42_v3  ;;  %v25_v23 = vld [vmem:[%s523_s0 + $0x58] sm:$0xff]  ;;  %v18_v24 = vld [vmem:[%s523_s0 + $0x20] sm:$0xff]  ;;  %v27_v27 = vld [vmem:[%s523_s0 + $0x68] sm:$0xff] }
   0xa   :  { %275 = vmatprep.subr.mxu0 %v41_v4  ;;  %327 = vmatprep.subr.mxu1 %v41_v4  ;;  %v26_v25 = vld [vmem:[%s523_s0 + $0x60] sm:$0xff]  ;;  %v20_v28 = vld [vmem:[%s523_s0 + $0x30] sm:$0xff]  ;;  %v21_v30 = vld [vmem:[%s523_s0 + $0x38] sm:$0xff] }
   0xb   :  { %276 = vmatpush3.msra.mxu0 %v41_v4  ;;  %343 = vmatpush3.msra.mxu1 %v41_v4  ;;  %v28_v29 = vld [vmem:[%s523_s0 + $0x70] sm:$0xff]  ;;  %v29_v31 = vld [vmem:[%s523_s0 + $0x78] sm:$0xff]  ;;  %v234_v32 = vld [vmem:[%s524_s2] ss:$0 sm:$0xff] }
   0xc   :  { %277 = vmatprep.subr.mxu0 %v40_v5  ;;  %328 = vmatprep.subr.mxu1 %v40_v5 }
   0xd   :  { %278 = vmatpush3.msra.mxu0 %v40_v5  ;;  %344 = vmatpush3.msra.mxu1 %v40_v5 }
   0xe   :  { %279 = vmatprep.subr.mxu0 %v39_v6  ;;  %329 = vmatprep.subr.mxu1 %v39_v6 }
   0xf   :  { %280 = vmatpush3.msra.mxu0 %v39_v6  ;;  %345 = vmatpush3.msra.mxu1 %v39_v6 }
  0x10   :  { %281 = vmatprep.subr.mxu0 %v38_v7  ;;  %330 = vmatprep.subr.mxu1 %v38_v7 }
  0x11   :  { %282 = vmatpush3.msra.mxu0 %v38_v7  ;;  %346 = vmatpush3.msra.mxu1 %v38_v7 }
  0x12   :  { %283 = vmatprep.subr.mxu0 %v37_v8  ;;  %331 = vmatprep.subr.mxu1 %v37_v8 }
  0x13   :  { %284 = vmatpush3.msra.mxu0 %v37_v8  ;;  %347 = vmatpush3.msra.mxu1 %v37_v8 }
  0x14   :  { %285 = vmatprep.subr.mxu0 %v36_v9  ;;  %332 = vmatprep.subr.mxu1 %v36_v9 }
  0x15   :  { %286 = vmatpush3.msra.mxu0 %v36_v9  ;;  %348 = vmatpush3.msra.mxu1 %v36_v9 }
  0x16   :  { %287 = vmatprep.subr.mxu0 %v35_v10  ;;  %333 = vmatprep.subr.mxu1 %v35_v10 }
  0x17   :  { %288 = vmatpush3.msra.mxu0 %v35_v10  ;;  %349 = vmatpush3.msra.mxu1 %v35_v10 }
  0x18   :  { %289 = vmatprep.subr.mxu0 %v34_v11  ;;  %334 = vmatprep.subr.mxu1 %v34_v11 }
  0x19   :  { %290 = vmatpush3.msra.mxu0 %v34_v11  ;;  %350 = vmatpush3.msra.mxu1 %v34_v11 }
  0x1a   :  { %291 = vmatprep.subr.mxu0 %v33_v12  ;;  %335 = vmatprep.subr.mxu1 %v33_v12 }
  0x1b   :  { %292 = vmatpush3.msra.mxu0 %v33_v12  ;;  %351 = vmatpush3.msra.mxu1 %v33_v12 }
  0x1c   :  { %293 = vmatprep.subr.mxu0 %v32_v13  ;;  %336 = vmatprep.subr.mxu1 %v32_v13 }
  0x1d   :  { %294 = vmatpush3.msra.mxu0 %v32_v13  ;;  %352 = vmatpush3.msra.mxu1 %v32_v13 }
  0x1e   :  { %295 = vmatprep.subr.mxu0 %v31_v14  ;;  %337 = vmatprep.subr.mxu1 %v31_v14 }
  0x1f   :  { %296 = vmatpush3.msra.mxu0 %v31_v14  ;;  %353 = vmatpush3.msra.mxu1 %v31_v14 }
  0x20   :  { %297 = vmatprep.subr.mxu0 %v30_v15  ;;  %338 = vmatprep.subr.mxu1 %v30_v15 }
  0x21   :  { %298 = vmatpush3.msra.mxu0 %v30_v15  ;;  %354 = vmatpush3.msra.mxu1 %v30_v15 }
  0x22   :  { %299 = vmatprep.mubr.f32.mxu0 %v14_v16  ;;  %311 = vmatprep.mubr.f32.mxu1 %v22_v17 }
  0x23   :  { %300 = vmatmul.mubr.f32.vlgmr.msra.gmra.mxu0 %v15_v18  ;;  %312 = vmatmul.mubr.f32.vlgmr.msra.gmra.mxu1 %v23_v19 }
  0x24   :  { %302 = vmatprep.mubr.f32.mxu0 %v16_v20  ;;  %314 = vmatprep.mubr.f32.mxu1 %v24_v21 }
  0x27   :  { %303 = vmatmul.mubr.f32.gmra.mxu0 %v17_v22  ;;  %315 = vmatmul.mubr.f32.gmra.mxu1 %v25_v23 }
  0x28   :  { %305 = vmatprep.mubr.f32.mxu0 %v18_v24  ;;  %317 = vmatprep.mubr.f32.mxu1 %v26_v25 }
  0x2b   :  { %306 = vmatmul.mubr.f32.gmra.mxu0 %v19_v26  ;;  %318 = vmatmul.mubr.f32.gmra.mxu1 %v27_v27 }
  0x2c   :  { %308 = vmatprep.mubr.f32.mxu0 %v20_v28  ;;  %320 = vmatprep.mubr.f32.mxu1 %v28_v29 }
  0x2f   :  { %309 = vmatmul.mubr.f32.gmra.mxu0 %v21_v30  ;;  %321 = vmatmul.mubr.f32.gmra.mxu1 %v29_v31 }
  0xe3   :  { %v301_v33 = vpop.f32.mrf.mxu0  ;;  %v313_v34 = vpop.f32.mrf.mxu1 }
  0xe4   :  { %v125_v35 = vadd.f32 %v301_v33, %v234_v32  ;;  %v165_v36 = vadd.f32 %v313_v34, %v234_v32 }
  0xe5   :  { %v119_v37 = vpop.f32.mrf.mxu0  ;;  %v159_v38 = vpop.f32.mrf.mxu1 }
  0xe6   :  { %v199_v39 = vmax.f32 %v125_v35, 0.0  ;;  %v207_v40 = vmax.f32 %v165_v36, 0.0  ;;  %v120_v41 = vadd.f32 %v234_v32, %v119_v37  ;;  %v160_v42 = vadd.f32 %v234_v32, %v159_v38 }
  0xe7   :  { %v304_v43 = vpop.f32.mrf.mxu0  ;;  %v316_v44 = vpop.f32.mrf.mxu1 }
  0xe8   :  { %215 = vst [vmem:[%s525_s3 + $0x8] sm:$0xff] %v199_v39  ;;  %223 = vst [vmem:[%s525_s3 + $0x48] sm:$0xff] %v207_v40  ;;  %v198_v45 = vmax.f32 %v120_v41, 0.0  ;;  %v206_v46 = vmax.f32 %v160_v42, 0.0  ;;  %v135_v47 = vadd.f32 %v304_v43, %v234_v32  ;;  %v175_v48 = vadd.f32 %v316_v44, %v234_v32 }
  0xe9   :  { %v129_v49 = vpop.f32.mrf.mxu0  ;;  %v169_v50 = vpop.f32.mrf.mxu1 }
  0xea   :  { %214 = vst [vmem:[%s525_s3] sm:$0xff] %v198_v45  ;;  %222 = vst [vmem:[%s525_s3 + $0x40] sm:$0xff] %v206_v46  ;;  %v201_v51 = vmax.f32 %v135_v47, 0.0  ;;  %v209_v52 = vmax.f32 %v175_v48, 0.0  ;;  %v130_v53 = vadd.f32 %v234_v32, %v129_v49  ;;  %v170_v54 = vadd.f32 %v234_v32, %v169_v50 }
  0xeb   :  { %v307_v55 = vpop.f32.mrf.mxu0  ;;  %v319_v56 = vpop.f32.mrf.mxu1 }
  0xec   :  { %217 = vst [vmem:[%s525_s3 + $0x18] sm:$0xff] %v201_v51  ;;  %225 = vst [vmem:[%s525_s3 + $0x58] sm:$0xff] %v209_v52  ;;  %v200_v57 = vmax.f32 %v130_v53, 0.0  ;;  %v208_v58 = vmax.f32 %v170_v54, 0.0  ;;  %v145_v59 = vadd.f32 %v307_v55, %v234_v32  ;;  %v185_v60 = vadd.f32 %v319_v56, %v234_v32 }
  0xed   :  { %v139_v61 = vpop.f32.mrf.mxu0  ;;  %v179_v62 = vpop.f32.mrf.mxu1 }
  0xee   :  { %216 = vst [vmem:[%s525_s3 + $0x10] sm:$0xff] %v200_v57  ;;  %224 = vst [vmem:[%s525_s3 + $0x50] sm:$0xff] %v208_v58  ;;  %v203_v63 = vmax.f32 %v145_v59, 0.0  ;;  %v211_v0 = vmax.f32 %v185_v60, 0.0  ;;  %v140_v1 = vadd.f32 %v234_v32, %v139_v61  ;;  %v180_v2 = vadd.f32 %v234_v32, %v179_v62 }
  0xef   :  { %v310_v3 = vpop.f32.mrf.mxu0  ;;  %v322_v4 = vpop.f32.mrf.mxu1 }
  0xf0   :  { %219 = vst [vmem:[%s525_s3 + $0x28] sm:$0xff] %v203_v63  ;;  %227 = vst [vmem:[%s525_s3 + $0x68] sm:$0xff] %v211_v0  ;;  %v202_v5 = vmax.f32 %v140_v1, 0.0  ;;  %v210_v6 = vmax.f32 %v180_v2, 0.0  ;;  %v155_v7 = vadd.f32 %v310_v3, %v234_v32  ;;  %v195_v8 = vadd.f32 %v322_v4, %v234_v32 }
  0xf1   :  { %v149_v9 = vpop.f32.mrf.mxu0  ;;  %v189_v10 = vpop.f32.mrf.mxu1 }
  0xf2   :  { %218 = vst [vmem:[%s525_s3 + $0x20] sm:$0xff] %v202_v5  ;;  %226 = vst [vmem:[%s525_s3 + $0x60] sm:$0xff] %v210_v6  ;;  %v205_v11 = vmax.f32 %v155_v7, 0.0  ;;  %v213_v12 = vmax.f32 %v195_v8, 0.0  ;;  %v150_v13 = vadd.f32 %v234_v32, %v149_v9  ;;  %v190_v14 = vadd.f32 %v234_v32, %v189_v10 }
  0xf4   :  { %221 = vst [vmem:[%s525_s3 + $0x38] sm:$0xff] %v205_v11  ;;  %229 = vst [vmem:[%s525_s3 + $0x78] sm:$0xff] %v213_v12  ;;  %v204_v15 = vmax.f32 %v150_v13, 0.0  ;;  %v212_v16 = vmax.f32 %v190_v14, 0.0 }
  0xf6   :  { %220 = vst [vmem:[%s525_s3 + $0x30] sm:$0xff] %v204_v15  ;;  %228 = vst [vmem:[%s525_s3 + $0x70] sm:$0xff] %v212_v16 }

// kernel: forward.9
= control target key start
LH: loop header
LB: loop body
LE: loop exit
PB: predicated region body
PF: predicated region fallthrough
CT: control target
= control target key end

     0   :  { %s390_s1 = inlined_call_operand.vmem [shape: f32[256,128], index: 1, kind: input, shape index: {}]   ;;  %s391_s0 = inlined_call_operand.vmem [shape: f32[32,256], index: 0, kind: input, shape index: {}]   ;;  %s392_s2 = inlined_call_operand.vmem [shape: f32[1,128], index: 2, kind: input, shape index: {}]   ;;  %s393_s3 = inlined_call_operand.vmem [shape: f32[32,128], index: 3, kind: output, shape index: {}]  }
   0x1   :  { %v53_v0 = vld [vmem:[%s390_s1 + $0xf8] sm:$0xff]  ;;  %v52_v2 = vld [vmem:[%s390_s1 + $0xf0] sm:$0xff]  ;;  %v51_v4 = vld [vmem:[%s390_s1 + $0xe8] sm:$0xff] }
   0x2   :  { %v37_v1 = vld [vmem:[%s390_s1 + $0x78] sm:$0xff]  ;;  %159 = vmatprep.subr.mxu0 %v53_v0  ;;  %203 = vmatprep.subr.mxu1 %v53_v0  ;;  %v36_v3 = vld [vmem:[%s390_s1 + $0x70] sm:$0xff]  ;;  %v35_v5 = vld [vmem:[%s390_s1 + $0x68] sm:$0xff] }
   0x3   :  { %160 = vmatpush3.msra.mxu0 %v37_v1  ;;  %219 = vmatpush3.msra.mxu1 %v37_v1  ;;  %v50_v6 = vld [vmem:[%s390_s1 + $0xe0] sm:$0xff]  ;;  %v49_v8 = vld [vmem:[%s390_s1 + $0xd8] sm:$0xff]  ;;  %v48_v10 = vld [vmem:[%s390_s1 + $0xd0] sm:$0xff] }
   0x4   :  { %161 = vmatprep.subr.mxu0 %v52_v2  ;;  %204 = vmatprep.subr.mxu1 %v52_v2  ;;  %v34_v7 = vld [vmem:[%s390_s1 + $0x60] sm:$0xff]  ;;  %v33_v9 = vld [vmem:[%s390_s1 + $0x58] sm:$0xff]  ;;  %v32_v11 = vld [vmem:[%s390_s1 + $0x50] sm:$0xff] }
   0x5   :  { %162 = vmatpush3.msra.mxu0 %v36_v3  ;;  %220 = vmatpush3.msra.mxu1 %v36_v3  ;;  %v47_v12 = vld [vmem:[%s390_s1 + $0xc8] sm:$0xff]  ;;  %v46_v14 = vld [vmem:[%s390_s1 + $0xc0] sm:$0xff]  ;;  %v45_v16 = vld [vmem:[%s390_s1 + $0xb8] sm:$0xff] }
   0x6   :  { %163 = vmatprep.subr.mxu0 %v51_v4  ;;  %205 = vmatprep.subr.mxu1 %v51_v4  ;;  %v31_v13 = vld [vmem:[%s390_s1 + $0x48] sm:$0xff]  ;;  %v30_v15 = vld [vmem:[%s390_s1 + $0x40] sm:$0xff]  ;;  %v29_v17 = vld [vmem:[%s390_s1 + $0x38] sm:$0xff] }
   0x7   :  { %164 = vmatpush3.msra.mxu0 %v35_v5  ;;  %221 = vmatpush3.msra.mxu1 %v35_v5  ;;  %v44_v18 = vld [vmem:[%s390_s1 + $0xb0] sm:$0xff]  ;;  %v43_v20 = vld [vmem:[%s390_s1 + $0xa8] sm:$0xff]  ;;  %v42_v22 = vld [vmem:[%s390_s1 + $0xa0] sm:$0xff] }
   0x8   :  { %165 = vmatprep.subr.mxu0 %v50_v6  ;;  %206 = vmatprep.subr.mxu1 %v50_v6  ;;  %v28_v19 = vld [vmem:[%s390_s1 + $0x30] sm:$0xff]  ;;  %v27_v21 = vld [vmem:[%s390_s1 + $0x28] sm:$0xff]  ;;  %v26_v23 = vld [vmem:[%s390_s1 + $0x20] sm:$0xff] }
   0x9   :  { %166 = vmatpush3.msra.mxu0 %v34_v7  ;;  %222 = vmatpush3.msra.mxu1 %v34_v7  ;;  %v41_v24 = vld [vmem:[%s390_s1 + $0x98] sm:$0xff]  ;;  %v40_v26 = vld [vmem:[%s390_s1 + $0x90] sm:$0xff]  ;;  %v39_v28 = vld [vmem:[%s390_s1 + $0x88] sm:$0xff] }
   0xa   :  { %167 = vmatprep.subr.mxu0 %v49_v8  ;;  %207 = vmatprep.subr.mxu1 %v49_v8  ;;  %v25_v25 = vld [vmem:[%s390_s1 + $0x18] sm:$0xff]  ;;  %v24_v27 = vld [vmem:[%s390_s1 + $0x10] sm:$0xff]  ;;  %v23_v29 = vld [vmem:[%s390_s1 + $0x8] sm:$0xff] }
   0xb   :  { %168 = vmatpush3.msra.mxu0 %v33_v9  ;;  %223 = vmatpush3.msra.mxu1 %v33_v9  ;;  %v38_v30 = vld [vmem:[%s390_s1 + $0x80] sm:$0xff]  ;;  %v15_v32 = vld [vmem:[%s391_s0 + $0x8] sm:$0xff]  ;;  %v17_v36 = vld [vmem:[%s391_s0 + $0x18] sm:$0xff] }
   0xc   :  { %169 = vmatprep.subr.mxu0 %v48_v10  ;;  %208 = vmatprep.subr.mxu1 %v48_v10  ;;  %v22_v31 = vld [vmem:[%s390_s1] sm:$0xff]  ;;  %v19_v33 = vld [vmem:[%s391_s0 + $0x28] sm:$0xff]  ;;  %v21_v37 = vld [vmem:[%s391_s0 + $0x38] sm:$0xff] }
   0xd   :  { %170 = vmatpush3.msra.mxu0 %v32_v11  ;;  %224 = vmatpush3.msra.mxu1 %v32_v11  ;;  %v14_v34 = vld [vmem:[%s391_s0] sm:$0xff]  ;;  %v16_v38 = vld [vmem:[%s391_s0 + $0x10] sm:$0xff] }
   0xe   :  { %171 = vmatprep.subr.mxu0 %v47_v12  ;;  %209 = vmatprep.subr.mxu1 %v47_v12  ;;  %v18_v35 = vld [vmem:[%s391_s0 + $0x20] sm:$0xff]  ;;  %v20_v39 = vld [vmem:[%s391_s0 + $0x30] sm:$0xff] }
   0xf   :  { %172 = vmatpush3.msra.mxu0 %v31_v13  ;;  %225 = vmatpush3.msra.mxu1 %v31_v13  ;;  %v158_v42 = vld [vmem:[%s392_s2] ss:$0 sm:$0xff] }
  0x10   :  { %173 = vmatprep.subr.mxu0 %v46_v14  ;;  %210 = vmatprep.subr.mxu1 %v46_v14 }
  0x11   :  { %174 = vmatpush3.msra.mxu0 %v30_v15  ;;  %226 = vmatpush3.msra.mxu1 %v30_v15 }
  0x12   :  { %175 = vmatprep.subr.mxu0 %v45_v16  ;;  %211 = vmatprep.subr.mxu1 %v45_v16 }
  0x13   :  { %176 = vmatpush3.msra.mxu0 %v29_v17  ;;  %227 = vmatpush3.msra.mxu1 %v29_v17 }
  0x14   :  { %177 = vmatprep.subr.mxu0 %v44_v18  ;;  %212 = vmatprep.subr.mxu1 %v44_v18 }
  0x15   :  { %178 = vmatpush3.msra.mxu0 %v28_v19  ;;  %228 = vmatpush3.msra.mxu1 %v28_v19 }
  0x16   :  { %179 = vmatprep.subr.mxu0 %v43_v20  ;;  %213 = vmatprep.subr.mxu1 %v43_v20 }
  0x17   :  { %180 = vmatpush3.msra.mxu0 %v27_v21  ;;  %229 = vmatpush3.msra.mxu1 %v27_v21 }
  0x18   :  { %181 = vmatprep.subr.mxu0 %v42_v22  ;;  %214 = vmatprep.subr.mxu1 %v42_v22 }
  0x19   :  { %182 = vmatpush3.msra.mxu0 %v26_v23  ;;  %230 = vmatpush3.msra.mxu1 %v26_v23 }
  0x1a   :  { %183 = vmatprep.subr.mxu0 %v41_v24  ;;  %215 = vmatprep.subr.mxu1 %v41_v24 }
  0x1b   :  { %184 = vmatpush3.msra.mxu0 %v25_v25  ;;  %231 = vmatpush3.msra.mxu1 %v25_v25 }
  0x1c   :  { %185 = vmatprep.subr.mxu0 %v40_v26  ;;  %216 = vmatprep.subr.mxu1 %v40_v26 }
  0x1d   :  { %186 = vmatpush3.msra.mxu0 %v24_v27  ;;  %232 = vmatpush3.msra.mxu1 %v24_v27 }
  0x1e   :  { %187 = vmatprep.subr.mxu0 %v39_v28  ;;  %217 = vmatprep.subr.mxu1 %v39_v28 }
  0x1f   :  { %188 = vmatpush3.msra.mxu0 %v23_v29  ;;  %233 = vmatpush3.msra.mxu1 %v23_v29 }
  0x20   :  { %189 = vmatprep.subr.mxu0 %v38_v30  ;;  %218 = vmatprep.subr.mxu1 %v38_v30 }
  0x21   :  { %190 = vmatpush3.msra.mxu0 %v22_v31  ;;  %234 = vmatpush3.msra.mxu1 %v22_v31 }
  0x22   :  { %125 = vmatprep.mubr.f32.mxu0 %v15_v32  ;;  %135 = vmatprep.mubr.f32.mxu1 %v19_v33 }
  0x23   :  { %126 = vmatmul.mubr.f32.vlgmr.msra.gmra.mxu0 %v14_v34  ;;  %136 = vmatmul.mubr.f32.vlgmr.msra.gmra.mxu1 %v18_v35 }
  0x24   :  { %130 = vmatprep.mubr.f32.mxu0 %v17_v36  ;;  %140 = vmatprep.mubr.f32.mxu1 %v21_v37 }
  0x27   :  { %131 = vmatmul.mubr.f32.gmra.mxu0 %v16_v38  ;;  %141 = vmatmul.mubr.f32.gmra.mxu1 %v20_v39 }
  0xe3   :  { %v191_v40 = vpop.f32.mrf.mxu0  ;;  %v197_v41 = vpop.f32.mrf.mxu1 }
  0xe5   :  { %v192_v43 = vpop.f32.mrf.mxu0  ;;  %v198_v44 = vpop.f32.mrf.mxu1 }
  0xe6   :  { %v193_v45 = vadd.f32 %v192_v43, %v191_v40  ;;  %v199_v46 = vadd.f32 %v198_v44, %v197_v41 }
  0xe7   :  { %v194_v47 = vpop.f32.mrf.mxu0  ;;  %v200_v48 = vpop.f32.mrf.mxu1 }
  0xe8   :  { %v128_v49 = vadd.f32 %v193_v45, %v158_v42  ;;  %v138_v50 = vadd.f32 %v199_v46, %v158_v42 }
  0xe9   :  { %v195_v51 = vpop.f32.mrf.mxu0  ;;  %v201_v52 = vpop.f32.mrf.mxu1 }
  0xea   :  { %v146_v53 = vmax.f32 %v128_v49, 0.0  ;;  %v148_v54 = vmax.f32 %v138_v50, 0.0  ;;  %v196_v55 = vadd.f32 %v195_v51, %v194_v47  ;;  %v202_v56 = vadd.f32 %v201_v52, %v200_v48 }
  0xec   :  { %150 = vst [vmem:[%s393_s3] sm:$0xff] %v146_v53  ;;  %152 = vst [vmem:[%s393_s3 + $0x10] sm:$0xff] %v148_v54  ;;  %v133_v57 = vadd.f32 %v196_v55, %v158_v42  ;;  %v143_v58 = vadd.f32 %v202_v56, %v158_v42 }
  0xee   :  { %v147_v59 = vmax.f32 %v133_v57, 0.0  ;;  %v149_v60 = vmax.f32 %v143_v58, 0.0 }
  0xf0   :  { %151 = vst [vmem:[%s393_s3 + $0x8] sm:$0xff] %v147_v59  ;;  %153 = vst [vmem:[%s393_s3 + $0x18] sm:$0xff] %v149_v60 }

// kernel: forward.10
= control target key start
LH: loop header
LB: loop body
LE: loop exit
PB: predicated region body
PF: predicated region fallthrough
CT: control target
= control target key end

     0   :  { %18 = vsyncpa [#allocation3], 0  ;;  %v1715_v30 = vmov 1983009808   ;;  %v117_v32 = vlaneseq  ;;  %s2997_s0 = inlined_call_operand.vmem [shape: f32[2,512], index: 0, kind: input, shape index: {}]   ;;  %s2998_s1 = inlined_call_operand.vmem [shape: f32[2,128], index: 1, kind: input, shape index: {}]   ;;  %s2999_s2 = inlined_call_operand.vmem [shape: f32[512,128], index: 2, kind: input, shape index: {}]   ;;  %s3000_s3 = inlined_call_operand.vmem [shape: f32[1,128], index: 3, kind: input, shape index: {}]   ;;  %s3001_s4 = inlined_call_operand.vmem [shape: f32[128,128], index: 4, kind: input, shape index: {}]   ;;  %s3002_s5 = inlined_call_operand.vmem [shape: f32[1,128], index: 5, kind: input, shape index: {}]   ;;  %s3003_s6 = inlined_call_operand.vmem [shape: f32[128,256], index: 6, kind: input, shape index: {}]   ;;  %s3004_s7 = inlined_call_operand.vmem [shape: f32[1,256], index: 7, kind: input, shape index: {}]   ;;  %s3005_s8 = inlined_call_operand.vmem [shape: f32[128,2048], index: 8, kind: input, shape index: {}]   ;;  %s3006_s9 = inlined_call_operand.vmem [shape: f32[1,2048], index: 9, kind: input, shape index: {}]   ;;  %s3007_s10 = inlined_call_operand.hbm [shape: f32[2,128], index: 10, kind: output, shape index: {0}]   ;;  %s3008_s11 = inlined_call_operand.hbm [shape: f32[2,128], index: 11, kind: output, shape index: {1}]   ;;  %s3009_s12 = inlined_call_operand.vmem [shape: f32[2,2048], index: 12, kind: output, shape index: {2}]  }
   0x1   :  { %v72_v0 = vld [vmem:[%s2999_s2 + $0xf8] sm:$0xff]  ;;  %v71_v4 = vld [vmem:[%s2999_s2 + $0xf0] sm:$0xff]  ;;  %v70_v8 = vld [vmem:[%s2999_s2 + $0xe8] sm:$0xff]  ;;  %v115_v31 = vunpack.c.l.s4 %v1715_v30 }
   0x2   :  { %v104_v1 = vld [vmem:[%s2999_s2 + $0x1f8] sm:$0xff]  ;;  %1541 = vmatprep.subr.mxu0 %v72_v0  ;;  %v103_v5 = vld [vmem:[%s2999_s2 + $0x1f0] sm:$0xff]  ;;  %v102_v9 = vld [vmem:[%s2999_s2 + $0x1e8] sm:$0xff]  ;;  %v1899_v42 = vshrl.u32 %v117_v32, 7 }
   0x3   :  { %v56_v2 = vld [vmem:[%s2999_s2 + $0x78] sm:$0xff]  ;;  %1576 = vmatprep.subr.mxu1 %v104_v1  ;;  %v55_v6 = vld [vmem:[%s2999_s2 + $0x70] sm:$0xff]  ;;  %v54_v10 = vld [vmem:[%s2999_s2 + $0x68] sm:$0xff]  ;;  %v116_v41 = vunpack.c.0.s8 %v115_v31 }
   0x4   :  { %v88_v3 = vld [vmem:[%s2999_s2 + $0x178] sm:$0xff]  ;;  %1542 = vmatpush3.msra.mxu0 %v56_v2  ;;  %v87_v7 = vld [vmem:[%s2999_s2 + $0x170] sm:$0xff]  ;;  %v86_v11 = vld [vmem:[%s2999_s2 + $0x168] sm:$0xff] }
   0x5   :  { %1577 = vmatpush3.msra.mxu1 %v88_v3  ;;  %1543 = vmatprep.subr.mxu0 %v71_v4  ;;  %v69_v12 = vld [vmem:[%s2999_s2 + $0xe0] sm:$0xff]  ;;  %v68_v16 = vld [vmem:[%s2999_s2 + $0xd8] sm:$0xff]  ;;  %v67_v20 = vld [vmem:[%s2999_s2 + $0xd0] sm:$0xff]  ;;  %v1926_v51 = vsub.s32 %v116_v41, %v1899_v42 }
   0x6   :  { %1578 = vmatprep.subr.mxu1 %v103_v5  ;;  %1544 = vmatpush3.msra.mxu0 %v55_v6  ;;  %v101_v13 = vld [vmem:[%s2999_s2 + $0x1e0] sm:$0xff]  ;;  %v100_v17 = vld [vmem:[%s2999_s2 + $0x1d8] sm:$0xff]  ;;  %v99_v21 = vld [vmem:[%s2999_s2 + $0x1d0] sm:$0xff] }
   0x7   :  { %1579 = vmatpush3.msra.mxu1 %v87_v7  ;;  %1545 = vmatprep.subr.mxu0 %v70_v8  ;;  %v53_v14 = vld [vmem:[%s2999_s2 + $0x60] sm:$0xff]  ;;  %v52_v18 = vld [vmem:[%s2999_s2 + $0x58] sm:$0xff]  ;;  %v51_v22 = vld [vmem:[%s2999_s2 + $0x50] sm:$0xff] }
   0x8   :  { %1580 = vmatprep.subr.mxu1 %v102_v9  ;;  %v85_v15 = vld [vmem:[%s2999_s2 + $0x160] sm:$0xff]  ;;  %1546 = vmatpush3.msra.mxu0 %v54_v10  ;;  %v84_v19 = vld [vmem:[%s2999_s2 + $0x158] sm:$0xff]  ;;  %v83_v23 = vld [vmem:[%s2999_s2 + $0x150] sm:$0xff] }
   0x9   :  { %1581 = vmatpush3.msra.mxu1 %v86_v11  ;;  %1547 = vmatprep.subr.mxu0 %v69_v12  ;;  %v66_v24 = vld [vmem:[%s2999_s2 + $0xc8] sm:$0xff]  ;;  %v65_v28 = vld [vmem:[%s2999_s2 + $0xc0] sm:$0xff]  ;;  %v64_v35 = vld [vmem:[%s2999_s2 + $0xb8] sm:$0xff] }
   0xa   :  { %1582 = vmatprep.subr.mxu1 %v101_v13  ;;  %1548 = vmatpush3.msra.mxu0 %v53_v14  ;;  %v98_v25 = vld [vmem:[%s2999_s2 + $0x1c8] sm:$0xff]  ;;  %v97_v29 = vld [vmem:[%s2999_s2 + $0x1c0] sm:$0xff]  ;;  %v96_v36 = vld [vmem:[%s2999_s2 + $0x1b8] sm:$0xff] }
   0xb   :  { %1583 = vmatpush3.msra.mxu1 %v85_v15  ;;  %1549 = vmatprep.subr.mxu0 %v68_v16  ;;  %v50_v26 = vld [vmem:[%s2999_s2 + $0x48] sm:$0xff]  ;;  %v49_v33 = vld [vmem:[%s2999_s2 + $0x40] sm:$0xff]  ;;  %v48_v37 = vld [vmem:[%s2999_s2 + $0x38] sm:$0xff] }
   0xc   :  { %1584 = vmatprep.subr.mxu1 %v100_v17  ;;  %1550 = vmatpush3.msra.mxu0 %v52_v18  ;;  %v82_v27 = vld [vmem:[%s2999_s2 + $0x148] sm:$0xff]  ;;  %v81_v34 = vld [vmem:[%s2999_s2 + $0x140] sm:$0xff]  ;;  %v80_v38 = vld [vmem:[%s2999_s2 + $0x138] sm:$0xff] }
   0xd   :  { %1585 = vmatpush3.msra.mxu1 %v84_v19  ;;  %1551 = vmatprep.subr.mxu0 %v67_v20  ;;  %v63_v39 = vld [vmem:[%s2999_s2 + $0xb0] sm:$0xff]  ;;  %v62_v45 = vld [vmem:[%s2999_s2 + $0xa8] sm:$0xff]  ;;  %v61_v49 = vld [vmem:[%s2999_s2 + $0xa0] sm:$0xff] }
   0xe   :  { %1586 = vmatprep.subr.mxu1 %v99_v21  ;;  %1552 = vmatpush3.msra.mxu0 %v51_v22  ;;  %v95_v40 = vld [vmem:[%s2999_s2 + $0x1b0] sm:$0xff]  ;;  %v94_v46 = vld [vmem:[%s2999_s2 + $0x1a8] sm:$0xff]  ;;  %v93_v50 = vld [vmem:[%s2999_s2 + $0x1a0] sm:$0xff] }
   0xf   :  { %1587 = vmatpush3.msra.mxu1 %v83_v23  ;;  %1553 = vmatprep.subr.mxu0 %v66_v24  ;;  %v47_v43 = vld [vmem:[%s2999_s2 + $0x30] sm:$0xff]  ;;  %v46_v47 = vld [vmem:[%s2999_s2 + $0x28] sm:$0xff]  ;;  %v45_v52 = vld [vmem:[%s2999_s2 + $0x20] sm:$0xff] }
  0x10   :  { %1588 = vmatprep.subr.mxu1 %v98_v25  ;;  %1554 = vmatpush3.msra.mxu0 %v50_v26  ;;  %v79_v44 = vld [vmem:[%s2999_s2 + $0x130] sm:$0xff]  ;;  %v78_v48 = vld [vmem:[%s2999_s2 + $0x128] sm:$0xff]  ;;  %v77_v53 = vld [vmem:[%s2999_s2 + $0x120] sm:$0xff] }
  0x11   :  { %1589 = vmatpush3.msra.mxu1 %v82_v27  ;;  %1555 = vmatprep.subr.mxu0 %v65_v28  ;;  %v40_v54 = vld [vmem:[%s2997_s0] sm:$0xff]  ;;  %v60_v55 = vld [vmem:[%s2999_s2 + $0x98] sm:$0xff]  ;;  %v59_v60 = vld [vmem:[%s2999_s2 + $0x90] sm:$0xff] }
  0x12   :  { %1590 = vmatprep.subr.mxu1 %v97_v29  ;;  %1556 = vmatpush3.msra.mxu0 %v49_v33  ;;  %v92_v56 = vld [vmem:[%s2999_s2 + $0x198] sm:$0xff]  ;;  %v113_v57 = vcombine.high %v40_v54, %v40_v54  ;;  %v91_v61 = vld [vmem:[%s2999_s2 + $0x190] sm:$0xff]  ;;  %v120_v62 = vrot.slane %v40_v54, %v1926_v51 }
  0x13   :  { %1591 = vmatpush3.msra.mxu1 %v81_v34  ;;  %1557 = vmatprep.subr.mxu0 %v64_v35  ;;  %v44_v58 = vld [vmem:[%s2999_s2 + $0x18] sm:$0xff]  ;;  %v43_v63 = vld [vmem:[%s2999_s2 + $0x10] sm:$0xff] }
  0x14   :  { %1592 = vmatprep.subr.mxu1 %v96_v36  ;;  %1558 = vmatpush3.msra.mxu0 %v48_v37  ;;  %v76_v59 = vld [vmem:[%s2999_s2 + $0x118] sm:$0xff]  ;;  %v75_v0 = vld [vmem:[%s2999_s2 + $0x110] sm:$0xff]  ;;  %v127_v1 = vrot.slane %v113_v57, %v1926_v51 }
  0x15   :  { %1593 = vmatpush3.msra.mxu1 %v80_v38  ;;  %1559 = vmatprep.subr.mxu0 %v63_v39 }
  0x16   :  { %1594 = vmatprep.subr.mxu1 %v95_v40  ;;  %1560 = vmatpush3.msra.mxu0 %v47_v43 }
  0x17   :  { %1595 = vmatpush3.msra.mxu1 %v79_v44  ;;  %1561 = vmatprep.subr.mxu0 %v62_v45 }
  0x18   :  { %1596 = vmatprep.subr.mxu1 %v94_v46  ;;  %1562 = vmatpush3.msra.mxu0 %v46_v47 }
  0x19   :  { %1597 = vmatpush3.msra.mxu1 %v78_v48  ;;  %1563 = vmatprep.subr.mxu0 %v61_v49 }
  0x1a   :  { %1598 = vmatprep.subr.mxu1 %v93_v50  ;;  %1564 = vmatpush3.msra.mxu0 %v45_v52 }
  0x1b   :  { %1599 = vmatpush3.msra.mxu1 %v77_v53  ;;  %1565 = vmatprep.subr.mxu0 %v60_v55 }
  0x1c   :  { %1600 = vmatprep.subr.mxu1 %v92_v56 }
  0x1d   :  { %19 = vsyncpa [#allocation5], 0  ;;  %1566 = vmatpush3.msra.mxu0 %v44_v58  ;;  %1601 = vmatpush3.msra.mxu1 %v76_v59  ;;  %v58_v2 = vld [vmem:[%s2999_s2 + $0x88] sm:$0xff]  ;;  %v57_v6 = vld [vmem:[%s2999_s2 + $0x80] sm:$0xff]  ;;  %v128_v8 = vcombine.high %v120_v62, %v120_v62  ;;  %v129_v10 = vcombine.high %v127_v1, %v127_v1  ;;  %v1716_v13 = vmov 0.0   ;;  %vm1717_vm0 = vmmov 0  }
  0x1e   :  { %v90_v3 = vld [vmem:[%s2999_s2 + $0x188] sm:$0xff]  ;;  %1567 = vmatprep.subr.mxu0 %v59_v60  ;;  %1602 = vmatprep.subr.mxu1 %v91_v61  ;;  %v89_v7 = vld [vmem:[%s2999_s2 + $0x180] sm:$0xff]  ;;  %v290_v12 = vld [vmem:[%s3001_s4 + $0x78] sm:$0xff]  ;;  %s1719_s25 = smov [#allocation4]  }
  0x1f   :  { %v42_v4 = vld [vmem:[%s2999_s2 + $0x8] sm:$0xff]  ;;  %1568 = vmatpush3.msra.mxu0 %v43_v63  ;;  %1603 = vmatpush3.msra.mxu1 %v75_v0  ;;  %v41_v9 = vld [vmem:[%s2999_s2] sm:$0xff]  ;;  %v289_v14 = vld [vmem:[%s3001_s4 + $0x70] sm:$0xff]  ;;  %s1523_s26 = sshll.u32 %s1719_s25, 4  ;;  %s1524_s26 = int_to_ptr.vmem [resolvable:$true] %s1523_s26 }
  0x20   :  { %v74_v5 = vld [vmem:[%s2999_s2 + $0x108] sm:$0xff]  ;;  %1569 = vmatprep.subr.mxu0 %v58_v2  ;;  %1604 = vmatprep.subr.mxu1 %v90_v3  ;;  %v73_v11 = vld [vmem:[%s2999_s2 + $0x100] sm:$0xff]  ;;  %v286_v17 = vld [vmem:[%s3001_s4 + $0x58] sm:$0xff] }
  0x21   :  { %1570 = vmatpush3.msra.mxu0 %v42_v4  ;;  %1605 = vmatpush3.msra.mxu1 %v74_v5  ;;  %v288_v15 = vld [vmem:[%s3001_s4 + $0x68] sm:$0xff]  ;;  %v287_v16 = vld [vmem:[%s3001_s4 + $0x60] sm:$0xff]  ;;  %v285_v18 = vld [vmem:[%s3001_s4 + $0x50] sm:$0xff] }
  0x22   :  { %1571 = vmatprep.subr.mxu0 %v57_v6  ;;  %1606 = vmatprep.subr.mxu1 %v89_v7  ;;  %v284_v19 = vld [vmem:[%s3001_s4 + $0x48] sm:$0xff]  ;;  %v283_v20 = vld [vmem:[%s3001_s4 + $0x40] sm:$0xff]  ;;  %v282_v21 = vld [vmem:[%s3001_s4 + $0x38] sm:$0xff] }
  0x23   :  { %1572 = vmatpush3.msra.mxu0 %v41_v9  ;;  %198 = vmatprep.mubr.f32.mxu0 %v128_v8  ;;  %v281_v22 = vld [vmem:[%s3001_s4 + $0x30] sm:$0xff]  ;;  %v280_v23 = vld [vmem:[%s3001_s4 + $0x28] sm:$0xff]  ;;  %v279_v24 = vld [vmem:[%s3001_s4 + $0x20] sm:$0xff] }
  0x24   :  { %1607 = vmatpush3.msra.mxu1 %v73_v11  ;;  %268 = vmatprep.mubr.f32.mxu1 %v129_v10  ;;  %v278_v25 = vld [vmem:[%s3001_s4 + $0x18] sm:$0xff]  ;;  %v277_v26 = vld [vmem:[%s3001_s4 + $0x10] sm:$0xff]  ;;  %v276_v27 = vld [vmem:[%s3001_s4 + $0x8] sm:$0xff] }
  0x25   :  { %199 = vmatmul.mubr.f32.vlgmr.msra.gmra.mxu0 %v120_v62  ;;  %269 = vmatmul.mubr.f32.vlgmr.msra.gmra.mxu1 %v127_v1  ;;  %v275_v28 = vld [vmem:[%s3001_s4] sm:$0xff]  ;;  %v399_v29 = vld [vmem:[%s3003_s6 + $0xf8] sm:$0xff]  ;;  %v398_v30 = vld [vmem:[%s3003_s6 + $0xf0] sm:$0xff] }
  0x26   :  { %1628 = vmatprep.subr.mxu0 %v1716_v13  ;;  %476 = vmatprep.mubr.f32.mxu1 %v1716_v13  ;;  %v397_v31 = vld [vmem:[%s3003_s6 + $0xe8] sm:$0xff]  ;;  %v396_v32 = vld [vmem:[%s3003_s6 + $0xe0] sm:$0xff]  ;;  %v395_v33 = vld [vmem:[%s3003_s6 + $0xd8] sm:$0xff] }
  0x27   :  { %1629 = vmatpush3.msra.mxu0 %v290_v12  ;;  %1660 = vmatprep.mubr.msk.f32.mxu0 %vm1717_vm0, %v1716_v13  ;;  %v394_v34 = vld [vmem:[%s3003_s6 + $0xd0] sm:$0xff]  ;;  %v393_v35 = vld [vmem:[%s3003_s6 + $0xc8] sm:$0xff]  ;;  %v392_v36 = vld [vmem:[%s3003_s6 + $0xc0] sm:$0xff] }
  0x28   :  { %1630 = vmatprep.subr.mxu0 %v1716_v13  ;;  %412 = vmatprep.subr.mxu1 %v399_v29  ;;  %v391_v37 = vld [vmem:[%s3003_s6 + $0xb8] sm:$0xff]  ;;  %v390_v38 = vld [vmem:[%s3003_s6 + $0xb0] sm:$0xff]  ;;  %v389_v39 = vld [vmem:[%s3003_s6 + $0xa8] sm:$0xff] }
  0x29   :  { %1631 = vmatpush3.msra.mxu0 %v289_v14  ;;  %413 = vmatpush1.msra.mxu1 %v398_v30  ;;  %v388_v40 = vld [vmem:[%s3003_s6 + $0xa0] sm:$0xff]  ;;  %v387_v41 = vld [vmem:[%s3003_s6 + $0x98] sm:$0xff]  ;;  %v386_v43 = vld [vmem:[%s3003_s6 + $0x90] sm:$0xff] }
  0x2a   :  { %1632 = vmatprep.subr.mxu0 %v1716_v13  ;;  %414 = vmatprep.subr.mxu1 %v397_v31  ;;  %v385_v44 = vld [vmem:[%s3003_s6 + $0x88] sm:$0xff]  ;;  %v384_v45 = vld [vmem:[%s3003_s6 + $0x80] sm:$0xff]  ;;  %v383_v46 = vld [vmem:[%s3003_s6 + $0x78] sm:$0xff] }
  0x2b   :  { %1633 = vmatpush3.msra.mxu0 %v288_v15  ;;  %415 = vmatpush1.msra.mxu1 %v396_v32  ;;  %v382_v47 = vld [vmem:[%s3003_s6 + $0x70] sm:$0xff]  ;;  %v381_v48 = vld [vmem:[%s3003_s6 + $0x68] sm:$0xff]  ;;  %v380_v49 = vld [vmem:[%s3003_s6 + $0x60] sm:$0xff] }
  0x2c   :  { %1634 = vmatprep.subr.mxu0 %v1716_v13  ;;  %416 = vmatprep.subr.mxu1 %v395_v33  ;;  %v379_v50 = vld [vmem:[%s3003_s6 + $0x58] sm:$0xff]  ;;  %v378_v52 = vld [vmem:[%s3003_s6 + $0x50] sm:$0xff]  ;;  %v377_v53 = vld [vmem:[%s3003_s6 + $0x48] sm:$0xff] }
  0x2d   :  { %1635 = vmatpush3.msra.mxu0 %v287_v16  ;;  %417 = vmatpush1.msra.mxu1 %v394_v34  ;;  %v376_v54 = vld [vmem:[%s3003_s6 + $0x40] sm:$0xff]  ;;  %v375_v55 = vld [vmem:[%s3003_s6 + $0x38] sm:$0xff]  ;;  %v374_v56 = vld [vmem:[%s3003_s6 + $0x30] sm:$0xff] }
  0x2e   :  { %1636 = vmatprep.subr.mxu0 %v1716_v13  ;;  %418 = vmatprep.subr.mxu1 %v393_v35  ;;  %v373_v57 = vld [vmem:[%s3003_s6 + $0x28] sm:$0xff]  ;;  %v372_v58 = vld [vmem:[%s3003_s6 + $0x20] sm:$0xff]  ;;  %v371_v59 = vld [vmem:[%s3003_s6 + $0x18] sm:$0xff] }
  0x2f   :  { %1637 = vmatpush3.msra.mxu0 %v286_v17  ;;  %419 = vmatpush1.msra.mxu1 %v392_v36  ;;  %v1539_v62 = vld [vmem:[%s3000_s3] ss:$0 sm:$0xff]  ;;  %v370_v6 = vld [vmem:[%s3003_s6 + $0x10] sm:$0xff]  ;;  %v369_v7 = vld [vmem:[%s3003_s6 + $0x8] sm:$0xff] }
  0x30   :  { %1638 = vmatprep.subr.mxu0 %v1716_v13  ;;  %420 = vmatprep.subr.mxu1 %v391_v37  ;;  %v368_v8 = vld [vmem:[%s3003_s6] sm:$0xff]  ;;  %v730_v9 = vld [vmem:[%s3005_s8 + $0x788] sm:$0xff]  ;;  %v732_v10 = vld [vmem:[%s3005_s8 + $0x798] sm:$0xff]  ;;  %s1718_s6 = smov [#allocation2]  }
  0x31   :  { %1639 = vmatpush3.msra.mxu0 %v285_v18  ;;  %421 = vmatpush1.msra.mxu1 %v390_v38  ;;  %v729_v11 = vld [vmem:[%s3005_s8 + $0x780] sm:$0xff]  ;;  %v714_v12 = vld [vmem:[%s3005_s8 + $0x708] sm:$0xff]  ;;  %v683_v29 = vld [vmem:[%s3005_s8 + $0x610] sm:$0xff]  ;;  %s1513_s24 = sshll.u32 %s1718_s6, 4  ;;  %s1514_s24 = int_to_ptr.vmem [resolvable:$true] %s1513_s24 }
  0x32   :  { %1640 = vmatprep.subr.mxu0 %v1716_v13  ;;  %422 = vmatprep.subr.mxu1 %v389_v39  ;;  %v713_v14 = vld [vmem:[%s3005_s8 + $0x700] sm:$0xff]  ;;  %v698_v15 = vld [vmem:[%s3005_s8 + $0x688] sm:$0xff]  ;;  %v668_v31 = vld [vmem:[%s3005_s8 + $0x598] sm:$0xff]  ;;  %s1671_s2 = scalar_lea.vmem %s1514_s24, 32  ;;  %p1676_p1 = scmp.lt.s32.totalorder %s1514_s24, %s1514_s24 }
  0x33   :  { %1641 = vmatpush3.msra.mxu0 %v284_v19  ;;  %423 = vmatpush1.msra.mxu1 %v388_v40  ;;  %v697_v16 = vld [vmem:[%s3005_s8 + $0x680] sm:$0xff]  ;;  %v666_v30 = vld [vmem:[%s3005_s8 + $0x588] sm:$0xff]  ;;  %v667_v33 = vld [vmem:[%s3005_s8 + $0x590] sm:$0xff]  ;;  %p1672_p0 = scmp.ne.s32.totalorder %s1514_s24, %s1671_s2  ;;  %p1677_p2 = scmp.lt.s32.totalorder %s1671_s2, %s1671_s2 }
  0x34   :  { %1642 = vmatprep.subr.mxu0 %v1716_v13  ;;  %424 = vmatprep.subr.mxu1 %v387_v41  ;;  %v1540_v17 = vld [vmem:[%s3002_s5] ss:$0 sm:$0xff]  ;;  %v650_v34 = vld [vmem:[%s3005_s8 + $0x508] sm:$0xff]  ;;  %v652_v35 = vld [vmem:[%s3005_s8 + $0x518] sm:$0xff] }
  0x35   :  { %1643 = vmatpush3.msra.mxu0 %v283_v20  ;;  %425 = vmatpush1.msra.mxu1 %v386_v43  ;;  %v731_v20 = vld [vmem:[%s3005_s8 + $0x790] sm:$0xff]  ;;  %v665_v32 = vld [vmem:[%s3005_s8 + $0x580] sm:$0xff]  ;;  %v634_v38 = vld [vmem:[%s3005_s8 + $0x488] sm:$0xff]  ;;  %p1678_p3 = por %p1677_p2, %p1676_p1 }
  0x36   :  { %1644 = vmatprep.subr.mxu0 %v1716_v13  ;;  %426 = vmatprep.subr.mxu1 %v385_v44  ;;  %v649_v36 = vld [vmem:[%s3005_s8 + $0x500] sm:$0xff]  ;;  %v651_v37 = vld [vmem:[%s3005_s8 + $0x510] sm:$0xff]  ;;  %v636_v39 = vld [vmem:[%s3005_s8 + $0x498] sm:$0xff] }
  0x37   :  { %1645 = vmatpush3.msra.mxu0 %v282_v21  ;;  %427 = vmatpush1.msra.mxu1 %v384_v45  ;;  %v633_v40 = vld [vmem:[%s3005_s8 + $0x480] sm:$0xff]  ;;  %v635_v41 = vld [vmem:[%s3005_s8 + $0x490] sm:$0xff]  ;;  %v618_v43 = vld [vmem:[%s3005_s8 + $0x408] sm:$0xff]  ;;  %p1679_p4 = pnand %p1678_p3, %p1672_p0 }
  0x38   :  { %1646 = vmatprep.subr.mxu0 %v1716_v13  ;;  %428 = vmatprep.subr.mxu1 %v383_v46  ;;  %v620_v44 = vld [vmem:[%s3005_s8 + $0x418] sm:$0xff]  ;;  %v617_v45 = vld [vmem:[%s3005_s8 + $0x400] sm:$0xff]  ;;  %v619_v46 = vld [vmem:[%s3005_s8 + $0x410] sm:$0xff] }
  0x39   :  { %1647 = vmatpush3.msra.mxu0 %v281_v22  ;;  %429 = vmatpush1.msra.mxu1 %v382_v47  ;;  %v716_v22 = vld [vmem:[%s3005_s8 + $0x718] sm:$0xff]  ;;  %v602_v47 = vld [vmem:[%s3005_s8 + $0x388] sm:$0xff] }
  0x3a   :  { %1648 = vmatprep.subr.mxu0 %v1716_v13  ;;  %430 = vmatprep.subr.mxu1 %v381_v48  ;;  %v604_v48 = vld [vmem:[%s3005_s8 + $0x398] sm:$0xff] }
  0x3b   :  { %1649 = vmatpush3.msra.mxu0 %v280_v23  ;;  %431 = vmatpush1.msra.mxu1 %v380_v49  ;;  %v715_v23 = vld [vmem:[%s3005_s8 + $0x710] sm:$0xff]  ;;  %v601_v49 = vld [vmem:[%s3005_s8 + $0x380] sm:$0xff] }
  0x3c   :  { %1650 = vmatprep.subr.mxu0 %v1716_v13  ;;  %432 = vmatprep.subr.mxu1 %v379_v50  ;;  %v603_v50 = vld [vmem:[%s3005_s8 + $0x390] sm:$0xff] }
  0x3d   :  { %1651 = vmatpush3.msra.mxu0 %v279_v24  ;;  %433 = vmatpush1.msra.mxu1 %v378_v52  ;;  %v700_v24 = vld [vmem:[%s3005_s8 + $0x698] sm:$0xff]  ;;  %v586_v52 = vld [vmem:[%s3005_s8 + $0x308] sm:$0xff] }
  0x3e   :  { %1652 = vmatprep.subr.mxu0 %v1716_v13  ;;  %434 = vmatprep.subr.mxu1 %v377_v53  ;;  %v588_v53 = vld [vmem:[%s3005_s8 + $0x318] sm:$0xff] }
  0x3f   :  { %1653 = vmatpush3.msra.mxu0 %v278_v25  ;;  %435 = vmatpush1.msra.mxu1 %v376_v54  ;;  %v699_v25 = vld [vmem:[%s3005_s8 + $0x690] sm:$0xff]  ;;  %v585_v54 = vld [vmem:[%s3005_s8 + $0x300] sm:$0xff] }
  0x40   :  { %1654 = vmatprep.subr.mxu0 %v1716_v13  ;;  %436 = vmatprep.subr.mxu1 %v375_v55  ;;  %v587_v55 = vld [vmem:[%s3005_s8 + $0x310] sm:$0xff] }
  0x41   :  { %1655 = vmatpush3.msra.mxu0 %v277_v26  ;;  %437 = vmatpush1.msra.mxu1 %v374_v56  ;;  %v682_v26 = vld [vmem:[%s3005_s8 + $0x608] sm:$0xff] }
  0x42   :  { %1656 = vmatprep.subr.mxu0 %v1716_v13  ;;  %438 = vmatprep.subr.mxu1 %v373_v57  ;;  %v570_v56 = vld [vmem:[%s3005_s8 + $0x288] sm:$0xff]  ;;  %v572_v57 = vld [vmem:[%s3005_s8 + $0x298] sm:$0xff] }
  0x43   :  { %1657 = vmatpush3.msra.mxu0 %v276_v27  ;;  %439 = vmatpush1.msra.mxu1 %v372_v58  ;;  %v684_v27 = vld [vmem:[%s3005_s8 + $0x618] sm:$0xff]  ;;  %v569_v58 = vld [vmem:[%s3005_s8 + $0x280] sm:$0xff] }
  0x44   :  { %1658 = vmatprep.subr.mxu0 %v1716_v13  ;;  %440 = vmatprep.subr.mxu1 %v371_v59  ;;  %v571_v59 = vld [vmem:[%s3005_s8 + $0x290] sm:$0xff] }
  0x45   :  { %1659 = vmatpush3.msra.mxu0 %v275_v28  ;;  %441 = vmatpush1.msra.mxu1 %v370_v6  ;;  %v681_v28 = vld [vmem:[%s3005_s8 + $0x600] sm:$0xff] }
  0x46   :  { %442 = vmatprep.subr.mxu1 %v369_v7  ;;  %829 = vmatprep.subr.mxu0 %v730_v9  ;;  %v521_v6 = vld [vmem:[%s3005_s8 + $0x100] sm:$0xff]  ;;  %v523_v7 = vld [vmem:[%s3005_s8 + $0x110] sm:$0xff]  ;;  %v508_v9 = vld [vmem:[%s3005_s8 + $0x98] sm:$0xff] }
  0x47   :  { %443 = vmatpush1.msra.mxu1 %v368_v8  ;;  %v506_v8 = vld [vmem:[%s3005_s8 + $0x88] sm:$0xff] }
  0x48   :  { %900 = vmatprep.subr.mxu1 %v732_v10  ;;  %v505_v10 = vld [vmem:[%s3005_s8 + $0x80] sm:$0xff] }
  0xe5   :  { %v1573_v60 = vpop.f32.mrf.mxu0  ;;  %v1608_v61 = vpop.f32.mrf.mxu1 }
  0xe7   :  { %v1574_v63 = vpop.f32.mrf.mxu0  ;;  %v1609_v0 = vpop.f32.mrf.mxu1 }
  0xe8   :  { %v1575_v1 = vadd.f32 %v1574_v63, %v1573_v60  ;;  %v1610_v3 = vadd.f32 %v1609_v0, %v1608_v61  ;;  %v554_v60 = vld [vmem:[%s3005_s8 + $0x208] sm:$0xff]  ;;  %v556_v61 = vld [vmem:[%s3005_s8 + $0x218] sm:$0xff]  ;;  %v555_v63 = vld [vmem:[%s3005_s8 + $0x210] sm:$0xff] }
  0xe9   :  { %v538_v0 = vld [vmem:[%s3005_s8 + $0x188] sm:$0xff] }
  0xea   :  { %v201_v2 = vadd.f32 %v1575_v1, %v1539_v62  ;;  %v553_v62 = vld [vmem:[%s3005_s8 + $0x200] sm:$0xff]  ;;  %v540_v1 = vld [vmem:[%s3005_s8 + $0x198] sm:$0xff] }
  0xec   :  { %v271_v4 = vadd.f32 %v1610_v3, %v201_v2  ;;  %v537_v2 = vld [vmem:[%s3005_s8 + $0x180] sm:$0xff]  ;;  %v539_v3 = vld [vmem:[%s3005_s8 + $0x190] sm:$0xff] }
  0xee   :  { %v274_v5 = vmax.f32 %v271_v4, 0.0  ;;  %v522_v4 = vld [vmem:[%s3005_s8 + $0x108] sm:$0xff] }
  0xf0   :  { %1661 = vmatmul.mubr.f32.vlgmr.msra.gmra.mxu0 %v274_v5  ;;  %v524_v5 = vld [vmem:[%s3005_s8 + $0x118] sm:$0xff] }
  0xf1   :  { %893 = vmatprep.mubr.f32.mxu0 %v1716_v13  ;;  %830 = vmatpush1.msra.mxu0 %v729_v11  ;;  %v507_v11 = vld [vmem:[%s3005_s8 + $0x90] sm:$0xff] }
  0xf2   :  { %831 = vmatprep.subr.mxu0 %v714_v12  ;;  %v490_v12 = vld [vmem:[%s3005_s8 + $0x8] sm:$0xff] }
  0xf3   :  { %832 = vmatpush1.msra.mxu0 %v713_v14  ;;  %v492_v14 = vld [vmem:[%s3005_s8 + $0x18] sm:$0xff] }
  0xf4   :  { %833 = vmatprep.subr.mxu0 %v698_v15  ;;  %v489_v15 = vld [vmem:[%s3005_s8] sm:$0xff] }
  0xf5   :  { %834 = vmatpush1.msra.mxu0 %v697_v16  ;;  %v491_v16 = vld [vmem:[%s3005_s8 + $0x10] sm:$0xff] }
  0xf6   :  { %835 = vmatprep.subr.mxu0 %v682_v26 }
  0xf7   :  { %836 = vmatpush1.msra.mxu0 %v681_v28 }
  0xf8   :  { %837 = vmatprep.subr.mxu0 %v666_v30  ;;  %v486_v30 = vld [vmem:[%s2998_s1] sm:$0x3] }
  0xf9   :  { %838 = vmatpush1.msra.mxu0 %v665_v32 }
  0xfa   :  { %839 = vmatprep.subr.mxu0 %v650_v34  ;;  %v733_v34 = vld [vmem:[%s3005_s8 + $0x7a0] sm:$0xff] }
  0xfb   :  { %840 = vmatpush1.msra.mxu0 %v649_v36  ;;  %v718_v36 = vld [vmem:[%s3005_s8 + $0x728] sm:$0xff] }
  0xfc   :  { %841 = vmatprep.subr.mxu0 %v634_v38  ;;  %v717_v38 = vld [vmem:[%s3005_s8 + $0x720] sm:$0xff] }
  0xfd   :  { %842 = vmatpush1.msra.mxu0 %v633_v40  ;;  %v702_v40 = vld [vmem:[%s3005_s8 + $0x6a8] sm:$0xff] }
  0xfe   :  { %843 = vmatprep.subr.mxu0 %v618_v43  ;;  %v701_v43 = vld [vmem:[%s3005_s8 + $0x6a0] sm:$0xff] }
  0xff   :  { %844 = vmatpush1.msra.mxu0 %v617_v45  ;;  %v686_v45 = vld [vmem:[%s3005_s8 + $0x628] sm:$0xff] }
 0x100   :  { %845 = vmatprep.subr.mxu0 %v602_v47  ;;  %v685_v47 = vld [vmem:[%s3005_s8 + $0x620] sm:$0xff] }
 0x101   :  { %846 = vmatpush1.msra.mxu0 %v601_v49  ;;  %v670_v49 = vld [vmem:[%s3005_s8 + $0x5a8] sm:$0xff] }
 0x102   :  { %847 = vmatprep.subr.mxu0 %v586_v52  ;;  %v669_v52 = vld [vmem:[%s3005_s8 + $0x5a0] sm:$0xff] }
 0x103   :  { %848 = vmatpush1.msra.mxu0 %v585_v54  ;;  %v654_v54 = vld [vmem:[%s3005_s8 + $0x528] sm:$0xff] }
 0x104   :  { %849 = vmatprep.subr.mxu0 %v570_v56  ;;  %v653_v56 = vld [vmem:[%s3005_s8 + $0x520] sm:$0xff] }
 0x105   :  { %850 = vmatpush1.msra.mxu0 %v569_v58  ;;  %v638_v58 = vld [vmem:[%s3005_s8 + $0x4a8] sm:$0xff] }
 0x106   :  { %851 = vmatprep.subr.mxu0 %v554_v60  ;;  %v637_v60 = vld [vmem:[%s3005_s8 + $0x4a0] sm:$0xff] }
 0x107   :  { %852 = vmatpush1.msra.mxu0 %v553_v62  ;;  %v622_v62 = vld [vmem:[%s3005_s8 + $0x428] sm:$0xff] }
 0x108   :  { %853 = vmatprep.subr.mxu0 %v538_v0  ;;  %v621_v0 = vld [vmem:[%s3005_s8 + $0x420] sm:$0xff] }
 0x109   :  { %854 = vmatpush1.msra.mxu0 %v537_v2  ;;  %v606_v2 = vld [vmem:[%s3005_s8 + $0x3a8] sm:$0xff] }
 0x10a   :  { %855 = vmatprep.subr.mxu0 %v522_v4  ;;  %v605_v4 = vld [vmem:[%s3005_s8 + $0x3a0] sm:$0xff] }
 0x10b   :  { %856 = vmatpush1.msra.mxu0 %v521_v6  ;;  %v590_v6 = vld [vmem:[%s3005_s8 + $0x328] sm:$0xff] }
 0x10c   :  { %857 = vmatprep.subr.mxu0 %v506_v8  ;;  %v589_v8 = vld [vmem:[%s3005_s8 + $0x320] sm:$0xff] }
 0x10d   :  { %858 = vmatpush1.msra.mxu0 %v505_v10  ;;  %v574_v10 = vld [vmem:[%s3005_s8 + $0x2a8] sm:$0xff] }
 0x10e   :  { %859 = vmatprep.subr.mxu0 %v490_v12  ;;  %v573_v12 = vld [vmem:[%s3005_s8 + $0x2a0] sm:$0xff] }
 0x10f   :  { %860 = vmatpush1.msra.mxu0 %v489_v15  ;;  %v558_v15 = vld [vmem:[%s3005_s8 + $0x228] sm:$0xff] }
 0x1b0   :  { %v364_v18 = vpop.f32.mrf.mxu0 }
 0x1b1   :  { %v365_v19 = vadd.f32 %v1540_v17, %v364_v18  ;;  %v734_v17 = vld [vmem:[%s3005_s8 + $0x7a8] sm:$0xff]  ;;  %v736_v18 = vld [vmem:[%s3005_s8 + $0x7b8] sm:$0xff] }
 0x1b2   :  { %v1662_v21 = vpop.f32.mrf.mxu0  ;;  %971 = vmatprep.subr.mxu0 %v734_v17  ;;  %v557_v17 = vld [vmem:[%s3005_s8 + $0x220] sm:$0xff] }
 0x1b3   :  { %477 = vmatmul.mubr.f32.vlgmr.msra.gmra.mxu1 %v365_v19  ;;  %v2356_v19 = vsub.s32 0, %v1899_v42  ;;  %v2362_v21 = vsub.s32 1, %v1899_v42 }
 0x1b4   :  { %901 = vmatpush1.msra.mxu1 %v731_v20  ;;  %964 = vmatprep.mubr.f32.mxu1 %v1716_v13  ;;  %v400_v20 = vld [vmem:[%s3004_s7] sm:$0x3] }
 0x1b5   :  { %902 = vmatprep.subr.mxu1 %v716_v22  ;;  %v405_v22 = vrot.slane %v400_v20, %v2356_v19 }
 0x1b6   :  { %903 = vmatpush1.msra.mxu1 %v715_v23  ;;  %v409_v23 = vrot.slane %v400_v20, %v2362_v21  ;;  %v542_v20 = vld [vmem:[%s3005_s8 + $0x1a8] sm:$0xff] }
 0x1b7   :  { %904 = vmatprep.subr.mxu1 %v700_v24 }
 0x1b8   :  { %905 = vmatpush1.msra.mxu1 %v699_v25 }
 0x1b9   :  { %906 = vmatprep.subr.mxu1 %v684_v27 }
 0x1ba   :  { %907 = vmatpush1.msra.mxu1 %v683_v29 }
 0x1bb   :  { %908 = vmatprep.subr.mxu1 %v668_v31 }
 0x1bc   :  { %909 = vmatpush1.msra.mxu1 %v667_v33 }
 0x1bd   :  { %910 = vmatprep.subr.mxu1 %v652_v35  ;;  %v735_v35 = vld [vmem:[%s3005_s8 + $0x7b0] sm:$0xff] }
 0x1be   :  { %911 = vmatpush1.msra.mxu1 %v651_v37  ;;  %v720_v37 = vld [vmem:[%s3005_s8 + $0x738] sm:$0xff] }
 0x1bf   :  { %912 = vmatprep.subr.mxu1 %v636_v39  ;;  %v719_v39 = vld [vmem:[%s3005_s8 + $0x730] sm:$0xff] }
 0x1c0   :  { %913 = vmatpush1.msra.mxu1 %v635_v41  ;;  %v704_v41 = vld [vmem:[%s3005_s8 + $0x6b8] sm:$0xff] }
 0x1c1   :  { %914 = vmatprep.subr.mxu1 %v620_v44  ;;  %v703_v44 = vld [vmem:[%s3005_s8 + $0x6b0] sm:$0xff] }
 0x1c2   :  { %915 = vmatpush1.msra.mxu1 %v619_v46  ;;  %v688_v46 = vld [vmem:[%s3005_s8 + $0x638] sm:$0xff] }
 0x1c3   :  { %916 = vmatprep.subr.mxu1 %v604_v48  ;;  %v687_v48 = vld [vmem:[%s3005_s8 + $0x630] sm:$0xff] }
 0x1c4   :  { %917 = vmatpush1.msra.mxu1 %v603_v50  ;;  %v672_v50 = vld [vmem:[%s3005_s8 + $0x5b8] sm:$0xff] }
 0x1c5   :  { %918 = vmatprep.subr.mxu1 %v588_v53  ;;  %v671_v53 = vld [vmem:[%s3005_s8 + $0x5b0] sm:$0xff] }
 0x1c6   :  { %919 = vmatpush1.msra.mxu1 %v587_v55  ;;  %v656_v55 = vld [vmem:[%s3005_s8 + $0x538] sm:$0xff] }
 0x1c7   :  { %920 = vmatprep.subr.mxu1 %v572_v57  ;;  %v655_v57 = vld [vmem:[%s3005_s8 + $0x530] sm:$0xff] }
 0x1c8   :  { %921 = vmatpush1.msra.mxu1 %v571_v59  ;;  %v640_v59 = vld [vmem:[%s3005_s8 + $0x4b8] sm:$0xff] }
 0x1c9   :  { %922 = vmatprep.subr.mxu1 %v556_v61  ;;  %v639_v61 = vld [vmem:[%s3005_s8 + $0x4b0] sm:$0xff] }
 0x1ca   :  { %923 = vmatpush1.msra.mxu1 %v555_v63  ;;  %v624_v63 = vld [vmem:[%s3005_s8 + $0x438] sm:$0xff] }
 0x1cb   :  { %924 = vmatprep.subr.mxu1 %v540_v1  ;;  %v623_v1 = vld [vmem:[%s3005_s8 + $0x430] sm:$0xff] }
 0x1cc   :  { %925 = vmatpush1.msra.mxu1 %v539_v3  ;;  %v608_v3 = vld [vmem:[%s3005_s8 + $0x3b8] sm:$0xff] }
 0x1cd   :  { %926 = vmatprep.subr.mxu1 %v524_v5  ;;  %v607_v5 = vld [vmem:[%s3005_s8 + $0x3b0] sm:$0xff] }
 0x1ce   :  { %927 = vmatpush1.msra.mxu1 %v523_v7  ;;  %v592_v7 = vld [vmem:[%s3005_s8 + $0x338] sm:$0xff] }
 0x1cf   :  { %928 = vmatprep.subr.mxu1 %v508_v9  ;;  %v591_v9 = vld [vmem:[%s3005_s8 + $0x330] sm:$0xff] }
 0x1d0   :  { %929 = vmatpush1.msra.mxu1 %v507_v11  ;;  %v576_v11 = vld [vmem:[%s3005_s8 + $0x2b8] sm:$0xff] }
 0x1d1   :  { %930 = vmatprep.subr.mxu1 %v492_v14  ;;  %v575_v14 = vld [vmem:[%s3005_s8 + $0x2b0] sm:$0xff] }
 0x1d2   :  { %931 = vmatpush1.msra.mxu1 %v491_v16  ;;  %v560_v16 = vld [vmem:[%s3005_s8 + $0x238] sm:$0xff] }
 0x1d3   :  { %1042 = vmatprep.subr.mxu1 %v736_v18  ;;  %v559_v18 = vld [vmem:[%s3005_s8 + $0x230] sm:$0xff] }
 0x273   :  { %v478_v24 = vpop.f32.mrf.mxu1 }
 0x274   :  { %v479_v25 = vadd.f32 %v478_v24, %v405_v22  ;;  %v544_v22 = vld [vmem:[%s3005_s8 + $0x1b8] sm:$0xff]  ;;  %v543_v24 = vld [vmem:[%s3005_s8 + $0x1b0] sm:$0xff] }
 0x275   :  { %v480_v26 = vpop.f32.mrf.mxu1 }
 0x276   :  { %1397 = vst [vmem:[#allocation2] sm:$0x3] %v479_v25  ;;  %v481_v27 = vadd.f32 %v480_v26, %v409_v23  ;;  %v541_v23 = vld [vmem:[%s3005_s8 + $0x1a0] sm:$0xff]  ;;  %v528_v26 = vld [vmem:[%s3005_s8 + $0x138] sm:$0xff] }
 0x278   :  { %v483_v28 = vmul.f32 0.5, %v481_v27  ;;  %1398 = vst [vmem:[#allocation4] sm:$0x3] %v481_v27  ;;  %v525_v27 = vld [vmem:[%s3005_s8 + $0x120] sm:$0xff] }
 0x27a   :  { %v484_v29 = vmul.f32 1.442695, %v483_v28  ;;  %v527_v28 = vld [vmem:[%s3005_s8 + $0x130] sm:$0xff] }
 0x27c   :  { %1669 = vpow2.f32 %v484_v29  ;;  %v510_v29 = vld [vmem:[%s3005_s8 + $0xa8] sm:$0xff] }
 0x289   :  { %v1670_v31 = vpop.eup %1669 }
 0x28a   :  { %v487_v32 = vmul.f32 %v1670_v31, %v486_v30  ;;  %v512_v30 = vld [vmem:[%s3005_s8 + $0xb8] sm:$0xff]  ;;  %v509_v31 = vld [vmem:[%s3005_s8 + $0xa0] sm:$0xff] }
 0x28c   :  { %v2369_v33 = vadd.f32 %v487_v32, %v479_v25  ;;  %v526_v25 = vld [vmem:[%s3005_s8 + $0x128] sm:$0xff]  ;;  %v511_v32 = vld [vmem:[%s3005_s8 + $0xb0] sm:$0xff] }
 0x28e   :  { %894 = vmatmul.mubr.f32.vlgmr.msra.gmra.mxu0 %v2369_v33  ;;  %965 = vmatmul.mubr.f32.vlgmr.msra.gmra.mxu1 %v2369_v33 }
 0x28f   :  { %972 = vmatpush1.msra.mxu0 %v733_v34  ;;  %1043 = vmatpush1.msra.mxu1 %v735_v35  ;;  %v494_v34 = vld [vmem:[%s3005_s8 + $0x28] sm:$0xff]  ;;  %v496_v35 = vld [vmem:[%s3005_s8 + $0x38] sm:$0xff] }
 0x290   :  { %973 = vmatprep.subr.mxu0 %v718_v36  ;;  %1044 = vmatprep.subr.mxu1 %v720_v37  ;;  %v493_v36 = vld [vmem:[%s3005_s8 + $0x20] sm:$0xff]  ;;  %v495_v37 = vld [vmem:[%s3005_s8 + $0x30] sm:$0xff] }
 0x291   :  { %974 = vmatpush1.msra.mxu0 %v717_v38  ;;  %1045 = vmatpush1.msra.mxu1 %v719_v39  ;;  %v738_v38 = vld [vmem:[%s3005_s8 + $0x7c8] sm:$0xff]  ;;  %v740_v39 = vld [vmem:[%s3005_s8 + $0x7d8] sm:$0xff] }
 0x292   :  { %975 = vmatprep.subr.mxu0 %v702_v40  ;;  %1046 = vmatprep.subr.mxu1 %v704_v41  ;;  %v737_v40 = vld [vmem:[%s3005_s8 + $0x7c0] sm:$0xff]  ;;  %v739_v41 = vld [vmem:[%s3005_s8 + $0x7d0] sm:$0xff] }
 0x293   :  { %976 = vmatpush1.msra.mxu0 %v701_v43  ;;  %1047 = vmatpush1.msra.mxu1 %v703_v44  ;;  %v722_v43 = vld [vmem:[%s3005_s8 + $0x748] sm:$0xff]  ;;  %v724_v44 = vld [vmem:[%s3005_s8 + $0x758] sm:$0xff] }
 0x294   :  { %977 = vmatprep.subr.mxu0 %v686_v45  ;;  %1048 = vmatprep.subr.mxu1 %v688_v46  ;;  %v721_v45 = vld [vmem:[%s3005_s8 + $0x740] sm:$0xff]  ;;  %v723_v46 = vld [vmem:[%s3005_s8 + $0x750] sm:$0xff] }
 0x295   :  { %978 = vmatpush1.msra.mxu0 %v685_v47  ;;  %1049 = vmatpush1.msra.mxu1 %v687_v48  ;;  %v706_v47 = vld [vmem:[%s3005_s8 + $0x6c8] sm:$0xff]  ;;  %v708_v48 = vld [vmem:[%s3005_s8 + $0x6d8] sm:$0xff] }
 0x296   :  { %979 = vmatprep.subr.mxu0 %v670_v49  ;;  %1050 = vmatprep.subr.mxu1 %v672_v50  ;;  %v705_v49 = vld [vmem:[%s3005_s8 + $0x6c0] sm:$0xff]  ;;  %v707_v50 = vld [vmem:[%s3005_s8 + $0x6d0] sm:$0xff] }
 0x297   :  { %980 = vmatpush1.msra.mxu0 %v669_v52  ;;  %1051 = vmatpush1.msra.mxu1 %v671_v53  ;;  %v690_v52 = vld [vmem:[%s3005_s8 + $0x648] sm:$0xff]  ;;  %v692_v53 = vld [vmem:[%s3005_s8 + $0x658] sm:$0xff] }
 0x298   :  { %981 = vmatprep.subr.mxu0 %v654_v54  ;;  %1052 = vmatprep.subr.mxu1 %v656_v55  ;;  %v689_v54 = vld [vmem:[%s3005_s8 + $0x640] sm:$0xff]  ;;  %v691_v55 = vld [vmem:[%s3005_s8 + $0x650] sm:$0xff] }
 0x299   :  { %982 = vmatpush1.msra.mxu0 %v653_v56  ;;  %1053 = vmatpush1.msra.mxu1 %v655_v57  ;;  %v674_v56 = vld [vmem:[%s3005_s8 + $0x5c8] sm:$0xff]  ;;  %v676_v57 = vld [vmem:[%s3005_s8 + $0x5d8] sm:$0xff] }
 0x29a   :  { %983 = vmatprep.subr.mxu0 %v638_v58  ;;  %1054 = vmatprep.subr.mxu1 %v640_v59  ;;  %v673_v58 = vld [vmem:[%s3005_s8 + $0x5c0] sm:$0xff]  ;;  %v675_v59 = vld [vmem:[%s3005_s8 + $0x5d0] sm:$0xff] }
 0x29b   :  { %984 = vmatpush1.msra.mxu0 %v637_v60  ;;  %1055 = vmatpush1.msra.mxu1 %v639_v61  ;;  %v658_v60 = vld [vmem:[%s3005_s8 + $0x548] sm:$0xff]  ;;  %v660_v61 = vld [vmem:[%s3005_s8 + $0x558] sm:$0xff] }
 0x29c   :  { %985 = vmatprep.subr.mxu0 %v622_v62  ;;  %1056 = vmatprep.subr.mxu1 %v624_v63  ;;  %v657_v62 = vld [vmem:[%s3005_s8 + $0x540] sm:$0xff]  ;;  %v659_v63 = vld [vmem:[%s3005_s8 + $0x550] sm:$0xff] }
 0x29d   :  { %986 = vmatpush1.msra.mxu0 %v621_v0  ;;  %1057 = vmatpush1.msra.mxu1 %v623_v1  ;;  %v642_v0 = vld [vmem:[%s3005_s8 + $0x4c8] sm:$0xff]  ;;  %v644_v1 = vld [vmem:[%s3005_s8 + $0x4d8] sm:$0xff] }
 0x29e   :  { %987 = vmatprep.subr.mxu0 %v606_v2  ;;  %1058 = vmatprep.subr.mxu1 %v608_v3  ;;  %v641_v2 = vld [vmem:[%s3005_s8 + $0x4c0] sm:$0xff]  ;;  %v643_v3 = vld [vmem:[%s3005_s8 + $0x4d0] sm:$0xff] }
 0x29f   :  { %988 = vmatpush1.msra.mxu0 %v605_v4  ;;  %1059 = vmatpush1.msra.mxu1 %v607_v5  ;;  %v626_v4 = vld [vmem:[%s3005_s8 + $0x448] sm:$0xff]  ;;  %v628_v5 = vld [vmem:[%s3005_s8 + $0x458] sm:$0xff] }
 0x2a0   :  { %989 = vmatprep.subr.mxu0 %v590_v6  ;;  %1060 = vmatprep.subr.mxu1 %v592_v7  ;;  %v625_v6 = vld [vmem:[%s3005_s8 + $0x440] sm:$0xff]  ;;  %v627_v7 = vld [vmem:[%s3005_s8 + $0x450] sm:$0xff] }
 0x2a1   :  { %990 = vmatpush1.msra.mxu0 %v589_v8  ;;  %1061 = vmatpush1.msra.mxu1 %v591_v9  ;;  %v610_v8 = vld [vmem:[%s3005_s8 + $0x3c8] sm:$0xff]  ;;  %v612_v9 = vld [vmem:[%s3005_s8 + $0x3d8] sm:$0xff] }
 0x2a2   :  { %991 = vmatprep.subr.mxu0 %v574_v10  ;;  %1062 = vmatprep.subr.mxu1 %v576_v11  ;;  %v609_v10 = vld [vmem:[%s3005_s8 + $0x3c0] sm:$0xff]  ;;  %v611_v11 = vld [vmem:[%s3005_s8 + $0x3d0] sm:$0xff] }
 0x2a3   :  { %992 = vmatpush1.msra.mxu0 %v573_v12  ;;  %1063 = vmatpush1.msra.mxu1 %v575_v14  ;;  %v594_v12 = vld [vmem:[%s3005_s8 + $0x348] sm:$0xff]  ;;  %v596_v14 = vld [vmem:[%s3005_s8 + $0x358] sm:$0xff] }
 0x2a4   :  { %993 = vmatprep.subr.mxu0 %v558_v15  ;;  %1064 = vmatprep.subr.mxu1 %v560_v16  ;;  %v593_v15 = vld [vmem:[%s3005_s8 + $0x340] sm:$0xff]  ;;  %v595_v16 = vld [vmem:[%s3005_s8 + $0x350] sm:$0xff] }
 0x2a5   :  { %994 = vmatpush1.msra.mxu0 %v557_v17  ;;  %1065 = vmatpush1.msra.mxu1 %v559_v18  ;;  %v578_v17 = vld [vmem:[%s3005_s8 + $0x2c8] sm:$0xff]  ;;  %v580_v18 = vld [vmem:[%s3005_s8 + $0x2d8] sm:$0xff] }
 0x2a6   :  { %995 = vmatprep.subr.mxu0 %v542_v20  ;;  %1066 = vmatprep.subr.mxu1 %v544_v22  ;;  %v577_v20 = vld [vmem:[%s3005_s8 + $0x2c0] sm:$0xff]  ;;  %v579_v22 = vld [vmem:[%s3005_s8 + $0x2d0] sm:$0xff] }
 0x2a7   :  { %996 = vmatpush1.msra.mxu0 %v541_v23  ;;  %1067 = vmatpush1.msra.mxu1 %v543_v24  ;;  %v562_v23 = vld [vmem:[%s3005_s8 + $0x248] sm:$0xff]  ;;  %v564_v24 = vld [vmem:[%s3005_s8 + $0x258] sm:$0xff] }
 0x2a8   :  { %997 = vmatprep.subr.mxu0 %v526_v25  ;;  %1068 = vmatprep.subr.mxu1 %v528_v26  ;;  %v561_v25 = vld [vmem:[%s3005_s8 + $0x240] sm:$0xff]  ;;  %v563_v26 = vld [vmem:[%s3005_s8 + $0x250] sm:$0xff] }
 0x2a9   :  { %998 = vmatpush1.msra.mxu0 %v525_v27  ;;  %1069 = vmatpush1.msra.mxu1 %v527_v28  ;;  %v546_v27 = vld [vmem:[%s3005_s8 + $0x1c8] sm:$0xff]  ;;  %v548_v28 = vld [vmem:[%s3005_s8 + $0x1d8] sm:$0xff] }
 0x2aa   :  { %999 = vmatprep.subr.mxu0 %v510_v29  ;;  %1070 = vmatprep.subr.mxu1 %v512_v30  ;;  %v545_v29 = vld [vmem:[%s3005_s8 + $0x1c0] sm:$0xff]  ;;  %v547_v30 = vld [vmem:[%s3005_s8 + $0x1d0] sm:$0xff] }
 0x2ab   :  { %1000 = vmatpush1.msra.mxu0 %v509_v31  ;;  %1071 = vmatpush1.msra.mxu1 %v511_v32  ;;  %v530_v31 = vld [vmem:[%s3005_s8 + $0x148] sm:$0xff]  ;;  %v532_v32 = vld [vmem:[%s3005_s8 + $0x158] sm:$0xff] }
 0x2ac   :  { %1001 = vmatprep.subr.mxu0 %v494_v34  ;;  %1072 = vmatprep.subr.mxu1 %v496_v35  ;;  %v529_v34 = vld [vmem:[%s3005_s8 + $0x140] sm:$0xff]  ;;  %v531_v35 = vld [vmem:[%s3005_s8 + $0x150] sm:$0xff] }
 0x2ad   :  { %1002 = vmatpush1.msra.mxu0 %v493_v36  ;;  %1035 = vmatprep.mubr.f32.mxu0 %v1716_v13  ;;  %v514_v36 = vld [vmem:[%s3005_s8 + $0xc8] sm:$0xff] }
 0x2ae   :  { %1073 = vmatpush1.msra.mxu1 %v495_v37  ;;  %1106 = vmatprep.mubr.f32.mxu1 %v1716_v13  ;;  %v516_v37 = vld [vmem:[%s3005_s8 + $0xd8] sm:$0xff] }
 0x2af   :  { %1036 = vmatmul.mubr.f32.vlgmr.msra.gmra.mxu0 %v2369_v33  ;;  %1107 = vmatmul.mubr.f32.vlgmr.msra.gmra.mxu1 %v2369_v33 }
 0x2b0   :  { %1113 = vmatprep.subr.mxu0 %v738_v38  ;;  %1184 = vmatprep.subr.mxu1 %v740_v39  ;;  %v513_v38 = vld [vmem:[%s3005_s8 + $0xc0] sm:$0xff]  ;;  %v515_v39 = vld [vmem:[%s3005_s8 + $0xd0] sm:$0xff] }
 0x2b1   :  { %1114 = vmatpush1.msra.mxu0 %v737_v40  ;;  %1185 = vmatpush1.msra.mxu1 %v739_v41  ;;  %v498_v40 = vld [vmem:[%s3005_s8 + $0x48] sm:$0xff]  ;;  %v500_v41 = vld [vmem:[%s3005_s8 + $0x58] sm:$0xff] }
 0x2b2   :  { %1115 = vmatprep.subr.mxu0 %v722_v43  ;;  %1186 = vmatprep.subr.mxu1 %v724_v44  ;;  %v497_v43 = vld [vmem:[%s3005_s8 + $0x40] sm:$0xff]  ;;  %v499_v44 = vld [vmem:[%s3005_s8 + $0x50] sm:$0xff] }
 0x2b3   :  { %1116 = vmatpush1.msra.mxu0 %v721_v45  ;;  %1187 = vmatpush1.msra.mxu1 %v723_v46  ;;  %v742_v45 = vld [vmem:[%s3005_s8 + $0x7e8] sm:$0xff]  ;;  %v744_v46 = vld [vmem:[%s3005_s8 + $0x7f8] sm:$0xff] }
 0x2b4   :  { %1117 = vmatprep.subr.mxu0 %v706_v47  ;;  %1188 = vmatprep.subr.mxu1 %v708_v48  ;;  %v741_v47 = vld [vmem:[%s3005_s8 + $0x7e0] sm:$0xff]  ;;  %v743_v48 = vld [vmem:[%s3005_s8 + $0x7f0] sm:$0xff] }
 0x2b5   :  { %1118 = vmatpush1.msra.mxu0 %v705_v49  ;;  %1189 = vmatpush1.msra.mxu1 %v707_v50  ;;  %v726_v49 = vld [vmem:[%s3005_s8 + $0x768] sm:$0xff]  ;;  %v728_v50 = vld [vmem:[%s3005_s8 + $0x778] sm:$0xff] }
 0x2b6   :  { %1119 = vmatprep.subr.mxu0 %v690_v52  ;;  %1190 = vmatprep.subr.mxu1 %v692_v53  ;;  %v725_v52 = vld [vmem:[%s3005_s8 + $0x760] sm:$0xff]  ;;  %v727_v53 = vld [vmem:[%s3005_s8 + $0x770] sm:$0xff] }
 0x2b7   :  { %1120 = vmatpush1.msra.mxu0 %v689_v54  ;;  %1191 = vmatpush1.msra.mxu1 %v691_v55  ;;  %v710_v54 = vld [vmem:[%s3005_s8 + $0x6e8] sm:$0xff]  ;;  %v712_v55 = vld [vmem:[%s3005_s8 + $0x6f8] sm:$0xff] }
 0x2b8   :  { %1121 = vmatprep.subr.mxu0 %v674_v56  ;;  %1192 = vmatprep.subr.mxu1 %v676_v57  ;;  %v709_v56 = vld [vmem:[%s3005_s8 + $0x6e0] sm:$0xff]  ;;  %v711_v57 = vld [vmem:[%s3005_s8 + $0x6f0] sm:$0xff] }
 0x2b9   :  { %1122 = vmatpush1.msra.mxu0 %v673_v58  ;;  %1193 = vmatpush1.msra.mxu1 %v675_v59  ;;  %v694_v58 = vld [vmem:[%s3005_s8 + $0x668] sm:$0xff]  ;;  %v696_v59 = vld [vmem:[%s3005_s8 + $0x678] sm:$0xff] }
 0x2ba   :  { %1123 = vmatprep.subr.mxu0 %v658_v60  ;;  %1194 = vmatprep.subr.mxu1 %v660_v61  ;;  %v693_v60 = vld [vmem:[%s3005_s8 + $0x660] sm:$0xff]  ;;  %v695_v61 = vld [vmem:[%s3005_s8 + $0x670] sm:$0xff] }
 0x2bb   :  { %1124 = vmatpush1.msra.mxu0 %v657_v62  ;;  %1195 = vmatpush1.msra.mxu1 %v659_v63  ;;  %v678_v62 = vld [vmem:[%s3005_s8 + $0x5e8] sm:$0xff]  ;;  %v680_v63 = vld [vmem:[%s3005_s8 + $0x5f8] sm:$0xff] }
 0x2bc   :  { %1125 = vmatprep.subr.mxu0 %v642_v0  ;;  %1196 = vmatprep.subr.mxu1 %v644_v1  ;;  %v677_v0 = vld [vmem:[%s3005_s8 + $0x5e0] sm:$0xff]  ;;  %v679_v1 = vld [vmem:[%s3005_s8 + $0x5f0] sm:$0xff] }
 0x2bd   :  { %1126 = vmatpush1.msra.mxu0 %v641_v2  ;;  %1197 = vmatpush1.msra.mxu1 %v643_v3  ;;  %v662_v2 = vld [vmem:[%s3005_s8 + $0x568] sm:$0xff]  ;;  %v664_v3 = vld [vmem:[%s3005_s8 + $0x578] sm:$0xff] }
 0x2be   :  { %1127 = vmatprep.subr.mxu0 %v626_v4  ;;  %1198 = vmatprep.subr.mxu1 %v628_v5  ;;  %v661_v4 = vld [vmem:[%s3005_s8 + $0x560] sm:$0xff]  ;;  %v663_v5 = vld [vmem:[%s3005_s8 + $0x570] sm:$0xff] }
 0x2bf   :  { %1128 = vmatpush1.msra.mxu0 %v625_v6  ;;  %1199 = vmatpush1.msra.mxu1 %v627_v7  ;;  %v646_v6 = vld [vmem:[%s3005_s8 + $0x4e8] sm:$0xff]  ;;  %v648_v7 = vld [vmem:[%s3005_s8 + $0x4f8] sm:$0xff] }
 0x2c0   :  { %1129 = vmatprep.subr.mxu0 %v610_v8  ;;  %1200 = vmatprep.subr.mxu1 %v612_v9  ;;  %v645_v8 = vld [vmem:[%s3005_s8 + $0x4e0] sm:$0xff]  ;;  %v647_v9 = vld [vmem:[%s3005_s8 + $0x4f0] sm:$0xff] }
 0x2c1   :  { %1130 = vmatpush1.msra.mxu0 %v609_v10  ;;  %1201 = vmatpush1.msra.mxu1 %v611_v11  ;;  %v630_v10 = vld [vmem:[%s3005_s8 + $0x468] sm:$0xff]  ;;  %v632_v11 = vld [vmem:[%s3005_s8 + $0x478] sm:$0xff] }
 0x2c2   :  { %1131 = vmatprep.subr.mxu0 %v594_v12  ;;  %1202 = vmatprep.subr.mxu1 %v596_v14  ;;  %v629_v12 = vld [vmem:[%s3005_s8 + $0x460] sm:$0xff]  ;;  %v631_v14 = vld [vmem:[%s3005_s8 + $0x470] sm:$0xff] }
 0x2c3   :  { %1132 = vmatpush1.msra.mxu0 %v593_v15  ;;  %1203 = vmatpush1.msra.mxu1 %v595_v16  ;;  %v614_v15 = vld [vmem:[%s3005_s8 + $0x3e8] sm:$0xff]  ;;  %v616_v16 = vld [vmem:[%s3005_s8 + $0x3f8] sm:$0xff] }
 0x2c4   :  { %1133 = vmatprep.subr.mxu0 %v578_v17  ;;  %1204 = vmatprep.subr.mxu1 %v580_v18  ;;  %v613_v17 = vld [vmem:[%s3005_s8 + $0x3e0] sm:$0xff]  ;;  %v615_v18 = vld [vmem:[%s3005_s8 + $0x3f0] sm:$0xff] }
 0x2c5   :  { %1134 = vmatpush1.msra.mxu0 %v577_v20  ;;  %1205 = vmatpush1.msra.mxu1 %v579_v22  ;;  %v598_v20 = vld [vmem:[%s3005_s8 + $0x368] sm:$0xff]  ;;  %v600_v22 = vld [vmem:[%s3005_s8 + $0x378] sm:$0xff] }
 0x2c6   :  { %1135 = vmatprep.subr.mxu0 %v562_v23  ;;  %1206 = vmatprep.subr.mxu1 %v564_v24  ;;  %v597_v23 = vld [vmem:[%s3005_s8 + $0x360] sm:$0xff]  ;;  %v599_v24 = vld [vmem:[%s3005_s8 + $0x370] sm:$0xff] }
 0x2c7   :  { %1136 = vmatpush1.msra.mxu0 %v561_v25  ;;  %1207 = vmatpush1.msra.mxu1 %v563_v26  ;;  %v582_v25 = vld [vmem:[%s3005_s8 + $0x2e8] sm:$0xff]  ;;  %v584_v26 = vld [vmem:[%s3005_s8 + $0x2f8] sm:$0xff] }
 0x2c8   :  { %1137 = vmatprep.subr.mxu0 %v546_v27  ;;  %1208 = vmatprep.subr.mxu1 %v548_v28  ;;  %v581_v27 = vld [vmem:[%s3005_s8 + $0x2e0] sm:$0xff]  ;;  %v583_v28 = vld [vmem:[%s3005_s8 + $0x2f0] sm:$0xff] }
 0x2c9   :  { %1138 = vmatpush1.msra.mxu0 %v545_v29  ;;  %1209 = vmatpush1.msra.mxu1 %v547_v30  ;;  %v566_v29 = vld [vmem:[%s3005_s8 + $0x268] sm:$0xff]  ;;  %v568_v30 = vld [vmem:[%s3005_s8 + $0x278] sm:$0xff] }
 0x2ca   :  { %1139 = vmatprep.subr.mxu0 %v530_v31  ;;  %1210 = vmatprep.subr.mxu1 %v532_v32  ;;  %v565_v31 = vld [vmem:[%s3005_s8 + $0x260] sm:$0xff]  ;;  %v567_v32 = vld [vmem:[%s3005_s8 + $0x270] sm:$0xff] }
 0x2cb   :  { %1140 = vmatpush1.msra.mxu0 %v529_v34  ;;  %1211 = vmatpush1.msra.mxu1 %v531_v35  ;;  %v550_v34 = vld [vmem:[%s3005_s8 + $0x1e8] sm:$0xff]  ;;  %v552_v35 = vld [vmem:[%s3005_s8 + $0x1f8] sm:$0xff] }
 0x2cc   :  { %1141 = vmatprep.subr.mxu0 %v514_v36  ;;  %1212 = vmatprep.subr.mxu1 %v516_v37  ;;  %v549_v36 = vld [vmem:[%s3005_s8 + $0x1e0] sm:$0xff]  ;;  %v551_v37 = vld [vmem:[%s3005_s8 + $0x1f0] sm:$0xff] }
 0x2cd   :  { %1142 = vmatpush1.msra.mxu0 %v513_v38  ;;  %1213 = vmatpush1.msra.mxu1 %v515_v39  ;;  %v534_v38 = vld [vmem:[%s3005_s8 + $0x168] sm:$0xff]  ;;  %v536_v39 = vld [vmem:[%s3005_s8 + $0x178] sm:$0xff] }
 0x2ce   :  { %1143 = vmatprep.subr.mxu0 %v498_v40  ;;  %1214 = vmatprep.subr.mxu1 %v500_v41  ;;  %v533_v40 = vld [vmem:[%s3005_s8 + $0x160] sm:$0xff]  ;;  %v535_v41 = vld [vmem:[%s3005_s8 + $0x170] sm:$0xff] }
 0x2cf   :  { %1144 = vmatpush1.msra.mxu0 %v497_v43  ;;  %1177 = vmatprep.mubr.f32.mxu0 %v1716_v13  ;;  %v518_v43 = vld [vmem:[%s3005_s8 + $0xe8] sm:$0xff] }
 0x2d0   :  { %1215 = vmatpush1.msra.mxu1 %v499_v44  ;;  %1248 = vmatprep.mubr.f32.mxu1 %v1716_v13  ;;  %v520_v44 = vld [vmem:[%s3005_s8 + $0xf8] sm:$0xff] }
 0x2d1   :  { %1178 = vmatmul.mubr.f32.vlgmr.msra.gmra.mxu0 %v2369_v33  ;;  %1249 = vmatmul.mubr.f32.vlgmr.msra.gmra.mxu1 %v2369_v33 }
 0x2d2   :  { %1255 = vmatprep.subr.mxu0 %v742_v45  ;;  %1326 = vmatprep.subr.mxu1 %v744_v46  ;;  %v517_v45 = vld [vmem:[%s3005_s8 + $0xe0] sm:$0xff]  ;;  %v519_v46 = vld [vmem:[%s3005_s8 + $0xf0] sm:$0xff] }
 0x2d3   :  { %1256 = vmatpush1.msra.mxu0 %v741_v47  ;;  %1327 = vmatpush1.msra.mxu1 %v743_v48  ;;  %v502_v47 = vld [vmem:[%s3005_s8 + $0x68] sm:$0xff]  ;;  %v504_v48 = vld [vmem:[%s3005_s8 + $0x78] sm:$0xff] }
 0x2d4   :  { %1257 = vmatprep.subr.mxu0 %v726_v49  ;;  %1328 = vmatprep.subr.mxu1 %v728_v50  ;;  %v501_v49 = vld [vmem:[%s3005_s8 + $0x60] sm:$0xff]  ;;  %v503_v50 = vld [vmem:[%s3005_s8 + $0x70] sm:$0xff] }
 0x2d5   :  { %1258 = vmatpush1.msra.mxu0 %v725_v52  ;;  %1329 = vmatpush1.msra.mxu1 %v727_v53 }
 0x2d6   :  { %1259 = vmatprep.subr.mxu0 %v710_v54  ;;  %1330 = vmatprep.subr.mxu1 %v712_v55 }
 0x2d7   :  { %1260 = vmatpush1.msra.mxu0 %v709_v56  ;;  %1331 = vmatpush1.msra.mxu1 %v711_v57 }
 0x2d8   :  { %1261 = vmatprep.subr.mxu0 %v694_v58  ;;  %1332 = vmatprep.subr.mxu1 %v696_v59 }
 0x2d9   :  { %1262 = vmatpush1.msra.mxu0 %v693_v60  ;;  %1333 = vmatpush1.msra.mxu1 %v695_v61 }
 0x2da   :  { %1263 = vmatprep.subr.mxu0 %v678_v62  ;;  %1334 = vmatprep.subr.mxu1 %v680_v63 }
 0x2db   :  { %1264 = vmatpush1.msra.mxu0 %v677_v0  ;;  %1335 = vmatpush1.msra.mxu1 %v679_v1 }
 0x2dc   :  { %1265 = vmatprep.subr.mxu0 %v662_v2  ;;  %1336 = vmatprep.subr.mxu1 %v664_v3 }
 0x2dd   :  { %1266 = vmatpush1.msra.mxu0 %v661_v4  ;;  %1337 = vmatpush1.msra.mxu1 %v663_v5 }
 0x2de   :  { %1267 = vmatprep.subr.mxu0 %v646_v6  ;;  %1338 = vmatprep.subr.mxu1 %v648_v7 }
 0x2df   :  { %1268 = vmatpush1.msra.mxu0 %v645_v8  ;;  %1339 = vmatpush1.msra.mxu1 %v647_v9 }
 0x2e0   :  { %1269 = vmatprep.subr.mxu0 %v630_v10  ;;  %1340 = vmatprep.subr.mxu1 %v632_v11 }
 0x2e1   :  { %1270 = vmatpush1.msra.mxu0 %v629_v12  ;;  %1341 = vmatpush1.msra.mxu1 %v631_v14 }
 0x2e2   :  { %1271 = vmatprep.subr.mxu0 %v614_v15  ;;  %1342 = vmatprep.subr.mxu1 %v616_v16 }
 0x2e3   :  { %1272 = vmatpush1.msra.mxu0 %v613_v17  ;;  %1343 = vmatpush1.msra.mxu1 %v615_v18 }
 0x2e4   :  { %1273 = vmatprep.subr.mxu0 %v598_v20  ;;  %1344 = vmatprep.subr.mxu1 %v600_v22 }
 0x2e5   :  { %1274 = vmatpush1.msra.mxu0 %v597_v23  ;;  %1345 = vmatpush1.msra.mxu1 %v599_v24 }
 0x2e6   :  { %1275 = vmatprep.subr.mxu0 %v582_v25  ;;  %1346 = vmatprep.subr.mxu1 %v584_v26 }
 0x2e7   :  { %1276 = vmatpush1.msra.mxu0 %v581_v27  ;;  %1347 = vmatpush1.msra.mxu1 %v583_v28 }
 0x2e8   :  { %1277 = vmatprep.subr.mxu0 %v566_v29  ;;  %1348 = vmatprep.subr.mxu1 %v568_v30 }
 0x2e9   :  { %1278 = vmatpush1.msra.mxu0 %v565_v31  ;;  %1349 = vmatpush1.msra.mxu1 %v567_v32 }
 0x2ea   :  { %1279 = vmatprep.subr.mxu0 %v550_v34  ;;  %1350 = vmatprep.subr.mxu1 %v552_v35 }
 0x2eb   :  { %1280 = vmatpush1.msra.mxu0 %v549_v36  ;;  %1351 = vmatpush1.msra.mxu1 %v551_v37 }
 0x2ec   :  { %1281 = vmatprep.subr.mxu0 %v534_v38  ;;  %1352 = vmatprep.subr.mxu1 %v536_v39 }
 0x2ed   :  { %1282 = vmatpush1.msra.mxu0 %v533_v40  ;;  %1353 = vmatpush1.msra.mxu1 %v535_v41 }
 0x2ee   :  { %1283 = vmatprep.subr.mxu0 %v518_v43  ;;  %1354 = vmatprep.subr.mxu1 %v520_v44 }
 0x2ef   :  { %1284 = vmatpush1.msra.mxu0 %v517_v45  ;;  %1355 = vmatpush1.msra.mxu1 %v519_v46 }
 0x2f0   :  { %1285 = vmatprep.subr.mxu0 %v502_v47  ;;  %1356 = vmatprep.subr.mxu1 %v504_v48 }
 0x2f1   :  { %1286 = vmatpush1.msra.mxu0 %v501_v49  ;;  %1319 = vmatprep.mubr.f32.mxu0 %v1716_v13 }
 0x2f2   :  { %1357 = vmatpush1.msra.mxu1 %v503_v50  ;;  %1390 = vmatprep.mubr.f32.mxu1 %v1716_v13 }
 0x2f3   :  { %1320 = vmatmul.mubr.f32.vlgmr.msra.gmra.mxu0 %v2369_v33  ;;  %1391 = vmatmul.mubr.f32.vlgmr.msra.gmra.mxu1 %v2369_v33 }
 0x2f4   :  { %1682 = shalt.err (!%p1679_p4)
}
 0x2f5   :  { %1516 = dma.vmem_to_hbm [thread:$0]  %s1514_s24, 32, %s3007_s10, [#allocation3]  }
 0x2f6   :  { %s1691_s28 = scalar_lea.vmem %s1524_s26, 32  ;;  %p1696_p6 = scmp.lt.s32.totalorder %s1524_s26, %s1524_s26 }
 0x2f7   :  { %p1692_p5 = scmp.ne.s32.totalorder %s1524_s26, %s1691_s28  ;;  %p1697_p7 = scmp.lt.s32.totalorder %s1691_s28, %s1691_s28 }
 0x2f9   :  { %p1698_p8 = por %p1697_p7, %p1696_p6 }
 0x2fb   :  { %p1699_p9 = pnand %p1698_p8, %p1692_p5 }
 0x2fd   :  { %1702 = shalt.err (!%p1699_p9)
}
 0x2fe   :  { %1526 = dma.vmem_to_hbm [thread:$0]  %s1524_s26, 32, %s3008_s11, [#allocation5]   ;;  %v759_v13 = vsub.s32 2, %v1899_v42  ;;  %v745_v33 = vld [vmem:[%s3006_s9] sm:$0xff]  ;;  %v763_v52 = vsub.s32 3, %v1899_v42  ;;  %v767_v10 = vsub.s32 4, %v1899_v42 }
 0x2ff   :  { %v752_v53 = vrot.slane %v745_v33, %v2356_v19  ;;  %v756_v55 = vrot.slane %v745_v33, %v2362_v21  ;;  %v775_v11 = vsub.s32 6, %v1899_v42  ;;  %v771_v12 = vsub.s32 5, %v1899_v42  ;;  %v746_v38 = vld [vmem:[%s3006_s9 + $0x8] sm:$0xff] }
 0x300   :  { %v760_v54 = vrot.slane %v745_v33, %v759_v13  ;;  %v764_v56 = vrot.slane %v745_v33, %v763_v52  ;;  %v779_v14 = vsub.s32 7, %v1899_v42  ;;  %v768_v15 = vrot.slane %v745_v33, %v767_v10 }
 0x301   :  { %v776_v16 = vrot.slane %v745_v33, %v775_v11  ;;  %v772_v17 = vrot.slane %v745_v33, %v771_v12  ;;  %v784_v39 = vrot.slane %v746_v38, %v2356_v19  ;;  %v792_v40 = vrot.slane %v746_v38, %v759_v13 }
 0x302   :  { %v780_v18 = vrot.slane %v745_v33, %v779_v14  ;;  %v788_v41 = vrot.slane %v746_v38, %v2362_v21  ;;  %v796_v43 = vrot.slane %v746_v38, %v763_v52  ;;  %v800_v52 = vrot.slane %v746_v38, %v767_v10 }
 0x34e   :  { %v895_v57 = vpop.f32.mrf.mxu0  ;;  %v966_v58 = vpop.f32.mrf.mxu1 }
 0x34f   :  { %v896_v59 = vadd.f32 %v895_v57, %v752_v53  ;;  %v967_v60 = vadd.f32 %v966_v58, %v760_v54 }
 0x350   :  { %v897_v61 = vpop.f32.mrf.mxu0  ;;  %v968_v62 = vpop.f32.mrf.mxu1 }
 0x351   :  { %v898_v63 = vadd.f32 %v897_v61, %v756_v55  ;;  %v969_v0 = vadd.f32 %v968_v62, %v764_v56  ;;  %v1399_v1 = vmax.f32 %v896_v59, 0.0  ;;  %v1401_v2 = vmax.f32 %v967_v60, 0.0 }
 0x352   :  { %v808_v59 = vrot.slane %v746_v38, %v775_v11  ;;  %v804_v60 = vrot.slane %v746_v38, %v771_v12  ;;  %v812_v61 = vrot.slane %v746_v38, %v779_v14 }
 0x353   :  { %v1400_v3 = vmax.f32 %v898_v63, 0.0  ;;  %v1402_v4 = vmax.f32 %v969_v0, 0.0 }
 0x355   :  { %v1431_v5 = vcombine.low %v1399_v1, %v1400_v3  ;;  %v1432_v6 = vcombine.low %v1401_v2, %v1402_v4 }
 0x357   :  { %v1439_v7 = vrot.slane %v1431_v5, %v1926_v51  ;;  %v1446_v8 = vrot.slane %v1432_v6, %v1926_v51 }
 0x359   :  { %v1447_v9 = vcombine.low %v1439_v7, %v1446_v8 }
 0x35b   :  { %1503 = vst [vmem:[%s3009_s12] sm:$0xff] %v1447_v9 }
 0x36f   :  { %v1037_v20 = vpop.f32.mrf.mxu0  ;;  %v1108_v22 = vpop.f32.mrf.mxu1 }
 0x370   :  { %v1038_v23 = vadd.f32 %v1037_v20, %v768_v15  ;;  %v1109_v24 = vadd.f32 %v1108_v22, %v776_v16 }
 0x371   :  { %v1039_v25 = vpop.f32.mrf.mxu0  ;;  %v1110_v26 = vpop.f32.mrf.mxu1 }
 0x372   :  { %v1040_v27 = vadd.f32 %v1039_v25, %v772_v17  ;;  %v1111_v28 = vadd.f32 %v1110_v26, %v780_v18  ;;  %v1403_v29 = vmax.f32 %v1038_v23, 0.0  ;;  %v1405_v30 = vmax.f32 %v1109_v24, 0.0 }
 0x374   :  { %v1404_v31 = vmax.f32 %v1040_v27, 0.0  ;;  %v1406_v32 = vmax.f32 %v1111_v28, 0.0 }
 0x376   :  { %v1448_v34 = vcombine.low %v1403_v29, %v1404_v31  ;;  %v1449_v35 = vcombine.low %v1405_v30, %v1406_v32 }
 0x378   :  { %v1456_v42 = vrot.slane %v1448_v34, %v1926_v51  ;;  %v1463_v36 = vrot.slane %v1449_v35, %v1926_v51 }
 0x37a   :  { %v1464_v37 = vcombine.low %v1456_v42, %v1463_v36 }
 0x37c   :  { %1504 = vst [vmem:[%s3009_s12 + $0x8] sm:$0xff] %v1464_v37 }
 0x391   :  { %v1179_v44 = vpop.f32.mrf.mxu0  ;;  %v1250_v45 = vpop.f32.mrf.mxu1 }
 0x392   :  { %v1180_v46 = vadd.f32 %v1179_v44, %v784_v39  ;;  %v1251_v47 = vadd.f32 %v1250_v45, %v792_v40 }
 0x393   :  { %v1181_v48 = vpop.f32.mrf.mxu0  ;;  %v1252_v49 = vpop.f32.mrf.mxu1 }
 0x394   :  { %v1182_v50 = vadd.f32 %v1181_v48, %v788_v41  ;;  %v1253_v33 = vadd.f32 %v1252_v49, %v796_v43  ;;  %v1407_v53 = vmax.f32 %v1180_v46, 0.0  ;;  %v1409_v54 = vmax.f32 %v1251_v47, 0.0 }
 0x396   :  { %v1408_v55 = vmax.f32 %v1182_v50, 0.0  ;;  %v1410_v56 = vmax.f32 %v1253_v33, 0.0 }
 0x398   :  { %v1465_v57 = vcombine.low %v1407_v53, %v1408_v55  ;;  %v1466_v58 = vcombine.low %v1409_v54, %v1410_v56 }
 0x39a   :  { %v1473_v19 = vrot.slane %v1465_v57, %v1926_v51  ;;  %v1480_v13 = vrot.slane %v1466_v58, %v1926_v51 }
 0x39c   :  { %v1481_v21 = vcombine.low %v1473_v19, %v1480_v13 }
 0x39e   :  { %1505 = vst [vmem:[%s3009_s12 + $0x10] sm:$0xff] %v1481_v21 }
 0x3b3   :  { %v1321_v62 = vpop.f32.mrf.mxu0  ;;  %v1392_v63 = vpop.f32.mrf.mxu1 }
 0x3b4   :  { %v1322_v0 = vadd.f32 %v1321_v62, %v800_v52  ;;  %v1393_v1 = vadd.f32 %v1392_v63, %v808_v59 }
 0x3b5   :  { %v1323_v2 = vpop.f32.mrf.mxu0  ;;  %v1394_v3 = vpop.f32.mrf.mxu1 }
 0x3b6   :  { %v1324_v4 = vadd.f32 %v1323_v2, %v804_v60  ;;  %v1395_v5 = vadd.f32 %v1394_v3, %v812_v61  ;;  %v1411_v6 = vmax.f32 %v1322_v0, 0.0  ;;  %v1413_v7 = vmax.f32 %v1393_v1, 0.0 }
 0x3b8   :  { %v1412_v8 = vmax.f32 %v1324_v4, 0.0  ;;  %v1414_v9 = vmax.f32 %v1395_v5, 0.0 }
 0x3ba   :  { %v1482_v15 = vcombine.low %v1411_v6, %v1412_v8  ;;  %v1483_v16 = vcombine.low %v1413_v7, %v1414_v9 }
 0x3bc   :  { %v1490_v17 = vrot.slane %v1482_v15, %v1926_v51  ;;  %v1497_v10 = vrot.slane %v1483_v16, %v1926_v51 }
 0x3be   :  { %v1498_v11 = vcombine.low %v1490_v17, %v1497_v10 }
 0x3c0   :  { %1506 = vst [vmem:[%s3009_s12 + $0x18] sm:$0xff] %v1498_v11 }
 0x3c1   :  { %1711 = dma.done.wait [#allocation3], 32  }
 0x3c2   :  { %1712 = vsyncadd [#allocation3], 4294967264 }
 0x3c3   :  { %1713 = dma.done.wait [#allocation5], 32  }
 0x3c4   :  { %1714 = vsyncadd [#allocation5], 4294967264 }
 0x3c5   :  { %1537 = vsyncpa [#allocation3], 1 }
 0x3c6   :  { %1538 = vsyncpa [#allocation5], 1 }

// kernel: forward.11
= control target key start
LH: loop header
LB: loop body
LE: loop exit
PB: predicated region body
PF: predicated region fallthrough
CT: control target
= control target key end

     0   :  { %vm344_vm0 = vcmask 523264   ;;  %s2040_s1 = inlined_call_operand.vmem [shape: f32[576,512], index: 1, kind: input, shape index: {}]   ;;  %s2041_s0 = inlined_call_operand.vmem [shape: f32[32,576], index: 0, kind: input, shape index: {}]   ;;  %s2042_s2 = inlined_call_operand.vmem [shape: f32[1,512], index: 2, kind: input, shape index: {}]   ;;  %s2043_s3 = inlined_call_operand.vmem [shape: f32[32,512], index: 3, kind: output, shape index: {}]  }
   0x1   :  { %v95_v0 = vld [vmem:[%s2040_s1 + $0x1e8] sm:$0xff]  ;;  %v94_v2 = vld [vmem:[%s2040_s1 + $0x1e0] sm:$0xff] }
   0x2   :  { %v223_v1 = vld [vmem:[%s2040_s1 + $0x5e8] sm:$0xff]  ;;  %357 = vmatprep.subr.mxu0 %v95_v0  ;;  %v222_v3 = vld [vmem:[%s2040_s1 + $0x5e0] sm:$0xff] }
   0x3   :  { %446 = vmatprep.subr.mxu1 %v223_v1  ;;  %v91_v4 = vld [vmem:[%s2040_s1 + $0x1c8] sm:$0xff]  ;;  %358 = vmatpush1.msra.mxu0 %v94_v2  ;;  %v90_v6 = vld [vmem:[%s2040_s1 + $0x1c0] sm:$0xff] }
   0x4   :  { %v219_v5 = vld [vmem:[%s2040_s1 + $0x5c8] sm:$0xff]  ;;  %447 = vmatpush1.msra.mxu1 %v222_v3  ;;  %v218_v7 = vld [vmem:[%s2040_s1 + $0x5c0] sm:$0xff]  ;;  %359 = vmatprep.subr.mxu0 %v91_v4 }
   0x5   :  { %v87_v8 = vld [vmem:[%s2040_s1 + $0x1a8] sm:$0xff]  ;;  %448 = vmatprep.subr.mxu1 %v219_v5  ;;  %v86_v10 = vld [vmem:[%s2040_s1 + $0x1a0] sm:$0xff]  ;;  %360 = vmatpush1.msra.mxu0 %v90_v6 }
   0x6   :  { %v215_v9 = vld [vmem:[%s2040_s1 + $0x5a8] sm:$0xff]  ;;  %v214_v11 = vld [vmem:[%s2040_s1 + $0x5a0] sm:$0xff]  ;;  %449 = vmatpush1.msra.mxu1 %v218_v7  ;;  %361 = vmatprep.subr.mxu0 %v87_v8 }
   0x7   :  { %v83_v12 = vld [vmem:[%s2040_s1 + $0x188] sm:$0xff]  ;;  %450 = vmatprep.subr.mxu1 %v215_v9  ;;  %v82_v14 = vld [vmem:[%s2040_s1 + $0x180] sm:$0xff]  ;;  %362 = vmatpush1.msra.mxu0 %v86_v10 }
   0x8   :  { %v211_v13 = vld [vmem:[%s2040_s1 + $0x588] sm:$0xff]  ;;  %v210_v15 = vld [vmem:[%s2040_s1 + $0x580] sm:$0xff]  ;;  %451 = vmatpush1.msra.mxu1 %v214_v11  ;;  %363 = vmatprep.subr.mxu0 %v83_v12 }
   0x9   :  { %v79_v16 = vld [vmem:[%s2040_s1 + $0x168] sm:$0xff]  ;;  %452 = vmatprep.subr.mxu1 %v211_v13  ;;  %v78_v18 = vld [vmem:[%s2040_s1 + $0x160] sm:$0xff]  ;;  %364 = vmatpush1.msra.mxu0 %v82_v14 }
   0xa   :  { %v207_v17 = vld [vmem:[%s2040_s1 + $0x568] sm:$0xff]  ;;  %v206_v19 = vld [vmem:[%s2040_s1 + $0x560] sm:$0xff]  ;;  %453 = vmatpush1.msra.mxu1 %v210_v15  ;;  %365 = vmatprep.subr.mxu0 %v79_v16 }
   0xb   :  { %v75_v20 = vld [vmem:[%s2040_s1 + $0x148] sm:$0xff]  ;;  %454 = vmatprep.subr.mxu1 %v207_v17  ;;  %v74_v22 = vld [vmem:[%s2040_s1 + $0x140] sm:$0xff]  ;;  %366 = vmatpush1.msra.mxu0 %v78_v18 }
   0xc   :  { %v203_v21 = vld [vmem:[%s2040_s1 + $0x548] sm:$0xff]  ;;  %v202_v23 = vld [vmem:[%s2040_s1 + $0x540] sm:$0xff]  ;;  %455 = vmatpush1.msra.mxu1 %v206_v19  ;;  %367 = vmatprep.subr.mxu0 %v75_v20 }
   0xd   :  { %v71_v24 = vld [vmem:[%s2040_s1 + $0x128] sm:$0xff]  ;;  %456 = vmatprep.subr.mxu1 %v203_v21  ;;  %v70_v26 = vld [vmem:[%s2040_s1 + $0x120] sm:$0xff]  ;;  %368 = vmatpush1.msra.mxu0 %v74_v22 }
   0xe   :  { %v199_v25 = vld [vmem:[%s2040_s1 + $0x528] sm:$0xff]  ;;  %v198_v27 = vld [vmem:[%s2040_s1 + $0x520] sm:$0xff]  ;;  %457 = vmatpush1.msra.mxu1 %v202_v23  ;;  %369 = vmatprep.subr.mxu0 %v71_v24 }
   0xf   :  { %v67_v28 = vld [vmem:[%s2040_s1 + $0x108] sm:$0xff]  ;;  %458 = vmatprep.subr.mxu1 %v199_v25  ;;  %v66_v30 = vld [vmem:[%s2040_s1 + $0x100] sm:$0xff]  ;;  %370 = vmatpush1.msra.mxu0 %v70_v26 }
  0x10   :  { %v195_v29 = vld [vmem:[%s2040_s1 + $0x508] sm:$0xff]  ;;  %v194_v31 = vld [vmem:[%s2040_s1 + $0x500] sm:$0xff]  ;;  %459 = vmatpush1.msra.mxu1 %v198_v27  ;;  %371 = vmatprep.subr.mxu0 %v67_v28 }
  0x11   :  { %v63_v32 = vld [vmem:[%s2040_s1 + $0xe8] sm:$0xff]  ;;  %460 = vmatprep.subr.mxu1 %v195_v29  ;;  %v62_v34 = vld [vmem:[%s2040_s1 + $0xe0] sm:$0xff]  ;;  %372 = vmatpush1.msra.mxu0 %v66_v30 }
  0x12   :  { %v191_v33 = vld [vmem:[%s2040_s1 + $0x4e8] sm:$0xff]  ;;  %v190_v35 = vld [vmem:[%s2040_s1 + $0x4e0] sm:$0xff]  ;;  %461 = vmatpush1.msra.mxu1 %v194_v31  ;;  %373 = vmatprep.subr.mxu0 %v63_v32 }
  0x13   :  { %v59_v36 = vld [vmem:[%s2040_s1 + $0xc8] sm:$0xff]  ;;  %462 = vmatprep.subr.mxu1 %v191_v33  ;;  %v58_v38 = vld [vmem:[%s2040_s1 + $0xc0] sm:$0xff]  ;;  %374 = vmatpush1.msra.mxu0 %v62_v34 }
  0x14   :  { %v187_v37 = vld [vmem:[%s2040_s1 + $0x4c8] sm:$0xff]  ;;  %v186_v39 = vld [vmem:[%s2040_s1 + $0x4c0] sm:$0xff]  ;;  %463 = vmatpush1.msra.mxu1 %v190_v35  ;;  %375 = vmatprep.subr.mxu0 %v59_v36 }
  0x15   :  { %v55_v40 = vld [vmem:[%s2040_s1 + $0xa8] sm:$0xff]  ;;  %464 = vmatprep.subr.mxu1 %v187_v37  ;;  %v54_v42 = vld [vmem:[%s2040_s1 + $0xa0] sm:$0xff]  ;;  %376 = vmatpush1.msra.mxu0 %v58_v38 }
  0x16   :  { %v183_v41 = vld [vmem:[%s2040_s1 + $0x4a8] sm:$0xff]  ;;  %v182_v43 = vld [vmem:[%s2040_s1 + $0x4a0] sm:$0xff]  ;;  %465 = vmatpush1.msra.mxu1 %v186_v39  ;;  %377 = vmatprep.subr.mxu0 %v55_v40 }
  0x17   :  { %v51_v44 = vld [vmem:[%s2040_s1 + $0x88] sm:$0xff]  ;;  %466 = vmatprep.subr.mxu1 %v183_v41  ;;  %v50_v46 = vld [vmem:[%s2040_s1 + $0x80] sm:$0xff]  ;;  %378 = vmatpush1.msra.mxu0 %v54_v42 }
  0x18   :  { %v179_v45 = vld [vmem:[%s2040_s1 + $0x488] sm:$0xff]  ;;  %v178_v47 = vld [vmem:[%s2040_s1 + $0x480] sm:$0xff]  ;;  %467 = vmatpush1.msra.mxu1 %v182_v43  ;;  %379 = vmatprep.subr.mxu0 %v51_v44 }
  0x19   :  { %v47_v48 = vld [vmem:[%s2040_s1 + $0x68] sm:$0xff]  ;;  %468 = vmatprep.subr.mxu1 %v179_v45  ;;  %v46_v50 = vld [vmem:[%s2040_s1 + $0x60] sm:$0xff]  ;;  %380 = vmatpush1.msra.mxu0 %v50_v46 }
  0x1a   :  { %v175_v49 = vld [vmem:[%s2040_s1 + $0x468] sm:$0xff]  ;;  %v174_v51 = vld [vmem:[%s2040_s1 + $0x460] sm:$0xff]  ;;  %469 = vmatpush1.msra.mxu1 %v178_v47  ;;  %381 = vmatprep.subr.mxu0 %v47_v48 }
  0x1b   :  { %v43_v52 = vld [vmem:[%s2040_s1 + $0x48] sm:$0xff]  ;;  %470 = vmatprep.subr.mxu1 %v175_v49  ;;  %v42_v54 = vld [vmem:[%s2040_s1 + $0x40] sm:$0xff]  ;;  %382 = vmatpush1.msra.mxu0 %v46_v50 }
  0x1c   :  { %v171_v53 = vld [vmem:[%s2040_s1 + $0x448] sm:$0xff]  ;;  %v170_v55 = vld [vmem:[%s2040_s1 + $0x440] sm:$0xff]  ;;  %471 = vmatpush1.msra.mxu1 %v174_v51  ;;  %383 = vmatprep.subr.mxu0 %v43_v52 }
  0x1d   :  { %v39_v56 = vld [vmem:[%s2040_s1 + $0x28] sm:$0xff]  ;;  %472 = vmatprep.subr.mxu1 %v171_v53  ;;  %v38_v58 = vld [vmem:[%s2040_s1 + $0x20] sm:$0xff]  ;;  %384 = vmatpush1.msra.mxu0 %v42_v54 }
  0x1e   :  { %v167_v57 = vld [vmem:[%s2040_s1 + $0x428] sm:$0xff]  ;;  %v166_v59 = vld [vmem:[%s2040_s1 + $0x420] sm:$0xff]  ;;  %473 = vmatpush1.msra.mxu1 %v170_v55  ;;  %385 = vmatprep.subr.mxu0 %v39_v56 }
  0x1f   :  { %v35_v60 = vld [vmem:[%s2040_s1 + $0x8] sm:$0xff]  ;;  %474 = vmatprep.subr.mxu1 %v167_v57  ;;  %v34_v62 = vld [vmem:[%s2040_s1] sm:$0xff]  ;;  %386 = vmatpush1.msra.mxu0 %v38_v58 }
  0x20   :  { %v163_v61 = vld [vmem:[%s2040_s1 + $0x408] sm:$0xff]  ;;  %v162_v63 = vld [vmem:[%s2040_s1 + $0x400] sm:$0xff]  ;;  %475 = vmatpush1.msra.mxu1 %v166_v59  ;;  %387 = vmatprep.subr.mxu0 %v35_v60 }
  0x21   :  { %v159_v0 = vld [vmem:[%s2040_s1 + $0x3e8] sm:$0xff]  ;;  %476 = vmatprep.subr.mxu1 %v163_v61  ;;  %v158_v2 = vld [vmem:[%s2040_s1 + $0x3e0] sm:$0xff]  ;;  %388 = vmatpush1.msra.mxu0 %v34_v62 }
  0x22   :  { %v287_v1 = vld [vmem:[%s2040_s1 + $0x7e8] sm:$0xff]  ;;  %v286_v3 = vld [vmem:[%s2040_s1 + $0x7e0] sm:$0xff]  ;;  %477 = vmatpush1.msra.mxu1 %v162_v63  ;;  %389 = vmatprep.subr.mxu0 %v159_v0 }
  0x23   :  { %v155_v4 = vld [vmem:[%s2040_s1 + $0x3c8] sm:$0xff]  ;;  %478 = vmatprep.subr.mxu1 %v287_v1  ;;  %v154_v6 = vld [vmem:[%s2040_s1 + $0x3c0] sm:$0xff]  ;;  %390 = vmatpush2.msra.mxu0 %v158_v2  ;;  %v1349_v1 = vld [vmem:[%s2041_s0 + $0x18] sm:$0xff] }
  0x24   :  { %v283_v5 = vld [vmem:[%s2040_s1 + $0x7c8] sm:$0xff]  ;;  %v282_v7 = vld [vmem:[%s2040_s1 + $0x7c0] sm:$0xff]  ;;  %479 = vmatpush2.msra.mxu1 %v286_v3  ;;  %391 = vmatprep.subr.mxu0 %v155_v4  ;;  %v1359_v3 = vld [vmem:[%s2041_s0 + $0x10] sm:$0xff] }
  0x25   :  { %v151_v8 = vld [vmem:[%s2040_s1 + $0x3a8] sm:$0xff]  ;;  %480 = vmatprep.subr.mxu1 %v283_v5  ;;  %v150_v10 = vld [vmem:[%s2040_s1 + $0x3a0] sm:$0xff]  ;;  %392 = vmatpush2.msra.mxu0 %v154_v6  ;;  %v97_v5 = vld [vmem:[%s2040_s1 + $0x1f8] sm:$0xff] }
  0x26   :  { %v279_v9 = vld [vmem:[%s2040_s1 + $0x7a8] sm:$0xff]  ;;  %v278_v11 = vld [vmem:[%s2040_s1 + $0x7a0] sm:$0xff]  ;;  %481 = vmatpush2.msra.mxu1 %v282_v7  ;;  %393 = vmatprep.subr.mxu0 %v151_v8  ;;  %v96_v7 = vld [vmem:[%s2040_s1 + $0x1f0] sm:$0xff] }
  0x27   :  { %v147_v12 = vld [vmem:[%s2040_s1 + $0x388] sm:$0xff]  ;;  %482 = vmatprep.subr.mxu1 %v279_v9  ;;  %v146_v14 = vld [vmem:[%s2040_s1 + $0x380] sm:$0xff]  ;;  %394 = vmatpush2.msra.mxu0 %v150_v10  ;;  %v93_v9 = vld [vmem:[%s2040_s1 + $0x1d8] sm:$0xff] }
  0x28   :  { %v275_v13 = vld [vmem:[%s2040_s1 + $0x788] sm:$0xff]  ;;  %v274_v15 = vld [vmem:[%s2040_s1 + $0x780] sm:$0xff]  ;;  %483 = vmatpush2.msra.mxu1 %v278_v11  ;;  %395 = vmatprep.subr.mxu0 %v147_v12  ;;  %v1386_v10 = vld [vmem:[%s2041_s0 + $0x30] sm:$0xff] }
  0x29   :  { %v143_v16 = vld [vmem:[%s2040_s1 + $0x368] sm:$0xff]  ;;  %484 = vmatprep.subr.mxu1 %v275_v13  ;;  %v142_v18 = vld [vmem:[%s2040_s1 + $0x360] sm:$0xff]  ;;  %396 = vmatpush2.msra.mxu0 %v146_v14  ;;  %v92_v12 = vld [vmem:[%s2040_s1 + $0x1d0] sm:$0xff] }
  0x2a   :  { %v271_v17 = vld [vmem:[%s2040_s1 + $0x768] sm:$0xff]  ;;  %v270_v19 = vld [vmem:[%s2040_s1 + $0x760] sm:$0xff]  ;;  %485 = vmatpush2.msra.mxu1 %v274_v15  ;;  %397 = vmatprep.subr.mxu0 %v143_v16  ;;  %v89_v15 = vld [vmem:[%s2040_s1 + $0x1b8] sm:$0xff] }
  0x2b   :  { %v139_v20 = vld [vmem:[%s2040_s1 + $0x348] sm:$0xff]  ;;  %486 = vmatprep.subr.mxu1 %v271_v17  ;;  %v138_v22 = vld [vmem:[%s2040_s1 + $0x340] sm:$0xff]  ;;  %398 = vmatpush2.msra.mxu0 %v142_v18  ;;  %v88_v18 = vld [vmem:[%s2040_s1 + $0x1b0] sm:$0xff] }
  0x2c   :  { %v267_v21 = vld [vmem:[%s2040_s1 + $0x748] sm:$0xff]  ;;  %v266_v23 = vld [vmem:[%s2040_s1 + $0x740] sm:$0xff]  ;;  %487 = vmatpush2.msra.mxu1 %v270_v19  ;;  %399 = vmatprep.subr.mxu0 %v139_v20  ;;  %v1424_v20 = vld [vmem:[%s2041_s0 + $0x38] sm:$0xff] }
  0x2d   :  { %v135_v24 = vld [vmem:[%s2040_s1 + $0x328] sm:$0xff]  ;;  %488 = vmatprep.subr.mxu1 %v267_v21  ;;  %v134_v26 = vld [vmem:[%s2040_s1 + $0x320] sm:$0xff]  ;;  %400 = vmatpush2.msra.mxu0 %v138_v22  ;;  %v85_v21 = vld [vmem:[%s2040_s1 + $0x198] sm:$0xff] }
  0x2e   :  { %v263_v25 = vld [vmem:[%s2040_s1 + $0x728] sm:$0xff]  ;;  %v262_v27 = vld [vmem:[%s2040_s1 + $0x720] sm:$0xff]  ;;  %489 = vmatpush2.msra.mxu1 %v266_v23  ;;  %401 = vmatprep.subr.mxu0 %v135_v24  ;;  %v1433_v22 = vld [vmem:[%s2041_s0 + $0x58] sm:$0xff] }
  0x2f   :  { %v131_v28 = vld [vmem:[%s2040_s1 + $0x308] sm:$0xff]  ;;  %490 = vmatprep.subr.mxu1 %v263_v25  ;;  %v130_v30 = vld [vmem:[%s2040_s1 + $0x300] sm:$0xff]  ;;  %402 = vmatpush2.msra.mxu0 %v134_v26  ;;  %v84_v24 = vld [vmem:[%s2040_s1 + $0x190] sm:$0xff] }
  0x30   :  { %v259_v29 = vld [vmem:[%s2040_s1 + $0x708] sm:$0xff]  ;;  %v258_v31 = vld [vmem:[%s2040_s1 + $0x700] sm:$0xff]  ;;  %491 = vmatpush2.msra.mxu1 %v262_v27  ;;  %403 = vmatprep.subr.mxu0 %v131_v28  ;;  %v1444_v25 = vld [vmem:[%s2041_s0 + $0x50] sm:$0xff] }
  0x31   :  { %v127_v32 = vld [vmem:[%s2040_s1 + $0x2e8] sm:$0xff]  ;;  %492 = vmatprep.subr.mxu1 %v259_v29  ;;  %v126_v34 = vld [vmem:[%s2040_s1 + $0x2e0] sm:$0xff]  ;;  %404 = vmatpush2.msra.mxu0 %v130_v30  ;;  %v81_v27 = vld [vmem:[%s2040_s1 + $0x178] sm:$0xff] }
  0x32   :  { %v255_v33 = vld [vmem:[%s2040_s1 + $0x6e8] sm:$0xff]  ;;  %v254_v35 = vld [vmem:[%s2040_s1 + $0x6e0] sm:$0xff]  ;;  %493 = vmatpush2.msra.mxu1 %v258_v31  ;;  %405 = vmatprep.subr.mxu0 %v127_v32  ;;  %v80_v30 = vld [vmem:[%s2040_s1 + $0x170] sm:$0xff] }
  0x33   :  { %v123_v36 = vld [vmem:[%s2040_s1 + $0x2c8] sm:$0xff]  ;;  %494 = vmatprep.subr.mxu1 %v255_v33  ;;  %v122_v38 = vld [vmem:[%s2040_s1 + $0x2c0] sm:$0xff]  ;;  %406 = vmatpush2.msra.mxu0 %v126_v34  ;;  %v77_v33 = vld [vmem:[%s2040_s1 + $0x158] sm:$0xff] }
  0x34   :  { %v251_v37 = vld [vmem:[%s2040_s1 + $0x6c8] sm:$0xff]  ;;  %v250_v39 = vld [vmem:[%s2040_s1 + $0x6c0] sm:$0xff]  ;;  %495 = vmatpush2.msra.mxu1 %v254_v35  ;;  %407 = vmatprep.subr.mxu0 %v123_v36  ;;  %v76_v36 = vld [vmem:[%s2040_s1 + $0x150] sm:$0xff] }
  0x35   :  { %v119_v40 = vld [vmem:[%s2040_s1 + $0x2a8] sm:$0xff]  ;;  %496 = vmatprep.subr.mxu1 %v251_v37  ;;  %v118_v42 = vld [vmem:[%s2040_s1 + $0x2a0] sm:$0xff]  ;;  %408 = vmatpush2.msra.mxu0 %v122_v38  ;;  %v1492_v37 = vld [vmem:[%s2041_s0 + $0x78] sm:$0xff] }
  0x36   :  { %v247_v41 = vld [vmem:[%s2040_s1 + $0x6a8] sm:$0xff]  ;;  %v246_v43 = vld [vmem:[%s2040_s1 + $0x6a0] sm:$0xff]  ;;  %497 = vmatpush2.msra.mxu1 %v250_v39  ;;  %409 = vmatprep.subr.mxu0 %v119_v40  ;;  %v73_v39 = vld [vmem:[%s2040_s1 + $0x138] sm:$0xff] }
  0x37   :  { %v115_v44 = vld [vmem:[%s2040_s1 + $0x288] sm:$0xff]  ;;  %498 = vmatprep.subr.mxu1 %v247_v41  ;;  %v114_v46 = vld [vmem:[%s2040_s1 + $0x280] sm:$0xff]  ;;  %410 = vmatpush2.msra.mxu0 %v118_v42  ;;  %v1505_v40 = vld [vmem:[%s2041_s0 + $0x90] sm:$0xff] }
  0x38   :  { %v243_v45 = vld [vmem:[%s2040_s1 + $0x688] sm:$0xff]  ;;  %v242_v47 = vld [vmem:[%s2040_s1 + $0x680] sm:$0xff]  ;;  %499 = vmatpush2.msra.mxu1 %v246_v43  ;;  %411 = vmatprep.subr.mxu0 %v115_v44  ;;  %v72_v42 = vld [vmem:[%s2040_s1 + $0x130] sm:$0xff] }
  0x39   :  { %v111_v48 = vld [vmem:[%s2040_s1 + $0x268] sm:$0xff]  ;;  %500 = vmatprep.subr.mxu1 %v243_v45  ;;  %v110_v50 = vld [vmem:[%s2040_s1 + $0x260] sm:$0xff]  ;;  %412 = vmatpush2.msra.mxu0 %v114_v46  ;;  %v69_v45 = vld [vmem:[%s2040_s1 + $0x118] sm:$0xff] }
  0x3a   :  { %v239_v49 = vld [vmem:[%s2040_s1 + $0x668] sm:$0xff]  ;;  %v238_v51 = vld [vmem:[%s2040_s1 + $0x660] sm:$0xff]  ;;  %501 = vmatpush2.msra.mxu1 %v242_v47  ;;  %413 = vmatprep.subr.mxu0 %v111_v48  ;;  %v68_v47 = vld [vmem:[%s2040_s1 + $0x110] sm:$0xff] }
  0x3b   :  { %v107_v52 = vld [vmem:[%s2040_s1 + $0x248] sm:$0xff]  ;;  %502 = vmatprep.subr.mxu1 %v239_v49  ;;  %v106_v54 = vld [vmem:[%s2040_s1 + $0x240] sm:$0xff]  ;;  %414 = vmatpush2.msra.mxu0 %v110_v50  ;;  %v65_v49 = vld [vmem:[%s2040_s1 + $0xf8] sm:$0xff] }
  0x3c   :  { %v235_v53 = vld [vmem:[%s2040_s1 + $0x648] sm:$0xff]  ;;  %v234_v55 = vld [vmem:[%s2040_s1 + $0x640] sm:$0xff]  ;;  %503 = vmatpush2.msra.mxu1 %v238_v51  ;;  %415 = vmatprep.subr.mxu0 %v107_v52  ;;  %v225_v50 = vld [vmem:[%s2040_s1 + $0x5f8] sm:$0xff]  ;;  %v936_v51 = vmov 0.0  }
  0x3d   :  { %v103_v56 = vld [vmem:[%s2040_s1 + $0x228] sm:$0xff]  ;;  %504 = vmatprep.subr.mxu1 %v235_v53  ;;  %v102_v58 = vld [vmem:[%s2040_s1 + $0x220] sm:$0xff]  ;;  %416 = vmatpush2.msra.mxu0 %v106_v54  ;;  %v64_v52 = vld [vmem:[%s2040_s1 + $0xf0] sm:$0xff] }
  0x3e   :  { %v231_v57 = vld [vmem:[%s2040_s1 + $0x628] sm:$0xff]  ;;  %v230_v59 = vld [vmem:[%s2040_s1 + $0x620] sm:$0xff]  ;;  %505 = vmatpush2.msra.mxu1 %v234_v55  ;;  %417 = vmatprep.subr.mxu0 %v103_v56  ;;  %v224_v53 = vld [vmem:[%s2040_s1 + $0x5f0] sm:$0xff] }
  0x3f   :  { %v99_v60 = vld [vmem:[%s2040_s1 + $0x208] sm:$0xff]  ;;  %506 = vmatprep.subr.mxu1 %v231_v57  ;;  %v98_v62 = vld [vmem:[%s2040_s1 + $0x200] sm:$0xff]  ;;  %418 = vmatpush2.msra.mxu0 %v102_v58  ;;  %v61_v54 = vld [vmem:[%s2040_s1 + $0xd8] sm:$0xff] }
  0x40   :  { %v227_v61 = vld [vmem:[%s2040_s1 + $0x608] sm:$0xff]  ;;  %507 = vmatpush2.msra.mxu1 %v230_v59  ;;  %v226_v0 = vld [vmem:[%s2040_s1 + $0x600] sm:$0xff]  ;;  %419 = vmatprep.subr.mxu0 %v99_v60  ;;  %v221_v55 = vld [vmem:[%s2040_s1 + $0x5d8] sm:$0xff] }
  0x41   :  { %v1341_v63 = vld [vmem:[%s2041_s0 + $0x8] sm:$0xff]  ;;  %508 = vmatprep.subr.mxu1 %v227_v61  ;;  %v1354_v2 = vld [vmem:[%s2041_s0] sm:$0xff]  ;;  %420 = vmatpush2.msra.mxu0 %v98_v62  ;;  %v60_v56 = vld [vmem:[%s2040_s1 + $0xd0] sm:$0xff] }
  0x42   :  { %421 = vmatprep.mubr.f32.mxu0 %v1341_v63  ;;  %v319_v4 = vld [vmem:[%s2040_s1 + $0x8e8] sm:$0xff]  ;;  %509 = vmatpush2.msra.mxu1 %v226_v0  ;;  %v318_v6 = vld [vmem:[%s2040_s1 + $0x8e0] sm:$0xff]  ;;  %v220_v57 = vld [vmem:[%s2040_s1 + $0x5d0] sm:$0xff] }
  0x43   :  { %510 = vmatprep.mubr.f32.mxu1 %v1349_v1  ;;  %422 = vmatmul.mubr.f32.vlgmr.msra.gmra.mxu0 %v1354_v2  ;;  %v315_v8 = vld [vmem:[%s2040_s1 + $0x8c8] sm:$0xff]  ;;  %v314_v11 = vld [vmem:[%s2040_s1 + $0x8c0] sm:$0xff]  ;;  %v57_v58 = vld [vmem:[%s2040_s1 + $0xb8] sm:$0xff] }
  0x44   :  { %511 = vmatmul.mubr.f32.vlgmr.msra.gmra.mxu1 %v1359_v3  ;;  %551 = vmatprep.subr.mxu0 %v319_v4  ;;  %v1397_v13 = vld [vmem:[%s2041_s0 + $0x28] sm:$0xff]  ;;  %v1409_v16 = vld [vmem:[%s2041_s0 + $0x40] sm:$0xff]  ;;  %v217_v60 = vld [vmem:[%s2040_s1 + $0x5b8] sm:$0xff] }
  0x45   :  { %624 = vmatprep.subr.mxu1 %v97_v5  ;;  %552 = vmatpush1.msra.mxu0 %v318_v6  ;;  %v311_v14 = vld [vmem:[%s2040_s1 + $0x8a8] sm:$0xff]  ;;  %v310_v17 = vld [vmem:[%s2040_s1 + $0x8a0] sm:$0xff]  ;;  %v56_v61 = vld [vmem:[%s2040_s1 + $0xb0] sm:$0xff] }
  0x46   :  { %625 = vmatpush1.msra.mxu1 %v96_v7  ;;  %553 = vmatprep.subr.mxu0 %v315_v8  ;;  %v307_v19 = vld [vmem:[%s2040_s1 + $0x888] sm:$0xff]  ;;  %v306_v23 = vld [vmem:[%s2040_s1 + $0x880] sm:$0xff]  ;;  %v216_v62 = vld [vmem:[%s2040_s1 + $0x5b0] sm:$0xff] }
  0x47   :  { %626 = vmatprep.subr.mxu1 %v93_v9  ;;  %427 = vmatprep.mubr.f32.mxu0 %v1386_v10  ;;  %v303_v26 = vld [vmem:[%s2040_s1 + $0x868] sm:$0xff]  ;;  %v302_v29 = vld [vmem:[%s2040_s1 + $0x860] sm:$0xff]  ;;  %v53_v0 = vld [vmem:[%s2040_s1 + $0x98] sm:$0xff] }
  0x48   :  { %554 = vmatpush1.msra.mxu0 %v314_v11  ;;  %627 = vmatpush1.msra.mxu1 %v92_v12  ;;  %v1457_v28 = vld [vmem:[%s2041_s0 + $0x68] sm:$0xff]  ;;  %v1472_v32 = vld [vmem:[%s2041_s0 + $0x60] sm:$0xff]  ;;  %v213_v4 = vld [vmem:[%s2040_s1 + $0x598] sm:$0xff] }
  0x49   :  { %428 = vmatmul.mubr.f32.gmra.mxu0 %v1397_v13  ;;  %555 = vmatprep.subr.mxu0 %v311_v14  ;;  %v299_v31 = vld [vmem:[%s2040_s1 + $0x848] sm:$0xff]  ;;  %v1481_v34 = vld [vmem:[%s2041_s0 + $0x80] sm:$0xff]  ;;  %v52_v5 = vld [vmem:[%s2040_s1 + $0x90] sm:$0xff] }
  0x4a   :  { %628 = vmatprep.subr.mxu1 %v89_v15  ;;  %516 = vmatprep.mubr.f32.mxu1 %v1409_v16  ;;  %v298_v35 = vld [vmem:[%s2040_s1 + $0x840] sm:$0xff]  ;;  %v295_v38 = vld [vmem:[%s2040_s1 + $0x828] sm:$0xff]  ;;  %v212_v6 = vld [vmem:[%s2040_s1 + $0x590] sm:$0xff] }
  0x4b   :  { %556 = vmatpush1.msra.mxu0 %v310_v17  ;;  %629 = vmatpush1.msra.mxu1 %v88_v18  ;;  %v294_v41 = vld [vmem:[%s2040_s1 + $0x820] sm:$0xff]  ;;  %v291_v43 = vld [vmem:[%s2040_s1 + $0x808] sm:$0xff]  ;;  %v49_v7 = vld [vmem:[%s2040_s1 + $0x78] sm:$0xff] }
  0x4c   :  { %557 = vmatprep.subr.mxu0 %v307_v19  ;;  %517 = vmatmul.mubr.f32.gmra.mxu1 %v1424_v20  ;;  %v1520_v44 = vld [vmem:[%s2041_s0 + $0x88] sm:$0xff]  ;;  %v290_v46 = vld [vmem:[%s2040_s1 + $0x800] sm:$0xff]  ;;  %v1603_v8 = vld [vmem:[%s2041_s0 + $0x70] sm:$0xff] }
  0x4d   :  { %630 = vmatprep.subr.mxu1 %v85_v21  ;;  %433 = vmatprep.mubr.f32.mxu0 %v1433_v22  ;;  %v1535_v48 = vld [vmem:[%s2041_s0 + $0x20] sm:$0xff]  ;;  %v1571_v59 = vld [vmem:[%s2041_s0 + $0x48] sm:$0xff]  ;;  %v209_v9 = vld [vmem:[%s2040_s1 + $0x578] sm:$0xff] }
  0x4e   :  { %558 = vmatpush1.msra.mxu0 %v306_v23  ;;  %631 = vmatpush1.msra.mxu1 %v84_v24  ;;  %v48_v11 = vld [vmem:[%s2040_s1 + $0x70] sm:$0xff]  ;;  %v45_v14 = vld [vmem:[%s2040_s1 + $0x58] sm:$0xff] }
  0x4f   :  { %434 = vmatmul.mubr.f32.gmra.mxu0 %v1444_v25  ;;  %559 = vmatprep.subr.mxu0 %v303_v26  ;;  %v208_v12 = vld [vmem:[%s2040_s1 + $0x570] sm:$0xff]  ;;  %v205_v15 = vld [vmem:[%s2040_s1 + $0x558] sm:$0xff] }
  0x50   :  { %632 = vmatprep.subr.mxu1 %v81_v27  ;;  %522 = vmatprep.mubr.f32.mxu1 %v1457_v28  ;;  %v44_v17 = vld [vmem:[%s2040_s1 + $0x50] sm:$0xff]  ;;  %v41_v19 = vld [vmem:[%s2040_s1 + $0x38] sm:$0xff] }
  0x51   :  { %560 = vmatpush1.msra.mxu0 %v302_v29  ;;  %633 = vmatpush1.msra.mxu1 %v80_v30  ;;  %v204_v18 = vld [vmem:[%s2040_s1 + $0x550] sm:$0xff]  ;;  %v1635_v21 = vld [vmem:[%s2041_s0 + $0x98] sm:$0xff] }
  0x52   :  { %561 = vmatprep.subr.mxu0 %v299_v31  ;;  %523 = vmatmul.mubr.f32.gmra.mxu1 %v1472_v32  ;;  %v201_v23 = vld [vmem:[%s2040_s1 + $0x538] sm:$0xff]  ;;  %v40_v24 = vld [vmem:[%s2040_s1 + $0x30] sm:$0xff] }
  0x53   :  { %634 = vmatprep.subr.mxu1 %v77_v33  ;;  %439 = vmatprep.mubr.f32.mxu0 %v1481_v34  ;;  %v200_v26 = vld [vmem:[%s2040_s1 + $0x530] sm:$0xff]  ;;  %v37_v27 = vld [vmem:[%s2040_s1 + $0x18] sm:$0xff] }
  0x54   :  { %562 = vmatpush1.msra.mxu0 %v298_v35  ;;  %635 = vmatpush1.msra.mxu1 %v76_v36  ;;  %v197_v29 = vld [vmem:[%s2040_s1 + $0x518] sm:$0xff]  ;;  %v36_v30 = vld [vmem:[%s2040_s1 + $0x10] sm:$0xff] }
  0x55   :  { %440 = vmatmul.mubr.f32.gmra.mxu0 %v1492_v37  ;;  %563 = vmatprep.subr.mxu0 %v295_v38  ;;  %v196_v31 = vld [vmem:[%s2040_s1 + $0x510] sm:$0xff]  ;;  %v161_v33 = vld [vmem:[%s2040_s1 + $0x3f8] sm:$0xff] }
  0x56   :  { %636 = vmatprep.subr.mxu1 %v73_v39  ;;  %528 = vmatprep.mubr.f32.mxu1 %v1505_v40  ;;  %v193_v35 = vld [vmem:[%s2040_s1 + $0x4f8] sm:$0xff]  ;;  %v160_v36 = vld [vmem:[%s2040_s1 + $0x3f0] sm:$0xff] }
  0x57   :  { %564 = vmatpush1.msra.mxu0 %v294_v41  ;;  %637 = vmatpush1.msra.mxu1 %v72_v42  ;;  %v192_v38 = vld [vmem:[%s2040_s1 + $0x4f0] sm:$0xff]  ;;  %v157_v39 = vld [vmem:[%s2040_s1 + $0x3d8] sm:$0xff] }
  0x58   :  { %565 = vmatprep.subr.mxu0 %v291_v43  ;;  %529 = vmatmul.mubr.f32.gmra.mxu1 %v1520_v44  ;;  %v189_v41 = vld [vmem:[%s2040_s1 + $0x4d8] sm:$0xff]  ;;  %v156_v42 = vld [vmem:[%s2040_s1 + $0x3d0] sm:$0xff] }
  0x59   :  { %638 = vmatprep.subr.mxu1 %v69_v45  ;;  %566 = vmatpush1.msra.mxu0 %v290_v46  ;;  %v188_v43 = vld [vmem:[%s2040_s1 + $0x4d0] sm:$0xff]  ;;  %v153_v45 = vld [vmem:[%s2040_s1 + $0x3b8] sm:$0xff] }
  0x5a   :  { %599 = vmatprep.mubr.f32.mxu0 %v936_v51  ;;  %639 = vmatpush1.msra.mxu1 %v68_v47  ;;  %v185_v46 = vld [vmem:[%s2040_s1 + $0x4b8] sm:$0xff]  ;;  %v152_v47 = vld [vmem:[%s2040_s1 + $0x3b0] sm:$0xff] }
  0x5b   :  { %927 = vmatmul.mubr.msk.f32.vlgmr.msra.gmra.mxu0 %vm344_vm0, %v1535_v48  ;;  %640 = vmatprep.subr.mxu1 %v65_v49  ;;  %v184_v49 = vld [vmem:[%s2040_s1 + $0x4b0] sm:$0xff] }
  0x5c   :  { %713 = vmatprep.subr.mxu0 %v225_v50  ;;  %641 = vmatpush1.msra.mxu1 %v64_v52  ;;  %v149_v50 = vld [vmem:[%s2040_s1 + $0x398] sm:$0xff] }
  0x5d   :  { %714 = vmatpush1.msra.mxu0 %v224_v53  ;;  %642 = vmatprep.subr.mxu1 %v61_v54  ;;  %v181_v52 = vld [vmem:[%s2040_s1 + $0x498] sm:$0xff]  ;;  %v148_v53 = vld [vmem:[%s2040_s1 + $0x390] sm:$0xff] }
  0x5e   :  { %715 = vmatprep.subr.mxu0 %v221_v55  ;;  %605 = vmatprep.mubr.f32.mxu0 %v936_v51  ;;  %v180_v54 = vld [vmem:[%s2040_s1 + $0x490] sm:$0xff]  ;;  %v145_v55 = vld [vmem:[%s2040_s1 + $0x378] sm:$0xff] }
  0x5f   :  { %643 = vmatpush1.msra.mxu1 %v60_v56  ;;  %716 = vmatpush1.msra.mxu0 %v220_v57  ;;  %v177_v56 = vld [vmem:[%s2040_s1 + $0x478] sm:$0xff]  ;;  %v144_v57 = vld [vmem:[%s2040_s1 + $0x370] sm:$0xff] }
  0x60   :  { %644 = vmatprep.subr.mxu1 %v57_v58  ;;  %928 = vmatmul.mubr.msk.f32.gmra.mxu0 %vm344_vm0, %v1571_v59  ;;  %v176_v58 = vld [vmem:[%s2040_s1 + $0x470] sm:$0xff] }
  0x61   :  { %717 = vmatprep.subr.mxu0 %v217_v60  ;;  %645 = vmatpush1.msra.mxu1 %v56_v61  ;;  %v141_v60 = vld [vmem:[%s2040_s1 + $0x358] sm:$0xff] }
  0x62   :  { %718 = vmatpush1.msra.mxu0 %v216_v62  ;;  %646 = vmatprep.subr.mxu1 %v53_v0  ;;  %v173_v61 = vld [vmem:[%s2040_s1 + $0x458] sm:$0xff]  ;;  %v140_v62 = vld [vmem:[%s2040_s1 + $0x350] sm:$0xff] }
  0x63   :  { %719 = vmatprep.subr.mxu0 %v213_v4  ;;  %611 = vmatprep.mubr.f32.mxu0 %v936_v51  ;;  %v172_v0 = vld [vmem:[%s2040_s1 + $0x450] sm:$0xff]  ;;  %v137_v4 = vld [vmem:[%s2040_s1 + $0x338] sm:$0xff] }
  0x64   :  { %647 = vmatpush1.msra.mxu1 %v52_v5  ;;  %720 = vmatpush1.msra.mxu0 %v212_v6  ;;  %v169_v5 = vld [vmem:[%s2040_s1 + $0x438] sm:$0xff]  ;;  %v136_v6 = vld [vmem:[%s2040_s1 + $0x330] sm:$0xff] }
  0x65   :  { %648 = vmatprep.subr.mxu1 %v49_v7  ;;  %929 = vmatmul.mubr.msk.f32.gmra.mxu0 %vm344_vm0, %v1603_v8  ;;  %v168_v7 = vld [vmem:[%s2040_s1 + $0x430] sm:$0xff] }
  0x66   :  { %721 = vmatprep.subr.mxu0 %v209_v9  ;;  %649 = vmatpush1.msra.mxu1 %v48_v11  ;;  %v133_v9 = vld [vmem:[%s2040_s1 + $0x318] sm:$0xff] }
  0x67   :  { %722 = vmatpush1.msra.mxu0 %v208_v12  ;;  %650 = vmatprep.subr.mxu1 %v45_v14  ;;  %v165_v11 = vld [vmem:[%s2040_s1 + $0x418] sm:$0xff]  ;;  %v132_v12 = vld [vmem:[%s2040_s1 + $0x310] sm:$0xff] }
  0x68   :  { %723 = vmatprep.subr.mxu0 %v205_v15  ;;  %617 = vmatprep.mubr.f32.mxu0 %v936_v51  ;;  %v164_v14 = vld [vmem:[%s2040_s1 + $0x410] sm:$0xff]  ;;  %v129_v15 = vld [vmem:[%s2040_s1 + $0x2f8] sm:$0xff] }
  0x69   :  { %651 = vmatpush1.msra.mxu1 %v44_v17  ;;  %724 = vmatpush1.msra.mxu0 %v204_v18  ;;  %v289_v17 = vld [vmem:[%s2040_s1 + $0x7f8] sm:$0xff]  ;;  %v128_v18 = vld [vmem:[%s2040_s1 + $0x2f0] sm:$0xff] }
  0x6a   :  { %652 = vmatprep.subr.mxu1 %v41_v19  ;;  %930 = vmatmul.mubr.msk.f32.gmra.mxu0 %vm344_vm0, %v1635_v21  ;;  %v288_v19 = vld [vmem:[%s2040_s1 + $0x7f0] sm:$0xff] }
  0x6b   :  { %725 = vmatprep.subr.mxu0 %v201_v23  ;;  %653 = vmatpush1.msra.mxu1 %v40_v24  ;;  %v125_v23 = vld [vmem:[%s2040_s1 + $0x2d8] sm:$0xff] }
  0x6c   :  { %726 = vmatpush1.msra.mxu0 %v200_v26  ;;  %654 = vmatprep.subr.mxu1 %v37_v27  ;;  %v285_v24 = vld [vmem:[%s2040_s1 + $0x7d8] sm:$0xff]  ;;  %v124_v26 = vld [vmem:[%s2040_s1 + $0x2d0] sm:$0xff] }
  0x6d   :  { %727 = vmatprep.subr.mxu0 %v197_v29  ;;  %655 = vmatpush1.msra.mxu1 %v36_v30  ;;  %v284_v27 = vld [vmem:[%s2040_s1 + $0x7d0] sm:$0xff]  ;;  %v121_v29 = vld [vmem:[%s2040_s1 + $0x2b8] sm:$0xff] }
  0x6e   :  { %728 = vmatpush1.msra.mxu0 %v196_v31  ;;  %656 = vmatprep.subr.mxu1 %v161_v33  ;;  %v281_v30 = vld [vmem:[%s2040_s1 + $0x7b8] sm:$0xff]  ;;  %v120_v31 = vld [vmem:[%s2040_s1 + $0x2b0] sm:$0xff] }
  0x6f   :  { %729 = vmatprep.subr.mxu0 %v193_v35  ;;  %657 = vmatpush2.msra.mxu1 %v160_v36  ;;  %v280_v33 = vld [vmem:[%s2040_s1 + $0x7b0] sm:$0xff]  ;;  %v117_v35 = vld [vmem:[%s2040_s1 + $0x298] sm:$0xff] }
  0x70   :  { %730 = vmatpush1.msra.mxu0 %v192_v38  ;;  %658 = vmatprep.subr.mxu1 %v157_v39  ;;  %v277_v36 = vld [vmem:[%s2040_s1 + $0x798] sm:$0xff]  ;;  %v116_v38 = vld [vmem:[%s2040_s1 + $0x290] sm:$0xff] }
  0x71   :  { %731 = vmatprep.subr.mxu0 %v189_v41  ;;  %659 = vmatpush2.msra.mxu1 %v156_v42  ;;  %v276_v39 = vld [vmem:[%s2040_s1 + $0x790] sm:$0xff]  ;;  %v113_v41 = vld [vmem:[%s2040_s1 + $0x278] sm:$0xff] }
  0x72   :  { %732 = vmatpush1.msra.mxu0 %v188_v43  ;;  %660 = vmatprep.subr.mxu1 %v153_v45  ;;  %v273_v42 = vld [vmem:[%s2040_s1 + $0x778] sm:$0xff]  ;;  %v112_v43 = vld [vmem:[%s2040_s1 + $0x270] sm:$0xff] }
  0x73   :  { %733 = vmatprep.subr.mxu0 %v185_v46  ;;  %661 = vmatpush2.msra.mxu1 %v152_v47  ;;  %v272_v45 = vld [vmem:[%s2040_s1 + $0x770] sm:$0xff]  ;;  %v109_v46 = vld [vmem:[%s2040_s1 + $0x258] sm:$0xff] }
  0x74   :  { %734 = vmatpush1.msra.mxu0 %v184_v49  ;;  %662 = vmatprep.subr.mxu1 %v149_v50  ;;  %v269_v47 = vld [vmem:[%s2040_s1 + $0x758] sm:$0xff]  ;;  %v108_v49 = vld [vmem:[%s2040_s1 + $0x250] sm:$0xff] }
  0x75   :  { %735 = vmatprep.subr.mxu0 %v181_v52  ;;  %663 = vmatpush2.msra.mxu1 %v148_v53  ;;  %v268_v50 = vld [vmem:[%s2040_s1 + $0x750] sm:$0xff]  ;;  %v105_v52 = vld [vmem:[%s2040_s1 + $0x238] sm:$0xff] }
  0x76   :  { %736 = vmatpush1.msra.mxu0 %v180_v54  ;;  %664 = vmatprep.subr.mxu1 %v145_v55  ;;  %v265_v53 = vld [vmem:[%s2040_s1 + $0x738] sm:$0xff]  ;;  %v104_v54 = vld [vmem:[%s2040_s1 + $0x230] sm:$0xff] }
  0x77   :  { %737 = vmatprep.subr.mxu0 %v177_v56  ;;  %665 = vmatpush2.msra.mxu1 %v144_v57  ;;  %v264_v55 = vld [vmem:[%s2040_s1 + $0x730] sm:$0xff]  ;;  %v101_v56 = vld [vmem:[%s2040_s1 + $0x218] sm:$0xff] }
  0x78   :  { %738 = vmatpush1.msra.mxu0 %v176_v58  ;;  %666 = vmatprep.subr.mxu1 %v141_v60  ;;  %v261_v57 = vld [vmem:[%s2040_s1 + $0x718] sm:$0xff]  ;;  %v100_v58 = vld [vmem:[%s2040_s1 + $0x210] sm:$0xff] }
  0x79   :  { %739 = vmatprep.subr.mxu0 %v173_v61  ;;  %667 = vmatpush2.msra.mxu1 %v140_v62  ;;  %v260_v60 = vld [vmem:[%s2040_s1 + $0x710] sm:$0xff]  ;;  %v257_v61 = vld [vmem:[%s2040_s1 + $0x6f8] sm:$0xff] }
  0x7a   :  { %740 = vmatpush1.msra.mxu0 %v172_v0  ;;  %668 = vmatprep.subr.mxu1 %v137_v4  ;;  %v321_v62 = vld [vmem:[%s2040_s1 + $0x8f8] sm:$0xff]  ;;  %v256_v0 = vld [vmem:[%s2040_s1 + $0x6f0] sm:$0xff] }
  0x7b   :  { %741 = vmatprep.subr.mxu0 %v169_v5  ;;  %669 = vmatpush2.msra.mxu1 %v136_v6  ;;  %v320_v4 = vld [vmem:[%s2040_s1 + $0x8f0] sm:$0xff]  ;;  %v253_v5 = vld [vmem:[%s2040_s1 + $0x6d8] sm:$0xff] }
  0x7c   :  { %742 = vmatpush1.msra.mxu0 %v168_v7  ;;  %670 = vmatprep.subr.mxu1 %v133_v9  ;;  %v317_v6 = vld [vmem:[%s2040_s1 + $0x8d8] sm:$0xff] }
  0x7d   :  { %743 = vmatprep.subr.mxu0 %v165_v11  ;;  %671 = vmatpush2.msra.mxu1 %v132_v12  ;;  %v249_v7 = vld [vmem:[%s2040_s1 + $0x6b8] sm:$0xff]  ;;  %v248_v11 = vld [vmem:[%s2040_s1 + $0x6b0] sm:$0xff] }
  0x7e   :  { %744 = vmatpush1.msra.mxu0 %v164_v14  ;;  %672 = vmatprep.subr.mxu1 %v129_v15  ;;  %v313_v9 = vld [vmem:[%s2040_s1 + $0x8b8] sm:$0xff]  ;;  %v312_v12 = vld [vmem:[%s2040_s1 + $0x8b0] sm:$0xff] }
  0x7f   :  { %745 = vmatprep.subr.mxu0 %v289_v17  ;;  %673 = vmatpush2.msra.mxu1 %v128_v18  ;;  %v245_v14 = vld [vmem:[%s2040_s1 + $0x698] sm:$0xff]  ;;  %v308_v17 = vld [vmem:[%s2040_s1 + $0x890] sm:$0xff] }
  0x80   :  { %746 = vmatpush2.msra.mxu0 %v288_v19  ;;  %674 = vmatprep.subr.mxu1 %v125_v23  ;;  %v309_v15 = vld [vmem:[%s2040_s1 + $0x898] sm:$0xff]  ;;  %v240_v19 = vld [vmem:[%s2040_s1 + $0x670] sm:$0xff] }
  0x81   :  { %747 = vmatprep.subr.mxu0 %v285_v24  ;;  %675 = vmatpush2.msra.mxu1 %v124_v26  ;;  %v241_v18 = vld [vmem:[%s2040_s1 + $0x678] sm:$0xff]  ;;  %v304_v23 = vld [vmem:[%s2040_s1 + $0x870] sm:$0xff] }
  0x82   :  { %748 = vmatpush2.msra.mxu0 %v284_v27  ;;  %676 = vmatprep.subr.mxu1 %v121_v29  ;;  %v237_v24 = vld [vmem:[%s2040_s1 + $0x658] sm:$0xff]  ;;  %v300_v27 = vld [vmem:[%s2040_s1 + $0x850] sm:$0xff] }
  0x83   :  { %749 = vmatprep.subr.mxu0 %v281_v30  ;;  %677 = vmatpush2.msra.mxu1 %v120_v31  ;;  %v301_v26 = vld [vmem:[%s2040_s1 + $0x858] sm:$0xff]  ;;  %v232_v30 = vld [vmem:[%s2040_s1 + $0x630] sm:$0xff] }
  0x84   :  { %750 = vmatpush2.msra.mxu0 %v280_v33  ;;  %678 = vmatprep.subr.mxu1 %v117_v35  ;;  %v233_v29 = vld [vmem:[%s2040_s1 + $0x638] sm:$0xff]  ;;  %v296_v31 = vld [vmem:[%s2040_s1 + $0x830] sm:$0xff] }
  0x85   :  { %751 = vmatprep.subr.mxu0 %v277_v36  ;;  %679 = vmatpush2.msra.mxu1 %v116_v38  ;;  %v229_v33 = vld [vmem:[%s2040_s1 + $0x618] sm:$0xff]  ;;  %v292_v36 = vld [vmem:[%s2040_s1 + $0x810] sm:$0xff] }
  0x86   :  { %752 = vmatpush2.msra.mxu0 %v276_v39  ;;  %680 = vmatprep.subr.mxu1 %v113_v41  ;;  %v293_v35 = vld [vmem:[%s2040_s1 + $0x818] sm:$0xff] }
  0x87   :  { %753 = vmatprep.subr.mxu0 %v273_v42  ;;  %681 = vmatpush2.msra.mxu1 %v112_v43 }
  0x88   :  { %754 = vmatpush2.msra.mxu0 %v272_v45  ;;  %682 = vmatprep.subr.mxu1 %v109_v46 }
  0x89   :  { %755 = vmatprep.subr.mxu0 %v269_v47  ;;  %683 = vmatpush2.msra.mxu1 %v108_v49 }
  0x8a   :  { %756 = vmatpush2.msra.mxu0 %v268_v50  ;;  %684 = vmatprep.subr.mxu1 %v105_v52 }
  0x8b   :  { %757 = vmatprep.subr.mxu0 %v265_v53  ;;  %685 = vmatpush2.msra.mxu1 %v104_v54 }
  0x8c   :  { %758 = vmatpush2.msra.mxu0 %v264_v55  ;;  %686 = vmatprep.subr.mxu1 %v101_v56 }
  0x8d   :  { %759 = vmatprep.subr.mxu0 %v261_v57  ;;  %687 = vmatpush2.msra.mxu1 %v100_v58 }
  0x8e   :  { %688 = vmatprep.mubr.f32.mxu1 %v1341_v63  ;;  %760 = vmatpush2.msra.mxu0 %v260_v60  ;;  %v252_v63 = vld [vmem:[%s2040_s1 + $0x6d0] sm:$0xff] }
  0x8f   :  { %689 = vmatmul.mubr.f32.vlgmr.msra.gmra.mxu1 %v1354_v2  ;;  %761 = vmatprep.subr.mxu0 %v257_v61  ;;  %v316_v2 = vld [vmem:[%s2040_s1 + $0x8d0] sm:$0xff] }
  0x90   :  { %818 = vmatprep.subr.mxu1 %v321_v62  ;;  %762 = vmatpush2.msra.mxu0 %v256_v0 }
  0x91   :  { %819 = vmatpush1.msra.mxu1 %v320_v4  ;;  %763 = vmatprep.subr.mxu0 %v253_v5 }
  0x92   :  { %820 = vmatprep.subr.mxu1 %v317_v6  ;;  %694 = vmatprep.mubr.f32.mxu1 %v1386_v10  ;;  %v244_v10 = vld [vmem:[%s2040_s1 + $0x690] sm:$0xff] }
  0x93   :  { %764 = vmatpush2.msra.mxu0 %v252_v63  ;;  %821 = vmatpush1.msra.mxu1 %v316_v2 }
  0x94   :  { %765 = vmatprep.subr.mxu0 %v249_v7  ;;  %695 = vmatmul.mubr.f32.gmra.mxu1 %v1397_v13  ;;  %v305_v13 = vld [vmem:[%s2040_s1 + $0x878] sm:$0xff] }
  0x95   :  { %822 = vmatprep.subr.mxu1 %v313_v9  ;;  %766 = vmatpush2.msra.mxu0 %v248_v11 }
  0x96   :  { %823 = vmatpush1.msra.mxu1 %v312_v12  ;;  %767 = vmatprep.subr.mxu0 %v245_v14 }
  0x97   :  { %824 = vmatprep.subr.mxu1 %v309_v15  ;;  %700 = vmatprep.mubr.f32.mxu1 %v1433_v22  ;;  %v236_v22 = vld [vmem:[%s2040_s1 + $0x650] sm:$0xff] }
  0x98   :  { %768 = vmatpush2.msra.mxu0 %v244_v10  ;;  %825 = vmatpush1.msra.mxu1 %v308_v17 }
  0x99   :  { %769 = vmatprep.subr.mxu0 %v241_v18  ;;  %701 = vmatmul.mubr.f32.gmra.mxu1 %v1444_v25  ;;  %v297_v25 = vld [vmem:[%s2040_s1 + $0x838] sm:$0xff] }
  0x9a   :  { %826 = vmatprep.subr.mxu1 %v305_v13  ;;  %770 = vmatpush2.msra.mxu0 %v240_v19 }
  0x9b   :  { %827 = vmatpush1.msra.mxu1 %v304_v23  ;;  %771 = vmatprep.subr.mxu0 %v237_v24 }
  0x9c   :  { %828 = vmatprep.subr.mxu1 %v301_v26  ;;  %706 = vmatprep.mubr.f32.mxu1 %v1481_v34  ;;  %v228_v34 = vld [vmem:[%s2040_s1 + $0x610] sm:$0xff] }
  0x9d   :  { %772 = vmatpush2.msra.mxu0 %v236_v22  ;;  %829 = vmatpush1.msra.mxu1 %v300_v27 }
  0x9e   :  { %773 = vmatprep.subr.mxu0 %v233_v29  ;;  %707 = vmatmul.mubr.f32.gmra.mxu1 %v1492_v37 }
  0x9f   :  { %830 = vmatprep.subr.mxu1 %v297_v25  ;;  %774 = vmatpush2.msra.mxu0 %v232_v30 }
  0xa0   :  { %831 = vmatpush1.msra.mxu1 %v296_v31  ;;  %775 = vmatprep.subr.mxu0 %v229_v33 }
  0xa1   :  { %832 = vmatprep.subr.mxu1 %v293_v35  ;;  %776 = vmatpush2.msra.mxu0 %v228_v34 }
  0xa2   :  { %777 = vmatprep.mubr.f32.mxu0 %v1349_v1  ;;  %833 = vmatpush1.msra.mxu1 %v292_v36 }
  0xa3   :  { %866 = vmatprep.mubr.f32.mxu1 %v936_v51  ;;  %778 = vmatmul.mubr.f32.vlgmr.msra.gmra.mxu0 %v1359_v3  ;;  %v324_v3 = vlaneseq }
  0xa4   :  { %931 = vmatmul.mubr.msk.f32.vlgmr.msra.gmra.mxu1 %vm344_vm0, %v1535_v48  ;;  %783 = vmatprep.mubr.f32.mxu0 %v1409_v16 }
  0xa5   :  { %872 = vmatprep.mubr.f32.mxu1 %v936_v51 }
  0xa7   :  { %784 = vmatmul.mubr.f32.gmra.mxu0 %v1424_v20 }
  0xa8   :  { %932 = vmatmul.mubr.msk.f32.gmra.mxu1 %vm344_vm0, %v1571_v59  ;;  %789 = vmatprep.mubr.f32.mxu0 %v1457_v28  ;;  %v1977_v28 = vshrl.u32 %v324_v3, 7 }
  0xa9   :  { %878 = vmatprep.mubr.f32.mxu1 %v936_v51 }
  0xaa   :  { %v326_v48 = vsub.s32 0, %v1977_v28 }
  0xab   :  { %790 = vmatmul.mubr.f32.gmra.mxu0 %v1472_v32 }
  0xac   :  { %933 = vmatmul.mubr.msk.f32.gmra.mxu1 %vm344_vm0, %v1603_v8  ;;  %795 = vmatprep.mubr.f32.mxu0 %v1505_v40  ;;  %v1983_v40 = vld [vmem:[%s2042_s2] sm:$0xf] }
  0xad   :  { %884 = vmatprep.mubr.f32.mxu1 %v936_v51 }
  0xaf   :  { %796 = vmatmul.mubr.f32.gmra.mxu0 %v1520_v44  ;;  %v330_v44 = vsub.s32 1, %v1977_v28 }
  0xb0   :  { %934 = vmatmul.mubr.msk.f32.gmra.mxu1 %vm344_vm0, %v1635_v21  ;;  %v327_v21 = vrot.slane %v1983_v40, %v326_v48  ;;  %v338_v48 = vsub.s32 3, %v1977_v28 }
  0xb1   :  { %v331_v38 = vrot.slane %v1983_v40, %v330_v44 }
 0x103   :  { %v423_v1 = vpop.f32.mrf.mxu0 }
 0x104   :  { %v512_v32 = vpop.f32.mrf.mxu1  ;;  %v424_v42 = vadd.f32 %v423_v1, %v327_v21 }
 0x105   :  { %v425_v16 = vpop.f32.mrf.mxu0 }
 0x106   :  { %v514_v59 = vpop.f32.mrf.mxu1  ;;  %v426_v45 = vadd.f32 %v425_v16, %v331_v38  ;;  %v513_v47 = vadd.f32 %v512_v32, %v424_v42 }
 0x108   :  { %v515_v50 = vadd.f32 %v514_v59, %v426_v45  ;;  %v339_v59 = vrot.slane %v1983_v40, %v338_v48 }
 0x109   :  { %v429_v20 = vpop.f32.mrf.mxu0 }
 0x10a   :  { %v430_v52 = vadd.f32 %v429_v20, %v327_v21 }
 0x10b   :  { %v431_v37 = vpop.f32.mrf.mxu0 }
 0x10c   :  { %v518_v39 = vpop.f32.mrf.mxu1  ;;  %v432_v56 = vadd.f32 %v431_v37, %v331_v38  ;;  %v334_v37 = vsub.s32 2, %v1977_v28 }
 0x10d   :  { %v519_v60 = vadd.f32 %v518_v39, %v430_v52 }
 0x10e   :  { %v520_v46 = vpop.f32.mrf.mxu1 }
 0x10f   :  { %v435_v51 = vpop.f32.mrf.mxu0  ;;  %v521_v5 = vadd.f32 %v520_v46, %v432_v56 }
 0x110   :  { %v436_v62 = vadd.f32 %v435_v51, %v327_v21  ;;  %v335_v51 = vrot.slane %v1983_v40, %v334_v37 }
 0x111   :  { %v437_v8 = vpop.f32.mrf.mxu0 }
 0x112   :  { %v524_v54 = vpop.f32.mrf.mxu1  ;;  %v438_v63 = vadd.f32 %v437_v8, %v331_v38 }
 0x113   :  { %v525_v11 = vadd.f32 %v524_v54, %v436_v62 }
 0x114   :  { %v526_v0 = vpop.f32.mrf.mxu1 }
 0x115   :  { %v441_v41 = vpop.f32.mrf.mxu0  ;;  %v527_v17 = vadd.f32 %v526_v0, %v438_v63 }
 0x116   :  { %v442_v14 = vadd.f32 %v441_v41, %v327_v21 }
 0x117   :  { %v443_v43 = vpop.f32.mrf.mxu0 }
 0x118   :  { %v530_v12 = vpop.f32.mrf.mxu1  ;;  %v444_v13 = vadd.f32 %v443_v43, %v331_v38 }
 0x119   :  { %v531_v22 = vadd.f32 %v530_v12, %v442_v14 }
 0x11a   :  { %v532_v23 = vpop.f32.mrf.mxu1 }
 0x11b   :  { %v601_v49 = vpop.f32.mrf.mxu0  ;;  %v533_v25 = vadd.f32 %v532_v23, %v444_v13 }
 0x11c   :  { %v602_v53 = vadd.f32 %v601_v49, %v513_v47 }
 0x11d   :  { %v603_v55 = vpop.f32.mrf.mxu0 }
 0x11e   :  { %v891_v57 = vmax.f32 %v602_v53, 0.0  ;;  %v604_v58 = vadd.f32 %v603_v55, %v515_v50 }
 0x120   :  { %907 = vst [vmem:[%s2043_s3] sm:$0xff] %v891_v57  ;;  %v892_v61 = vmax.f32 %v604_v58, 0.0  ;;  %v607_v4 = vpop.f32.mrf.mxu0 }
 0x121   :  { %v608_v6 = vadd.f32 %v607_v4, %v519_v60 }
 0x122   :  { %908 = vst [vmem:[%s2043_s3 + $0x8] sm:$0xff] %v892_v61  ;;  %v609_v2 = vpop.f32.mrf.mxu0 }
 0x123   :  { %v895_v7 = vmax.f32 %v608_v6, 0.0  ;;  %v610_v9 = vadd.f32 %v609_v2, %v521_v5 }
 0x125   :  { %911 = vst [vmem:[%s2043_s3 + $0x20] sm:$0xff] %v895_v7  ;;  %v896_v15 = vmax.f32 %v610_v9, 0.0  ;;  %v613_v10 = vpop.f32.mrf.mxu0 }
 0x126   :  { %v614_v18 = vadd.f32 %v613_v10, %v525_v11 }
 0x127   :  { %912 = vst [vmem:[%s2043_s3 + $0x28] sm:$0xff] %v896_v15  ;;  %v615_v19 = vpop.f32.mrf.mxu0 }
 0x128   :  { %v899_v24 = vmax.f32 %v614_v18, 0.0  ;;  %v616_v26 = vadd.f32 %v615_v19, %v527_v17 }
 0x12a   :  { %915 = vst [vmem:[%s2043_s3 + $0x40] sm:$0xff] %v899_v24  ;;  %v900_v27 = vmax.f32 %v616_v26, 0.0  ;;  %v619_v29 = vpop.f32.mrf.mxu0 }
 0x12b   :  { %v620_v30 = vadd.f32 %v619_v29, %v531_v22 }
 0x12c   :  { %916 = vst [vmem:[%s2043_s3 + $0x48] sm:$0xff] %v900_v27  ;;  %v621_v31 = vpop.f32.mrf.mxu0 }
 0x12d   :  { %v903_v33 = vmax.f32 %v620_v30, 0.0  ;;  %v622_v35 = vadd.f32 %v621_v31, %v533_v25 }
 0x12f   :  { %919 = vst [vmem:[%s2043_s3 + $0x60] sm:$0xff] %v903_v33  ;;  %v904_v34 = vmax.f32 %v622_v35, 0.0 }
 0x131   :  { %920 = vst [vmem:[%s2043_s3 + $0x68] sm:$0xff] %v904_v34 }
 0x14f   :  { %v690_v36 = vpop.f32.mrf.mxu1 }
 0x150   :  { %v691_v21 = vadd.f32 %v690_v36, %v335_v51 }
 0x151   :  { %v692_v1 = vpop.f32.mrf.mxu1 }
 0x152   :  { %v693_v41 = vadd.f32 %v692_v1, %v339_v59 }
 0x154   :  { %v696_v3 = vpop.f32.mrf.mxu1 }
 0x155   :  { %v697_v46 = vadd.f32 %v696_v3, %v335_v51 }
 0x156   :  { %v698_v16 = vpop.f32.mrf.mxu1 }
 0x157   :  { %v699_v53 = vadd.f32 %v698_v16, %v339_v59 }
 0x159   :  { %v702_v20 = vpop.f32.mrf.mxu1 }
 0x15a   :  { %v703_v40 = vadd.f32 %v702_v20, %v335_v51 }
 0x15b   :  { %v704_v32 = vpop.f32.mrf.mxu1 }
 0x15c   :  { %v705_v4 = vadd.f32 %v704_v32, %v339_v59 }
 0x15e   :  { %v708_v44 = vpop.f32.mrf.mxu1 }
 0x15f   :  { %v709_v9 = vadd.f32 %v708_v44, %v335_v51 }
 0x160   :  { %v710_v8 = vpop.f32.mrf.mxu1 }
 0x161   :  { %v711_v17 = vadd.f32 %v710_v8, %v339_v59 }
 0x163   :  { %v779_v38 = vpop.f32.mrf.mxu0 }
 0x164   :  { %v868_v39 = vpop.f32.mrf.mxu1  ;;  %v780_v42 = vadd.f32 %v779_v38, %v691_v21 }
 0x165   :  { %v781_v43 = vpop.f32.mrf.mxu0 }
 0x166   :  { %v870_v45 = vpop.f32.mrf.mxu1  ;;  %v869_v47 = vadd.f32 %v868_v39, %v780_v42  ;;  %v782_v49 = vadd.f32 %v781_v43, %v693_v41 }
 0x167   :  { %v785_v50 = vpop.f32.mrf.mxu0 }
 0x168   :  { %v874_v52 = vpop.f32.mrf.mxu1  ;;  %v893_v28 = vmax.f32 %v869_v47, 0.0  ;;  %v871_v54 = vadd.f32 %v870_v45, %v782_v49  ;;  %v786_v55 = vadd.f32 %v785_v50, %v697_v46 }
 0x169   :  { %v787_v56 = vpop.f32.mrf.mxu0 }
 0x16a   :  { %v876_v57 = vpop.f32.mrf.mxu1  ;;  %909 = vst [vmem:[%s2043_s3 + $0x10] sm:$0xff] %v893_v28  ;;  %v894_v58 = vmax.f32 %v871_v54, 0.0  ;;  %v875_v60 = vadd.f32 %v874_v52, %v786_v55  ;;  %v788_v61 = vadd.f32 %v787_v56, %v699_v53 }
 0x16b   :  { %v791_v62 = vpop.f32.mrf.mxu0 }
 0x16c   :  { %v880_v0 = vpop.f32.mrf.mxu1  ;;  %910 = vst [vmem:[%s2043_s3 + $0x18] sm:$0xff] %v894_v58  ;;  %v897_v5 = vmax.f32 %v875_v60, 0.0  ;;  %v877_v6 = vadd.f32 %v876_v57, %v788_v61  ;;  %v792_v63 = vadd.f32 %v791_v62, %v703_v40 }
 0x16d   :  { %v793_v2 = vpop.f32.mrf.mxu0 }
 0x16e   :  { %v882_v7 = vpop.f32.mrf.mxu1  ;;  %913 = vst [vmem:[%s2043_s3 + $0x30] sm:$0xff] %v897_v5  ;;  %v898_v11 = vmax.f32 %v877_v6, 0.0  ;;  %v881_v12 = vadd.f32 %v880_v0, %v792_v63  ;;  %v794_v14 = vadd.f32 %v793_v2, %v705_v4 }
 0x16f   :  { %v797_v15 = vpop.f32.mrf.mxu0 }
 0x170   :  { %v886_v10 = vpop.f32.mrf.mxu1  ;;  %914 = vst [vmem:[%s2043_s3 + $0x38] sm:$0xff] %v898_v11  ;;  %v901_v18 = vmax.f32 %v881_v12, 0.0  ;;  %v883_v13 = vadd.f32 %v882_v7, %v794_v14  ;;  %v798_v19 = vadd.f32 %v797_v15, %v709_v9 }
 0x171   :  { %v799_v23 = vpop.f32.mrf.mxu0 }
 0x172   :  { %917 = vst [vmem:[%s2043_s3 + $0x50] sm:$0xff] %v901_v18  ;;  %v902_v24 = vmax.f32 %v883_v13, 0.0  ;;  %v887_v26 = vadd.f32 %v886_v10, %v798_v19  ;;  %v800_v22 = vadd.f32 %v799_v23, %v711_v17  ;;  %v888_v27 = vpop.f32.mrf.mxu1 }
 0x174   :  { %918 = vst [vmem:[%s2043_s3 + $0x58] sm:$0xff] %v902_v24  ;;  %v905_v29 = vmax.f32 %v887_v26, 0.0  ;;  %v889_v25 = vadd.f32 %v888_v27, %v800_v22 }
 0x176   :  { %921 = vst [vmem:[%s2043_s3 + $0x70] sm:$0xff] %v905_v29  ;;  %v906_v30 = vmax.f32 %v889_v25, 0.0 }
 0x178   :  { %922 = vst [vmem:[%s2043_s3 + $0x78] sm:$0xff] %v906_v30 }

// kernel: forward.12
= control target key start
LH: loop header
LB: loop body
LE: loop exit
PB: predicated region body
PF: predicated region fallthrough
CT: control target
= control target key end

     0   :  { %v1094_v3 = vmov 0.0   ;;  %vm228_vm0 = vcmask 261120   ;;  %s2272_s1 = inlined_call_operand.vmem [shape: f32[288,512], index: 1, kind: input, shape index: {}]   ;;  %s2273_s0 = inlined_call_operand.vmem [shape: f32[128,288], index: 0, kind: input, shape index: {}]   ;;  %s2274_s2 = inlined_call_operand.vmem [shape: f32[1,512], index: 2, kind: input, shape index: {}]   ;;  %s2275_s3 = inlined_call_operand.vmem [shape: f32[128,512], index: 3, kind: output, shape index: {}]  }
   0x1   :  { %v123_v0 = vld [vmem:[%s2272_s1 + $0x1e8] sm:$0xff]  ;;  %v122_v2 = vld [vmem:[%s2272_s1 + $0x1e0] sm:$0xff]  ;;  %502 = vmatprep.mubr.f32.mxu1 %v1094_v3  ;;  %v1170_v18 = vld [vmem:[%s2273_s0 + $0x10] sm:$0xff] }
   0x2   :  { %v203_v1 = vld [vmem:[%s2272_s1 + $0x468] sm:$0xff]  ;;  %277 = vmatprep.subr.mxu0 %v123_v0  ;;  %v202_v4 = vld [vmem:[%s2272_s1 + $0x460] sm:$0xff]  ;;  %v125_v19 = vld [vmem:[%s2272_s1 + $0x1f8] sm:$0xff] }
   0x3   :  { %462 = vmatprep.subr.mxu1 %v203_v1  ;;  %v119_v5 = vld [vmem:[%s2272_s1 + $0x1c8] sm:$0xff]  ;;  %278 = vmatpush1.msra.mxu0 %v122_v2  ;;  %v118_v7 = vld [vmem:[%s2272_s1 + $0x1c0] sm:$0xff]  ;;  %v124_v21 = vld [vmem:[%s2272_s1 + $0x1f0] sm:$0xff] }
   0x4   :  { %v199_v6 = vld [vmem:[%s2272_s1 + $0x448] sm:$0xff]  ;;  %463 = vmatpush1.msra.mxu1 %v202_v4  ;;  %v198_v8 = vld [vmem:[%s2272_s1 + $0x440] sm:$0xff]  ;;  %279 = vmatprep.subr.mxu0 %v119_v5  ;;  %v121_v23 = vld [vmem:[%s2272_s1 + $0x1d8] sm:$0xff] }
   0x5   :  { %v115_v9 = vld [vmem:[%s2272_s1 + $0x1a8] sm:$0xff]  ;;  %464 = vmatprep.subr.mxu1 %v199_v6  ;;  %v114_v11 = vld [vmem:[%s2272_s1 + $0x1a0] sm:$0xff]  ;;  %280 = vmatpush1.msra.mxu0 %v118_v7  ;;  %v120_v25 = vld [vmem:[%s2272_s1 + $0x1d0] sm:$0xff] }
   0x6   :  { %v195_v10 = vld [vmem:[%s2272_s1 + $0x428] sm:$0xff]  ;;  %v194_v12 = vld [vmem:[%s2272_s1 + $0x420] sm:$0xff]  ;;  %465 = vmatpush1.msra.mxu1 %v198_v8  ;;  %281 = vmatprep.subr.mxu0 %v115_v9  ;;  %v117_v28 = vld [vmem:[%s2272_s1 + $0x1b8] sm:$0xff] }
   0x7   :  { %v111_v13 = vld [vmem:[%s2272_s1 + $0x188] sm:$0xff]  ;;  %466 = vmatprep.subr.mxu1 %v195_v10  ;;  %v110_v15 = vld [vmem:[%s2272_s1 + $0x180] sm:$0xff]  ;;  %282 = vmatpush1.msra.mxu0 %v114_v11  ;;  %v116_v30 = vld [vmem:[%s2272_s1 + $0x1b0] sm:$0xff] }
   0x8   :  { %v191_v14 = vld [vmem:[%s2272_s1 + $0x408] sm:$0xff]  ;;  %v190_v16 = vld [vmem:[%s2272_s1 + $0x400] sm:$0xff]  ;;  %467 = vmatpush1.msra.mxu1 %v194_v12  ;;  %283 = vmatprep.subr.mxu0 %v111_v13  ;;  %v113_v32 = vld [vmem:[%s2272_s1 + $0x198] sm:$0xff] }
   0x9   :  { %v107_v17 = vld [vmem:[%s2272_s1 + $0x168] sm:$0xff]  ;;  %468 = vmatprep.subr.mxu1 %v191_v14  ;;  %v106_v20 = vld [vmem:[%s2272_s1 + $0x160] sm:$0xff]  ;;  %284 = vmatpush1.msra.mxu0 %v110_v15  ;;  %v112_v34 = vld [vmem:[%s2272_s1 + $0x190] sm:$0xff] }
   0xa   :  { %469 = vmatpush1.msra.mxu1 %v190_v16  ;;  %v103_v22 = vld [vmem:[%s2272_s1 + $0x148] sm:$0xff]  ;;  %285 = vmatprep.subr.mxu0 %v107_v17  ;;  %v102_v24 = vld [vmem:[%s2272_s1 + $0x140] sm:$0xff]  ;;  %v109_v37 = vld [vmem:[%s2272_s1 + $0x178] sm:$0xff] }
   0xb   :  { %1053 = vmatmul.mubr.msk.f32.vlgmr.msra.gmra.mxu1 %vm228_vm0, %v1170_v18  ;;  %599 = vmatprep.subr.mxu1 %v125_v19  ;;  %v99_v26 = vld [vmem:[%s2272_s1 + $0x128] sm:$0xff]  ;;  %v98_v29 = vld [vmem:[%s2272_s1 + $0x120] sm:$0xff]  ;;  %v108_v39 = vld [vmem:[%s2272_s1 + $0x170] sm:$0xff] }
   0xc   :  { %286 = vmatpush1.msra.mxu0 %v106_v20  ;;  %600 = vmatpush1.msra.mxu1 %v124_v21  ;;  %v1201_v27 = vld [vmem:[%s2273_s0 + $0x28] sm:$0xff]  ;;  %v94_v33 = vld [vmem:[%s2272_s1 + $0x100] sm:$0xff]  ;;  %v105_v41 = vld [vmem:[%s2272_s1 + $0x158] sm:$0xff] }
   0xd   :  { %287 = vmatprep.subr.mxu0 %v103_v22  ;;  %601 = vmatprep.subr.mxu1 %v121_v23  ;;  %v95_v31 = vld [vmem:[%s2272_s1 + $0x108] sm:$0xff]  ;;  %v1233_v36 = vld [vmem:[%s2273_s0 + $0x40] sm:$0xff]  ;;  %v104_v43 = vld [vmem:[%s2272_s1 + $0x150] sm:$0xff] }
   0xe   :  { %288 = vmatpush1.msra.mxu0 %v102_v24  ;;  %508 = vmatprep.mubr.f32.mxu1 %v1094_v3  ;;  %v91_v35 = vld [vmem:[%s2272_s1 + $0xe8] sm:$0xff]  ;;  %v90_v38 = vld [vmem:[%s2272_s1 + $0xe0] sm:$0xff]  ;;  %v1265_v45 = vld [vmem:[%s2273_s0 + $0x58] sm:$0xff] }
   0xf   :  { %602 = vmatpush1.msra.mxu1 %v120_v25  ;;  %289 = vmatprep.subr.mxu0 %v99_v26  ;;  %v87_v40 = vld [vmem:[%s2272_s1 + $0xc8] sm:$0xff]  ;;  %v86_v42 = vld [vmem:[%s2272_s1 + $0xc0] sm:$0xff]  ;;  %v101_v46 = vld [vmem:[%s2272_s1 + $0x138] sm:$0xff] }
  0x10   :  { %1054 = vmatmul.mubr.msk.f32.gmra.mxu1 %vm228_vm0, %v1201_v27  ;;  %603 = vmatprep.subr.mxu1 %v117_v28  ;;  %v83_v44 = vld [vmem:[%s2272_s1 + $0xa8] sm:$0xff]  ;;  %v82_v47 = vld [vmem:[%s2272_s1 + $0xa0] sm:$0xff]  ;;  %v100_v48 = vld [vmem:[%s2272_s1 + $0x130] sm:$0xff] }
  0x11   :  { %290 = vmatpush1.msra.mxu0 %v98_v29  ;;  %604 = vmatpush1.msra.mxu1 %v116_v30  ;;  %v79_v49 = vld [vmem:[%s2272_s1 + $0x88] sm:$0xff]  ;;  %v97_v50 = vld [vmem:[%s2272_s1 + $0x118] sm:$0xff]  ;;  %v78_v51 = vld [vmem:[%s2272_s1 + $0x80] sm:$0xff] }
  0x12   :  { %291 = vmatprep.subr.mxu0 %v95_v31  ;;  %605 = vmatprep.subr.mxu1 %v113_v32  ;;  %v96_v52 = vld [vmem:[%s2272_s1 + $0x110] sm:$0xff]  ;;  %v75_v53 = vld [vmem:[%s2272_s1 + $0x68] sm:$0xff]  ;;  %v93_v55 = vld [vmem:[%s2272_s1 + $0xf8] sm:$0xff] }
  0x13   :  { %292 = vmatpush1.msra.mxu0 %v94_v33  ;;  %514 = vmatprep.mubr.f32.mxu1 %v1094_v3  ;;  %v1297_v54 = vld [vmem:[%s2273_s0 + $0x70] sm:$0xff]  ;;  %v74_v56 = vld [vmem:[%s2272_s1 + $0x60] sm:$0xff]  ;;  %v71_v58 = vld [vmem:[%s2272_s1 + $0x48] sm:$0xff] }
  0x14   :  { %606 = vmatpush1.msra.mxu1 %v112_v34  ;;  %293 = vmatprep.subr.mxu0 %v91_v35  ;;  %v92_v57 = vld [vmem:[%s2272_s1 + $0xf0] sm:$0xff]  ;;  %v89_v59 = vld [vmem:[%s2272_s1 + $0xd8] sm:$0xff]  ;;  %v70_v60 = vld [vmem:[%s2272_s1 + $0x40] sm:$0xff] }
  0x15   :  { %1055 = vmatmul.mubr.msk.f32.gmra.mxu1 %vm228_vm0, %v1233_v36  ;;  %607 = vmatprep.subr.mxu1 %v109_v37  ;;  %v88_v61 = vld [vmem:[%s2272_s1 + $0xd0] sm:$0xff]  ;;  %v67_v62 = vld [vmem:[%s2272_s1 + $0x28] sm:$0xff]  ;;  %v85_v0 = vld [vmem:[%s2272_s1 + $0xb8] sm:$0xff] }
  0x16   :  { %294 = vmatpush1.msra.mxu0 %v90_v38  ;;  %608 = vmatpush1.msra.mxu1 %v108_v39  ;;  %v1329_v63 = vld [vmem:[%s2273_s0 + $0x88] sm:$0xff]  ;;  %v66_v1 = vld [vmem:[%s2272_s1 + $0x20] sm:$0xff]  ;;  %v84_v2 = vld [vmem:[%s2272_s1 + $0xb0] sm:$0xff] }
  0x17   :  { %295 = vmatprep.subr.mxu0 %v87_v40  ;;  %609 = vmatprep.subr.mxu1 %v105_v41  ;;  %v63_v4 = vld [vmem:[%s2272_s1 + $0x8] sm:$0xff]  ;;  %v81_v5 = vld [vmem:[%s2272_s1 + $0x98] sm:$0xff]  ;;  %v62_v6 = vld [vmem:[%s2272_s1] sm:$0xff] }
  0x18   :  { %296 = vmatpush1.msra.mxu0 %v86_v42  ;;  %520 = vmatprep.mubr.f32.mxu1 %v1094_v3  ;;  %v80_v7 = vld [vmem:[%s2272_s1 + $0x90] sm:$0xff]  ;;  %v187_v8 = vld [vmem:[%s2272_s1 + $0x3e8] sm:$0xff]  ;;  %v1361_v9 = vld [vmem:[%s2273_s0 + $0xa0] sm:$0xff] }
  0x19   :  { %610 = vmatpush1.msra.mxu1 %v104_v43  ;;  %297 = vmatprep.subr.mxu0 %v83_v44  ;;  %v77_v10 = vld [vmem:[%s2272_s1 + $0x78] sm:$0xff]  ;;  %v186_v11 = vld [vmem:[%s2272_s1 + $0x3e0] sm:$0xff]  ;;  %v76_v12 = vld [vmem:[%s2272_s1 + $0x70] sm:$0xff] }
  0x1a   :  { %1056 = vmatmul.mubr.msk.f32.gmra.mxu1 %vm228_vm0, %v1265_v45  ;;  %611 = vmatprep.subr.mxu1 %v101_v46  ;;  %v183_v13 = vld [vmem:[%s2272_s1 + $0x3c8] sm:$0xff]  ;;  %v73_v14 = vld [vmem:[%s2272_s1 + $0x58] sm:$0xff]  ;;  %v182_v15 = vld [vmem:[%s2272_s1 + $0x3c0] sm:$0xff] }
  0x1b   :  { %298 = vmatpush1.msra.mxu0 %v82_v47  ;;  %612 = vmatpush1.msra.mxu1 %v100_v48  ;;  %v72_v16 = vld [vmem:[%s2272_s1 + $0x50] sm:$0xff]  ;;  %v179_v17 = vld [vmem:[%s2272_s1 + $0x3a8] sm:$0xff]  ;;  %v1393_v19 = vld [vmem:[%s2273_s0 + $0xb8] sm:$0xff] }
  0x1c   :  { %299 = vmatprep.subr.mxu0 %v79_v49  ;;  %613 = vmatprep.subr.mxu1 %v97_v50  ;;  %v69_v20 = vld [vmem:[%s2272_s1 + $0x38] sm:$0xff]  ;;  %v178_v21 = vld [vmem:[%s2272_s1 + $0x3a0] sm:$0xff]  ;;  %v68_v22 = vld [vmem:[%s2272_s1 + $0x30] sm:$0xff] }
  0x1d   :  { %300 = vmatpush1.msra.mxu0 %v78_v51  ;;  %526 = vmatprep.mubr.f32.mxu1 %v1094_v3  ;;  %v175_v23 = vld [vmem:[%s2272_s1 + $0x388] sm:$0xff]  ;;  %v65_v24 = vld [vmem:[%s2272_s1 + $0x18] sm:$0xff]  ;;  %v174_v25 = vld [vmem:[%s2272_s1 + $0x380] sm:$0xff] }
  0x1e   :  { %614 = vmatpush1.msra.mxu1 %v96_v52  ;;  %301 = vmatprep.subr.mxu0 %v75_v53  ;;  %v64_v26 = vld [vmem:[%s2272_s1 + $0x10] sm:$0xff]  ;;  %v171_v28 = vld [vmem:[%s2272_s1 + $0x368] sm:$0xff]  ;;  %v189_v30 = vld [vmem:[%s2272_s1 + $0x3f8] sm:$0xff] }
  0x1f   :  { %1057 = vmatmul.mubr.msk.f32.gmra.mxu1 %vm228_vm0, %v1297_v54  ;;  %615 = vmatprep.subr.mxu1 %v93_v55  ;;  %v1425_v29 = vld [vmem:[%s2273_s0 + $0xd0] sm:$0xff]  ;;  %v170_v31 = vld [vmem:[%s2272_s1 + $0x360] sm:$0xff]  ;;  %v167_v33 = vld [vmem:[%s2272_s1 + $0x348] sm:$0xff] }
  0x20   :  { %302 = vmatpush1.msra.mxu0 %v74_v56  ;;  %616 = vmatpush1.msra.mxu1 %v92_v57  ;;  %v188_v32 = vld [vmem:[%s2272_s1 + $0x3f0] sm:$0xff]  ;;  %v185_v34 = vld [vmem:[%s2272_s1 + $0x3d8] sm:$0xff]  ;;  %v166_v35 = vld [vmem:[%s2272_s1 + $0x340] sm:$0xff] }
  0x21   :  { %303 = vmatprep.subr.mxu0 %v71_v58  ;;  %617 = vmatprep.subr.mxu1 %v89_v59  ;;  %v184_v37 = vld [vmem:[%s2272_s1 + $0x3d0] sm:$0xff]  ;;  %v163_v38 = vld [vmem:[%s2272_s1 + $0x328] sm:$0xff]  ;;  %v181_v40 = vld [vmem:[%s2272_s1 + $0x3b8] sm:$0xff] }
  0x22   :  { %304 = vmatpush1.msra.mxu0 %v70_v60  ;;  %532 = vmatprep.mubr.f32.mxu1 %v1094_v3  ;;  %v1457_v39 = vld [vmem:[%s2273_s0 + $0xe8] sm:$0xff]  ;;  %v162_v41 = vld [vmem:[%s2272_s1 + $0x320] sm:$0xff]  ;;  %v180_v42 = vld [vmem:[%s2272_s1 + $0x3b0] sm:$0xff] }
  0x23   :  { %618 = vmatpush1.msra.mxu1 %v88_v61  ;;  %305 = vmatprep.subr.mxu0 %v67_v62  ;;  %v159_v43 = vld [vmem:[%s2272_s1 + $0x308] sm:$0xff]  ;;  %v177_v44 = vld [vmem:[%s2272_s1 + $0x398] sm:$0xff]  ;;  %v158_v46 = vld [vmem:[%s2272_s1 + $0x300] sm:$0xff] }
  0x24   :  { %1058 = vmatmul.mubr.msk.f32.gmra.mxu1 %vm228_vm0, %v1329_v63  ;;  %619 = vmatprep.subr.mxu1 %v85_v0  ;;  %v176_v47 = vld [vmem:[%s2272_s1 + $0x390] sm:$0xff]  ;;  %v155_v48 = vld [vmem:[%s2272_s1 + $0x2e8] sm:$0xff]  ;;  %v1489_v49 = vld [vmem:[%s2273_s0 + $0x100] sm:$0xff] }
  0x25   :  { %306 = vmatpush1.msra.mxu0 %v66_v1  ;;  %620 = vmatpush1.msra.mxu1 %v84_v2  ;;  %v173_v50 = vld [vmem:[%s2272_s1 + $0x378] sm:$0xff]  ;;  %v154_v51 = vld [vmem:[%s2272_s1 + $0x2e0] sm:$0xff]  ;;  %v172_v52 = vld [vmem:[%s2272_s1 + $0x370] sm:$0xff] }
  0x26   :  { %307 = vmatprep.subr.mxu0 %v63_v4  ;;  %621 = vmatprep.subr.mxu1 %v81_v5  ;;  %v151_v53 = vld [vmem:[%s2272_s1 + $0x2c8] sm:$0xff]  ;;  %v169_v55 = vld [vmem:[%s2272_s1 + $0x358] sm:$0xff]  ;;  %v150_v56 = vld [vmem:[%s2272_s1 + $0x2c0] sm:$0xff] }
  0x27   :  { %308 = vmatpush1.msra.mxu0 %v62_v6  ;;  %538 = vmatprep.mubr.f32.mxu1 %v1094_v3  ;;  %v168_v57 = vld [vmem:[%s2272_s1 + $0x350] sm:$0xff]  ;;  %v147_v58 = vld [vmem:[%s2272_s1 + $0x2a8] sm:$0xff]  ;;  %v1521_v59 = vld [vmem:[%s2273_s0 + $0x118] sm:$0xff] }
  0x28   :  { %622 = vmatpush1.msra.mxu1 %v80_v7  ;;  %309 = vmatprep.subr.mxu0 %v187_v8  ;;  %v165_v60 = vld [vmem:[%s2272_s1 + $0x338] sm:$0xff]  ;;  %v146_v61 = vld [vmem:[%s2272_s1 + $0x2a0] sm:$0xff]  ;;  %v164_v62 = vld [vmem:[%s2272_s1 + $0x330] sm:$0xff] }
  0x29   :  { %1059 = vmatmul.mubr.msk.f32.gmra.mxu1 %vm228_vm0, %v1361_v9  ;;  %623 = vmatprep.subr.mxu1 %v77_v10  ;;  %v143_v0 = vld [vmem:[%s2272_s1 + $0x288] sm:$0xff]  ;;  %v161_v1 = vld [vmem:[%s2272_s1 + $0x318] sm:$0xff]  ;;  %v142_v2 = vld [vmem:[%s2272_s1 + $0x280] sm:$0xff] }
  0x2a   :  { %310 = vmatpush2.msra.mxu0 %v186_v11  ;;  %624 = vmatpush1.msra.mxu1 %v76_v12  ;;  %v160_v4 = vld [vmem:[%s2272_s1 + $0x310] sm:$0xff]  ;;  %v139_v5 = vld [vmem:[%s2272_s1 + $0x268] sm:$0xff]  ;;  %v157_v7 = vld [vmem:[%s2272_s1 + $0x2f8] sm:$0xff] }
  0x2b   :  { %311 = vmatprep.subr.mxu0 %v183_v13  ;;  %625 = vmatprep.subr.mxu1 %v73_v14  ;;  %v1553_v6 = vld [vmem:[%s2273_s0 + $0x130] sm:$0xff]  ;;  %v138_v8 = vld [vmem:[%s2272_s1 + $0x260] sm:$0xff]  ;;  %v135_v11 = vld [vmem:[%s2272_s1 + $0x248] sm:$0xff] }
  0x2c   :  { %312 = vmatpush2.msra.mxu0 %v182_v15  ;;  %544 = vmatprep.mubr.f32.mxu1 %v1094_v3  ;;  %v156_v10 = vld [vmem:[%s2272_s1 + $0x2f0] sm:$0xff]  ;;  %v153_v12 = vld [vmem:[%s2272_s1 + $0x2d8] sm:$0xff]  ;;  %v134_v13 = vld [vmem:[%s2272_s1 + $0x240] sm:$0xff] }
  0x2d   :  { %626 = vmatpush1.msra.mxu1 %v72_v16  ;;  %313 = vmatprep.subr.mxu0 %v179_v17  ;;  %v152_v14 = vld [vmem:[%s2272_s1 + $0x2d0] sm:$0xff]  ;;  %v131_v15 = vld [vmem:[%s2272_s1 + $0x228] sm:$0xff]  ;;  %v149_v17 = vld [vmem:[%s2272_s1 + $0x2b8] sm:$0xff] }
  0x2e   :  { %1060 = vmatmul.mubr.msk.f32.gmra.mxu1 %vm228_vm0, %v1393_v19  ;;  %627 = vmatprep.subr.mxu1 %v69_v20  ;;  %v1585_v16 = vld [vmem:[%s2273_s0 + $0x148] sm:$0xff]  ;;  %v130_v20 = vld [vmem:[%s2272_s1 + $0x220] sm:$0xff] }
  0x2f   :  { %314 = vmatpush2.msra.mxu0 %v178_v21  ;;  %628 = vmatpush1.msra.mxu1 %v68_v22  ;;  %v148_v21 = vld [vmem:[%s2272_s1 + $0x2b0] sm:$0xff]  ;;  %v127_v22 = vld [vmem:[%s2272_s1 + $0x208] sm:$0xff] }
  0x30   :  { %315 = vmatprep.subr.mxu0 %v175_v23  ;;  %629 = vmatprep.subr.mxu1 %v65_v24  ;;  %v145_v23 = vld [vmem:[%s2272_s1 + $0x298] sm:$0xff]  ;;  %v126_v24 = vld [vmem:[%s2272_s1 + $0x200] sm:$0xff] }
  0x31   :  { %316 = vmatpush2.msra.mxu0 %v174_v25  ;;  %550 = vmatprep.mubr.f32.mxu1 %v1094_v3  ;;  %v15_v25 = vld [vmem:[%s2273_s0 + $0x8] sm:$0xff] }
  0x32   :  { %630 = vmatpush1.msra.mxu1 %v64_v26  ;;  %317 = vmatprep.subr.mxu0 %v171_v28  ;;  %v144_v26 = vld [vmem:[%s2272_s1 + $0x290] sm:$0xff]  ;;  %v14_v28 = vld [vmem:[%s2273_s0] sm:$0xff] }
  0x33   :  { %1061 = vmatmul.mubr.msk.f32.gmra.mxu1 %vm228_vm0, %v1425_v29  ;;  %631 = vmatprep.subr.mxu1 %v189_v30  ;;  %v1620_v30 = vld [vmem:[%s2273_s0 + $0x160] sm:$0xff] }
  0x34   :  { %318 = vmatpush2.msra.mxu0 %v170_v31  ;;  %632 = vmatpush2.msra.mxu1 %v188_v32  ;;  %v141_v31 = vld [vmem:[%s2272_s1 + $0x278] sm:$0xff] }
  0x35   :  { %319 = vmatprep.subr.mxu0 %v167_v33  ;;  %633 = vmatprep.subr.mxu1 %v185_v34  ;;  %v205_v32 = vld [vmem:[%s2272_s1 + $0x478] sm:$0xff]  ;;  %v140_v33 = vld [vmem:[%s2272_s1 + $0x270] sm:$0xff] }
  0x36   :  { %320 = vmatpush2.msra.mxu0 %v166_v35  ;;  %556 = vmatprep.mubr.f32.mxu1 %v1094_v3  ;;  %v204_v34 = vld [vmem:[%s2272_s1 + $0x470] sm:$0xff]  ;;  %v137_v35 = vld [vmem:[%s2272_s1 + $0x258] sm:$0xff] }
  0x37   :  { %634 = vmatpush2.msra.mxu1 %v184_v37  ;;  %321 = vmatprep.subr.mxu0 %v163_v38  ;;  %v18_v37 = vld [vmem:[%s2273_s0 + $0x20] sm:$0xff]  ;;  %v136_v38 = vld [vmem:[%s2272_s1 + $0x250] sm:$0xff] }
  0x38   :  { %1062 = vmatmul.mubr.msk.f32.gmra.mxu1 %vm228_vm0, %v1457_v39  ;;  %635 = vmatprep.subr.mxu1 %v181_v40  ;;  %v17_v40 = vld [vmem:[%s2273_s0 + $0x18] sm:$0xff] }
  0x39   :  { %322 = vmatpush2.msra.mxu0 %v162_v41  ;;  %636 = vmatpush2.msra.mxu1 %v180_v42  ;;  %v1652_v41 = vld [vmem:[%s2273_s0 + $0x178] sm:$0xff] }
  0x3a   :  { %323 = vmatprep.subr.mxu0 %v159_v43  ;;  %637 = vmatprep.subr.mxu1 %v177_v44  ;;  %v133_v42 = vld [vmem:[%s2272_s1 + $0x238] sm:$0xff]  ;;  %v132_v43 = vld [vmem:[%s2272_s1 + $0x230] sm:$0xff] }
  0x3b   :  { %324 = vmatpush2.msra.mxu0 %v158_v46  ;;  %562 = vmatprep.mubr.f32.mxu1 %v1094_v3  ;;  %v21_v44 = vld [vmem:[%s2273_s0 + $0x38] sm:$0xff] }
  0x3c   :  { %638 = vmatpush2.msra.mxu1 %v176_v47  ;;  %325 = vmatprep.subr.mxu0 %v155_v48  ;;  %v129_v46 = vld [vmem:[%s2272_s1 + $0x218] sm:$0xff]  ;;  %v128_v47 = vld [vmem:[%s2272_s1 + $0x210] sm:$0xff] }
  0x3d   :  { %1063 = vmatmul.mubr.msk.f32.gmra.mxu1 %vm228_vm0, %v1489_v49  ;;  %639 = vmatprep.subr.mxu1 %v173_v50  ;;  %v20_v48 = vld [vmem:[%s2273_s0 + $0x30] sm:$0xff] }
  0x3e   :  { %326 = vmatpush2.msra.mxu0 %v154_v51  ;;  %640 = vmatpush2.msra.mxu1 %v172_v52  ;;  %v24_v50 = vld [vmem:[%s2273_s0 + $0x50] sm:$0xff]  ;;  %v201_v51 = vld [vmem:[%s2272_s1 + $0x458] sm:$0xff]  ;;  %v23_v52 = vld [vmem:[%s2273_s0 + $0x48] sm:$0xff] }
  0x3f   :  { %327 = vmatprep.subr.mxu0 %v151_v53  ;;  %641 = vmatprep.subr.mxu1 %v169_v55  ;;  %v27_v53 = vld [vmem:[%s2273_s0 + $0x68] sm:$0xff]  ;;  %v200_v55 = vld [vmem:[%s2272_s1 + $0x450] sm:$0xff] }
  0x40   :  { %328 = vmatpush2.msra.mxu0 %v150_v56  ;;  %568 = vmatprep.mubr.f32.mxu1 %v1094_v3  ;;  %v197_v56 = vld [vmem:[%s2272_s1 + $0x438] sm:$0xff] }
  0x41   :  { %642 = vmatpush2.msra.mxu1 %v168_v57  ;;  %329 = vmatprep.subr.mxu0 %v147_v58  ;;  %v26_v57 = vld [vmem:[%s2273_s0 + $0x60] sm:$0xff] }
  0x42   :  { %1064 = vmatmul.mubr.msk.f32.gmra.mxu1 %vm228_vm0, %v1521_v59  ;;  %643 = vmatprep.subr.mxu1 %v165_v60  ;;  %v30_v58 = vld [vmem:[%s2273_s0 + $0x80] sm:$0xff]  ;;  %v196_v60 = vld [vmem:[%s2272_s1 + $0x430] sm:$0xff] }
  0x43   :  { %330 = vmatpush2.msra.mxu0 %v146_v61  ;;  %644 = vmatpush2.msra.mxu1 %v164_v62  ;;  %v193_v61 = vld [vmem:[%s2272_s1 + $0x418] sm:$0xff] }
  0x44   :  { %331 = vmatprep.subr.mxu0 %v143_v0  ;;  %645 = vmatprep.subr.mxu1 %v161_v1  ;;  %v29_v62 = vld [vmem:[%s2273_s0 + $0x78] sm:$0xff]  ;;  %v192_v1 = vld [vmem:[%s2272_s1 + $0x410] sm:$0xff] }
  0x45   :  { %332 = vmatpush2.msra.mxu0 %v142_v2  ;;  %574 = vmatprep.mubr.f32.mxu1 %v1094_v3  ;;  %v33_v0 = vld [vmem:[%s2273_s0 + $0x98] sm:$0xff]  ;;  %v32_v2 = vld [vmem:[%s2273_s0 + $0x90] sm:$0xff] }
  0x46   :  { %646 = vmatpush2.msra.mxu1 %v160_v4  ;;  %333 = vmatprep.subr.mxu0 %v139_v5  ;;  %v36_v4 = vld [vmem:[%s2273_s0 + $0xb0] sm:$0xff]  ;;  %v35_v5 = vld [vmem:[%s2273_s0 + $0xa8] sm:$0xff] }
  0x47   :  { %1065 = vmatmul.mubr.msk.f32.gmra.mxu1 %vm228_vm0, %v1553_v6  ;;  %647 = vmatprep.subr.mxu1 %v157_v7  ;;  %v39_v7 = vld [vmem:[%s2273_s0 + $0xc8] sm:$0xff] }
  0x48   :  { %334 = vmatpush2.msra.mxu0 %v138_v8  ;;  %648 = vmatpush2.msra.mxu1 %v156_v10  ;;  %v38_v8 = vld [vmem:[%s2273_s0 + $0xc0] sm:$0xff] }
  0x49   :  { %335 = vmatprep.subr.mxu0 %v135_v11  ;;  %649 = vmatprep.subr.mxu1 %v153_v12  ;;  %v42_v10 = vld [vmem:[%s2273_s0 + $0xe0] sm:$0xff]  ;;  %v41_v11 = vld [vmem:[%s2273_s0 + $0xd8] sm:$0xff] }
  0x4a   :  { %336 = vmatpush2.msra.mxu0 %v134_v13  ;;  %580 = vmatprep.mubr.f32.mxu1 %v1094_v3  ;;  %v45_v12 = vld [vmem:[%s2273_s0 + $0xf8] sm:$0xff]  ;;  %v44_v13 = vld [vmem:[%s2273_s0 + $0xf0] sm:$0xff] }
  0x4b   :  { %650 = vmatpush2.msra.mxu1 %v152_v14  ;;  %337 = vmatprep.subr.mxu0 %v131_v15  ;;  %v48_v14 = vld [vmem:[%s2273_s0 + $0x110] sm:$0xff]  ;;  %v47_v15 = vld [vmem:[%s2273_s0 + $0x108] sm:$0xff] }
  0x4c   :  { %1066 = vmatmul.mubr.msk.f32.gmra.mxu1 %vm228_vm0, %v1585_v16  ;;  %651 = vmatprep.subr.mxu1 %v149_v17  ;;  %v51_v17 = vld [vmem:[%s2273_s0 + $0x128] sm:$0xff] }
  0x4d   :  { %338 = vmatpush2.msra.mxu0 %v130_v20  ;;  %652 = vmatpush2.msra.mxu1 %v148_v21  ;;  %v50_v20 = vld [vmem:[%s2273_s0 + $0x120] sm:$0xff] }
  0x4e   :  { %339 = vmatprep.subr.mxu0 %v127_v22  ;;  %653 = vmatprep.subr.mxu1 %v145_v23  ;;  %v54_v21 = vld [vmem:[%s2273_s0 + $0x140] sm:$0xff]  ;;  %v53_v22 = vld [vmem:[%s2273_s0 + $0x138] sm:$0xff] }
  0x4f   :  { %340 = vmatpush2.msra.mxu0 %v126_v24  ;;  %341 = vmatprep.mubr.f32.mxu0 %v15_v25  ;;  %v57_v23 = vld [vmem:[%s2273_s0 + $0x158] sm:$0xff]  ;;  %v56_v24 = vld [vmem:[%s2273_s0 + $0x150] sm:$0xff] }
  0x50   :  { %586 = vmatprep.mubr.f32.mxu1 %v1094_v3  ;;  %654 = vmatpush2.msra.mxu1 %v144_v26  ;;  %v59_v26 = vld [vmem:[%s2273_s0 + $0x168] sm:$0xff] }
  0x51   :  { %342 = vmatmul.mubr.f32.vlgmr.msra.gmra.mxu0 %v14_v28  ;;  %1067 = vmatmul.mubr.msk.f32.gmra.mxu1 %vm228_vm0, %v1620_v30 }
  0x52   :  { %655 = vmatprep.subr.mxu1 %v141_v31  ;;  %784 = vmatprep.subr.mxu0 %v205_v32 }
  0x53   :  { %656 = vmatpush2.msra.mxu1 %v140_v33  ;;  %785 = vmatpush1.msra.mxu0 %v204_v34 }
  0x54   :  { %657 = vmatprep.subr.mxu1 %v137_v35  ;;  %347 = vmatprep.mubr.f32.mxu0 %v18_v37 }
  0x55   :  { %592 = vmatprep.mubr.f32.mxu1 %v1094_v3  ;;  %658 = vmatpush2.msra.mxu1 %v136_v38 }
  0x56   :  { %348 = vmatmul.mubr.f32.gmra.mxu0 %v17_v40  ;;  %1068 = vmatmul.mubr.msk.f32.gmra.mxu1 %vm228_vm0, %v1652_v41 }
  0x57   :  { %659 = vmatprep.subr.mxu1 %v133_v42  ;;  %353 = vmatprep.mubr.f32.mxu0 %v21_v44 }
  0x58   :  { %660 = vmatpush2.msra.mxu1 %v132_v43  ;;  %663 = vmatprep.mubr.f32.mxu1 %v15_v25  ;;  %v60_v25 = vld [vmem:[%s2273_s0 + $0x170] sm:$0xff] }
  0x59   :  { %661 = vmatprep.subr.mxu1 %v129_v46  ;;  %786 = vmatprep.subr.mxu0 %v201_v51 }
  0x5a   :  { %662 = vmatpush2.msra.mxu1 %v128_v47  ;;  %354 = vmatmul.mubr.f32.gmra.mxu0 %v20_v48 }
  0x5b   :  { %664 = vmatmul.mubr.f32.vlgmr.msra.gmra.mxu1 %v14_v28  ;;  %1085 = vmatprep.subr.mxu1 %v205_v32  ;;  %v208_v28 = vlaneseq }
  0x5c   :  { %1089 = vmatpush1.msra.mxu1 %v204_v34  ;;  %359 = vmatprep.mubr.f32.mxu0 %v24_v50 }
  0x5d   :  { %669 = vmatprep.mubr.f32.mxu1 %v18_v37  ;;  %1086 = vmatprep.subr.mxu1 %v201_v51  ;;  %v1779_v31 = vshrl.u32 %v208_v28, 7 }
  0x5e   :  { %360 = vmatmul.mubr.f32.gmra.mxu0 %v23_v52  ;;  %1090 = vmatpush1.msra.mxu1 %v200_v55 }
  0x5f   :  { %670 = vmatmul.mubr.f32.gmra.mxu1 %v17_v40  ;;  %365 = vmatprep.mubr.f32.mxu0 %v27_v53  ;;  %v214_v51 = vsub.s32 1, %v1779_v31 }
  0x60   :  { %675 = vmatprep.mubr.f32.mxu1 %v21_v44  ;;  %787 = vmatpush1.msra.mxu0 %v200_v55 }
  0x61   :  { %788 = vmatprep.subr.mxu0 %v197_v56  ;;  %1087 = vmatprep.subr.mxu1 %v197_v56 }
  0x62   :  { %366 = vmatmul.mubr.f32.gmra.mxu0 %v26_v57  ;;  %1091 = vmatpush1.msra.mxu1 %v196_v60 }
  0x63   :  { %676 = vmatmul.mubr.f32.gmra.mxu1 %v20_v48  ;;  %371 = vmatprep.mubr.f32.mxu0 %v30_v58  ;;  %v210_v48 = vsub.s32 0, %v1779_v31 }
  0x64   :  { %681 = vmatprep.mubr.f32.mxu1 %v24_v50  ;;  %789 = vmatpush1.msra.mxu0 %v196_v60 }
  0x65   :  { %790 = vmatprep.subr.mxu0 %v193_v61  ;;  %1088 = vmatprep.subr.mxu1 %v193_v61 }
  0x66   :  { %372 = vmatmul.mubr.f32.gmra.mxu0 %v29_v62  ;;  %1092 = vmatpush1.msra.mxu1 %v192_v1 }
  0x67   :  { %682 = vmatmul.mubr.f32.gmra.mxu1 %v23_v52  ;;  %377 = vmatprep.mubr.f32.mxu0 %v33_v0 }
  0x68   :  { %687 = vmatprep.mubr.f32.mxu1 %v27_v53  ;;  %791 = vmatpush1.msra.mxu0 %v192_v1 }
  0x6a   :  { %378 = vmatmul.mubr.f32.gmra.mxu0 %v32_v2 }
  0x6b   :  { %688 = vmatmul.mubr.f32.gmra.mxu1 %v26_v57  ;;  %383 = vmatprep.mubr.f32.mxu0 %v36_v4 }
  0x6c   :  { %693 = vmatprep.mubr.f32.mxu1 %v30_v58 }
  0x6e   :  { %384 = vmatmul.mubr.f32.gmra.mxu0 %v35_v5 }
  0x6f   :  { %694 = vmatmul.mubr.f32.gmra.mxu1 %v29_v62  ;;  %389 = vmatprep.mubr.f32.mxu0 %v39_v7 }
  0x70   :  { %699 = vmatprep.mubr.f32.mxu1 %v33_v0 }
  0x72   :  { %390 = vmatmul.mubr.f32.gmra.mxu0 %v38_v8 }
  0x73   :  { %700 = vmatmul.mubr.f32.gmra.mxu1 %v32_v2  ;;  %395 = vmatprep.mubr.f32.mxu0 %v42_v10 }
  0x74   :  { %705 = vmatprep.mubr.f32.mxu1 %v36_v4 }
  0x76   :  { %396 = vmatmul.mubr.f32.gmra.mxu0 %v41_v11 }
  0x77   :  { %706 = vmatmul.mubr.f32.gmra.mxu1 %v35_v5  ;;  %401 = vmatprep.mubr.f32.mxu0 %v45_v12 }
  0x78   :  { %711 = vmatprep.mubr.f32.mxu1 %v39_v7 }
  0x7a   :  { %402 = vmatmul.mubr.f32.gmra.mxu0 %v44_v13 }
  0x7b   :  { %712 = vmatmul.mubr.f32.gmra.mxu1 %v38_v8  ;;  %407 = vmatprep.mubr.f32.mxu0 %v48_v14 }
  0x7c   :  { %717 = vmatprep.mubr.f32.mxu1 %v42_v10 }
  0x7e   :  { %408 = vmatmul.mubr.f32.gmra.mxu0 %v47_v15 }
  0x7f   :  { %718 = vmatmul.mubr.f32.gmra.mxu1 %v41_v11  ;;  %413 = vmatprep.mubr.f32.mxu0 %v51_v17 }
  0x80   :  { %723 = vmatprep.mubr.f32.mxu1 %v45_v12 }
  0x82   :  { %414 = vmatmul.mubr.f32.gmra.mxu0 %v50_v20 }
  0x83   :  { %724 = vmatmul.mubr.f32.gmra.mxu1 %v44_v13  ;;  %419 = vmatprep.mubr.f32.mxu0 %v54_v21 }
  0x84   :  { %729 = vmatprep.mubr.f32.mxu1 %v48_v14 }
  0x86   :  { %420 = vmatmul.mubr.f32.gmra.mxu0 %v53_v22 }
  0x87   :  { %730 = vmatmul.mubr.f32.gmra.mxu1 %v47_v15  ;;  %425 = vmatprep.mubr.f32.mxu0 %v57_v23 }
  0x88   :  { %735 = vmatprep.mubr.f32.mxu1 %v51_v17 }
  0x8a   :  { %426 = vmatmul.mubr.f32.gmra.mxu0 %v56_v24 }
  0x8b   :  { %736 = vmatmul.mubr.f32.gmra.mxu1 %v50_v20  ;;  %431 = vmatprep.mubr.f32.mxu0 %v60_v25 }
  0x8c   :  { %741 = vmatprep.mubr.f32.mxu1 %v54_v21 }
  0x8e   :  { %432 = vmatmul.mubr.f32.gmra.mxu0 %v59_v26 }
  0x8f   :  { %742 = vmatmul.mubr.f32.gmra.mxu1 %v53_v22  ;;  %824 = vmatprep.mubr.f32.mxu0 %v1094_v3 }
  0x90   :  { %747 = vmatprep.mubr.f32.mxu1 %v57_v23 }
  0x92   :  { %1069 = vmatmul.mubr.msk.f32.vlgmr.msra.gmra.mxu0 %vm228_vm0, %v1170_v18  ;;  %v222_v18 = vsub.s32 3, %v1779_v31 }
  0x93   :  { %748 = vmatmul.mubr.f32.gmra.mxu1 %v56_v24  ;;  %830 = vmatprep.mubr.f32.mxu0 %v1094_v3 }
  0x94   :  { %753 = vmatprep.mubr.f32.mxu1 %v60_v25 }
  0x96   :  { %1070 = vmatmul.mubr.msk.f32.gmra.mxu0 %vm228_vm0, %v1201_v27  ;;  %v1790_v27 = vld [vmem:[%s2274_s2] sm:$0xf] }
  0x97   :  { %754 = vmatmul.mubr.f32.gmra.mxu1 %v59_v26  ;;  %836 = vmatprep.mubr.f32.mxu0 %v1094_v3  ;;  %v1794_v32 = vrot.slane %v1790_v27, %v222_v18  ;;  %v1877_v53 = vrot.slane %v1790_v27, %v210_v48  ;;  %v1880_v55 = vrot.slane %v1790_v27, %v214_v51 }
  0x98   :  { %878 = vmatprep.mubr.f32.mxu1 %v1094_v3 }
  0x9a   :  { %1071 = vmatmul.mubr.msk.f32.gmra.mxu0 %vm228_vm0, %v1233_v36 }
  0x9b   :  { %1078 = vmatmul.mubr.msk.f32.vlgmr.msra.gmra.mxu1 %vm228_vm0, %v1457_v39  ;;  %842 = vmatprep.mubr.f32.mxu0 %v1094_v3 }
  0x9c   :  { %884 = vmatprep.mubr.f32.mxu1 %v1094_v3 }
  0x9e   :  { %1072 = vmatmul.mubr.msk.f32.gmra.mxu0 %vm228_vm0, %v1265_v45 }
  0x9f   :  { %1079 = vmatmul.mubr.msk.f32.gmra.mxu1 %vm228_vm0, %v1489_v49  ;;  %848 = vmatprep.mubr.f32.mxu0 %v1094_v3 }
  0xa0   :  { %890 = vmatprep.mubr.f32.mxu1 %v1094_v3 }
  0xa2   :  { %1073 = vmatmul.mubr.msk.f32.gmra.mxu0 %vm228_vm0, %v1297_v54 }
  0xa3   :  { %1080 = vmatmul.mubr.msk.f32.gmra.mxu1 %vm228_vm0, %v1521_v59  ;;  %854 = vmatprep.mubr.f32.mxu0 %v1094_v3 }
  0xa4   :  { %896 = vmatprep.mubr.f32.mxu1 %v1094_v3 }
  0xa6   :  { %1074 = vmatmul.mubr.msk.f32.gmra.mxu0 %vm228_vm0, %v1329_v63 }
  0xa7   :  { %1081 = vmatmul.mubr.msk.f32.gmra.mxu1 %vm228_vm0, %v1553_v6  ;;  %860 = vmatprep.mubr.f32.mxu0 %v1094_v3 }
  0xa8   :  { %902 = vmatprep.mubr.f32.mxu1 %v1094_v3 }
  0xaa   :  { %1075 = vmatmul.mubr.msk.f32.gmra.mxu0 %vm228_vm0, %v1361_v9 }
  0xab   :  { %1082 = vmatmul.mubr.msk.f32.gmra.mxu1 %vm228_vm0, %v1585_v16  ;;  %866 = vmatprep.mubr.f32.mxu0 %v1094_v3 }
  0xac   :  { %908 = vmatprep.mubr.f32.mxu1 %v1094_v3 }
  0xae   :  { %1076 = vmatmul.mubr.msk.f32.gmra.mxu0 %vm228_vm0, %v1393_v19 }
  0xaf   :  { %1083 = vmatmul.mubr.msk.f32.gmra.mxu1 %vm228_vm0, %v1620_v30  ;;  %872 = vmatprep.mubr.f32.mxu0 %v1094_v3 }
  0xb0   :  { %914 = vmatprep.mubr.f32.mxu1 %v1094_v3 }
  0xb2   :  { %1077 = vmatmul.mubr.msk.f32.gmra.mxu0 %vm228_vm0, %v1425_v29 }
  0xb3   :  { %1084 = vmatmul.mubr.msk.f32.gmra.mxu1 %vm228_vm0, %v1652_v41 }
  0xcb   :  { %v504_v36 = vpop.f32.mrf.mxu1 }
  0xcd   :  { %v506_v45 = vpop.f32.mrf.mxu1 }
  0xd0   :  { %v510_v54 = vpop.f32.mrf.mxu1 }
  0xd2   :  { %v512_v63 = vpop.f32.mrf.mxu1 }
  0xd5   :  { %v516_v9 = vpop.f32.mrf.mxu1 }
  0xd7   :  { %v518_v39 = vpop.f32.mrf.mxu1 }
  0xda   :  { %v1830_v19 = vpop.f32.mrf.mxu1 }
  0xdc   :  { %v1832_v49 = vpop.f32.mrf.mxu1 }
  0xdf   :  { %v1834_v59 = vpop.f32.mrf.mxu1 }
  0xe1   :  { %v1836_v6 = vpop.f32.mrf.mxu1 }
  0xe4   :  { %v1838_v3 = vpop.f32.mrf.mxu1 }
  0xe6   :  { %v1840_v29 = vpop.f32.mrf.mxu1 }
  0xe9   :  { %v1842_v16 = vpop.f32.mrf.mxu1 }
  0xeb   :  { %v1844_v30 = vpop.f32.mrf.mxu1 }
  0xee   :  { %v1846_v33 = vpop.f32.mrf.mxu1 }
  0xf0   :  { %v1848_v34 = vpop.f32.mrf.mxu1 }
  0xf3   :  { %v1850_v35 = vpop.f32.mrf.mxu1 }
  0xf5   :  { %v1852_v37 = vpop.f32.mrf.mxu1 }
  0xf8   :  { %v1854_v38 = vpop.f32.mrf.mxu1 }
  0xfa   :  { %v1856_v40 = vpop.f32.mrf.mxu1 }
  0xfd   :  { %v1858_v41 = vpop.f32.mrf.mxu1 }
  0xff   :  { %v1860_v42 = vpop.f32.mrf.mxu1 }
 0x102   :  { %v1862_v43 = vpop.f32.mrf.mxu1 }
 0x104   :  { %v1864_v44 = vpop.f32.mrf.mxu1 }
 0x107   :  { %v1866_v46 = vpop.f32.mrf.mxu1 }
 0x109   :  { %v1868_v47 = vpop.f32.mrf.mxu1 }
 0x10c   :  { %v1871_v50 = vpop.f32.mrf.mxu1 }
 0x10e   :  { %v1874_v52 = vpop.f32.mrf.mxu1 }
 0x111   :  { %v343_v56 = vpop.f32.mrf.mxu0  ;;  %v1883_v58 = vpop.f32.mrf.mxu1 }
 0x112   :  { %v344_v57 = vadd.f32 %v343_v56, %v1877_v53 }
 0x113   :  { %v345_v60 = vpop.f32.mrf.mxu0  ;;  %v1886_v0 = vpop.f32.mrf.mxu1 }
 0x114   :  { %v505_v61 = vadd.f32 %v504_v36, %v344_v57  ;;  %v346_v62 = vadd.f32 %v345_v60, %v1880_v55 }
 0x116   :  { %v921_v1 = vmax.f32 %v505_v61, 0.0  ;;  %v507_v2 = vadd.f32 %v506_v45, %v346_v62  ;;  %v349_v4 = vpop.f32.mrf.mxu0  ;;  %v1889_v7 = vpop.f32.mrf.mxu1 }
 0x117   :  { %v350_v5 = vadd.f32 %v349_v4, %v1877_v53 }
 0x118   :  { %985 = vst [vmem:[%s2275_s3] sm:$0xff] %v921_v1  ;;  %v922_v8 = vmax.f32 %v507_v2, 0.0  ;;  %v351_v10 = vpop.f32.mrf.mxu0  ;;  %v1895_v13 = vpop.f32.mrf.mxu1 }
 0x119   :  { %v511_v11 = vadd.f32 %v510_v54, %v350_v5  ;;  %v352_v12 = vadd.f32 %v351_v10, %v1880_v55 }
 0x11a   :  { %986 = vst [vmem:[%s2275_s3 + $0x8] sm:$0xff] %v922_v8  ;;  %v355_v14 = vpop.f32.mrf.mxu0 }
 0x11b   :  { %v925_v15 = vmax.f32 %v511_v11, 0.0  ;;  %v513_v17 = vadd.f32 %v512_v63, %v352_v12  ;;  %v356_v20 = vadd.f32 %v355_v14, %v1877_v53  ;;  %v1901_v21 = vpop.f32.mrf.mxu1 }
 0x11c   :  { %v357_v22 = vpop.f32.mrf.mxu0 }
 0x11d   :  { %989 = vst [vmem:[%s2275_s3 + $0x20] sm:$0xff] %v925_v15  ;;  %v926_v23 = vmax.f32 %v513_v17, 0.0  ;;  %v517_v24 = vadd.f32 %v516_v9, %v356_v20  ;;  %v358_v25 = vadd.f32 %v357_v22, %v1880_v55  ;;  %v1907_v26 = vpop.f32.mrf.mxu1 }
 0x11e   :  { %v361_v28 = vpop.f32.mrf.mxu0 }
 0x11f   :  { %990 = vst [vmem:[%s2275_s3 + $0x28] sm:$0xff] %v926_v23  ;;  %v929_v18 = vmax.f32 %v517_v24, 0.0  ;;  %v519_v36 = vadd.f32 %v518_v39, %v358_v25  ;;  %v362_v45 = vadd.f32 %v361_v28, %v1877_v53  ;;  %v1913_v54 = vpop.f32.mrf.mxu1 }
 0x120   :  { %v363_v63 = vpop.f32.mrf.mxu0 }
 0x121   :  { %993 = vst [vmem:[%s2275_s3 + $0x40] sm:$0xff] %v929_v18  ;;  %v930_v9 = vmax.f32 %v519_v36, 0.0  ;;  %v523_v48 = vadd.f32 %v1830_v19, %v362_v45  ;;  %v364_v51 = vadd.f32 %v363_v63, %v1880_v55  ;;  %v1920_v56 = vpop.f32.mrf.mxu1 }
 0x122   :  { %v367_v57 = vpop.f32.mrf.mxu0 }
 0x123   :  { %994 = vst [vmem:[%s2275_s3 + $0x48] sm:$0xff] %v930_v9  ;;  %v933_v39 = vmax.f32 %v523_v48, 0.0  ;;  %v525_v60 = vadd.f32 %v1832_v49, %v364_v51  ;;  %v368_v61 = vadd.f32 %v367_v57, %v1877_v53  ;;  %v1927_v62 = vpop.f32.mrf.mxu1 }
 0x124   :  { %v369_v1 = vpop.f32.mrf.mxu0 }
 0x125   :  { %997 = vst [vmem:[%s2275_s3 + $0x60] sm:$0xff] %v933_v39  ;;  %v934_v19 = vmax.f32 %v525_v60, 0.0  ;;  %v529_v2 = vadd.f32 %v1834_v59, %v368_v61  ;;  %v370_v4 = vadd.f32 %v369_v1, %v1880_v55  ;;  %v1934_v5 = vpop.f32.mrf.mxu1 }
 0x126   :  { %v373_v8 = vpop.f32.mrf.mxu0 }
 0x127   :  { %998 = vst [vmem:[%s2275_s3 + $0x68] sm:$0xff] %v934_v19  ;;  %v937_v49 = vmax.f32 %v529_v2, 0.0  ;;  %v531_v10 = vadd.f32 %v1836_v6, %v370_v4  ;;  %v374_v11 = vadd.f32 %v373_v8, %v1877_v53  ;;  %v1941_v12 = vpop.f32.mrf.mxu1 }
 0x128   :  { %v375_v14 = vpop.f32.mrf.mxu0 }
 0x129   :  { %1001 = vst [vmem:[%s2275_s3 + $0x80] sm:$0xff] %v937_v49  ;;  %v938_v59 = vmax.f32 %v531_v10, 0.0  ;;  %v535_v15 = vadd.f32 %v1838_v3, %v374_v11  ;;  %v376_v17 = vadd.f32 %v375_v14, %v1880_v55  ;;  %v1948_v20 = vpop.f32.mrf.mxu1 }
 0x12a   :  { %v379_v22 = vpop.f32.mrf.mxu0 }
 0x12b   :  { %1002 = vst [vmem:[%s2275_s3 + $0x88] sm:$0xff] %v938_v59  ;;  %v941_v6 = vmax.f32 %v535_v15, 0.0  ;;  %v537_v23 = vadd.f32 %v1840_v29, %v376_v17  ;;  %v380_v24 = vadd.f32 %v379_v22, %v1877_v53  ;;  %v1955_v25 = vpop.f32.mrf.mxu1 }
 0x12c   :  { %v381_v28 = vpop.f32.mrf.mxu0 }
 0x12d   :  { %1005 = vst [vmem:[%s2275_s3 + $0xa0] sm:$0xff] %v941_v6  ;;  %v942_v3 = vmax.f32 %v537_v23, 0.0  ;;  %v541_v18 = vadd.f32 %v1842_v16, %v380_v24  ;;  %v382_v36 = vadd.f32 %v381_v28, %v1880_v55  ;;  %v1962_v45 = vpop.f32.mrf.mxu1 }
 0x12e   :  { %v385_v63 = vpop.f32.mrf.mxu0 }
 0x12f   :  { %1006 = vst [vmem:[%s2275_s3 + $0xa8] sm:$0xff] %v942_v3  ;;  %v945_v29 = vmax.f32 %v541_v18, 0.0  ;;  %v543_v9 = vadd.f32 %v1844_v30, %v382_v36  ;;  %v386_v48 = vadd.f32 %v385_v63, %v1877_v53  ;;  %v1969_v51 = vpop.f32.mrf.mxu1 }
 0x130   :  { %v387_v57 = vpop.f32.mrf.mxu0 }
 0x131   :  { %1009 = vst [vmem:[%s2275_s3 + $0xc0] sm:$0xff] %v945_v29  ;;  %v946_v16 = vmax.f32 %v543_v9, 0.0  ;;  %v547_v39 = vadd.f32 %v1846_v33, %v386_v48  ;;  %v388_v60 = vadd.f32 %v387_v57, %v1880_v55  ;;  %v1976_v61 = vpop.f32.mrf.mxu1 }
 0x132   :  { %v391_v1 = vpop.f32.mrf.mxu0 }
 0x133   :  { %1010 = vst [vmem:[%s2275_s3 + $0xc8] sm:$0xff] %v946_v16  ;;  %v949_v30 = vmax.f32 %v547_v39, 0.0  ;;  %v549_v19 = vadd.f32 %v1848_v34, %v388_v60  ;;  %v392_v2 = vadd.f32 %v391_v1, %v1877_v53  ;;  %v1983_v4 = vpop.f32.mrf.mxu1 }
 0x134   :  { %v393_v8 = vpop.f32.mrf.mxu0 }
 0x135   :  { %1013 = vst [vmem:[%s2275_s3 + $0xe0] sm:$0xff] %v949_v30  ;;  %v950_v33 = vmax.f32 %v549_v19, 0.0  ;;  %v553_v49 = vadd.f32 %v1850_v35, %v392_v2  ;;  %v394_v10 = vadd.f32 %v393_v8, %v1880_v55  ;;  %v1990_v11 = vpop.f32.mrf.mxu1 }
 0x136   :  { %v397_v14 = vpop.f32.mrf.mxu0 }
 0x137   :  { %1014 = vst [vmem:[%s2275_s3 + $0xe8] sm:$0xff] %v950_v33  ;;  %v953_v34 = vmax.f32 %v553_v49, 0.0  ;;  %v555_v59 = vadd.f32 %v1852_v37, %v394_v10  ;;  %v398_v15 = vadd.f32 %v397_v14, %v1877_v53  ;;  %v1997_v17 = vpop.f32.mrf.mxu1 }
 0x138   :  { %v399_v22 = vpop.f32.mrf.mxu0 }
 0x139   :  { %1017 = vst [vmem:[%s2275_s3 + $0x100] sm:$0xff] %v953_v34  ;;  %v954_v35 = vmax.f32 %v555_v59, 0.0  ;;  %v559_v6 = vadd.f32 %v1854_v38, %v398_v15  ;;  %v400_v23 = vadd.f32 %v399_v22, %v1880_v55  ;;  %v2004_v24 = vpop.f32.mrf.mxu1 }
 0x13a   :  { %v403_v28 = vpop.f32.mrf.mxu0 }
 0x13b   :  { %1018 = vst [vmem:[%s2275_s3 + $0x108] sm:$0xff] %v954_v35  ;;  %v957_v37 = vmax.f32 %v559_v6, 0.0  ;;  %v561_v3 = vadd.f32 %v1856_v40, %v400_v23  ;;  %v404_v18 = vadd.f32 %v403_v28, %v1877_v53  ;;  %v2011_v36 = vpop.f32.mrf.mxu1 }
 0x13c   :  { %v405_v63 = vpop.f32.mrf.mxu0 }
 0x13d   :  { %1021 = vst [vmem:[%s2275_s3 + $0x120] sm:$0xff] %v957_v37  ;;  %v958_v38 = vmax.f32 %v561_v3, 0.0  ;;  %v565_v29 = vadd.f32 %v1858_v41, %v404_v18  ;;  %v406_v9 = vadd.f32 %v405_v63, %v1880_v55  ;;  %v2018_v48 = vpop.f32.mrf.mxu1  ;;  %v218_v37 = vsub.s32 2, %v1779_v31 }
 0x13e   :  { %v409_v57 = vpop.f32.mrf.mxu0 }
 0x13f   :  { %1022 = vst [vmem:[%s2275_s3 + $0x128] sm:$0xff] %v958_v38  ;;  %v961_v40 = vmax.f32 %v565_v29, 0.0  ;;  %v567_v16 = vadd.f32 %v1860_v42, %v406_v9  ;;  %v410_v39 = vadd.f32 %v409_v57, %v1877_v53  ;;  %v2025_v60 = vpop.f32.mrf.mxu1 }
 0x140   :  { %v411_v1 = vpop.f32.mrf.mxu0 }
 0x141   :  { %1025 = vst [vmem:[%s2275_s3 + $0x140] sm:$0xff] %v961_v40  ;;  %v962_v41 = vmax.f32 %v567_v16, 0.0  ;;  %v571_v30 = vadd.f32 %v1862_v43, %v410_v39  ;;  %v412_v19 = vadd.f32 %v411_v1, %v1880_v55  ;;  %v2032_v2 = vpop.f32.mrf.mxu1  ;;  %v2071_v40 = vrot.slane %v1790_v27, %v218_v37 }
 0x142   :  { %v415_v8 = vpop.f32.mrf.mxu0 }
 0x143   :  { %1026 = vst [vmem:[%s2275_s3 + $0x148] sm:$0xff] %v962_v41  ;;  %v965_v42 = vmax.f32 %v571_v30, 0.0  ;;  %v573_v33 = vadd.f32 %v1864_v44, %v412_v19  ;;  %v416_v49 = vadd.f32 %v415_v8, %v1877_v53  ;;  %v2039_v10 = vpop.f32.mrf.mxu1 }
 0x144   :  { %v417_v14 = vpop.f32.mrf.mxu0 }
 0x145   :  { %1029 = vst [vmem:[%s2275_s3 + $0x160] sm:$0xff] %v965_v42  ;;  %v966_v43 = vmax.f32 %v573_v33, 0.0  ;;  %v577_v34 = vadd.f32 %v1866_v46, %v416_v49  ;;  %v418_v59 = vadd.f32 %v417_v14, %v1880_v55  ;;  %v2046_v15 = vpop.f32.mrf.mxu1 }
 0x146   :  { %v421_v22 = vpop.f32.mrf.mxu0 }
 0x147   :  { %1030 = vst [vmem:[%s2275_s3 + $0x168] sm:$0xff] %v966_v43  ;;  %v969_v44 = vmax.f32 %v577_v34, 0.0  ;;  %v579_v35 = vadd.f32 %v1868_v47, %v418_v59  ;;  %v422_v6 = vadd.f32 %v421_v22, %v1877_v53  ;;  %v2053_v23 = vpop.f32.mrf.mxu1 }
 0x148   :  { %v423_v28 = vpop.f32.mrf.mxu0 }
 0x149   :  { %1033 = vst [vmem:[%s2275_s3 + $0x180] sm:$0xff] %v969_v44  ;;  %v970_v46 = vmax.f32 %v579_v35, 0.0  ;;  %v583_v3 = vadd.f32 %v1871_v50, %v422_v6  ;;  %v424_v18 = vadd.f32 %v423_v28, %v1880_v55  ;;  %v2061_v63 = vpop.f32.mrf.mxu1 }
 0x14a   :  { %v427_v38 = vpop.f32.mrf.mxu0 }
 0x14b   :  { %1034 = vst [vmem:[%s2275_s3 + $0x188] sm:$0xff] %v970_v46  ;;  %v973_v47 = vmax.f32 %v583_v3, 0.0  ;;  %v585_v29 = vadd.f32 %v1874_v52, %v424_v18  ;;  %v428_v31 = vadd.f32 %v427_v38, %v1877_v53  ;;  %v2068_v9 = vpop.f32.mrf.mxu1  ;;  %v678_v3 = vadd.f32 %v1927_v62, %v2071_v40 }
 0x14c   :  { %v429_v57 = vpop.f32.mrf.mxu0 }
 0x14d   :  { %1037 = vst [vmem:[%s2275_s3 + $0x1a0] sm:$0xff] %v973_v47  ;;  %v974_v50 = vmax.f32 %v585_v29, 0.0  ;;  %v589_v16 = vadd.f32 %v1883_v58, %v428_v31  ;;  %v430_v39 = vadd.f32 %v429_v57, %v1880_v55  ;;  %v2078_v1 = vpop.f32.mrf.mxu1  ;;  %v666_v58 = vadd.f32 %v1901_v21, %v2071_v40 }
 0x14e   :  { %v433_v52 = vpop.f32.mrf.mxu0  ;;  %v720_v47 = vadd.f32 %v2025_v60, %v2071_v40  ;;  %v680_v31 = vadd.f32 %v1934_v5, %v1794_v32 }
 0x14f   :  { %1038 = vst [vmem:[%s2275_s3 + $0x1a8] sm:$0xff] %v974_v50  ;;  %v977_v41 = vmax.f32 %v589_v16, 0.0  ;;  %v591_v27 = vadd.f32 %v1886_v0, %v430_v39  ;;  %v434_v30 = vadd.f32 %v433_v52, %v1877_v53  ;;  %v2085_v19 = vpop.f32.mrf.mxu1  ;;  %v668_v53 = vadd.f32 %v1907_v26, %v1794_v32 }
 0x150   :  { %v435_v8 = vpop.f32.mrf.mxu0  ;;  %v722_v16 = vadd.f32 %v2032_v2, %v1794_v32  ;;  %v686_v2 = vadd.f32 %v1948_v20, %v1794_v32  ;;  %v690_v20 = vadd.f32 %v1955_v25, %v2071_v40  ;;  %v692_v25 = vadd.f32 %v1962_v45, %v1794_v32 }
 0x151   :  { %1041 = vst [vmem:[%s2275_s3 + $0x1c0] sm:$0xff] %v977_v41  ;;  %v978_v42 = vmax.f32 %v591_v27, 0.0  ;;  %v595_v33 = vadd.f32 %v1889_v7, %v434_v30  ;;  %v436_v49 = vadd.f32 %v435_v8, %v1880_v55  ;;  %v2094_v14 = vpop.f32.mrf.mxu1  ;;  %v672_v55 = vadd.f32 %v1913_v54, %v2071_v40 }
 0x152   :  { %v826_v0 = vpop.f32.mrf.mxu0  ;;  %v684_v41 = vadd.f32 %v1941_v12, %v2071_v40  ;;  %v726_v30 = vadd.f32 %v2039_v10, %v2071_v40  ;;  %v696_v45 = vadd.f32 %v1969_v51, %v2071_v40  ;;  %v698_v51 = vadd.f32 %v1976_v61, %v1794_v32 }
 0x153   :  { %1042 = vst [vmem:[%s2275_s3 + $0x1c8] sm:$0xff] %v978_v42  ;;  %v981_v21 = vmax.f32 %v595_v33, 0.0  ;;  %v597_v43 = vadd.f32 %v1895_v13, %v436_v49  ;;  %v2102_v34 = vpop.f32.mrf.mxu1  ;;  %v827_v59 = vadd.f32 %v826_v0, %v666_v58  ;;  %v674_v13 = vadd.f32 %v1920_v56, %v1794_v32 }
 0x154   :  { %v828_v22 = vpop.f32.mrf.mxu0  ;;  %v728_v0 = vadd.f32 %v2046_v15, %v1794_v32  ;;  %v732_v15 = vadd.f32 %v2053_v23, %v2071_v40  ;;  %v734_v23 = vadd.f32 %v2061_v63, %v1794_v32  ;;  %v738_v63 = vadd.f32 %v2068_v9, %v2071_v40 }
 0x155   :  { %1045 = vst [vmem:[%s2275_s3 + $0x1e0] sm:$0xff] %v981_v21  ;;  %v982_v7 = vmax.f32 %v597_v43, 0.0  ;;  %v923_v26 = vmax.f32 %v827_v59, 0.0  ;;  %v2109_v44 = vpop.f32.mrf.mxu1  ;;  %v829_v35 = vadd.f32 %v828_v22, %v668_v53  ;;  %v740_v9 = vadd.f32 %v2078_v1, %v1794_v32 }
 0x156   :  { %v832_v6 = vpop.f32.mrf.mxu0  ;;  %v702_v61 = vadd.f32 %v1983_v4, %v2071_v40  ;;  %v744_v1 = vadd.f32 %v2085_v19, %v2071_v40  ;;  %v704_v4 = vadd.f32 %v1990_v11, %v1794_v32  ;;  %v746_v19 = vadd.f32 %v2094_v14, %v1794_v32 }
 0x157   :  { %1046 = vst [vmem:[%s2275_s3 + $0x1e8] sm:$0xff] %v982_v7  ;;  %987 = vst [vmem:[%s2275_s3 + $0x10] sm:$0xff] %v923_v26  ;;  %v924_v54 = vmax.f32 %v829_v35, 0.0  ;;  %v2119_v28 = vpop.f32.mrf.mxu1  ;;  %v833_v37 = vadd.f32 %v832_v6, %v672_v55  ;;  %v708_v11 = vadd.f32 %v1997_v17, %v2071_v40  ;;  %v750_v14 = vadd.f32 %v2102_v34, %v2071_v40 }
 0x158   :  { %v834_v46 = vpop.f32.mrf.mxu0  ;;  %v710_v17 = vadd.f32 %v2004_v24, %v1794_v32  ;;  %v752_v34 = vadd.f32 %v2109_v44, %v1794_v32  ;;  %v714_v24 = vadd.f32 %v2011_v36, %v2071_v40  ;;  %v756_v44 = vadd.f32 %v2119_v28, %v2071_v40 }
 0x159   :  { %988 = vst [vmem:[%s2275_s3 + $0x18] sm:$0xff] %v924_v54  ;;  %v927_v56 = vmax.f32 %v833_v37, 0.0  ;;  %v2126_v18 = vpop.f32.mrf.mxu1  ;;  %v835_v38 = vadd.f32 %v834_v46, %v674_v13  ;;  %v716_v36 = vadd.f32 %v2018_v48, %v1794_v32 }
 0x15a   :  { %v838_v29 = vpop.f32.mrf.mxu0  ;;  %v758_v40 = vadd.f32 %v2126_v18, %v1794_v32 }
 0x15b   :  { %991 = vst [vmem:[%s2275_s3 + $0x30] sm:$0xff] %v927_v56  ;;  %v928_v62 = vmax.f32 %v835_v38, 0.0  ;;  %v839_v57 = vadd.f32 %v838_v29, %v678_v3  ;;  %v880_v50 = vpop.f32.mrf.mxu1 }
 0x15c   :  { %v881_v39 = vadd.f32 %v880_v50, %v720_v47  ;;  %v840_v52 = vpop.f32.mrf.mxu0 }
 0x15d   :  { %992 = vst [vmem:[%s2275_s3 + $0x38] sm:$0xff] %v928_v62  ;;  %v931_v5 = vmax.f32 %v839_v57, 0.0  ;;  %v841_v60 = vadd.f32 %v840_v52, %v680_v31  ;;  %v882_v27 = vpop.f32.mrf.mxu1 }
 0x15e   :  { %v959_v8 = vmax.f32 %v881_v39, 0.0  ;;  %v883_v58 = vadd.f32 %v882_v27, %v722_v16  ;;  %v844_v42 = vpop.f32.mrf.mxu0 }
 0x15f   :  { %995 = vst [vmem:[%s2275_s3 + $0x50] sm:$0xff] %v931_v5  ;;  %v932_v12 = vmax.f32 %v841_v60, 0.0  ;;  %v845_v33 = vadd.f32 %v844_v42, %v684_v41  ;;  %v886_v49 = vpop.f32.mrf.mxu1 }
 0x160   :  { %1023 = vst [vmem:[%s2275_s3 + $0x130] sm:$0xff] %v959_v8  ;;  %v960_v10 = vmax.f32 %v883_v58, 0.0  ;;  %v887_v53 = vadd.f32 %v886_v49, %v726_v30  ;;  %v846_v21 = vpop.f32.mrf.mxu0 }
 0x161   :  { %996 = vst [vmem:[%s2275_s3 + $0x58] sm:$0xff] %v932_v12  ;;  %v935_v43 = vmax.f32 %v845_v33, 0.0  ;;  %v847_v59 = vadd.f32 %v846_v21, %v686_v2  ;;  %v888_v22 = vpop.f32.mrf.mxu1 }
 0x162   :  { %1024 = vst [vmem:[%s2275_s3 + $0x138] sm:$0xff] %v960_v10  ;;  %v963_v55 = vmax.f32 %v887_v53, 0.0  ;;  %v889_v7 = vadd.f32 %v888_v22, %v728_v0  ;;  %v850_v26 = vpop.f32.mrf.mxu0 }
 0x163   :  { %999 = vst [vmem:[%s2275_s3 + $0x70] sm:$0xff] %v935_v43  ;;  %v936_v35 = vmax.f32 %v847_v59, 0.0  ;;  %v851_v6 = vadd.f32 %v850_v26, %v690_v20  ;;  %v892_v13 = vpop.f32.mrf.mxu1 }
 0x164   :  { %1027 = vst [vmem:[%s2275_s3 + $0x150] sm:$0xff] %v963_v55  ;;  %v964_v54 = vmax.f32 %v889_v7, 0.0  ;;  %v893_v37 = vadd.f32 %v892_v13, %v732_v15  ;;  %v852_v46 = vpop.f32.mrf.mxu0 }
 0x165   :  { %1000 = vst [vmem:[%s2275_s3 + $0x78] sm:$0xff] %v936_v35  ;;  %v939_v3 = vmax.f32 %v851_v6, 0.0  ;;  %v853_v56 = vadd.f32 %v852_v46, %v692_v25  ;;  %v894_v38 = vpop.f32.mrf.mxu1 }
 0x166   :  { %1028 = vst [vmem:[%s2275_s3 + $0x158] sm:$0xff] %v964_v54  ;;  %v967_v47 = vmax.f32 %v893_v37, 0.0  ;;  %v895_v29 = vadd.f32 %v894_v38, %v734_v23  ;;  %v856_v31 = vpop.f32.mrf.mxu0 }
 0x167   :  { %1003 = vst [vmem:[%s2275_s3 + $0x90] sm:$0xff] %v939_v3  ;;  %v940_v62 = vmax.f32 %v853_v56, 0.0  ;;  %v857_v57 = vadd.f32 %v856_v31, %v696_v45  ;;  %v898_v50 = vpop.f32.mrf.mxu1 }
 0x168   :  { %1031 = vst [vmem:[%s2275_s3 + $0x170] sm:$0xff] %v967_v47  ;;  %v968_v16 = vmax.f32 %v895_v29, 0.0  ;;  %v899_v39 = vadd.f32 %v898_v50, %v738_v63  ;;  %v858_v52 = vpop.f32.mrf.mxu0 }
 0x169   :  { %1004 = vst [vmem:[%s2275_s3 + $0x98] sm:$0xff] %v940_v62  ;;  %v943_v41 = vmax.f32 %v857_v57, 0.0  ;;  %v859_v5 = vadd.f32 %v858_v52, %v698_v51  ;;  %v900_v60 = vpop.f32.mrf.mxu1 }
 0x16a   :  { %1032 = vst [vmem:[%s2275_s3 + $0x178] sm:$0xff] %v968_v16  ;;  %v971_v27 = vmax.f32 %v899_v39, 0.0  ;;  %v901_v30 = vadd.f32 %v900_v60, %v740_v9  ;;  %v862_v8 = vpop.f32.mrf.mxu0 }
 0x16b   :  { %1007 = vst [vmem:[%s2275_s3 + $0xb0] sm:$0xff] %v943_v41  ;;  %v944_v58 = vmax.f32 %v859_v5, 0.0  ;;  %v863_v42 = vadd.f32 %v862_v8, %v702_v61  ;;  %v904_v2 = vpop.f32.mrf.mxu1 }
 0x16c   :  { %1035 = vst [vmem:[%s2275_s3 + $0x190] sm:$0xff] %v971_v27  ;;  %v972_v12 = vmax.f32 %v901_v30, 0.0  ;;  %v905_v33 = vadd.f32 %v904_v2, %v744_v1  ;;  %v864_v49 = vpop.f32.mrf.mxu0 }
 0x16d   :  { %1008 = vst [vmem:[%s2275_s3 + $0xb8] sm:$0xff] %v944_v58  ;;  %v947_v0 = vmax.f32 %v863_v42, 0.0  ;;  %v865_v10 = vadd.f32 %v864_v49, %v704_v4  ;;  %v906_v53 = vpop.f32.mrf.mxu1 }
 0x16e   :  { %1036 = vst [vmem:[%s2275_s3 + $0x198] sm:$0xff] %v972_v12  ;;  %v975_v21 = vmax.f32 %v905_v33, 0.0  ;;  %v907_v20 = vadd.f32 %v906_v53, %v746_v19  ;;  %v868_v43 = vpop.f32.mrf.mxu0 }
 0x16f   :  { %1011 = vst [vmem:[%s2275_s3 + $0xd0] sm:$0xff] %v947_v0  ;;  %v948_v59 = vmax.f32 %v865_v10, 0.0  ;;  %v869_v22 = vadd.f32 %v868_v43, %v708_v11  ;;  %v910_v15 = vpop.f32.mrf.mxu1 }
 0x170   :  { %1039 = vst [vmem:[%s2275_s3 + $0x1b0] sm:$0xff] %v975_v21  ;;  %v976_v55 = vmax.f32 %v907_v20, 0.0  ;;  %v911_v7 = vadd.f32 %v910_v15, %v750_v14  ;;  %v870_v26 = vpop.f32.mrf.mxu0 }
 0x171   :  { %1012 = vst [vmem:[%s2275_s3 + $0xd8] sm:$0xff] %v948_v59  ;;  %v951_v25 = vmax.f32 %v869_v22, 0.0  ;;  %v871_v35 = vadd.f32 %v870_v26, %v710_v17  ;;  %v912_v6 = vpop.f32.mrf.mxu1 }
 0x172   :  { %1040 = vst [vmem:[%s2275_s3 + $0x1b8] sm:$0xff] %v976_v55  ;;  %v979_v13 = vmax.f32 %v911_v7, 0.0  ;;  %v913_v23 = vadd.f32 %v912_v6, %v752_v34  ;;  %v874_v54 = vpop.f32.mrf.mxu0 }
 0x173   :  { %1015 = vst [vmem:[%s2275_s3 + $0xf0] sm:$0xff] %v951_v25  ;;  %v952_v37 = vmax.f32 %v871_v35, 0.0  ;;  %v875_v46 = vadd.f32 %v874_v54, %v714_v24  ;;  %v916_v45 = vpop.f32.mrf.mxu1 }
 0x174   :  { %1043 = vst [vmem:[%s2275_s3 + $0x1d0] sm:$0xff] %v979_v13  ;;  %v980_v28 = vmax.f32 %v913_v23, 0.0  ;;  %v917_v3 = vadd.f32 %v916_v45, %v756_v44  ;;  %v876_v56 = vpop.f32.mrf.mxu0 }
 0x175   :  { %1016 = vst [vmem:[%s2275_s3 + $0xf8] sm:$0xff] %v952_v37  ;;  %v955_v48 = vmax.f32 %v875_v46, 0.0  ;;  %v877_v38 = vadd.f32 %v876_v56, %v716_v36  ;;  %v918_v63 = vpop.f32.mrf.mxu1 }
 0x176   :  { %1044 = vst [vmem:[%s2275_s3 + $0x1d8] sm:$0xff] %v980_v28  ;;  %v983_v47 = vmax.f32 %v917_v3, 0.0  ;;  %v919_v32 = vadd.f32 %v918_v63, %v758_v40 }
 0x177   :  { %1019 = vst [vmem:[%s2275_s3 + $0x110] sm:$0xff] %v955_v48  ;;  %v956_v18 = vmax.f32 %v877_v38, 0.0 }
 0x178   :  { %1047 = vst [vmem:[%s2275_s3 + $0x1f0] sm:$0xff] %v983_v47  ;;  %v984_v29 = vmax.f32 %v919_v32, 0.0 }
 0x179   :  { %1020 = vst [vmem:[%s2275_s3 + $0x118] sm:$0xff] %v956_v18 }
 0x17a   :  { %1048 = vst [vmem:[%s2275_s3 + $0x1f8] sm:$0xff] %v984_v29 }

// kernel: forward.13
= control target key start
LH: loop header
LB: loop body
LE: loop exit
PB: predicated region body
PF: predicated region fallthrough
CT: control target
= control target key end

     0   :  { %vm236_vm0 = vcmask 130048   ;;  %s3498_s1 = inlined_call_operand.vmem [shape: f32[144,512], index: 1, kind: input, shape index: {}]   ;;  %s3499_s0 = inlined_call_operand.vmem [shape: f32[512,144], index: 0, kind: input, shape index: {}]   ;;  %s3500_s2 = inlined_call_operand.vmem [shape: f32[1,512], index: 2, kind: input, shape index: {}]   ;;  %s3501_s3 = inlined_call_operand.vmem [shape: f32[512,512], index: 3, kind: output, shape index: {}]  }
   0x1   :  { %v203_v0 = vld [vmem:[%s3498_s1 + $0x1e8] sm:$0xff]  ;;  %v205_v1 = vld [vmem:[%s3498_s1 + $0x1f8] sm:$0xff]  ;;  %v202_v2 = vld [vmem:[%s3498_s1 + $0x1e0] sm:$0xff] }
   0x2   :  { %429 = vmatprep.subr.mxu0 %v203_v0  ;;  %878 = vmatprep.subr.mxu1 %v205_v1  ;;  %v204_v3 = vld [vmem:[%s3498_s1 + $0x1f0] sm:$0xff]  ;;  %v199_v4 = vld [vmem:[%s3498_s1 + $0x1c8] sm:$0xff]  ;;  %v201_v5 = vld [vmem:[%s3498_s1 + $0x1d8] sm:$0xff] }
   0x3   :  { %430 = vmatpush1.msra.mxu0 %v202_v2  ;;  %879 = vmatpush1.msra.mxu1 %v204_v3  ;;  %v198_v6 = vld [vmem:[%s3498_s1 + $0x1c0] sm:$0xff]  ;;  %v200_v7 = vld [vmem:[%s3498_s1 + $0x1d0] sm:$0xff]  ;;  %v195_v8 = vld [vmem:[%s3498_s1 + $0x1a8] sm:$0xff] }
   0x4   :  { %431 = vmatprep.subr.mxu0 %v199_v4  ;;  %880 = vmatprep.subr.mxu1 %v201_v5  ;;  %v197_v9 = vld [vmem:[%s3498_s1 + $0x1b8] sm:$0xff]  ;;  %v194_v10 = vld [vmem:[%s3498_s1 + $0x1a0] sm:$0xff]  ;;  %v196_v11 = vld [vmem:[%s3498_s1 + $0x1b0] sm:$0xff] }
   0x5   :  { %432 = vmatpush1.msra.mxu0 %v198_v6  ;;  %881 = vmatpush1.msra.mxu1 %v200_v7  ;;  %v191_v12 = vld [vmem:[%s3498_s1 + $0x188] sm:$0xff]  ;;  %v193_v13 = vld [vmem:[%s3498_s1 + $0x198] sm:$0xff]  ;;  %v190_v14 = vld [vmem:[%s3498_s1 + $0x180] sm:$0xff] }
   0x6   :  { %433 = vmatprep.subr.mxu0 %v195_v8  ;;  %882 = vmatprep.subr.mxu1 %v197_v9  ;;  %v192_v15 = vld [vmem:[%s3498_s1 + $0x190] sm:$0xff]  ;;  %v187_v16 = vld [vmem:[%s3498_s1 + $0x168] sm:$0xff]  ;;  %v189_v17 = vld [vmem:[%s3498_s1 + $0x178] sm:$0xff] }
   0x7   :  { %434 = vmatpush1.msra.mxu0 %v194_v10  ;;  %883 = vmatpush1.msra.mxu1 %v196_v11  ;;  %v186_v18 = vld [vmem:[%s3498_s1 + $0x160] sm:$0xff]  ;;  %v188_v19 = vld [vmem:[%s3498_s1 + $0x170] sm:$0xff]  ;;  %v183_v20 = vld [vmem:[%s3498_s1 + $0x148] sm:$0xff] }
   0x8   :  { %435 = vmatprep.subr.mxu0 %v191_v12  ;;  %884 = vmatprep.subr.mxu1 %v193_v13  ;;  %v185_v21 = vld [vmem:[%s3498_s1 + $0x158] sm:$0xff]  ;;  %v182_v22 = vld [vmem:[%s3498_s1 + $0x140] sm:$0xff]  ;;  %v184_v23 = vld [vmem:[%s3498_s1 + $0x150] sm:$0xff] }
   0x9   :  { %436 = vmatpush1.msra.mxu0 %v190_v14  ;;  %885 = vmatpush1.msra.mxu1 %v192_v15  ;;  %v179_v24 = vld [vmem:[%s3498_s1 + $0x128] sm:$0xff]  ;;  %v181_v25 = vld [vmem:[%s3498_s1 + $0x138] sm:$0xff]  ;;  %v178_v26 = vld [vmem:[%s3498_s1 + $0x120] sm:$0xff] }
   0xa   :  { %437 = vmatprep.subr.mxu0 %v187_v16  ;;  %886 = vmatprep.subr.mxu1 %v189_v17  ;;  %v180_v27 = vld [vmem:[%s3498_s1 + $0x130] sm:$0xff]  ;;  %v175_v28 = vld [vmem:[%s3498_s1 + $0x108] sm:$0xff]  ;;  %v177_v29 = vld [vmem:[%s3498_s1 + $0x118] sm:$0xff] }
   0xb   :  { %438 = vmatpush1.msra.mxu0 %v186_v18  ;;  %887 = vmatpush1.msra.mxu1 %v188_v19  ;;  %v174_v30 = vld [vmem:[%s3498_s1 + $0x100] sm:$0xff]  ;;  %v176_v31 = vld [vmem:[%s3498_s1 + $0x110] sm:$0xff]  ;;  %v171_v32 = vld [vmem:[%s3498_s1 + $0xe8] sm:$0xff] }
   0xc   :  { %439 = vmatprep.subr.mxu0 %v183_v20  ;;  %888 = vmatprep.subr.mxu1 %v185_v21  ;;  %v173_v33 = vld [vmem:[%s3498_s1 + $0xf8] sm:$0xff]  ;;  %v170_v34 = vld [vmem:[%s3498_s1 + $0xe0] sm:$0xff]  ;;  %v172_v35 = vld [vmem:[%s3498_s1 + $0xf0] sm:$0xff] }
   0xd   :  { %440 = vmatpush1.msra.mxu0 %v182_v22  ;;  %889 = vmatpush1.msra.mxu1 %v184_v23  ;;  %v167_v36 = vld [vmem:[%s3498_s1 + $0xc8] sm:$0xff]  ;;  %v169_v37 = vld [vmem:[%s3498_s1 + $0xd8] sm:$0xff]  ;;  %v166_v38 = vld [vmem:[%s3498_s1 + $0xc0] sm:$0xff] }
   0xe   :  { %441 = vmatprep.subr.mxu0 %v179_v24  ;;  %890 = vmatprep.subr.mxu1 %v181_v25  ;;  %v168_v39 = vld [vmem:[%s3498_s1 + $0xd0] sm:$0xff]  ;;  %v163_v40 = vld [vmem:[%s3498_s1 + $0xa8] sm:$0xff]  ;;  %v165_v41 = vld [vmem:[%s3498_s1 + $0xb8] sm:$0xff] }
   0xf   :  { %442 = vmatpush1.msra.mxu0 %v178_v26  ;;  %891 = vmatpush1.msra.mxu1 %v180_v27  ;;  %v162_v42 = vld [vmem:[%s3498_s1 + $0xa0] sm:$0xff]  ;;  %v164_v43 = vld [vmem:[%s3498_s1 + $0xb0] sm:$0xff]  ;;  %v159_v44 = vld [vmem:[%s3498_s1 + $0x88] sm:$0xff] }
  0x10   :  { %443 = vmatprep.subr.mxu0 %v175_v28  ;;  %892 = vmatprep.subr.mxu1 %v177_v29  ;;  %v161_v45 = vld [vmem:[%s3498_s1 + $0x98] sm:$0xff]  ;;  %v158_v46 = vld [vmem:[%s3498_s1 + $0x80] sm:$0xff]  ;;  %v160_v47 = vld [vmem:[%s3498_s1 + $0x90] sm:$0xff] }
  0x11   :  { %444 = vmatpush1.msra.mxu0 %v174_v30  ;;  %893 = vmatpush1.msra.mxu1 %v176_v31  ;;  %v155_v48 = vld [vmem:[%s3498_s1 + $0x68] sm:$0xff]  ;;  %v157_v49 = vld [vmem:[%s3498_s1 + $0x78] sm:$0xff]  ;;  %v154_v50 = vld [vmem:[%s3498_s1 + $0x60] sm:$0xff] }
  0x12   :  { %445 = vmatprep.subr.mxu0 %v171_v32  ;;  %894 = vmatprep.subr.mxu1 %v173_v33  ;;  %v156_v51 = vld [vmem:[%s3498_s1 + $0x70] sm:$0xff]  ;;  %v151_v52 = vld [vmem:[%s3498_s1 + $0x48] sm:$0xff]  ;;  %v153_v53 = vld [vmem:[%s3498_s1 + $0x58] sm:$0xff] }
  0x13   :  { %446 = vmatpush1.msra.mxu0 %v170_v34  ;;  %895 = vmatpush1.msra.mxu1 %v172_v35  ;;  %v150_v54 = vld [vmem:[%s3498_s1 + $0x40] sm:$0xff]  ;;  %v152_v55 = vld [vmem:[%s3498_s1 + $0x50] sm:$0xff]  ;;  %v147_v56 = vld [vmem:[%s3498_s1 + $0x28] sm:$0xff] }
  0x14   :  { %447 = vmatprep.subr.mxu0 %v167_v36  ;;  %896 = vmatprep.subr.mxu1 %v169_v37  ;;  %v149_v57 = vld [vmem:[%s3498_s1 + $0x38] sm:$0xff]  ;;  %v146_v58 = vld [vmem:[%s3498_s1 + $0x20] sm:$0xff]  ;;  %v148_v59 = vld [vmem:[%s3498_s1 + $0x30] sm:$0xff] }
  0x15   :  { %448 = vmatpush1.msra.mxu0 %v166_v38  ;;  %897 = vmatpush1.msra.mxu1 %v168_v39  ;;  %v143_v60 = vld [vmem:[%s3498_s1 + $0x8] sm:$0xff]  ;;  %v145_v61 = vld [vmem:[%s3498_s1 + $0x18] sm:$0xff]  ;;  %v142_v62 = vld [vmem:[%s3498_s1] sm:$0xff] }
  0x16   :  { %449 = vmatprep.subr.mxu0 %v163_v40  ;;  %898 = vmatprep.subr.mxu1 %v165_v41  ;;  %v144_v63 = vld [vmem:[%s3498_s1 + $0x10] sm:$0xff]  ;;  %v211_v0 = vld [vmem:[%s3498_s1 + $0x228] sm:$0xff]  ;;  %v213_v1 = vld [vmem:[%s3498_s1 + $0x238] sm:$0xff] }
  0x17   :  { %450 = vmatpush1.msra.mxu0 %v162_v42  ;;  %899 = vmatpush1.msra.mxu1 %v164_v43  ;;  %v210_v2 = vld [vmem:[%s3498_s1 + $0x220] sm:$0xff]  ;;  %v212_v3 = vld [vmem:[%s3498_s1 + $0x230] sm:$0xff]  ;;  %v207_v4 = vld [vmem:[%s3498_s1 + $0x208] sm:$0xff] }
  0x18   :  { %451 = vmatprep.subr.mxu0 %v159_v44  ;;  %900 = vmatprep.subr.mxu1 %v161_v45  ;;  %v209_v5 = vld [vmem:[%s3498_s1 + $0x218] sm:$0xff]  ;;  %v206_v6 = vld [vmem:[%s3498_s1 + $0x200] sm:$0xff]  ;;  %v15_v7 = vld [vmem:[%s3499_s0 + $0x8] sm:$0xff] }
  0x19   :  { %452 = vmatpush1.msra.mxu0 %v158_v46  ;;  %901 = vmatpush1.msra.mxu1 %v160_v47  ;;  %v208_v8 = vld [vmem:[%s3498_s1 + $0x210] sm:$0xff]  ;;  %v14_v9 = vld [vmem:[%s3499_s0] sm:$0xff]  ;;  %v17_v10 = vld [vmem:[%s3499_s0 + $0x18] sm:$0xff] }
  0x1a   :  { %453 = vmatprep.subr.mxu0 %v155_v48  ;;  %902 = vmatprep.subr.mxu1 %v157_v49  ;;  %v16_v11 = vld [vmem:[%s3499_s0 + $0x10] sm:$0xff]  ;;  %v19_v12 = vld [vmem:[%s3499_s0 + $0x28] sm:$0xff]  ;;  %v18_v13 = vld [vmem:[%s3499_s0 + $0x20] sm:$0xff] }
  0x1b   :  { %454 = vmatpush1.msra.mxu0 %v154_v50  ;;  %903 = vmatpush1.msra.mxu1 %v156_v51  ;;  %v21_v14 = vld [vmem:[%s3499_s0 + $0x38] sm:$0xff]  ;;  %v20_v15 = vld [vmem:[%s3499_s0 + $0x30] sm:$0xff]  ;;  %v23_v16 = vld [vmem:[%s3499_s0 + $0x48] sm:$0xff] }
  0x1c   :  { %455 = vmatprep.subr.mxu0 %v151_v52  ;;  %904 = vmatprep.subr.mxu1 %v153_v53  ;;  %v22_v17 = vld [vmem:[%s3499_s0 + $0x40] sm:$0xff]  ;;  %v25_v18 = vld [vmem:[%s3499_s0 + $0x58] sm:$0xff]  ;;  %v24_v19 = vld [vmem:[%s3499_s0 + $0x50] sm:$0xff] }
  0x1d   :  { %456 = vmatpush1.msra.mxu0 %v150_v54  ;;  %905 = vmatpush1.msra.mxu1 %v152_v55  ;;  %v27_v20 = vld [vmem:[%s3499_s0 + $0x68] sm:$0xff]  ;;  %v26_v21 = vld [vmem:[%s3499_s0 + $0x60] sm:$0xff]  ;;  %v29_v22 = vld [vmem:[%s3499_s0 + $0x78] sm:$0xff] }
  0x1e   :  { %457 = vmatprep.subr.mxu0 %v147_v56  ;;  %906 = vmatprep.subr.mxu1 %v149_v57  ;;  %v28_v23 = vld [vmem:[%s3499_s0 + $0x70] sm:$0xff]  ;;  %v31_v24 = vld [vmem:[%s3499_s0 + $0x88] sm:$0xff]  ;;  %v30_v25 = vld [vmem:[%s3499_s0 + $0x80] sm:$0xff] }
  0x1f   :  { %458 = vmatpush1.msra.mxu0 %v146_v58  ;;  %907 = vmatpush1.msra.mxu1 %v148_v59  ;;  %v33_v26 = vld [vmem:[%s3499_s0 + $0x98] sm:$0xff]  ;;  %v32_v27 = vld [vmem:[%s3499_s0 + $0x90] sm:$0xff]  ;;  %v35_v28 = vld [vmem:[%s3499_s0 + $0xa8] sm:$0xff] }
  0x20   :  { %459 = vmatprep.subr.mxu0 %v143_v60  ;;  %908 = vmatprep.subr.mxu1 %v145_v61  ;;  %v34_v29 = vld [vmem:[%s3499_s0 + $0xa0] sm:$0xff]  ;;  %v37_v30 = vld [vmem:[%s3499_s0 + $0xb8] sm:$0xff]  ;;  %v36_v31 = vld [vmem:[%s3499_s0 + $0xb0] sm:$0xff] }
  0x21   :  { %460 = vmatpush1.msra.mxu0 %v142_v62  ;;  %909 = vmatpush1.msra.mxu1 %v144_v63  ;;  %v39_v32 = vld [vmem:[%s3499_s0 + $0xc8] sm:$0xff]  ;;  %v38_v33 = vld [vmem:[%s3499_s0 + $0xc0] sm:$0xff]  ;;  %v41_v34 = vld [vmem:[%s3499_s0 + $0xd8] sm:$0xff] }
  0x22   :  { %489 = vmatprep.subr.mxu0 %v211_v0  ;;  %938 = vmatprep.subr.mxu1 %v213_v1  ;;  %v40_v35 = vld [vmem:[%s3499_s0 + $0xd0] sm:$0xff]  ;;  %v43_v36 = vld [vmem:[%s3499_s0 + $0xe8] sm:$0xff]  ;;  %v42_v37 = vld [vmem:[%s3499_s0 + $0xe0] sm:$0xff] }
  0x23   :  { %490 = vmatpush2.msra.mxu0 %v210_v2  ;;  %939 = vmatpush2.msra.mxu1 %v212_v3  ;;  %v45_v38 = vld [vmem:[%s3499_s0 + $0xf8] sm:$0xff]  ;;  %v44_v39 = vld [vmem:[%s3499_s0 + $0xf0] sm:$0xff]  ;;  %v47_v40 = vld [vmem:[%s3499_s0 + $0x108] sm:$0xff] }
  0x24   :  { %491 = vmatprep.subr.mxu0 %v207_v4  ;;  %940 = vmatprep.subr.mxu1 %v209_v5  ;;  %v46_v41 = vld [vmem:[%s3499_s0 + $0x100] sm:$0xff]  ;;  %v49_v42 = vld [vmem:[%s3499_s0 + $0x118] sm:$0xff]  ;;  %v48_v43 = vld [vmem:[%s3499_s0 + $0x110] sm:$0xff] }
  0x25   :  { %492 = vmatpush2.msra.mxu0 %v206_v6  ;;  %1587 = vmatprep.mubr.msk.f32.mxu0 %vm236_vm0, %v15_v7  ;;  %v51_v44 = vld [vmem:[%s3499_s0 + $0x128] sm:$0xff]  ;;  %v50_v45 = vld [vmem:[%s3499_s0 + $0x120] sm:$0xff]  ;;  %v53_v46 = vld [vmem:[%s3499_s0 + $0x138] sm:$0xff] }
  0x26   :  { %941 = vmatpush2.msra.mxu1 %v208_v8  ;;  %1651 = vmatprep.mubr.msk.f32.mxu1 %vm236_vm0, %v15_v7  ;;  %v52_v47 = vld [vmem:[%s3499_s0 + $0x130] sm:$0xff]  ;;  %v55_v48 = vld [vmem:[%s3499_s0 + $0x148] sm:$0xff]  ;;  %v54_v49 = vld [vmem:[%s3499_s0 + $0x140] sm:$0xff] }
  0x27   :  { %494 = vmatmul.mubr.f32.vlgmr.msra.gmra.mxu0 %v14_v9  ;;  %943 = vmatmul.mubr.f32.vlgmr.msra.gmra.mxu1 %v14_v9  ;;  %v57_v50 = vld [vmem:[%s3499_s0 + $0x158] sm:$0xff]  ;;  %v56_v51 = vld [vmem:[%s3499_s0 + $0x150] sm:$0xff]  ;;  %v59_v52 = vld [vmem:[%s3499_s0 + $0x168] sm:$0xff] }
  0x28   :  { %1588 = vmatprep.mubr.msk.f32.mxu0 %vm236_vm0, %v17_v10  ;;  %1652 = vmatprep.mubr.msk.f32.mxu1 %vm236_vm0, %v17_v10  ;;  %v58_v53 = vld [vmem:[%s3499_s0 + $0x160] sm:$0xff]  ;;  %v61_v54 = vld [vmem:[%s3499_s0 + $0x178] sm:$0xff]  ;;  %v60_v55 = vld [vmem:[%s3499_s0 + $0x170] sm:$0xff] }
  0x29   :  { %v63_v56 = vld [vmem:[%s3499_s0 + $0x188] sm:$0xff]  ;;  %v62_v57 = vld [vmem:[%s3499_s0 + $0x180] sm:$0xff]  ;;  %v65_v58 = vld [vmem:[%s3499_s0 + $0x198] sm:$0xff] }
  0x2a   :  { %v64_v59 = vld [vmem:[%s3499_s0 + $0x190] sm:$0xff]  ;;  %v67_v60 = vld [vmem:[%s3499_s0 + $0x1a8] sm:$0xff]  ;;  %v66_v61 = vld [vmem:[%s3499_s0 + $0x1a0] sm:$0xff] }
  0x2b   :  { %500 = vmatmul.mubr.f32.gmra.mxu0 %v16_v11  ;;  %949 = vmatmul.mubr.f32.gmra.mxu1 %v16_v11  ;;  %v69_v62 = vld [vmem:[%s3499_s0 + $0x1b8] sm:$0xff]  ;;  %v68_v63 = vld [vmem:[%s3499_s0 + $0x1b0] sm:$0xff]  ;;  %v71_v0 = vld [vmem:[%s3499_s0 + $0x1c8] sm:$0xff] }
  0x2c   :  { %1589 = vmatprep.mubr.msk.f32.mxu0 %vm236_vm0, %v19_v12  ;;  %1653 = vmatprep.mubr.msk.f32.mxu1 %vm236_vm0, %v19_v12  ;;  %v70_v1 = vld [vmem:[%s3499_s0 + $0x1c0] sm:$0xff]  ;;  %v73_v2 = vld [vmem:[%s3499_s0 + $0x1d8] sm:$0xff]  ;;  %v72_v3 = vld [vmem:[%s3499_s0 + $0x1d0] sm:$0xff] }
  0x2d   :  { %v75_v4 = vld [vmem:[%s3499_s0 + $0x1e8] sm:$0xff]  ;;  %v74_v5 = vld [vmem:[%s3499_s0 + $0x1e0] sm:$0xff]  ;;  %v77_v6 = vld [vmem:[%s3499_s0 + $0x1f8] sm:$0xff] }
  0x2e   :  { %v76_v7 = vld [vmem:[%s3499_s0 + $0x1f0] sm:$0xff]  ;;  %v79_v8 = vld [vmem:[%s3499_s0 + $0x208] sm:$0xff]  ;;  %v78_v9 = vld [vmem:[%s3499_s0 + $0x200] sm:$0xff] }
  0x2f   :  { %506 = vmatmul.mubr.f32.gmra.mxu0 %v18_v13  ;;  %955 = vmatmul.mubr.f32.gmra.mxu1 %v18_v13  ;;  %v81_v10 = vld [vmem:[%s3499_s0 + $0x218] sm:$0xff]  ;;  %v80_v11 = vld [vmem:[%s3499_s0 + $0x210] sm:$0xff]  ;;  %v83_v12 = vld [vmem:[%s3499_s0 + $0x228] sm:$0xff] }
  0x30   :  { %1590 = vmatprep.mubr.msk.f32.mxu0 %vm236_vm0, %v21_v14  ;;  %1654 = vmatprep.mubr.msk.f32.mxu1 %vm236_vm0, %v21_v14  ;;  %v82_v13 = vld [vmem:[%s3499_s0 + $0x220] sm:$0xff]  ;;  %v85_v14 = vld [vmem:[%s3499_s0 + $0x238] sm:$0xff] }
  0x33   :  { %512 = vmatmul.mubr.f32.gmra.mxu0 %v20_v15  ;;  %961 = vmatmul.mubr.f32.gmra.mxu1 %v20_v15  ;;  %v84_v15 = vld [vmem:[%s3499_s0 + $0x230] sm:$0xff] }
  0x34   :  { %1591 = vmatprep.mubr.msk.f32.mxu0 %vm236_vm0, %v23_v16  ;;  %1655 = vmatprep.mubr.msk.f32.mxu1 %vm236_vm0, %v23_v16  ;;  %v87_v16 = vld [vmem:[%s3499_s0 + $0x248] sm:$0xff] }
  0x37   :  { %518 = vmatmul.mubr.f32.gmra.mxu0 %v22_v17  ;;  %967 = vmatmul.mubr.f32.gmra.mxu1 %v22_v17  ;;  %v86_v17 = vld [vmem:[%s3499_s0 + $0x240] sm:$0xff] }
  0x38   :  { %1592 = vmatprep.mubr.msk.f32.mxu0 %vm236_vm0, %v25_v18  ;;  %1656 = vmatprep.mubr.msk.f32.mxu1 %vm236_vm0, %v25_v18  ;;  %v89_v18 = vld [vmem:[%s3499_s0 + $0x258] sm:$0xff] }
  0x3b   :  { %524 = vmatmul.mubr.f32.gmra.mxu0 %v24_v19  ;;  %973 = vmatmul.mubr.f32.gmra.mxu1 %v24_v19  ;;  %v88_v19 = vld [vmem:[%s3499_s0 + $0x250] sm:$0xff] }
  0x3c   :  { %1593 = vmatprep.mubr.msk.f32.mxu0 %vm236_vm0, %v27_v20  ;;  %1657 = vmatprep.mubr.msk.f32.mxu1 %vm236_vm0, %v27_v20  ;;  %v91_v20 = vld [vmem:[%s3499_s0 + $0x268] sm:$0xff] }
  0x3f   :  { %530 = vmatmul.mubr.f32.gmra.mxu0 %v26_v21  ;;  %979 = vmatmul.mubr.f32.gmra.mxu1 %v26_v21  ;;  %v90_v21 = vld [vmem:[%s3499_s0 + $0x260] sm:$0xff] }
  0x40   :  { %1594 = vmatprep.mubr.msk.f32.mxu0 %vm236_vm0, %v29_v22  ;;  %1658 = vmatprep.mubr.msk.f32.mxu1 %vm236_vm0, %v29_v22  ;;  %v93_v22 = vld [vmem:[%s3499_s0 + $0x278] sm:$0xff] }
  0x43   :  { %536 = vmatmul.mubr.f32.gmra.mxu0 %v28_v23  ;;  %985 = vmatmul.mubr.f32.gmra.mxu1 %v28_v23  ;;  %v92_v23 = vld [vmem:[%s3499_s0 + $0x270] sm:$0xff] }
  0x44   :  { %1595 = vmatprep.mubr.msk.f32.mxu0 %vm236_vm0, %v31_v24  ;;  %1659 = vmatprep.mubr.msk.f32.mxu1 %vm236_vm0, %v31_v24  ;;  %v95_v24 = vld [vmem:[%s3499_s0 + $0x288] sm:$0xff] }
  0x47   :  { %542 = vmatmul.mubr.f32.gmra.mxu0 %v30_v25  ;;  %991 = vmatmul.mubr.f32.gmra.mxu1 %v30_v25  ;;  %v94_v25 = vld [vmem:[%s3499_s0 + $0x280] sm:$0xff] }
  0x48   :  { %1596 = vmatprep.mubr.msk.f32.mxu0 %vm236_vm0, %v33_v26  ;;  %1660 = vmatprep.mubr.msk.f32.mxu1 %vm236_vm0, %v33_v26  ;;  %v97_v26 = vld [vmem:[%s3499_s0 + $0x298] sm:$0xff] }
  0x4b   :  { %548 = vmatmul.mubr.f32.gmra.mxu0 %v32_v27  ;;  %997 = vmatmul.mubr.f32.gmra.mxu1 %v32_v27  ;;  %v96_v27 = vld [vmem:[%s3499_s0 + $0x290] sm:$0xff] }
  0x4c   :  { %1597 = vmatprep.mubr.msk.f32.mxu0 %vm236_vm0, %v35_v28  ;;  %1661 = vmatprep.mubr.msk.f32.mxu1 %vm236_vm0, %v35_v28  ;;  %v99_v28 = vld [vmem:[%s3499_s0 + $0x2a8] sm:$0xff] }
  0x4f   :  { %554 = vmatmul.mubr.f32.gmra.mxu0 %v34_v29  ;;  %1003 = vmatmul.mubr.f32.gmra.mxu1 %v34_v29  ;;  %v98_v29 = vld [vmem:[%s3499_s0 + $0x2a0] sm:$0xff] }
  0x50   :  { %1598 = vmatprep.mubr.msk.f32.mxu0 %vm236_vm0, %v37_v30  ;;  %1662 = vmatprep.mubr.msk.f32.mxu1 %vm236_vm0, %v37_v30  ;;  %v101_v30 = vld [vmem:[%s3499_s0 + $0x2b8] sm:$0xff] }
  0x53   :  { %560 = vmatmul.mubr.f32.gmra.mxu0 %v36_v31  ;;  %1009 = vmatmul.mubr.f32.gmra.mxu1 %v36_v31  ;;  %v100_v31 = vld [vmem:[%s3499_s0 + $0x2b0] sm:$0xff] }
  0x54   :  { %1599 = vmatprep.mubr.msk.f32.mxu0 %vm236_vm0, %v39_v32  ;;  %1663 = vmatprep.mubr.msk.f32.mxu1 %vm236_vm0, %v39_v32  ;;  %v103_v32 = vld [vmem:[%s3499_s0 + $0x2c8] sm:$0xff] }
  0x57   :  { %566 = vmatmul.mubr.f32.gmra.mxu0 %v38_v33  ;;  %1015 = vmatmul.mubr.f32.gmra.mxu1 %v38_v33  ;;  %v102_v33 = vld [vmem:[%s3499_s0 + $0x2c0] sm:$0xff] }
  0x58   :  { %1600 = vmatprep.mubr.msk.f32.mxu0 %vm236_vm0, %v41_v34  ;;  %1664 = vmatprep.mubr.msk.f32.mxu1 %vm236_vm0, %v41_v34  ;;  %v105_v34 = vld [vmem:[%s3499_s0 + $0x2d8] sm:$0xff] }
  0x5b   :  { %572 = vmatmul.mubr.f32.gmra.mxu0 %v40_v35  ;;  %1021 = vmatmul.mubr.f32.gmra.mxu1 %v40_v35  ;;  %v104_v35 = vld [vmem:[%s3499_s0 + $0x2d0] sm:$0xff] }
  0x5c   :  { %1601 = vmatprep.mubr.msk.f32.mxu0 %vm236_vm0, %v43_v36  ;;  %1665 = vmatprep.mubr.msk.f32.mxu1 %vm236_vm0, %v43_v36  ;;  %v216_v36 = vlaneseq }
  0x5f   :  { %578 = vmatmul.mubr.f32.gmra.mxu0 %v42_v37  ;;  %1027 = vmatmul.mubr.f32.gmra.mxu1 %v42_v37  ;;  %v107_v37 = vld [vmem:[%s3499_s0 + $0x2e8] sm:$0xff] }
  0x60   :  { %1602 = vmatprep.mubr.msk.f32.mxu0 %vm236_vm0, %v45_v38  ;;  %1666 = vmatprep.mubr.msk.f32.mxu1 %vm236_vm0, %v45_v38  ;;  %v106_v38 = vld [vmem:[%s3499_s0 + $0x2e0] sm:$0xff] }
  0x63   :  { %584 = vmatmul.mubr.f32.gmra.mxu0 %v44_v39  ;;  %1033 = vmatmul.mubr.f32.gmra.mxu1 %v44_v39  ;;  %v217_v39 = vshrl.u32 %v216_v36, 7 }
  0x64   :  { %1603 = vmatprep.mubr.msk.f32.mxu0 %vm236_vm0, %v47_v40  ;;  %1667 = vmatprep.mubr.msk.f32.mxu1 %vm236_vm0, %v47_v40  ;;  %v109_v40 = vld [vmem:[%s3499_s0 + $0x2f8] sm:$0xff] }
  0x67   :  { %590 = vmatmul.mubr.f32.gmra.mxu0 %v46_v41  ;;  %1039 = vmatmul.mubr.f32.gmra.mxu1 %v46_v41  ;;  %v108_v41 = vld [vmem:[%s3499_s0 + $0x2f0] sm:$0xff] }
  0x68   :  { %1604 = vmatprep.mubr.msk.f32.mxu0 %vm236_vm0, %v49_v42  ;;  %1668 = vmatprep.mubr.msk.f32.mxu1 %vm236_vm0, %v49_v42  ;;  %v218_v42 = vsub.s32 0, %v217_v39 }
  0x6b   :  { %596 = vmatmul.mubr.f32.gmra.mxu0 %v48_v43  ;;  %1045 = vmatmul.mubr.f32.gmra.mxu1 %v48_v43  ;;  %v226_v43 = vsub.s32 2, %v217_v39 }
  0x6c   :  { %1605 = vmatprep.mubr.msk.f32.mxu0 %vm236_vm0, %v51_v44  ;;  %1669 = vmatprep.mubr.msk.f32.mxu1 %vm236_vm0, %v51_v44  ;;  %v111_v44 = vld [vmem:[%s3499_s0 + $0x308] sm:$0xff] }
  0x6f   :  { %602 = vmatmul.mubr.f32.gmra.mxu0 %v50_v45  ;;  %1051 = vmatmul.mubr.f32.gmra.mxu1 %v50_v45  ;;  %v214_v45 = vld [vmem:[%s3500_s2] sm:$0xf] }
  0x70   :  { %1606 = vmatprep.mubr.msk.f32.mxu0 %vm236_vm0, %v53_v46  ;;  %1670 = vmatprep.mubr.msk.f32.mxu1 %vm236_vm0, %v53_v46  ;;  %v222_v46 = vsub.s32 1, %v217_v39 }
  0x73   :  { %608 = vmatmul.mubr.f32.gmra.mxu0 %v52_v47  ;;  %1057 = vmatmul.mubr.f32.gmra.mxu1 %v52_v47  ;;  %v230_v47 = vsub.s32 3, %v217_v39 }
  0x74   :  { %1607 = vmatprep.mubr.msk.f32.mxu0 %vm236_vm0, %v55_v48  ;;  %1671 = vmatprep.mubr.msk.f32.mxu1 %vm236_vm0, %v55_v48  ;;  %v2343_v48 = vrot.slane %v214_v45, %v218_v42 }
  0x77   :  { %614 = vmatmul.mubr.f32.gmra.mxu0 %v54_v49  ;;  %1063 = vmatmul.mubr.f32.gmra.mxu1 %v54_v49  ;;  %v110_v49 = vld [vmem:[%s3499_s0 + $0x300] sm:$0xff] }
  0x78   :  { %1608 = vmatprep.mubr.msk.f32.mxu0 %vm236_vm0, %v57_v50  ;;  %1672 = vmatprep.mubr.msk.f32.mxu1 %vm236_vm0, %v57_v50  ;;  %v2348_v50 = vrot.slane %v214_v45, %v226_v43 }
  0x7b   :  { %620 = vmatmul.mubr.f32.gmra.mxu0 %v56_v51  ;;  %1069 = vmatmul.mubr.f32.gmra.mxu1 %v56_v51  ;;  %v113_v51 = vld [vmem:[%s3499_s0 + $0x318] sm:$0xff] }
  0x7c   :  { %1609 = vmatprep.mubr.msk.f32.mxu0 %vm236_vm0, %v59_v52  ;;  %1673 = vmatprep.mubr.msk.f32.mxu1 %vm236_vm0, %v59_v52  ;;  %v2353_v52 = vrot.slane %v214_v45, %v222_v46 }
  0x7f   :  { %626 = vmatmul.mubr.f32.gmra.mxu0 %v58_v53  ;;  %1075 = vmatmul.mubr.f32.gmra.mxu1 %v58_v53  ;;  %v2355_v53 = vrot.slane %v214_v45, %v230_v47  ;;  %v125_v47 = vld [vmem:[%s3499_s0 + $0x378] sm:$0xff] }
  0x80   :  { %1610 = vmatprep.mubr.msk.f32.mxu0 %vm236_vm0, %v61_v54  ;;  %1674 = vmatprep.mubr.msk.f32.mxu1 %vm236_vm0, %v61_v54 }
  0x83   :  { %632 = vmatmul.mubr.f32.gmra.mxu0 %v60_v55  ;;  %1081 = vmatmul.mubr.f32.gmra.mxu1 %v60_v55 }
  0x84   :  { %1611 = vmatprep.mubr.msk.f32.mxu0 %vm236_vm0, %v63_v56  ;;  %1675 = vmatprep.mubr.msk.f32.mxu1 %vm236_vm0, %v63_v56 }
  0x87   :  { %638 = vmatmul.mubr.f32.gmra.mxu0 %v62_v57  ;;  %1087 = vmatmul.mubr.f32.gmra.mxu1 %v62_v57 }
  0x88   :  { %1612 = vmatprep.mubr.msk.f32.mxu0 %vm236_vm0, %v65_v58  ;;  %1676 = vmatprep.mubr.msk.f32.mxu1 %vm236_vm0, %v65_v58  ;;  %v112_v58 = vld [vmem:[%s3499_s0 + $0x310] sm:$0xff] }
  0x8b   :  { %644 = vmatmul.mubr.f32.gmra.mxu0 %v64_v59  ;;  %1093 = vmatmul.mubr.f32.gmra.mxu1 %v64_v59 }
  0x8c   :  { %1613 = vmatprep.mubr.msk.f32.mxu0 %vm236_vm0, %v67_v60  ;;  %1677 = vmatprep.mubr.msk.f32.mxu1 %vm236_vm0, %v67_v60 }
  0x8f   :  { %650 = vmatmul.mubr.f32.gmra.mxu0 %v66_v61  ;;  %1099 = vmatmul.mubr.f32.gmra.mxu1 %v66_v61  ;;  %v115_v61 = vld [vmem:[%s3499_s0 + $0x328] sm:$0xff] }
  0x90   :  { %1614 = vmatprep.mubr.msk.f32.mxu0 %vm236_vm0, %v69_v62  ;;  %1678 = vmatprep.mubr.msk.f32.mxu1 %vm236_vm0, %v69_v62 }
  0x93   :  { %656 = vmatmul.mubr.f32.gmra.mxu0 %v68_v63  ;;  %1105 = vmatmul.mubr.f32.gmra.mxu1 %v68_v63 }
  0x94   :  { %1615 = vmatprep.mubr.msk.f32.mxu0 %vm236_vm0, %v71_v0  ;;  %1679 = vmatprep.mubr.msk.f32.mxu1 %vm236_vm0, %v71_v0 }
  0x97   :  { %662 = vmatmul.mubr.f32.gmra.mxu0 %v70_v1  ;;  %1111 = vmatmul.mubr.f32.gmra.mxu1 %v70_v1 }
  0x98   :  { %1616 = vmatprep.mubr.msk.f32.mxu0 %vm236_vm0, %v73_v2  ;;  %1680 = vmatprep.mubr.msk.f32.mxu1 %vm236_vm0, %v73_v2 }
  0x9b   :  { %668 = vmatmul.mubr.f32.gmra.mxu0 %v72_v3  ;;  %1117 = vmatmul.mubr.f32.gmra.mxu1 %v72_v3 }
  0x9c   :  { %1617 = vmatprep.mubr.msk.f32.mxu0 %vm236_vm0, %v75_v4  ;;  %1681 = vmatprep.mubr.msk.f32.mxu1 %vm236_vm0, %v75_v4  ;;  %v114_v4 = vld [vmem:[%s3499_s0 + $0x320] sm:$0xff] }
  0x9f   :  { %674 = vmatmul.mubr.f32.gmra.mxu0 %v74_v5  ;;  %1123 = vmatmul.mubr.f32.gmra.mxu1 %v74_v5 }
  0xa0   :  { %1618 = vmatprep.mubr.msk.f32.mxu0 %vm236_vm0, %v77_v6  ;;  %1682 = vmatprep.mubr.msk.f32.mxu1 %vm236_vm0, %v77_v6 }
  0xa3   :  { %680 = vmatmul.mubr.f32.gmra.mxu0 %v76_v7  ;;  %1129 = vmatmul.mubr.f32.gmra.mxu1 %v76_v7  ;;  %v117_v7 = vld [vmem:[%s3499_s0 + $0x338] sm:$0xff] }
  0xa4   :  { %1619 = vmatprep.mubr.msk.f32.mxu0 %vm236_vm0, %v79_v8  ;;  %1683 = vmatprep.mubr.msk.f32.mxu1 %vm236_vm0, %v79_v8 }
  0xa7   :  { %686 = vmatmul.mubr.f32.gmra.mxu0 %v78_v9  ;;  %1135 = vmatmul.mubr.f32.gmra.mxu1 %v78_v9 }
  0xa8   :  { %1620 = vmatprep.mubr.msk.f32.mxu0 %vm236_vm0, %v81_v10  ;;  %1684 = vmatprep.mubr.msk.f32.mxu1 %vm236_vm0, %v81_v10 }
  0xab   :  { %692 = vmatmul.mubr.f32.gmra.mxu0 %v80_v11  ;;  %1141 = vmatmul.mubr.f32.gmra.mxu1 %v80_v11 }
  0xac   :  { %1621 = vmatprep.mubr.msk.f32.mxu0 %vm236_vm0, %v83_v12  ;;  %1685 = vmatprep.mubr.msk.f32.mxu1 %vm236_vm0, %v83_v12 }
  0xaf   :  { %698 = vmatmul.mubr.f32.gmra.mxu0 %v82_v13  ;;  %1147 = vmatmul.mubr.f32.gmra.mxu1 %v82_v13 }
  0xb0   :  { %1622 = vmatprep.mubr.msk.f32.mxu0 %vm236_vm0, %v85_v14  ;;  %1686 = vmatprep.mubr.msk.f32.mxu1 %vm236_vm0, %v85_v14  ;;  %v116_v14 = vld [vmem:[%s3499_s0 + $0x330] sm:$0xff] }
  0xb3   :  { %704 = vmatmul.mubr.f32.gmra.mxu0 %v84_v15  ;;  %1153 = vmatmul.mubr.f32.gmra.mxu1 %v84_v15 }
  0xb4   :  { %1623 = vmatprep.mubr.msk.f32.mxu0 %vm236_vm0, %v87_v16  ;;  %1687 = vmatprep.mubr.msk.f32.mxu1 %vm236_vm0, %v87_v16 }
  0xb7   :  { %710 = vmatmul.mubr.f32.gmra.mxu0 %v86_v17  ;;  %1159 = vmatmul.mubr.f32.gmra.mxu1 %v86_v17  ;;  %v119_v17 = vld [vmem:[%s3499_s0 + $0x348] sm:$0xff] }
  0xb8   :  { %1624 = vmatprep.mubr.msk.f32.mxu0 %vm236_vm0, %v89_v18  ;;  %1688 = vmatprep.mubr.msk.f32.mxu1 %vm236_vm0, %v89_v18 }
  0xbb   :  { %716 = vmatmul.mubr.f32.gmra.mxu0 %v88_v19  ;;  %1165 = vmatmul.mubr.f32.gmra.mxu1 %v88_v19 }
  0xbc   :  { %1625 = vmatprep.mubr.msk.f32.mxu0 %vm236_vm0, %v91_v20  ;;  %1689 = vmatprep.mubr.msk.f32.mxu1 %vm236_vm0, %v91_v20 }
  0xbf   :  { %722 = vmatmul.mubr.f32.gmra.mxu0 %v90_v21  ;;  %1171 = vmatmul.mubr.f32.gmra.mxu1 %v90_v21 }
  0xc0   :  { %1626 = vmatprep.mubr.msk.f32.mxu0 %vm236_vm0, %v93_v22  ;;  %1690 = vmatprep.mubr.msk.f32.mxu1 %vm236_vm0, %v93_v22 }
  0xc3   :  { %728 = vmatmul.mubr.f32.gmra.mxu0 %v92_v23  ;;  %1177 = vmatmul.mubr.f32.gmra.mxu1 %v92_v23 }
  0xc4   :  { %1627 = vmatprep.mubr.msk.f32.mxu0 %vm236_vm0, %v95_v24  ;;  %1691 = vmatprep.mubr.msk.f32.mxu1 %vm236_vm0, %v95_v24  ;;  %v118_v24 = vld [vmem:[%s3499_s0 + $0x340] sm:$0xff] }
  0xc7   :  { %734 = vmatmul.mubr.f32.gmra.mxu0 %v94_v25  ;;  %1183 = vmatmul.mubr.f32.gmra.mxu1 %v94_v25 }
  0xc8   :  { %1628 = vmatprep.mubr.msk.f32.mxu0 %vm236_vm0, %v97_v26  ;;  %1692 = vmatprep.mubr.msk.f32.mxu1 %vm236_vm0, %v97_v26 }
  0xcb   :  { %740 = vmatmul.mubr.f32.gmra.mxu0 %v96_v27  ;;  %1189 = vmatmul.mubr.f32.gmra.mxu1 %v96_v27  ;;  %v121_v27 = vld [vmem:[%s3499_s0 + $0x358] sm:$0xff] }
  0xcc   :  { %1629 = vmatprep.mubr.msk.f32.mxu0 %vm236_vm0, %v99_v28  ;;  %1693 = vmatprep.mubr.msk.f32.mxu1 %vm236_vm0, %v99_v28 }
  0xcf   :  { %746 = vmatmul.mubr.f32.gmra.mxu0 %v98_v29  ;;  %1195 = vmatmul.mubr.f32.gmra.mxu1 %v98_v29 }
  0xd0   :  { %1630 = vmatprep.mubr.msk.f32.mxu0 %vm236_vm0, %v101_v30  ;;  %1694 = vmatprep.mubr.msk.f32.mxu1 %vm236_vm0, %v101_v30 }
  0xd3   :  { %752 = vmatmul.mubr.f32.gmra.mxu0 %v100_v31  ;;  %1201 = vmatmul.mubr.f32.gmra.mxu1 %v100_v31 }
  0xd4   :  { %1631 = vmatprep.mubr.msk.f32.mxu0 %vm236_vm0, %v103_v32  ;;  %1695 = vmatprep.mubr.msk.f32.mxu1 %vm236_vm0, %v103_v32 }
  0xd7   :  { %758 = vmatmul.mubr.f32.gmra.mxu0 %v102_v33  ;;  %1207 = vmatmul.mubr.f32.gmra.mxu1 %v102_v33 }
  0xd8   :  { %1632 = vmatprep.mubr.msk.f32.mxu0 %vm236_vm0, %v105_v34  ;;  %1696 = vmatprep.mubr.msk.f32.mxu1 %vm236_vm0, %v105_v34  ;;  %v120_v34 = vld [vmem:[%s3499_s0 + $0x350] sm:$0xff] }
  0xdb   :  { %764 = vmatmul.mubr.f32.gmra.mxu0 %v104_v35  ;;  %1213 = vmatmul.mubr.f32.gmra.mxu1 %v104_v35 }
  0xdc   :  { %1633 = vmatprep.mubr.msk.f32.mxu0 %vm236_vm0, %v107_v37  ;;  %1697 = vmatprep.mubr.msk.f32.mxu1 %vm236_vm0, %v107_v37  ;;  %v123_v37 = vld [vmem:[%s3499_s0 + $0x368] sm:$0xff] }
  0xdf   :  { %770 = vmatmul.mubr.f32.gmra.mxu0 %v106_v38  ;;  %1219 = vmatmul.mubr.f32.gmra.mxu1 %v106_v38 }
  0xe0   :  { %1634 = vmatprep.mubr.msk.f32.mxu0 %vm236_vm0, %v109_v40  ;;  %1698 = vmatprep.mubr.msk.f32.mxu1 %vm236_vm0, %v109_v40 }
  0xe3   :  { %776 = vmatmul.mubr.f32.gmra.mxu0 %v108_v41  ;;  %1225 = vmatmul.mubr.f32.gmra.mxu1 %v108_v41 }
  0xe4   :  { %1635 = vmatprep.mubr.msk.f32.mxu0 %vm236_vm0, %v111_v44  ;;  %1699 = vmatprep.mubr.msk.f32.mxu1 %vm236_vm0, %v111_v44  ;;  %v122_v44 = vld [vmem:[%s3499_s0 + $0x360] sm:$0xff] }
  0xe7   :  { %v495_v54 = vpop.f32.mrf.mxu0  ;;  %782 = vmatmul.mubr.f32.gmra.mxu0 %v110_v49  ;;  %v944_v55 = vpop.f32.mrf.mxu1  ;;  %1231 = vmatmul.mubr.f32.gmra.mxu1 %v110_v49 }
  0xe8   :  { %v496_v56 = vadd.f32 %v495_v54, %v2343_v48  ;;  %v945_v57 = vadd.f32 %v944_v55, %v2348_v50  ;;  %1636 = vmatprep.mubr.msk.f32.mxu0 %vm236_vm0, %v113_v51  ;;  %1700 = vmatprep.mubr.msk.f32.mxu1 %vm236_vm0, %v113_v51 }
  0xe9   :  { %v497_v59 = vpop.f32.mrf.mxu0  ;;  %v946_v60 = vpop.f32.mrf.mxu1 }
  0xea   :  { %1327 = vst [vmem:[%s3501_s3] sm:$0xff] %v496_v56  ;;  %1329 = vst [vmem:[%s3501_s3 + $0x10] sm:$0xff] %v945_v57  ;;  %v498_v62 = vadd.f32 %v497_v59, %v2353_v52  ;;  %v947_v63 = vadd.f32 %v946_v60, %v2355_v53 }
  0xeb   :  { %v501_v0 = vpop.f32.mrf.mxu0  ;;  %788 = vmatmul.mubr.f32.gmra.mxu0 %v112_v58  ;;  %v950_v1 = vpop.f32.mrf.mxu1  ;;  %1237 = vmatmul.mubr.f32.gmra.mxu1 %v112_v58  ;;  %v124_v58 = vld [vmem:[%s3499_s0 + $0x370] sm:$0xff] }
  0xec   :  { %1328 = vst [vmem:[%s3501_s3 + $0x8] sm:$0xff] %v498_v62  ;;  %1330 = vst [vmem:[%s3501_s3 + $0x18] sm:$0xff] %v947_v63  ;;  %v502_v2 = vadd.f32 %v501_v0, %v2343_v48  ;;  %v951_v3 = vadd.f32 %v950_v1, %v2348_v50  ;;  %1637 = vmatprep.mubr.msk.f32.mxu0 %vm236_vm0, %v115_v61  ;;  %1701 = vmatprep.mubr.msk.f32.mxu1 %vm236_vm0, %v115_v61  ;;  %v127_v61 = vld [vmem:[%s3499_s0 + $0x388] sm:$0xff] }
  0xed   :  { %v503_v5 = vpop.f32.mrf.mxu0  ;;  %v952_v6 = vpop.f32.mrf.mxu1 }
  0xee   :  { %1331 = vst [vmem:[%s3501_s3 + $0x20] sm:$0xff] %v502_v2  ;;  %1333 = vst [vmem:[%s3501_s3 + $0x30] sm:$0xff] %v951_v3  ;;  %v504_v8 = vadd.f32 %v503_v5, %v2353_v52  ;;  %v953_v9 = vadd.f32 %v952_v6, %v2355_v53 }
  0xef   :  { %v507_v10 = vpop.f32.mrf.mxu0  ;;  %794 = vmatmul.mubr.f32.gmra.mxu0 %v114_v4  ;;  %v956_v11 = vpop.f32.mrf.mxu1  ;;  %1243 = vmatmul.mubr.f32.gmra.mxu1 %v114_v4  ;;  %v126_v4 = vld [vmem:[%s3499_s0 + $0x380] sm:$0xff] }
  0xf0   :  { %1332 = vst [vmem:[%s3501_s3 + $0x28] sm:$0xff] %v504_v8  ;;  %1334 = vst [vmem:[%s3501_s3 + $0x38] sm:$0xff] %v953_v9  ;;  %v508_v12 = vadd.f32 %v507_v10, %v2343_v48  ;;  %v957_v13 = vadd.f32 %v956_v11, %v2348_v50  ;;  %1638 = vmatprep.mubr.msk.f32.mxu0 %vm236_vm0, %v117_v7  ;;  %1702 = vmatprep.mubr.msk.f32.mxu1 %vm236_vm0, %v117_v7  ;;  %v129_v7 = vld [vmem:[%s3499_s0 + $0x398] sm:$0xff] }
  0xf1   :  { %v509_v15 = vpop.f32.mrf.mxu0  ;;  %v958_v16 = vpop.f32.mrf.mxu1 }
  0xf2   :  { %1335 = vst [vmem:[%s3501_s3 + $0x40] sm:$0xff] %v508_v12  ;;  %1337 = vst [vmem:[%s3501_s3 + $0x50] sm:$0xff] %v957_v13  ;;  %v510_v18 = vadd.f32 %v509_v15, %v2353_v52  ;;  %v959_v19 = vadd.f32 %v958_v16, %v2355_v53 }
  0xf3   :  { %v513_v20 = vpop.f32.mrf.mxu0  ;;  %800 = vmatmul.mubr.f32.gmra.mxu0 %v116_v14  ;;  %v962_v21 = vpop.f32.mrf.mxu1  ;;  %1249 = vmatmul.mubr.f32.gmra.mxu1 %v116_v14  ;;  %v128_v14 = vld [vmem:[%s3499_s0 + $0x390] sm:$0xff] }
  0xf4   :  { %1336 = vst [vmem:[%s3501_s3 + $0x48] sm:$0xff] %v510_v18  ;;  %1338 = vst [vmem:[%s3501_s3 + $0x58] sm:$0xff] %v959_v19  ;;  %v514_v22 = vadd.f32 %v513_v20, %v2343_v48  ;;  %v963_v23 = vadd.f32 %v962_v21, %v2348_v50  ;;  %1639 = vmatprep.mubr.msk.f32.mxu0 %vm236_vm0, %v119_v17  ;;  %1703 = vmatprep.mubr.msk.f32.mxu1 %vm236_vm0, %v119_v17  ;;  %v131_v17 = vld [vmem:[%s3499_s0 + $0x3a8] sm:$0xff] }
  0xf5   :  { %v515_v25 = vpop.f32.mrf.mxu0  ;;  %v964_v26 = vpop.f32.mrf.mxu1 }
  0xf6   :  { %1339 = vst [vmem:[%s3501_s3 + $0x60] sm:$0xff] %v514_v22  ;;  %1341 = vst [vmem:[%s3501_s3 + $0x70] sm:$0xff] %v963_v23  ;;  %v516_v28 = vadd.f32 %v515_v25, %v2353_v52  ;;  %v965_v29 = vadd.f32 %v964_v26, %v2355_v53 }
  0xf7   :  { %v519_v30 = vpop.f32.mrf.mxu0  ;;  %806 = vmatmul.mubr.f32.gmra.mxu0 %v118_v24  ;;  %v968_v31 = vpop.f32.mrf.mxu1  ;;  %1255 = vmatmul.mubr.f32.gmra.mxu1 %v118_v24  ;;  %v130_v24 = vld [vmem:[%s3499_s0 + $0x3a0] sm:$0xff] }
  0xf8   :  { %1340 = vst [vmem:[%s3501_s3 + $0x68] sm:$0xff] %v516_v28  ;;  %1342 = vst [vmem:[%s3501_s3 + $0x78] sm:$0xff] %v965_v29  ;;  %v520_v32 = vadd.f32 %v519_v30, %v2343_v48  ;;  %v969_v33 = vadd.f32 %v968_v31, %v2348_v50  ;;  %1640 = vmatprep.mubr.msk.f32.mxu0 %vm236_vm0, %v121_v27  ;;  %1704 = vmatprep.mubr.msk.f32.mxu1 %vm236_vm0, %v121_v27  ;;  %v133_v27 = vld [vmem:[%s3499_s0 + $0x3b8] sm:$0xff] }
  0xf9   :  { %v521_v35 = vpop.f32.mrf.mxu0  ;;  %v970_v36 = vpop.f32.mrf.mxu1 }
  0xfa   :  { %1343 = vst [vmem:[%s3501_s3 + $0x80] sm:$0xff] %v520_v32  ;;  %1345 = vst [vmem:[%s3501_s3 + $0x90] sm:$0xff] %v969_v33  ;;  %v522_v38 = vadd.f32 %v521_v35, %v2353_v52  ;;  %v971_v39 = vadd.f32 %v970_v36, %v2355_v53 }
  0xfb   :  { %v525_v40 = vpop.f32.mrf.mxu0  ;;  %812 = vmatmul.mubr.f32.gmra.mxu0 %v120_v34  ;;  %v974_v41 = vpop.f32.mrf.mxu1  ;;  %1261 = vmatmul.mubr.f32.gmra.mxu1 %v120_v34  ;;  %v132_v34 = vld [vmem:[%s3499_s0 + $0x3b0] sm:$0xff] }
  0xfc   :  { %1344 = vst [vmem:[%s3501_s3 + $0x88] sm:$0xff] %v522_v38  ;;  %1346 = vst [vmem:[%s3501_s3 + $0x98] sm:$0xff] %v971_v39  ;;  %v526_v42 = vadd.f32 %v525_v40, %v2343_v48  ;;  %v975_v43 = vadd.f32 %v974_v41, %v2348_v50  ;;  %1641 = vmatprep.mubr.msk.f32.mxu0 %vm236_vm0, %v123_v37  ;;  %1705 = vmatprep.mubr.msk.f32.mxu1 %vm236_vm0, %v123_v37  ;;  %v135_v37 = vld [vmem:[%s3499_s0 + $0x3c8] sm:$0xff] }
  0xfd   :  { %v527_v45 = vpop.f32.mrf.mxu0  ;;  %v976_v46 = vpop.f32.mrf.mxu1 }
  0xfe   :  { %1347 = vst [vmem:[%s3501_s3 + $0xa0] sm:$0xff] %v526_v42  ;;  %1349 = vst [vmem:[%s3501_s3 + $0xb0] sm:$0xff] %v975_v43  ;;  %v528_v49 = vadd.f32 %v527_v45, %v2353_v52  ;;  %v977_v51 = vadd.f32 %v976_v46, %v2355_v53 }
  0xff   :  { %v531_v54 = vpop.f32.mrf.mxu0  ;;  %818 = vmatmul.mubr.f32.gmra.mxu0 %v122_v44  ;;  %v980_v55 = vpop.f32.mrf.mxu1  ;;  %1267 = vmatmul.mubr.f32.gmra.mxu1 %v122_v44  ;;  %v134_v44 = vld [vmem:[%s3499_s0 + $0x3c0] sm:$0xff] }
 0x100   :  { %1348 = vst [vmem:[%s3501_s3 + $0xa8] sm:$0xff] %v528_v49  ;;  %1350 = vst [vmem:[%s3501_s3 + $0xb8] sm:$0xff] %v977_v51  ;;  %v532_v56 = vadd.f32 %v531_v54, %v2343_v48  ;;  %v981_v57 = vadd.f32 %v980_v55, %v2348_v50  ;;  %1642 = vmatprep.mubr.msk.f32.mxu0 %vm236_vm0, %v125_v47  ;;  %1706 = vmatprep.mubr.msk.f32.mxu1 %vm236_vm0, %v125_v47  ;;  %v137_v47 = vld [vmem:[%s3499_s0 + $0x3d8] sm:$0xff] }
 0x101   :  { %v533_v59 = vpop.f32.mrf.mxu0  ;;  %v982_v60 = vpop.f32.mrf.mxu1 }
 0x102   :  { %1351 = vst [vmem:[%s3501_s3 + $0xc0] sm:$0xff] %v532_v56  ;;  %1353 = vst [vmem:[%s3501_s3 + $0xd0] sm:$0xff] %v981_v57  ;;  %v534_v62 = vadd.f32 %v533_v59, %v2353_v52  ;;  %v983_v63 = vadd.f32 %v982_v60, %v2355_v53 }
 0x103   :  { %v537_v0 = vpop.f32.mrf.mxu0  ;;  %824 = vmatmul.mubr.f32.gmra.mxu0 %v124_v58  ;;  %v986_v1 = vpop.f32.mrf.mxu1  ;;  %1273 = vmatmul.mubr.f32.gmra.mxu1 %v124_v58  ;;  %v136_v58 = vld [vmem:[%s3499_s0 + $0x3d0] sm:$0xff] }
 0x104   :  { %1352 = vst [vmem:[%s3501_s3 + $0xc8] sm:$0xff] %v534_v62  ;;  %1354 = vst [vmem:[%s3501_s3 + $0xd8] sm:$0xff] %v983_v63  ;;  %v538_v2 = vadd.f32 %v537_v0, %v2343_v48  ;;  %v987_v3 = vadd.f32 %v986_v1, %v2348_v50  ;;  %1643 = vmatprep.mubr.msk.f32.mxu0 %vm236_vm0, %v127_v61  ;;  %1707 = vmatprep.mubr.msk.f32.mxu1 %vm236_vm0, %v127_v61  ;;  %v139_v61 = vld [vmem:[%s3499_s0 + $0x3e8] sm:$0xff] }
 0x105   :  { %v539_v5 = vpop.f32.mrf.mxu0  ;;  %v988_v6 = vpop.f32.mrf.mxu1 }
 0x106   :  { %1355 = vst [vmem:[%s3501_s3 + $0xe0] sm:$0xff] %v538_v2  ;;  %1357 = vst [vmem:[%s3501_s3 + $0xf0] sm:$0xff] %v987_v3  ;;  %v540_v8 = vadd.f32 %v539_v5, %v2353_v52  ;;  %v989_v9 = vadd.f32 %v988_v6, %v2355_v53 }
 0x107   :  { %v543_v10 = vpop.f32.mrf.mxu0  ;;  %830 = vmatmul.mubr.f32.gmra.mxu0 %v126_v4  ;;  %v992_v11 = vpop.f32.mrf.mxu1  ;;  %1279 = vmatmul.mubr.f32.gmra.mxu1 %v126_v4  ;;  %v138_v4 = vld [vmem:[%s3499_s0 + $0x3e0] sm:$0xff] }
 0x108   :  { %1356 = vst [vmem:[%s3501_s3 + $0xe8] sm:$0xff] %v540_v8  ;;  %1358 = vst [vmem:[%s3501_s3 + $0xf8] sm:$0xff] %v989_v9  ;;  %v544_v12 = vadd.f32 %v543_v10, %v2343_v48  ;;  %v993_v13 = vadd.f32 %v992_v11, %v2348_v50  ;;  %1644 = vmatprep.mubr.msk.f32.mxu0 %vm236_vm0, %v129_v7  ;;  %1708 = vmatprep.mubr.msk.f32.mxu1 %vm236_vm0, %v129_v7  ;;  %v141_v7 = vld [vmem:[%s3499_s0 + $0x3f8] sm:$0xff] }
 0x109   :  { %v545_v15 = vpop.f32.mrf.mxu0  ;;  %v994_v16 = vpop.f32.mrf.mxu1 }
 0x10a   :  { %1359 = vst [vmem:[%s3501_s3 + $0x100] sm:$0xff] %v544_v12  ;;  %1361 = vst [vmem:[%s3501_s3 + $0x110] sm:$0xff] %v993_v13  ;;  %v546_v18 = vadd.f32 %v545_v15, %v2353_v52  ;;  %v995_v19 = vadd.f32 %v994_v16, %v2355_v53 }
 0x10b   :  { %v549_v20 = vpop.f32.mrf.mxu0  ;;  %836 = vmatmul.mubr.f32.gmra.mxu0 %v128_v14  ;;  %v998_v21 = vpop.f32.mrf.mxu1  ;;  %1285 = vmatmul.mubr.f32.gmra.mxu1 %v128_v14  ;;  %v140_v14 = vld [vmem:[%s3499_s0 + $0x3f0] sm:$0xff] }
 0x10c   :  { %1360 = vst [vmem:[%s3501_s3 + $0x108] sm:$0xff] %v546_v18  ;;  %1362 = vst [vmem:[%s3501_s3 + $0x118] sm:$0xff] %v995_v19  ;;  %v550_v22 = vadd.f32 %v549_v20, %v2343_v48  ;;  %v999_v23 = vadd.f32 %v998_v21, %v2348_v50  ;;  %1645 = vmatprep.mubr.msk.f32.mxu0 %vm236_vm0, %v131_v17  ;;  %1709 = vmatprep.mubr.msk.f32.mxu1 %vm236_vm0, %v131_v17 }
 0x10d   :  { %v551_v25 = vpop.f32.mrf.mxu0  ;;  %v1000_v26 = vpop.f32.mrf.mxu1 }
 0x10e   :  { %1363 = vst [vmem:[%s3501_s3 + $0x120] sm:$0xff] %v550_v22  ;;  %1365 = vst [vmem:[%s3501_s3 + $0x130] sm:$0xff] %v999_v23  ;;  %v552_v28 = vadd.f32 %v551_v25, %v2353_v52  ;;  %v1001_v29 = vadd.f32 %v1000_v26, %v2355_v53 }
 0x10f   :  { %v555_v30 = vpop.f32.mrf.mxu0  ;;  %842 = vmatmul.mubr.f32.gmra.mxu0 %v130_v24  ;;  %v1004_v31 = vpop.f32.mrf.mxu1  ;;  %1291 = vmatmul.mubr.f32.gmra.mxu1 %v130_v24 }
 0x110   :  { %1364 = vst [vmem:[%s3501_s3 + $0x128] sm:$0xff] %v552_v28  ;;  %1366 = vst [vmem:[%s3501_s3 + $0x138] sm:$0xff] %v1001_v29  ;;  %v556_v32 = vadd.f32 %v555_v30, %v2343_v48  ;;  %v1005_v33 = vadd.f32 %v1004_v31, %v2348_v50  ;;  %1646 = vmatprep.mubr.msk.f32.mxu0 %vm236_vm0, %v133_v27  ;;  %1710 = vmatprep.mubr.msk.f32.mxu1 %vm236_vm0, %v133_v27 }
 0x111   :  { %v557_v35 = vpop.f32.mrf.mxu0  ;;  %v1006_v36 = vpop.f32.mrf.mxu1 }
 0x112   :  { %1367 = vst [vmem:[%s3501_s3 + $0x140] sm:$0xff] %v556_v32  ;;  %1369 = vst [vmem:[%s3501_s3 + $0x150] sm:$0xff] %v1005_v33  ;;  %v558_v38 = vadd.f32 %v557_v35, %v2353_v52  ;;  %v1007_v39 = vadd.f32 %v1006_v36, %v2355_v53 }
 0x113   :  { %v561_v40 = vpop.f32.mrf.mxu0  ;;  %848 = vmatmul.mubr.f32.gmra.mxu0 %v132_v34  ;;  %v1010_v41 = vpop.f32.mrf.mxu1  ;;  %1297 = vmatmul.mubr.f32.gmra.mxu1 %v132_v34 }
 0x114   :  { %1368 = vst [vmem:[%s3501_s3 + $0x148] sm:$0xff] %v558_v38  ;;  %1370 = vst [vmem:[%s3501_s3 + $0x158] sm:$0xff] %v1007_v39  ;;  %v562_v42 = vadd.f32 %v561_v40, %v2343_v48  ;;  %v1011_v43 = vadd.f32 %v1010_v41, %v2348_v50  ;;  %1647 = vmatprep.mubr.msk.f32.mxu0 %vm236_vm0, %v135_v37  ;;  %1711 = vmatprep.mubr.msk.f32.mxu1 %vm236_vm0, %v135_v37 }
 0x115   :  { %v563_v45 = vpop.f32.mrf.mxu0  ;;  %v1012_v46 = vpop.f32.mrf.mxu1 }
 0x116   :  { %1371 = vst [vmem:[%s3501_s3 + $0x160] sm:$0xff] %v562_v42  ;;  %1373 = vst [vmem:[%s3501_s3 + $0x170] sm:$0xff] %v1011_v43  ;;  %v564_v49 = vadd.f32 %v563_v45, %v2353_v52  ;;  %v1013_v51 = vadd.f32 %v1012_v46, %v2355_v53 }
 0x117   :  { %v567_v54 = vpop.f32.mrf.mxu0  ;;  %854 = vmatmul.mubr.f32.gmra.mxu0 %v134_v44  ;;  %v1016_v55 = vpop.f32.mrf.mxu1  ;;  %1303 = vmatmul.mubr.f32.gmra.mxu1 %v134_v44 }
 0x118   :  { %1372 = vst [vmem:[%s3501_s3 + $0x168] sm:$0xff] %v564_v49  ;;  %1374 = vst [vmem:[%s3501_s3 + $0x178] sm:$0xff] %v1013_v51  ;;  %v568_v56 = vadd.f32 %v567_v54, %v2343_v48  ;;  %v1017_v57 = vadd.f32 %v1016_v55, %v2348_v50  ;;  %1648 = vmatprep.mubr.msk.f32.mxu0 %vm236_vm0, %v137_v47  ;;  %1712 = vmatprep.mubr.msk.f32.mxu1 %vm236_vm0, %v137_v47 }
 0x119   :  { %v569_v59 = vpop.f32.mrf.mxu0  ;;  %v1018_v60 = vpop.f32.mrf.mxu1 }
 0x11a   :  { %1375 = vst [vmem:[%s3501_s3 + $0x180] sm:$0xff] %v568_v56  ;;  %1377 = vst [vmem:[%s3501_s3 + $0x190] sm:$0xff] %v1017_v57  ;;  %v570_v62 = vadd.f32 %v569_v59, %v2353_v52  ;;  %v1019_v63 = vadd.f32 %v1018_v60, %v2355_v53 }
 0x11b   :  { %v573_v0 = vpop.f32.mrf.mxu0  ;;  %860 = vmatmul.mubr.f32.gmra.mxu0 %v136_v58  ;;  %v1022_v1 = vpop.f32.mrf.mxu1  ;;  %1309 = vmatmul.mubr.f32.gmra.mxu1 %v136_v58 }
 0x11c   :  { %1376 = vst [vmem:[%s3501_s3 + $0x188] sm:$0xff] %v570_v62  ;;  %1378 = vst [vmem:[%s3501_s3 + $0x198] sm:$0xff] %v1019_v63  ;;  %v574_v2 = vadd.f32 %v573_v0, %v2343_v48  ;;  %v1023_v3 = vadd.f32 %v1022_v1, %v2348_v50  ;;  %1649 = vmatprep.mubr.msk.f32.mxu0 %vm236_vm0, %v139_v61  ;;  %1713 = vmatprep.mubr.msk.f32.mxu1 %vm236_vm0, %v139_v61 }
 0x11d   :  { %v575_v5 = vpop.f32.mrf.mxu0  ;;  %v1024_v6 = vpop.f32.mrf.mxu1 }
 0x11e   :  { %1379 = vst [vmem:[%s3501_s3 + $0x1a0] sm:$0xff] %v574_v2  ;;  %1381 = vst [vmem:[%s3501_s3 + $0x1b0] sm:$0xff] %v1023_v3  ;;  %v576_v8 = vadd.f32 %v575_v5, %v2353_v52  ;;  %v1025_v9 = vadd.f32 %v1024_v6, %v2355_v53 }
 0x11f   :  { %v579_v10 = vpop.f32.mrf.mxu0  ;;  %866 = vmatmul.mubr.f32.gmra.mxu0 %v138_v4  ;;  %v1028_v11 = vpop.f32.mrf.mxu1  ;;  %1315 = vmatmul.mubr.f32.gmra.mxu1 %v138_v4 }
 0x120   :  { %1380 = vst [vmem:[%s3501_s3 + $0x1a8] sm:$0xff] %v576_v8  ;;  %1382 = vst [vmem:[%s3501_s3 + $0x1b8] sm:$0xff] %v1025_v9  ;;  %v580_v12 = vadd.f32 %v579_v10, %v2343_v48  ;;  %v1029_v13 = vadd.f32 %v1028_v11, %v2348_v50  ;;  %1650 = vmatprep.mubr.msk.f32.mxu0 %vm236_vm0, %v141_v7  ;;  %1714 = vmatprep.mubr.msk.f32.mxu1 %vm236_vm0, %v141_v7 }
 0x121   :  { %v581_v15 = vpop.f32.mrf.mxu0  ;;  %v1030_v16 = vpop.f32.mrf.mxu1 }
 0x122   :  { %1383 = vst [vmem:[%s3501_s3 + $0x1c0] sm:$0xff] %v580_v12  ;;  %1385 = vst [vmem:[%s3501_s3 + $0x1d0] sm:$0xff] %v1029_v13  ;;  %v582_v17 = vadd.f32 %v581_v15, %v2353_v52  ;;  %v1031_v18 = vadd.f32 %v1030_v16, %v2355_v53 }
 0x123   :  { %v585_v19 = vpop.f32.mrf.mxu0  ;;  %872 = vmatmul.mubr.f32.gmra.mxu0 %v140_v14  ;;  %v1034_v20 = vpop.f32.mrf.mxu1  ;;  %1321 = vmatmul.mubr.f32.gmra.mxu1 %v140_v14 }
 0x124   :  { %1384 = vst [vmem:[%s3501_s3 + $0x1c8] sm:$0xff] %v582_v17  ;;  %1386 = vst [vmem:[%s3501_s3 + $0x1d8] sm:$0xff] %v1031_v18  ;;  %v586_v21 = vadd.f32 %v585_v19, %v2343_v48  ;;  %v1035_v22 = vadd.f32 %v1034_v20, %v2348_v50 }
 0x125   :  { %v587_v23 = vpop.f32.mrf.mxu0  ;;  %v1036_v24 = vpop.f32.mrf.mxu1 }
 0x126   :  { %1387 = vst [vmem:[%s3501_s3 + $0x1e0] sm:$0xff] %v586_v21  ;;  %1389 = vst [vmem:[%s3501_s3 + $0x1f0] sm:$0xff] %v1035_v22  ;;  %v588_v25 = vadd.f32 %v587_v23, %v2353_v52  ;;  %v1037_v26 = vadd.f32 %v1036_v24, %v2355_v53 }
 0x127   :  { %v591_v27 = vpop.f32.mrf.mxu0  ;;  %v1040_v28 = vpop.f32.mrf.mxu1 }
 0x128   :  { %1388 = vst [vmem:[%s3501_s3 + $0x1e8] sm:$0xff] %v588_v25  ;;  %1390 = vst [vmem:[%s3501_s3 + $0x1f8] sm:$0xff] %v1037_v26  ;;  %v592_v29 = vadd.f32 %v591_v27, %v2343_v48  ;;  %v1041_v30 = vadd.f32 %v1040_v28, %v2348_v50 }
 0x129   :  { %v593_v31 = vpop.f32.mrf.mxu0  ;;  %v1042_v32 = vpop.f32.mrf.mxu1 }
 0x12a   :  { %1391 = vst [vmem:[%s3501_s3 + $0x200] sm:$0xff] %v592_v29  ;;  %1393 = vst [vmem:[%s3501_s3 + $0x210] sm:$0xff] %v1041_v30  ;;  %v594_v33 = vadd.f32 %v593_v31, %v2353_v52  ;;  %v1043_v34 = vadd.f32 %v1042_v32, %v2355_v53 }
 0x12b   :  { %v597_v35 = vpop.f32.mrf.mxu0  ;;  %v1046_v36 = vpop.f32.mrf.mxu1 }
 0x12c   :  { %1392 = vst [vmem:[%s3501_s3 + $0x208] sm:$0xff] %v594_v33  ;;  %1394 = vst [vmem:[%s3501_s3 + $0x218] sm:$0xff] %v1043_v34  ;;  %v598_v37 = vadd.f32 %v597_v35, %v2343_v48  ;;  %v1047_v38 = vadd.f32 %v1046_v36, %v2348_v50 }
 0x12d   :  { %v599_v39 = vpop.f32.mrf.mxu0  ;;  %v1048_v40 = vpop.f32.mrf.mxu1 }
 0x12e   :  { %1395 = vst [vmem:[%s3501_s3 + $0x220] sm:$0xff] %v598_v37  ;;  %1397 = vst [vmem:[%s3501_s3 + $0x230] sm:$0xff] %v1047_v38  ;;  %v600_v41 = vadd.f32 %v599_v39, %v2353_v52  ;;  %v1049_v42 = vadd.f32 %v1048_v40, %v2355_v53 }
 0x12f   :  { %v603_v43 = vpop.f32.mrf.mxu0  ;;  %v1052_v44 = vpop.f32.mrf.mxu1 }
 0x130   :  { %1396 = vst [vmem:[%s3501_s3 + $0x228] sm:$0xff] %v600_v41  ;;  %1398 = vst [vmem:[%s3501_s3 + $0x238] sm:$0xff] %v1049_v42  ;;  %v604_v45 = vadd.f32 %v603_v43, %v2343_v48  ;;  %v1053_v46 = vadd.f32 %v1052_v44, %v2348_v50 }
 0x131   :  { %v605_v47 = vpop.f32.mrf.mxu0  ;;  %v1054_v49 = vpop.f32.mrf.mxu1 }
 0x132   :  { %1399 = vst [vmem:[%s3501_s3 + $0x240] sm:$0xff] %v604_v45  ;;  %1401 = vst [vmem:[%s3501_s3 + $0x250] sm:$0xff] %v1053_v46  ;;  %v606_v51 = vadd.f32 %v605_v47, %v2353_v52  ;;  %v1055_v54 = vadd.f32 %v1054_v49, %v2355_v53 }
 0x133   :  { %v609_v55 = vpop.f32.mrf.mxu0  ;;  %v1058_v56 = vpop.f32.mrf.mxu1 }
 0x134   :  { %1400 = vst [vmem:[%s3501_s3 + $0x248] sm:$0xff] %v606_v51  ;;  %1402 = vst [vmem:[%s3501_s3 + $0x258] sm:$0xff] %v1055_v54  ;;  %v610_v57 = vadd.f32 %v609_v55, %v2343_v48  ;;  %v1059_v58 = vadd.f32 %v1058_v56, %v2348_v50 }
 0x135   :  { %v611_v59 = vpop.f32.mrf.mxu0  ;;  %v1060_v60 = vpop.f32.mrf.mxu1 }
 0x136   :  { %1403 = vst [vmem:[%s3501_s3 + $0x260] sm:$0xff] %v610_v57  ;;  %1405 = vst [vmem:[%s3501_s3 + $0x270] sm:$0xff] %v1059_v58  ;;  %v612_v61 = vadd.f32 %v611_v59, %v2353_v52  ;;  %v1061_v62 = vadd.f32 %v1060_v60, %v2355_v53 }
 0x137   :  { %v615_v63 = vpop.f32.mrf.mxu0  ;;  %v1064_v0 = vpop.f32.mrf.mxu1 }
 0x138   :  { %1404 = vst [vmem:[%s3501_s3 + $0x268] sm:$0xff] %v612_v61  ;;  %1406 = vst [vmem:[%s3501_s3 + $0x278] sm:$0xff] %v1061_v62  ;;  %v616_v1 = vadd.f32 %v615_v63, %v2343_v48  ;;  %v1065_v2 = vadd.f32 %v1064_v0, %v2348_v50 }
 0x139   :  { %v617_v3 = vpop.f32.mrf.mxu0  ;;  %v1066_v4 = vpop.f32.mrf.mxu1 }
 0x13a   :  { %1407 = vst [vmem:[%s3501_s3 + $0x280] sm:$0xff] %v616_v1  ;;  %1409 = vst [vmem:[%s3501_s3 + $0x290] sm:$0xff] %v1065_v2  ;;  %v618_v5 = vadd.f32 %v617_v3, %v2353_v52  ;;  %v1067_v6 = vadd.f32 %v1066_v4, %v2355_v53 }
 0x13b   :  { %v621_v7 = vpop.f32.mrf.mxu0  ;;  %v1070_v8 = vpop.f32.mrf.mxu1 }
 0x13c   :  { %1408 = vst [vmem:[%s3501_s3 + $0x288] sm:$0xff] %v618_v5  ;;  %1410 = vst [vmem:[%s3501_s3 + $0x298] sm:$0xff] %v1067_v6  ;;  %v622_v9 = vadd.f32 %v621_v7, %v2343_v48  ;;  %v1071_v10 = vadd.f32 %v1070_v8, %v2348_v50 }
 0x13d   :  { %v623_v11 = vpop.f32.mrf.mxu0  ;;  %v1072_v12 = vpop.f32.mrf.mxu1 }
 0x13e   :  { %1411 = vst [vmem:[%s3501_s3 + $0x2a0] sm:$0xff] %v622_v9  ;;  %1413 = vst [vmem:[%s3501_s3 + $0x2b0] sm:$0xff] %v1071_v10  ;;  %v624_v13 = vadd.f32 %v623_v11, %v2353_v52  ;;  %v1073_v14 = vadd.f32 %v1072_v12, %v2355_v53 }
 0x13f   :  { %v627_v15 = vpop.f32.mrf.mxu0  ;;  %v1076_v16 = vpop.f32.mrf.mxu1 }
 0x140   :  { %1412 = vst [vmem:[%s3501_s3 + $0x2a8] sm:$0xff] %v624_v13  ;;  %1414 = vst [vmem:[%s3501_s3 + $0x2b8] sm:$0xff] %v1073_v14  ;;  %v628_v17 = vadd.f32 %v627_v15, %v2343_v48  ;;  %v1077_v18 = vadd.f32 %v1076_v16, %v2348_v50 }
 0x141   :  { %v629_v19 = vpop.f32.mrf.mxu0  ;;  %v1078_v20 = vpop.f32.mrf.mxu1 }
 0x142   :  { %1415 = vst [vmem:[%s3501_s3 + $0x2c0] sm:$0xff] %v628_v17  ;;  %1417 = vst [vmem:[%s3501_s3 + $0x2d0] sm:$0xff] %v1077_v18  ;;  %v630_v21 = vadd.f32 %v629_v19, %v2353_v52  ;;  %v1079_v22 = vadd.f32 %v1078_v20, %v2355_v53 }
 0x143   :  { %v633_v23 = vpop.f32.mrf.mxu0  ;;  %v1082_v24 = vpop.f32.mrf.mxu1 }
 0x144   :  { %1416 = vst [vmem:[%s3501_s3 + $0x2c8] sm:$0xff] %v630_v21  ;;  %1418 = vst [vmem:[%s3501_s3 + $0x2d8] sm:$0xff] %v1079_v22  ;;  %v634_v25 = vadd.f32 %v633_v23, %v2343_v48  ;;  %v1083_v26 = vadd.f32 %v1082_v24, %v2348_v50 }
 0x145   :  { %v635_v27 = vpop.f32.mrf.mxu0  ;;  %v1084_v28 = vpop.f32.mrf.mxu1 }
 0x146   :  { %1419 = vst [vmem:[%s3501_s3 + $0x2e0] sm:$0xff] %v634_v25  ;;  %1421 = vst [vmem:[%s3501_s3 + $0x2f0] sm:$0xff] %v1083_v26  ;;  %v636_v29 = vadd.f32 %v635_v27, %v2353_v52  ;;  %v1085_v30 = vadd.f32 %v1084_v28, %v2355_v53 }
 0x147   :  { %v639_v31 = vpop.f32.mrf.mxu0  ;;  %v1088_v32 = vpop.f32.mrf.mxu1 }
 0x148   :  { %1420 = vst [vmem:[%s3501_s3 + $0x2e8] sm:$0xff] %v636_v29  ;;  %1422 = vst [vmem:[%s3501_s3 + $0x2f8] sm:$0xff] %v1085_v30  ;;  %v640_v33 = vadd.f32 %v639_v31, %v2343_v48  ;;  %v1089_v34 = vadd.f32 %v1088_v32, %v2348_v50 }
 0x149   :  { %v641_v35 = vpop.f32.mrf.mxu0  ;;  %v1090_v36 = vpop.f32.mrf.mxu1 }
 0x14a   :  { %1423 = vst [vmem:[%s3501_s3 + $0x300] sm:$0xff] %v640_v33  ;;  %1425 = vst [vmem:[%s3501_s3 + $0x310] sm:$0xff] %v1089_v34  ;;  %v642_v37 = vadd.f32 %v641_v35, %v2353_v52  ;;  %v1091_v38 = vadd.f32 %v1090_v36, %v2355_v53 }
 0x14b   :  { %v645_v39 = vpop.f32.mrf.mxu0  ;;  %v1094_v40 = vpop.f32.mrf.mxu1 }
 0x14c   :  { %1424 = vst [vmem:[%s3501_s3 + $0x308] sm:$0xff] %v642_v37  ;;  %1426 = vst [vmem:[%s3501_s3 + $0x318] sm:$0xff] %v1091_v38  ;;  %v646_v41 = vadd.f32 %v645_v39, %v2343_v48  ;;  %v1095_v42 = vadd.f32 %v1094_v40, %v2348_v50 }
 0x14d   :  { %v647_v43 = vpop.f32.mrf.mxu0  ;;  %v1096_v44 = vpop.f32.mrf.mxu1 }
 0x14e   :  { %1427 = vst [vmem:[%s3501_s3 + $0x320] sm:$0xff] %v646_v41  ;;  %1429 = vst [vmem:[%s3501_s3 + $0x330] sm:$0xff] %v1095_v42  ;;  %v648_v45 = vadd.f32 %v647_v43, %v2353_v52  ;;  %v1097_v46 = vadd.f32 %v1096_v44, %v2355_v53 }
 0x14f   :  { %v651_v47 = vpop.f32.mrf.mxu0  ;;  %v1100_v49 = vpop.f32.mrf.mxu1 }
 0x150   :  { %1428 = vst [vmem:[%s3501_s3 + $0x328] sm:$0xff] %v648_v45  ;;  %1430 = vst [vmem:[%s3501_s3 + $0x338] sm:$0xff] %v1097_v46  ;;  %v652_v51 = vadd.f32 %v651_v47, %v2343_v48  ;;  %v1101_v54 = vadd.f32 %v1100_v49, %v2348_v50 }
 0x151   :  { %v653_v55 = vpop.f32.mrf.mxu0  ;;  %v1102_v56 = vpop.f32.mrf.mxu1 }
 0x152   :  { %1431 = vst [vmem:[%s3501_s3 + $0x340] sm:$0xff] %v652_v51  ;;  %1433 = vst [vmem:[%s3501_s3 + $0x350] sm:$0xff] %v1101_v54  ;;  %v654_v57 = vadd.f32 %v653_v55, %v2353_v52  ;;  %v1103_v58 = vadd.f32 %v1102_v56, %v2355_v53 }
 0x153   :  { %v657_v59 = vpop.f32.mrf.mxu0  ;;  %v1106_v60 = vpop.f32.mrf.mxu1 }
 0x154   :  { %1432 = vst [vmem:[%s3501_s3 + $0x348] sm:$0xff] %v654_v57  ;;  %1434 = vst [vmem:[%s3501_s3 + $0x358] sm:$0xff] %v1103_v58  ;;  %v658_v61 = vadd.f32 %v657_v59, %v2343_v48  ;;  %v1107_v62 = vadd.f32 %v1106_v60, %v2348_v50 }
 0x155   :  { %v659_v63 = vpop.f32.mrf.mxu0  ;;  %v1108_v0 = vpop.f32.mrf.mxu1 }
 0x156   :  { %1435 = vst [vmem:[%s3501_s3 + $0x360] sm:$0xff] %v658_v61  ;;  %1437 = vst [vmem:[%s3501_s3 + $0x370] sm:$0xff] %v1107_v62  ;;  %v660_v1 = vadd.f32 %v659_v63, %v2353_v52  ;;  %v1109_v2 = vadd.f32 %v1108_v0, %v2355_v53 }
 0x157   :  { %v663_v3 = vpop.f32.mrf.mxu0  ;;  %v1112_v4 = vpop.f32.mrf.mxu1 }
 0x158   :  { %1436 = vst [vmem:[%s3501_s3 + $0x368] sm:$0xff] %v660_v1  ;;  %1438 = vst [vmem:[%s3501_s3 + $0x378] sm:$0xff] %v1109_v2  ;;  %v664_v5 = vadd.f32 %v663_v3, %v2343_v48  ;;  %v1113_v6 = vadd.f32 %v1112_v4, %v2348_v50 }
 0x159   :  { %v665_v7 = vpop.f32.mrf.mxu0  ;;  %v1114_v8 = vpop.f32.mrf.mxu1 }
 0x15a   :  { %1439 = vst [vmem:[%s3501_s3 + $0x380] sm:$0xff] %v664_v5  ;;  %1441 = vst [vmem:[%s3501_s3 + $0x390] sm:$0xff] %v1113_v6  ;;  %v666_v9 = vadd.f32 %v665_v7, %v2353_v52  ;;  %v1115_v10 = vadd.f32 %v1114_v8, %v2355_v53 }
 0x15b   :  { %v669_v11 = vpop.f32.mrf.mxu0  ;;  %v1118_v12 = vpop.f32.mrf.mxu1 }
 0x15c   :  { %1440 = vst [vmem:[%s3501_s3 + $0x388] sm:$0xff] %v666_v9  ;;  %1442 = vst [vmem:[%s3501_s3 + $0x398] sm:$0xff] %v1115_v10  ;;  %v670_v13 = vadd.f32 %v669_v11, %v2343_v48  ;;  %v1119_v14 = vadd.f32 %v1118_v12, %v2348_v50 }
 0x15d   :  { %v671_v15 = vpop.f32.mrf.mxu0  ;;  %v1120_v16 = vpop.f32.mrf.mxu1 }
 0x15e   :  { %1443 = vst [vmem:[%s3501_s3 + $0x3a0] sm:$0xff] %v670_v13  ;;  %1445 = vst [vmem:[%s3501_s3 + $0x3b0] sm:$0xff] %v1119_v14  ;;  %v672_v17 = vadd.f32 %v671_v15, %v2353_v52  ;;  %v1121_v18 = vadd.f32 %v1120_v16, %v2355_v53 }
 0x15f   :  { %v675_v19 = vpop.f32.mrf.mxu0  ;;  %v1124_v20 = vpop.f32.mrf.mxu1 }
 0x160   :  { %1444 = vst [vmem:[%s3501_s3 + $0x3a8] sm:$0xff] %v672_v17  ;;  %1446 = vst [vmem:[%s3501_s3 + $0x3b8] sm:$0xff] %v1121_v18  ;;  %v676_v21 = vadd.f32 %v675_v19, %v2343_v48  ;;  %v1125_v22 = vadd.f32 %v1124_v20, %v2348_v50 }
 0x161   :  { %v677_v23 = vpop.f32.mrf.mxu0  ;;  %v1126_v24 = vpop.f32.mrf.mxu1 }
 0x162   :  { %1447 = vst [vmem:[%s3501_s3 + $0x3c0] sm:$0xff] %v676_v21  ;;  %1449 = vst [vmem:[%s3501_s3 + $0x3d0] sm:$0xff] %v1125_v22  ;;  %v678_v25 = vadd.f32 %v677_v23, %v2353_v52  ;;  %v1127_v26 = vadd.f32 %v1126_v24, %v2355_v53 }
 0x163   :  { %v681_v27 = vpop.f32.mrf.mxu0  ;;  %v1130_v28 = vpop.f32.mrf.mxu1 }
 0x164   :  { %1448 = vst [vmem:[%s3501_s3 + $0x3c8] sm:$0xff] %v678_v25  ;;  %1450 = vst [vmem:[%s3501_s3 + $0x3d8] sm:$0xff] %v1127_v26  ;;  %v682_v29 = vadd.f32 %v681_v27, %v2343_v48  ;;  %v1131_v30 = vadd.f32 %v1130_v28, %v2348_v50 }
 0x165   :  { %v683_v31 = vpop.f32.mrf.mxu0  ;;  %v1132_v32 = vpop.f32.mrf.mxu1 }
 0x166   :  { %1451 = vst [vmem:[%s3501_s3 + $0x3e0] sm:$0xff] %v682_v29  ;;  %1453 = vst [vmem:[%s3501_s3 + $0x3f0] sm:$0xff] %v1131_v30  ;;  %v684_v33 = vadd.f32 %v683_v31, %v2353_v52  ;;  %v1133_v34 = vadd.f32 %v1132_v32, %v2355_v53 }
 0x167   :  { %v687_v35 = vpop.f32.mrf.mxu0  ;;  %v1136_v36 = vpop.f32.mrf.mxu1 }
 0x168   :  { %1452 = vst [vmem:[%s3501_s3 + $0x3e8] sm:$0xff] %v684_v33  ;;  %1454 = vst [vmem:[%s3501_s3 + $0x3f8] sm:$0xff] %v1133_v34  ;;  %v688_v37 = vadd.f32 %v687_v35, %v2343_v48  ;;  %v1137_v38 = vadd.f32 %v1136_v36, %v2348_v50 }
 0x169   :  { %v689_v39 = vpop.f32.mrf.mxu0  ;;  %v1138_v40 = vpop.f32.mrf.mxu1 }
 0x16a   :  { %1455 = vst [vmem:[%s3501_s3 + $0x400] sm:$0xff] %v688_v37  ;;  %1457 = vst [vmem:[%s3501_s3 + $0x410] sm:$0xff] %v1137_v38  ;;  %v690_v41 = vadd.f32 %v689_v39, %v2353_v52  ;;  %v1139_v42 = vadd.f32 %v1138_v40, %v2355_v53 }
 0x16b   :  { %v693_v43 = vpop.f32.mrf.mxu0  ;;  %v1142_v44 = vpop.f32.mrf.mxu1 }
 0x16c   :  { %1456 = vst [vmem:[%s3501_s3 + $0x408] sm:$0xff] %v690_v41  ;;  %1458 = vst [vmem:[%s3501_s3 + $0x418] sm:$0xff] %v1139_v42  ;;  %v694_v45 = vadd.f32 %v693_v43, %v2343_v48  ;;  %v1143_v46 = vadd.f32 %v1142_v44, %v2348_v50 }
 0x16d   :  { %v695_v47 = vpop.f32.mrf.mxu0  ;;  %v1144_v49 = vpop.f32.mrf.mxu1 }
 0x16e   :  { %1459 = vst [vmem:[%s3501_s3 + $0x420] sm:$0xff] %v694_v45  ;;  %1461 = vst [vmem:[%s3501_s3 + $0x430] sm:$0xff] %v1143_v46  ;;  %v696_v51 = vadd.f32 %v695_v47, %v2353_v52  ;;  %v1145_v54 = vadd.f32 %v1144_v49, %v2355_v53 }
 0x16f   :  { %v699_v55 = vpop.f32.mrf.mxu0  ;;  %v1148_v56 = vpop.f32.mrf.mxu1 }
 0x170   :  { %1460 = vst [vmem:[%s3501_s3 + $0x428] sm:$0xff] %v696_v51  ;;  %1462 = vst [vmem:[%s3501_s3 + $0x438] sm:$0xff] %v1145_v54  ;;  %v700_v57 = vadd.f32 %v699_v55, %v2343_v48  ;;  %v1149_v58 = vadd.f32 %v1148_v56, %v2348_v50 }
 0x171   :  { %v701_v59 = vpop.f32.mrf.mxu0  ;;  %v1150_v60 = vpop.f32.mrf.mxu1 }
 0x172   :  { %1463 = vst [vmem:[%s3501_s3 + $0x440] sm:$0xff] %v700_v57  ;;  %1465 = vst [vmem:[%s3501_s3 + $0x450] sm:$0xff] %v1149_v58  ;;  %v702_v61 = vadd.f32 %v701_v59, %v2353_v52  ;;  %v1151_v62 = vadd.f32 %v1150_v60, %v2355_v53 }
 0x173   :  { %v705_v63 = vpop.f32.mrf.mxu0  ;;  %v1154_v0 = vpop.f32.mrf.mxu1 }
 0x174   :  { %1464 = vst [vmem:[%s3501_s3 + $0x448] sm:$0xff] %v702_v61  ;;  %1466 = vst [vmem:[%s3501_s3 + $0x458] sm:$0xff] %v1151_v62  ;;  %v706_v1 = vadd.f32 %v705_v63, %v2343_v48  ;;  %v1155_v2 = vadd.f32 %v1154_v0, %v2348_v50 }
 0x175   :  { %v707_v3 = vpop.f32.mrf.mxu0  ;;  %v1156_v4 = vpop.f32.mrf.mxu1 }
 0x176   :  { %1467 = vst [vmem:[%s3501_s3 + $0x460] sm:$0xff] %v706_v1  ;;  %1469 = vst [vmem:[%s3501_s3 + $0x470] sm:$0xff] %v1155_v2  ;;  %v708_v5 = vadd.f32 %v707_v3, %v2353_v52  ;;  %v1157_v6 = vadd.f32 %v1156_v4, %v2355_v53 }
 0x177   :  { %v711_v7 = vpop.f32.mrf.mxu0  ;;  %v1160_v8 = vpop.f32.mrf.mxu1 }
 0x178   :  { %1468 = vst [vmem:[%s3501_s3 + $0x468] sm:$0xff] %v708_v5  ;;  %1470 = vst [vmem:[%s3501_s3 + $0x478] sm:$0xff] %v1157_v6  ;;  %v712_v9 = vadd.f32 %v711_v7, %v2343_v48  ;;  %v1161_v10 = vadd.f32 %v1160_v8, %v2348_v50 }
 0x179   :  { %v713_v11 = vpop.f32.mrf.mxu0  ;;  %v1162_v12 = vpop.f32.mrf.mxu1 }
 0x17a   :  { %1471 = vst [vmem:[%s3501_s3 + $0x480] sm:$0xff] %v712_v9  ;;  %1473 = vst [vmem:[%s3501_s3 + $0x490] sm:$0xff] %v1161_v10  ;;  %v714_v13 = vadd.f32 %v713_v11, %v2353_v52  ;;  %v1163_v14 = vadd.f32 %v1162_v12, %v2355_v53 }
 0x17b   :  { %v717_v15 = vpop.f32.mrf.mxu0  ;;  %v1166_v16 = vpop.f32.mrf.mxu1 }
 0x17c   :  { %1472 = vst [vmem:[%s3501_s3 + $0x488] sm:$0xff] %v714_v13  ;;  %1474 = vst [vmem:[%s3501_s3 + $0x498] sm:$0xff] %v1163_v14  ;;  %v718_v17 = vadd.f32 %v717_v15, %v2343_v48  ;;  %v1167_v18 = vadd.f32 %v1166_v16, %v2348_v50 }
 0x17d   :  { %v719_v19 = vpop.f32.mrf.mxu0  ;;  %v1168_v20 = vpop.f32.mrf.mxu1 }
 0x17e   :  { %1475 = vst [vmem:[%s3501_s3 + $0x4a0] sm:$0xff] %v718_v17  ;;  %1477 = vst [vmem:[%s3501_s3 + $0x4b0] sm:$0xff] %v1167_v18  ;;  %v720_v21 = vadd.f32 %v719_v19, %v2353_v52  ;;  %v1169_v22 = vadd.f32 %v1168_v20, %v2355_v53 }
 0x17f   :  { %v723_v23 = vpop.f32.mrf.mxu0  ;;  %v1172_v24 = vpop.f32.mrf.mxu1 }
 0x180   :  { %1476 = vst [vmem:[%s3501_s3 + $0x4a8] sm:$0xff] %v720_v21  ;;  %1478 = vst [vmem:[%s3501_s3 + $0x4b8] sm:$0xff] %v1169_v22  ;;  %v724_v25 = vadd.f32 %v723_v23, %v2343_v48  ;;  %v1173_v26 = vadd.f32 %v1172_v24, %v2348_v50 }
 0x181   :  { %v725_v27 = vpop.f32.mrf.mxu0  ;;  %v1174_v28 = vpop.f32.mrf.mxu1 }
 0x182   :  { %1479 = vst [vmem:[%s3501_s3 + $0x4c0] sm:$0xff] %v724_v25  ;;  %1481 = vst [vmem:[%s3501_s3 + $0x4d0] sm:$0xff] %v1173_v26  ;;  %v726_v29 = vadd.f32 %v725_v27, %v2353_v52  ;;  %v1175_v30 = vadd.f32 %v1174_v28, %v2355_v53 }
 0x183   :  { %v729_v31 = vpop.f32.mrf.mxu0  ;;  %v1178_v32 = vpop.f32.mrf.mxu1 }
 0x184   :  { %1480 = vst [vmem:[%s3501_s3 + $0x4c8] sm:$0xff] %v726_v29  ;;  %1482 = vst [vmem:[%s3501_s3 + $0x4d8] sm:$0xff] %v1175_v30  ;;  %v730_v33 = vadd.f32 %v729_v31, %v2343_v48  ;;  %v1179_v34 = vadd.f32 %v1178_v32, %v2348_v50 }
 0x185   :  { %v731_v35 = vpop.f32.mrf.mxu0  ;;  %v1180_v36 = vpop.f32.mrf.mxu1 }
 0x186   :  { %1483 = vst [vmem:[%s3501_s3 + $0x4e0] sm:$0xff] %v730_v33  ;;  %1485 = vst [vmem:[%s3501_s3 + $0x4f0] sm:$0xff] %v1179_v34  ;;  %v732_v37 = vadd.f32 %v731_v35, %v2353_v52  ;;  %v1181_v38 = vadd.f32 %v1180_v36, %v2355_v53 }
 0x187   :  { %v735_v39 = vpop.f32.mrf.mxu0  ;;  %v1184_v40 = vpop.f32.mrf.mxu1 }
 0x188   :  { %1484 = vst [vmem:[%s3501_s3 + $0x4e8] sm:$0xff] %v732_v37  ;;  %1486 = vst [vmem:[%s3501_s3 + $0x4f8] sm:$0xff] %v1181_v38  ;;  %v736_v41 = vadd.f32 %v735_v39, %v2343_v48  ;;  %v1185_v42 = vadd.f32 %v1184_v40, %v2348_v50 }
 0x189   :  { %v737_v43 = vpop.f32.mrf.mxu0  ;;  %v1186_v44 = vpop.f32.mrf.mxu1 }
 0x18a   :  { %1487 = vst [vmem:[%s3501_s3 + $0x500] sm:$0xff] %v736_v41  ;;  %1489 = vst [vmem:[%s3501_s3 + $0x510] sm:$0xff] %v1185_v42  ;;  %v738_v45 = vadd.f32 %v737_v43, %v2353_v52  ;;  %v1187_v46 = vadd.f32 %v1186_v44, %v2355_v53 }
 0x18b   :  { %v741_v47 = vpop.f32.mrf.mxu0  ;;  %v1190_v49 = vpop.f32.mrf.mxu1 }
 0x18c   :  { %1488 = vst [vmem:[%s3501_s3 + $0x508] sm:$0xff] %v738_v45  ;;  %1490 = vst [vmem:[%s3501_s3 + $0x518] sm:$0xff] %v1187_v46  ;;  %v742_v51 = vadd.f32 %v741_v47, %v2343_v48  ;;  %v1191_v54 = vadd.f32 %v1190_v49, %v2348_v50 }
 0x18d   :  { %v743_v55 = vpop.f32.mrf.mxu0  ;;  %v1192_v56 = vpop.f32.mrf.mxu1 }
 0x18e   :  { %1491 = vst [vmem:[%s3501_s3 + $0x520] sm:$0xff] %v742_v51  ;;  %1493 = vst [vmem:[%s3501_s3 + $0x530] sm:$0xff] %v1191_v54  ;;  %v744_v57 = vadd.f32 %v743_v55, %v2353_v52  ;;  %v1193_v58 = vadd.f32 %v1192_v56, %v2355_v53 }
 0x18f   :  { %v747_v59 = vpop.f32.mrf.mxu0  ;;  %v1196_v60 = vpop.f32.mrf.mxu1 }
 0x190   :  { %1492 = vst [vmem:[%s3501_s3 + $0x528] sm:$0xff] %v744_v57  ;;  %1494 = vst [vmem:[%s3501_s3 + $0x538] sm:$0xff] %v1193_v58  ;;  %v748_v61 = vadd.f32 %v747_v59, %v2343_v48  ;;  %v1197_v62 = vadd.f32 %v1196_v60, %v2348_v50 }
 0x191   :  { %v749_v63 = vpop.f32.mrf.mxu0  ;;  %v1198_v0 = vpop.f32.mrf.mxu1 }
 0x192   :  { %1495 = vst [vmem:[%s3501_s3 + $0x540] sm:$0xff] %v748_v61  ;;  %1497 = vst [vmem:[%s3501_s3 + $0x550] sm:$0xff] %v1197_v62  ;;  %v750_v1 = vadd.f32 %v749_v63, %v2353_v52  ;;  %v1199_v2 = vadd.f32 %v1198_v0, %v2355_v53 }
 0x193   :  { %v753_v3 = vpop.f32.mrf.mxu0  ;;  %v1202_v4 = vpop.f32.mrf.mxu1 }
 0x194   :  { %1496 = vst [vmem:[%s3501_s3 + $0x548] sm:$0xff] %v750_v1  ;;  %1498 = vst [vmem:[%s3501_s3 + $0x558] sm:$0xff] %v1199_v2  ;;  %v754_v5 = vadd.f32 %v753_v3, %v2343_v48  ;;  %v1203_v6 = vadd.f32 %v1202_v4, %v2348_v50 }
 0x195   :  { %v755_v7 = vpop.f32.mrf.mxu0  ;;  %v1204_v8 = vpop.f32.mrf.mxu1 }
 0x196   :  { %1499 = vst [vmem:[%s3501_s3 + $0x560] sm:$0xff] %v754_v5  ;;  %1501 = vst [vmem:[%s3501_s3 + $0x570] sm:$0xff] %v1203_v6  ;;  %v756_v9 = vadd.f32 %v755_v7, %v2353_v52  ;;  %v1205_v10 = vadd.f32 %v1204_v8, %v2355_v53 }
 0x197   :  { %v759_v11 = vpop.f32.mrf.mxu0  ;;  %v1208_v12 = vpop.f32.mrf.mxu1 }
 0x198   :  { %1500 = vst [vmem:[%s3501_s3 + $0x568] sm:$0xff] %v756_v9  ;;  %1502 = vst [vmem:[%s3501_s3 + $0x578] sm:$0xff] %v1205_v10  ;;  %v760_v13 = vadd.f32 %v759_v11, %v2343_v48  ;;  %v1209_v14 = vadd.f32 %v1208_v12, %v2348_v50 }
 0x199   :  { %v761_v15 = vpop.f32.mrf.mxu0  ;;  %v1210_v16 = vpop.f32.mrf.mxu1 }
 0x19a   :  { %1503 = vst [vmem:[%s3501_s3 + $0x580] sm:$0xff] %v760_v13  ;;  %1505 = vst [vmem:[%s3501_s3 + $0x590] sm:$0xff] %v1209_v14  ;;  %v762_v17 = vadd.f32 %v761_v15, %v2353_v52  ;;  %v1211_v18 = vadd.f32 %v1210_v16, %v2355_v53 }
 0x19b   :  { %v765_v19 = vpop.f32.mrf.mxu0  ;;  %v1214_v20 = vpop.f32.mrf.mxu1 }
 0x19c   :  { %1504 = vst [vmem:[%s3501_s3 + $0x588] sm:$0xff] %v762_v17  ;;  %1506 = vst [vmem:[%s3501_s3 + $0x598] sm:$0xff] %v1211_v18  ;;  %v766_v21 = vadd.f32 %v765_v19, %v2343_v48  ;;  %v1215_v22 = vadd.f32 %v1214_v20, %v2348_v50 }
 0x19d   :  { %v767_v23 = vpop.f32.mrf.mxu0  ;;  %v1216_v24 = vpop.f32.mrf.mxu1 }
 0x19e   :  { %1507 = vst [vmem:[%s3501_s3 + $0x5a0] sm:$0xff] %v766_v21  ;;  %1509 = vst [vmem:[%s3501_s3 + $0x5b0] sm:$0xff] %v1215_v22  ;;  %v768_v25 = vadd.f32 %v767_v23, %v2353_v52  ;;  %v1217_v26 = vadd.f32 %v1216_v24, %v2355_v53 }
 0x19f   :  { %v771_v27 = vpop.f32.mrf.mxu0  ;;  %v1220_v28 = vpop.f32.mrf.mxu1 }
 0x1a0   :  { %1508 = vst [vmem:[%s3501_s3 + $0x5a8] sm:$0xff] %v768_v25  ;;  %1510 = vst [vmem:[%s3501_s3 + $0x5b8] sm:$0xff] %v1217_v26  ;;  %v772_v29 = vadd.f32 %v771_v27, %v2343_v48  ;;  %v1221_v30 = vadd.f32 %v1220_v28, %v2348_v50 }
 0x1a1   :  { %v773_v31 = vpop.f32.mrf.mxu0  ;;  %v1222_v32 = vpop.f32.mrf.mxu1 }
 0x1a2   :  { %1511 = vst [vmem:[%s3501_s3 + $0x5c0] sm:$0xff] %v772_v29  ;;  %1513 = vst [vmem:[%s3501_s3 + $0x5d0] sm:$0xff] %v1221_v30  ;;  %v774_v33 = vadd.f32 %v773_v31, %v2353_v52  ;;  %v1223_v34 = vadd.f32 %v1222_v32, %v2355_v53 }
 0x1a3   :  { %v777_v35 = vpop.f32.mrf.mxu0  ;;  %v1226_v36 = vpop.f32.mrf.mxu1 }
 0x1a4   :  { %1512 = vst [vmem:[%s3501_s3 + $0x5c8] sm:$0xff] %v774_v33  ;;  %1514 = vst [vmem:[%s3501_s3 + $0x5d8] sm:$0xff] %v1223_v34  ;;  %v778_v37 = vadd.f32 %v777_v35, %v2343_v48  ;;  %v1227_v38 = vadd.f32 %v1226_v36, %v2348_v50 }
 0x1a5   :  { %v779_v39 = vpop.f32.mrf.mxu0  ;;  %v1228_v40 = vpop.f32.mrf.mxu1 }
 0x1a6   :  { %1515 = vst [vmem:[%s3501_s3 + $0x5e0] sm:$0xff] %v778_v37  ;;  %1517 = vst [vmem:[%s3501_s3 + $0x5f0] sm:$0xff] %v1227_v38  ;;  %v780_v41 = vadd.f32 %v779_v39, %v2353_v52  ;;  %v1229_v42 = vadd.f32 %v1228_v40, %v2355_v53 }
 0x1a7   :  { %v783_v43 = vpop.f32.mrf.mxu0  ;;  %v1232_v44 = vpop.f32.mrf.mxu1 }
 0x1a8   :  { %1516 = vst [vmem:[%s3501_s3 + $0x5e8] sm:$0xff] %v780_v41  ;;  %1518 = vst [vmem:[%s3501_s3 + $0x5f8] sm:$0xff] %v1229_v42  ;;  %v784_v45 = vadd.f32 %v783_v43, %v2343_v48  ;;  %v1233_v46 = vadd.f32 %v1232_v44, %v2348_v50 }
 0x1a9   :  { %v785_v47 = vpop.f32.mrf.mxu0  ;;  %v1234_v49 = vpop.f32.mrf.mxu1 }
 0x1aa   :  { %1519 = vst [vmem:[%s3501_s3 + $0x600] sm:$0xff] %v784_v45  ;;  %1521 = vst [vmem:[%s3501_s3 + $0x610] sm:$0xff] %v1233_v46  ;;  %v786_v51 = vadd.f32 %v785_v47, %v2353_v52  ;;  %v1235_v54 = vadd.f32 %v1234_v49, %v2355_v53 }
 0x1ab   :  { %v789_v55 = vpop.f32.mrf.mxu0  ;;  %v1238_v56 = vpop.f32.mrf.mxu1 }
 0x1ac   :  { %1520 = vst [vmem:[%s3501_s3 + $0x608] sm:$0xff] %v786_v51  ;;  %1522 = vst [vmem:[%s3501_s3 + $0x618] sm:$0xff] %v1235_v54  ;;  %v790_v57 = vadd.f32 %v789_v55, %v2343_v48  ;;  %v1239_v58 = vadd.f32 %v1238_v56, %v2348_v50 }
 0x1ad   :  { %v791_v59 = vpop.f32.mrf.mxu0  ;;  %v1240_v60 = vpop.f32.mrf.mxu1 }
 0x1ae   :  { %1523 = vst [vmem:[%s3501_s3 + $0x620] sm:$0xff] %v790_v57  ;;  %1525 = vst [vmem:[%s3501_s3 + $0x630] sm:$0xff] %v1239_v58  ;;  %v792_v61 = vadd.f32 %v791_v59, %v2353_v52  ;;  %v1241_v62 = vadd.f32 %v1240_v60, %v2355_v53 }
 0x1af   :  { %v795_v63 = vpop.f32.mrf.mxu0  ;;  %v1244_v0 = vpop.f32.mrf.mxu1 }
 0x1b0   :  { %1524 = vst [vmem:[%s3501_s3 + $0x628] sm:$0xff] %v792_v61  ;;  %1526 = vst [vmem:[%s3501_s3 + $0x638] sm:$0xff] %v1241_v62  ;;  %v796_v1 = vadd.f32 %v795_v63, %v2343_v48  ;;  %v1245_v2 = vadd.f32 %v1244_v0, %v2348_v50 }
 0x1b1   :  { %v797_v3 = vpop.f32.mrf.mxu0  ;;  %v1246_v4 = vpop.f32.mrf.mxu1 }
 0x1b2   :  { %1527 = vst [vmem:[%s3501_s3 + $0x640] sm:$0xff] %v796_v1  ;;  %1529 = vst [vmem:[%s3501_s3 + $0x650] sm:$0xff] %v1245_v2  ;;  %v798_v5 = vadd.f32 %v797_v3, %v2353_v52  ;;  %v1247_v6 = vadd.f32 %v1246_v4, %v2355_v53 }
 0x1b3   :  { %v801_v7 = vpop.f32.mrf.mxu0  ;;  %v1250_v8 = vpop.f32.mrf.mxu1 }
 0x1b4   :  { %1528 = vst [vmem:[%s3501_s3 + $0x648] sm:$0xff] %v798_v5  ;;  %1530 = vst [vmem:[%s3501_s3 + $0x658] sm:$0xff] %v1247_v6  ;;  %v802_v9 = vadd.f32 %v801_v7, %v2343_v48  ;;  %v1251_v10 = vadd.f32 %v1250_v8, %v2348_v50 }
 0x1b5   :  { %v803_v11 = vpop.f32.mrf.mxu0  ;;  %v1252_v12 = vpop.f32.mrf.mxu1 }
 0x1b6   :  { %1531 = vst [vmem:[%s3501_s3 + $0x660] sm:$0xff] %v802_v9  ;;  %1533 = vst [vmem:[%s3501_s3 + $0x670] sm:$0xff] %v1251_v10  ;;  %v804_v13 = vadd.f32 %v803_v11, %v2353_v52  ;;  %v1253_v14 = vadd.f32 %v1252_v12, %v2355_v53 }
 0x1b7   :  { %v807_v15 = vpop.f32.mrf.mxu0  ;;  %v1256_v16 = vpop.f32.mrf.mxu1 }
 0x1b8   :  { %1532 = vst [vmem:[%s3501_s3 + $0x668] sm:$0xff] %v804_v13  ;;  %1534 = vst [vmem:[%s3501_s3 + $0x678] sm:$0xff] %v1253_v14  ;;  %v808_v17 = vadd.f32 %v807_v15, %v2343_v48  ;;  %v1257_v18 = vadd.f32 %v1256_v16, %v2348_v50 }
 0x1b9   :  { %v809_v19 = vpop.f32.mrf.mxu0  ;;  %v1258_v20 = vpop.f32.mrf.mxu1 }
 0x1ba   :  { %1535 = vst [vmem:[%s3501_s3 + $0x680] sm:$0xff] %v808_v17  ;;  %1537 = vst [vmem:[%s3501_s3 + $0x690] sm:$0xff] %v1257_v18  ;;  %v810_v21 = vadd.f32 %v809_v19, %v2353_v52  ;;  %v1259_v22 = vadd.f32 %v1258_v20, %v2355_v53 }
 0x1bb   :  { %v813_v23 = vpop.f32.mrf.mxu0  ;;  %v1262_v24 = vpop.f32.mrf.mxu1 }
 0x1bc   :  { %1536 = vst [vmem:[%s3501_s3 + $0x688] sm:$0xff] %v810_v21  ;;  %1538 = vst [vmem:[%s3501_s3 + $0x698] sm:$0xff] %v1259_v22  ;;  %v814_v25 = vadd.f32 %v813_v23, %v2343_v48  ;;  %v1263_v26 = vadd.f32 %v1262_v24, %v2348_v50 }
 0x1bd   :  { %v815_v27 = vpop.f32.mrf.mxu0  ;;  %v1264_v28 = vpop.f32.mrf.mxu1 }
 0x1be   :  { %1539 = vst [vmem:[%s3501_s3 + $0x6a0] sm:$0xff] %v814_v25  ;;  %1541 = vst [vmem:[%s3501_s3 + $0x6b0] sm:$0xff] %v1263_v26  ;;  %v816_v29 = vadd.f32 %v815_v27, %v2353_v52  ;;  %v1265_v30 = vadd.f32 %v1264_v28, %v2355_v53 }
 0x1bf   :  { %v819_v31 = vpop.f32.mrf.mxu0  ;;  %v1268_v32 = vpop.f32.mrf.mxu1 }
 0x1c0   :  { %1540 = vst [vmem:[%s3501_s3 + $0x6a8] sm:$0xff] %v816_v29  ;;  %1542 = vst [vmem:[%s3501_s3 + $0x6b8] sm:$0xff] %v1265_v30  ;;  %v820_v33 = vadd.f32 %v819_v31, %v2343_v48  ;;  %v1269_v34 = vadd.f32 %v1268_v32, %v2348_v50 }
 0x1c1   :  { %v821_v35 = vpop.f32.mrf.mxu0  ;;  %v1270_v36 = vpop.f32.mrf.mxu1 }
 0x1c2   :  { %1543 = vst [vmem:[%s3501_s3 + $0x6c0] sm:$0xff] %v820_v33  ;;  %1545 = vst [vmem:[%s3501_s3 + $0x6d0] sm:$0xff] %v1269_v34  ;;  %v822_v37 = vadd.f32 %v821_v35, %v2353_v52  ;;  %v1271_v38 = vadd.f32 %v1270_v36, %v2355_v53 }
 0x1c3   :  { %v825_v39 = vpop.f32.mrf.mxu0  ;;  %v1274_v40 = vpop.f32.mrf.mxu1 }
 0x1c4   :  { %1544 = vst [vmem:[%s3501_s3 + $0x6c8] sm:$0xff] %v822_v37  ;;  %1546 = vst [vmem:[%s3501_s3 + $0x6d8] sm:$0xff] %v1271_v38  ;;  %v826_v41 = vadd.f32 %v825_v39, %v2343_v48  ;;  %v1275_v42 = vadd.f32 %v1274_v40, %v2348_v50 }
 0x1c5   :  { %v827_v43 = vpop.f32.mrf.mxu0  ;;  %v1276_v44 = vpop.f32.mrf.mxu1 }
 0x1c6   :  { %1547 = vst [vmem:[%s3501_s3 + $0x6e0] sm:$0xff] %v826_v41  ;;  %1549 = vst [vmem:[%s3501_s3 + $0x6f0] sm:$0xff] %v1275_v42  ;;  %v828_v45 = vadd.f32 %v827_v43, %v2353_v52  ;;  %v1277_v46 = vadd.f32 %v1276_v44, %v2355_v53 }
 0x1c7   :  { %v831_v47 = vpop.f32.mrf.mxu0  ;;  %v1280_v49 = vpop.f32.mrf.mxu1 }
 0x1c8   :  { %1548 = vst [vmem:[%s3501_s3 + $0x6e8] sm:$0xff] %v828_v45  ;;  %1550 = vst [vmem:[%s3501_s3 + $0x6f8] sm:$0xff] %v1277_v46  ;;  %v832_v51 = vadd.f32 %v831_v47, %v2343_v48  ;;  %v1281_v54 = vadd.f32 %v1280_v49, %v2348_v50 }
 0x1c9   :  { %v833_v55 = vpop.f32.mrf.mxu0  ;;  %v1282_v56 = vpop.f32.mrf.mxu1 }
 0x1ca   :  { %1551 = vst [vmem:[%s3501_s3 + $0x700] sm:$0xff] %v832_v51  ;;  %1553 = vst [vmem:[%s3501_s3 + $0x710] sm:$0xff] %v1281_v54  ;;  %v834_v57 = vadd.f32 %v833_v55, %v2353_v52  ;;  %v1283_v58 = vadd.f32 %v1282_v56, %v2355_v53 }
 0x1cb   :  { %v837_v59 = vpop.f32.mrf.mxu0  ;;  %v1286_v60 = vpop.f32.mrf.mxu1 }
 0x1cc   :  { %1552 = vst [vmem:[%s3501_s3 + $0x708] sm:$0xff] %v834_v57  ;;  %1554 = vst [vmem:[%s3501_s3 + $0x718] sm:$0xff] %v1283_v58  ;;  %v838_v61 = vadd.f32 %v837_v59, %v2343_v48  ;;  %v1287_v62 = vadd.f32 %v1286_v60, %v2348_v50 }
 0x1cd   :  { %v839_v63 = vpop.f32.mrf.mxu0  ;;  %v1288_v0 = vpop.f32.mrf.mxu1 }
 0x1ce   :  { %1555 = vst [vmem:[%s3501_s3 + $0x720] sm:$0xff] %v838_v61  ;;  %1557 = vst [vmem:[%s3501_s3 + $0x730] sm:$0xff] %v1287_v62  ;;  %v840_v1 = vadd.f32 %v839_v63, %v2353_v52  ;;  %v1289_v2 = vadd.f32 %v1288_v0, %v2355_v53 }
 0x1cf   :  { %v843_v3 = vpop.f32.mrf.mxu0  ;;  %v1292_v4 = vpop.f32.mrf.mxu1 }
 0x1d0   :  { %1556 = vst [vmem:[%s3501_s3 + $0x728] sm:$0xff] %v840_v1  ;;  %1558 = vst [vmem:[%s3501_s3 + $0x738] sm:$0xff] %v1289_v2  ;;  %v844_v5 = vadd.f32 %v843_v3, %v2343_v48  ;;  %v1293_v6 = vadd.f32 %v1292_v4, %v2348_v50 }
 0x1d1   :  { %v845_v7 = vpop.f32.mrf.mxu0  ;;  %v1294_v8 = vpop.f32.mrf.mxu1 }
 0x1d2   :  { %1559 = vst [vmem:[%s3501_s3 + $0x740] sm:$0xff] %v844_v5  ;;  %1561 = vst [vmem:[%s3501_s3 + $0x750] sm:$0xff] %v1293_v6  ;;  %v846_v9 = vadd.f32 %v845_v7, %v2353_v52  ;;  %v1295_v10 = vadd.f32 %v1294_v8, %v2355_v53 }
 0x1d3   :  { %v849_v11 = vpop.f32.mrf.mxu0  ;;  %v1298_v12 = vpop.f32.mrf.mxu1 }
 0x1d4   :  { %1560 = vst [vmem:[%s3501_s3 + $0x748] sm:$0xff] %v846_v9  ;;  %1562 = vst [vmem:[%s3501_s3 + $0x758] sm:$0xff] %v1295_v10  ;;  %v850_v13 = vadd.f32 %v849_v11, %v2343_v48  ;;  %v1299_v14 = vadd.f32 %v1298_v12, %v2348_v50 }
 0x1d5   :  { %v851_v15 = vpop.f32.mrf.mxu0  ;;  %v1300_v16 = vpop.f32.mrf.mxu1 }
 0x1d6   :  { %1563 = vst [vmem:[%s3501_s3 + $0x760] sm:$0xff] %v850_v13  ;;  %1565 = vst [vmem:[%s3501_s3 + $0x770] sm:$0xff] %v1299_v14  ;;  %v852_v17 = vadd.f32 %v851_v15, %v2353_v52  ;;  %v1301_v18 = vadd.f32 %v1300_v16, %v2355_v53 }
 0x1d7   :  { %v855_v19 = vpop.f32.mrf.mxu0  ;;  %v1304_v20 = vpop.f32.mrf.mxu1 }
 0x1d8   :  { %1564 = vst [vmem:[%s3501_s3 + $0x768] sm:$0xff] %v852_v17  ;;  %1566 = vst [vmem:[%s3501_s3 + $0x778] sm:$0xff] %v1301_v18  ;;  %v856_v21 = vadd.f32 %v855_v19, %v2343_v48  ;;  %v1305_v22 = vadd.f32 %v1304_v20, %v2348_v50 }
 0x1d9   :  { %v857_v23 = vpop.f32.mrf.mxu0  ;;  %v1306_v24 = vpop.f32.mrf.mxu1 }
 0x1da   :  { %1567 = vst [vmem:[%s3501_s3 + $0x780] sm:$0xff] %v856_v21  ;;  %1569 = vst [vmem:[%s3501_s3 + $0x790] sm:$0xff] %v1305_v22  ;;  %v858_v25 = vadd.f32 %v857_v23, %v2353_v52  ;;  %v1307_v26 = vadd.f32 %v1306_v24, %v2355_v53 }
 0x1db   :  { %v861_v27 = vpop.f32.mrf.mxu0  ;;  %v1310_v28 = vpop.f32.mrf.mxu1 }
 0x1dc   :  { %1568 = vst [vmem:[%s3501_s3 + $0x788] sm:$0xff] %v858_v25  ;;  %1570 = vst [vmem:[%s3501_s3 + $0x798] sm:$0xff] %v1307_v26  ;;  %v862_v29 = vadd.f32 %v861_v27, %v2343_v48  ;;  %v1311_v30 = vadd.f32 %v1310_v28, %v2348_v50 }
 0x1dd   :  { %v863_v31 = vpop.f32.mrf.mxu0  ;;  %v1312_v32 = vpop.f32.mrf.mxu1 }
 0x1de   :  { %1571 = vst [vmem:[%s3501_s3 + $0x7a0] sm:$0xff] %v862_v29  ;;  %1573 = vst [vmem:[%s3501_s3 + $0x7b0] sm:$0xff] %v1311_v30  ;;  %v864_v33 = vadd.f32 %v863_v31, %v2353_v52  ;;  %v1313_v34 = vadd.f32 %v1312_v32, %v2355_v53 }
 0x1df   :  { %v867_v35 = vpop.f32.mrf.mxu0  ;;  %v1316_v36 = vpop.f32.mrf.mxu1 }
 0x1e0   :  { %1572 = vst [vmem:[%s3501_s3 + $0x7a8] sm:$0xff] %v864_v33  ;;  %1574 = vst [vmem:[%s3501_s3 + $0x7b8] sm:$0xff] %v1313_v34  ;;  %v868_v37 = vadd.f32 %v867_v35, %v2343_v48  ;;  %v1317_v38 = vadd.f32 %v1316_v36, %v2348_v50 }
 0x1e1   :  { %v869_v39 = vpop.f32.mrf.mxu0  ;;  %v1318_v40 = vpop.f32.mrf.mxu1 }
 0x1e2   :  { %1575 = vst [vmem:[%s3501_s3 + $0x7c0] sm:$0xff] %v868_v37  ;;  %1577 = vst [vmem:[%s3501_s3 + $0x7d0] sm:$0xff] %v1317_v38  ;;  %v870_v41 = vadd.f32 %v869_v39, %v2353_v52  ;;  %v1319_v42 = vadd.f32 %v1318_v40, %v2355_v53 }
 0x1e3   :  { %v873_v43 = vpop.f32.mrf.mxu0  ;;  %v1322_v44 = vpop.f32.mrf.mxu1 }
 0x1e4   :  { %1576 = vst [vmem:[%s3501_s3 + $0x7c8] sm:$0xff] %v870_v41  ;;  %1578 = vst [vmem:[%s3501_s3 + $0x7d8] sm:$0xff] %v1319_v42  ;;  %v874_v45 = vadd.f32 %v873_v43, %v2343_v48  ;;  %v1323_v46 = vadd.f32 %v1322_v44, %v2348_v50 }
 0x1e5   :  { %v875_v47 = vpop.f32.mrf.mxu0  ;;  %v1324_v49 = vpop.f32.mrf.mxu1 }
 0x1e6   :  { %1579 = vst [vmem:[%s3501_s3 + $0x7e0] sm:$0xff] %v874_v45  ;;  %1581 = vst [vmem:[%s3501_s3 + $0x7f0] sm:$0xff] %v1323_v46  ;;  %v876_v51 = vadd.f32 %v875_v47, %v2353_v52  ;;  %v1325_v54 = vadd.f32 %v1324_v49, %v2355_v53 }
 0x1e8   :  { %1580 = vst [vmem:[%s3501_s3 + $0x7e8] sm:$0xff] %v876_v51  ;;  %1582 = vst [vmem:[%s3501_s3 + $0x7f8] sm:$0xff] %v1325_v54 }

</bundles_post_ra>
